<compile_context>
chip_gen: v7x
topology: tpu7x:2x2x1
jax: 0.10.0
libtpu: 0.0.40
codegen_flags: <defaults>
</compile_context>

<pallas_src>
import jax
import jax.numpy as jnp
from jax import lax
from jax.experimental import pallas as pl
from jax.experimental.pallas import tpu as pltpu

NUM_HEADS = 2
LN_EPS = 1e-5
LANE = 128

_LAYER_PARAM_ORDER = [
    "wq", "bq", "wk", "bk", "wv", "bv", "wo", "bo",
    "g1", "be1", "w1", "b1", "w2", "b2", "g2", "be2",
]
_BF16_WEIGHTS = {"wq", "wk", "wv", "wo", "w1", "w2"}   # MXU operands -> bf16


def _layernorm(x, g, b, eps=LN_EPS):
    mu = jnp.mean(x, axis=-1, keepdims=True)
    var = jnp.mean((x - mu) ** 2, axis=-1, keepdims=True)
    return (x - mu) * lax.rsqrt(var + eps) * g + b


def fused_encoder_classifier_kernel(
        x_ref, mneg_ref,
        wq, bq, wk, bk, wv, bv, wo, bo,
        g1, be1, w1, b1, w2, b2, g2, be2,
        wc, bc,
        logits_ref, x_sc):
    """One grid step = (batch element b, encoder layer l)."""
    l = pl.program_id(1)
    num_layers = pl.num_programs(1)

    @pl.when(l == 0)
    def _():                                   # load the embedding block once per batch elem
        x_sc[...] = x_ref[0]

    x = x_sc[...]                              # (S, H) f32 resident activations
    xb = x.astype(jnp.bfloat16)                # bf16 operands feed the MXU

    # ---- multi-head self-attention -------------------------------------------------
    q = jnp.dot(xb, wq[0], preferred_element_type=jnp.float32) + bq[0]     # (S, H) f32
    k = jnp.dot(xb, wk[0], preferred_element_type=jnp.float32) + bk[0]
    v = jnp.dot(xb, wv[0], preferred_element_type=jnp.float32) + bv[0]

    S, H = x.shape
    hd = H // NUM_HEADS                        # 128 -> full-lane head slices
    scale = 1.0 / (hd ** 0.5)
    mneg = mneg_ref[0]                         # (1, S) additive mask (0 / -1e9)

    k_t = k.T                                  # transpose K once per layer -> (H, S)
    heads = []
    for h in range(NUM_HEADS):                 # static unroll; slices are 128-lane blocks
        sl = slice(h * hd, (h + 1) * hd)
        qh = q[:, sl].astype(jnp.bfloat16)     # (S, hd)
        kh_t = k_t[sl, :].astype(jnp.bfloat16)  # (hd, S), already transposed
        vh = v[:, sl].astype(jnp.bfloat16)     # (S, hd)

        scores = jnp.dot(qh, kh_t, preferred_element_type=jnp.float32) * scale + mneg
        m = jnp.max(scores, axis=-1, keepdims=True)        # f32 softmax
        e = jnp.exp(scores - m)
        p = e * pl.reciprocal(jnp.sum(e, axis=-1, keepdims=True), approx=True)
        heads.append(jnp.dot(p.astype(jnp.bfloat16), vh,
                             preferred_element_type=jnp.float32))          # (S, hd)

    ctx = jnp.concatenate(heads, axis=-1)      # (S, H) concat at 128-lane boundaries
    attn = jnp.dot(ctx.astype(jnp.bfloat16), wo[0],
                   preferred_element_type=jnp.float32) + bo[0]             # single out-proj

    x1 = _layernorm(x + attn, g1[0], be1[0])   # post-LN, f32

    # ---- feed-forward ---------------------------------------------------------------
    h1 = jnp.dot(x1.astype(jnp.bfloat16), w1[0],
                 preferred_element_type=jnp.float32) + b1[0]
    h1 = jax.nn.gelu(h1)                       # f32 vector math (tanh-GELU, see TODO above)
    ff = jnp.dot(h1.astype(jnp.bfloat16), w2[0],
                 preferred_element_type=jnp.float32) + b2[0]
    x2 = _layernorm(x1 + ff, g2[0], be2[0])

    x_sc[...] = x2                             # stays in VMEM for layer l+1

    # ---- classifier head, fused into the last layer ---------------------------------
    @pl.when(l == num_layers - 1)
    def _():
        cls = x2[0:1, :].astype(jnp.bfloat16)  # [CLS] row, (1, H)
        logits_ref[0] = (jnp.dot(cls, wc[...], preferred_element_type=jnp.float32)
                         + bc[...])


def _pack_params(params, c_pad):
    """Stack per-layer params to (L, ...), cast MXU weights to bf16, lane-pad classifier."""
    packed = []
    for name in _LAYER_PARAM_ORDER:
        w = jnp.stack([lp[name] for lp in params["layers"]], axis=0)
        if name in _BF16_WEIGHTS:
            w = w.astype(jnp.bfloat16)
        packed.append(w)
    H, n_classes = params["wc"].shape
    wc = jnp.zeros((H, c_pad), jnp.float32).at[:, :n_classes].set(params["wc"])
    bc = jnp.zeros((1, c_pad), jnp.float32).at[:, :n_classes].set(params["bc"])
    packed.append(wc.astype(jnp.bfloat16))
    packed.append(bc)
    return packed


def encoder_classifier_forward(input_ids, attention_mask, params):
    B, S = input_ids.shape
    H = params["tok_emb"].shape[1]
    L = len(params["layers"])
    n_classes = params["wc"].shape[1]
    c_pad = pl.cdiv(n_classes, LANE) * LANE    # lane-dense logits tile (4 -> 128)
    assert H % NUM_HEADS == 0

    # Embedding gather is glue (plain JAX); all matmul/softmax/LN work runs in the kernel.
    x = (params["tok_emb"][input_ids] + params["pos_emb"][:S][None, :, :]).astype(jnp.float32)
    if attention_mask is None:
        attention_mask = jnp.ones((B, S), dtype=jnp.float32)
    mneg = ((1.0 - attention_mask.astype(jnp.float32)) * (-1e9)).reshape(B, 1, S)

    weights = _pack_params(params, c_pad)

    layer_specs = [pl.BlockSpec((1,) + w.shape[1:], lambda b, l: (l, 0, 0))
                   for w in weights[:16]]
    clf_specs = [pl.BlockSpec(weights[16].shape, lambda b, l: (0, 0)),
                 pl.BlockSpec(weights[17].shape, lambda b, l: (0, 0))]
    in_specs = ([pl.BlockSpec((1, S, H), lambda b, l: (b, 0, 0)),
                 pl.BlockSpec((1, 1, S), lambda b, l: (b, 0, 0))]
                + layer_specs + clf_specs)
    out_spec = pl.BlockSpec((1, 1, c_pad), lambda b, l: (b, 0, 0))

    logits_padded = pl.pallas_call(
        fused_encoder_classifier_kernel,
        out_shape=jax.ShapeDtypeStruct((B, 1, c_pad), jnp.float32),
        grid_spec=pltpu.PrefetchScalarGridSpec(
            num_scalar_prefetch=0,
            grid=(B, L),                        # batch: parallel, layers: arbitrary (resident x)
            in_specs=in_specs,
            out_specs=out_spec,
            scratch_shapes=[pltpu.VMEM((S, H), jnp.float32)]),
        compiler_params=pltpu.CompilerParams(
            dimension_semantics=("parallel", "arbitrary"),
            vmem_limit_bytes=32 * 1024 * 1024),
    )(x, mneg, *weights)

    return logits_padded[:, 0, :n_classes]


def init_params(key, vocab, max_seq, H, F, n_layers, n_classes):
    def nrm(k, shape, scale=0.02):
        return jax.random.normal(k, shape, jnp.float32) * scale

    keys = jax.random.split(key, 3 + n_layers)
    params = {
        "tok_emb": nrm(keys[0], (vocab, H)),
        "pos_emb": nrm(keys[1], (max_seq, H)),
        "layers": [],
    }
    for li in range(n_layers):
        lk = jax.random.split(keys[3 + li], 6)
        layer = {
            "wq": nrm(lk[0], (H, H)), "bq": jnp.zeros((1, H), jnp.float32),
            "wk": nrm(lk[1], (H, H)), "bk": jnp.zeros((1, H), jnp.float32),
            "wv": nrm(lk[2], (H, H)), "bv": jnp.zeros((1, H), jnp.float32),
            "wo": nrm(lk[3], (H, H)), "bo": jnp.zeros((1, H), jnp.float32),
            "g1": jnp.ones((1, H), jnp.float32), "be1": jnp.zeros((1, H), jnp.float32),
            "w1": nrm(lk[4], (H, F)), "b1": jnp.zeros((1, F), jnp.float32),
            "w2": nrm(lk[5], (F, H)), "b2": jnp.zeros((1, H), jnp.float32),
            "g2": jnp.ones((1, H), jnp.float32), "be2": jnp.zeros((1, H), jnp.float32),
        }
        params["layers"].append(layer)

    # classifier: xavier_uniform weight (stored as (H, n_classes) = W.T), zero bias
    limit = (6.0 / (H + n_classes)) ** 0.5
    params["wc"] = jax.random.uniform(keys[2], (H, n_classes), jnp.float32,
                                      minval=-limit, maxval=limit)
    params["bc"] = jnp.zeros((1, n_classes), jnp.float32)
    return params


if __name__ == "__main__":
    # Small but lane-dense / MXU-friendly shapes: seq, hidden, ffn, head_dim all
    # multiples of 128 (head_dim = H / NUM_HEADS = 128).
    B, S, H, F, L = 2, 128, 256, 512, 2
    VOCAB, N_CLASSES = 1000, 4

    key = jax.random.PRNGKey(0)
    kp, kids = jax.random.split(key)
    params = init_params(kp, VOCAB, S, H, F, L, N_CLASSES)

    input_ids = jax.random.randint(kids, (B, S), 0, VOCAB, dtype=jnp.int32)
    attention_mask = jnp.ones((B, S), dtype=jnp.int32)

    logits = encoder_classifier_forward(input_ids, attention_mask, params)
    jax.block_until_ready(logits)
    assert logits.shape == (B, N_CLASSES)
    assert bool(jnp.all(jnp.isfinite(logits)))
    print("KERNEL_OK")
</pallas_src>

<mosaic_0001>
module attributes {stable_mosaic.version = 11 : i64} {
  func.func @fused_encoder_classifier_kernel(%arg0: i32, %arg1: i32, %arg2: memref<1x128x256xf32, #tpu.memory_space<vmem>>, %arg3: memref<1x1x128xf32, #tpu.memory_space<vmem>>, %arg4: memref<1x256x256xbf16, #tpu.memory_space<vmem>>, %arg5: memref<1x1x256xf32, #tpu.memory_space<vmem>>, %arg6: memref<1x256x256xbf16, #tpu.memory_space<vmem>>, %arg7: memref<1x1x256xf32, #tpu.memory_space<vmem>>, %arg8: memref<1x256x256xbf16, #tpu.memory_space<vmem>>, %arg9: memref<1x1x256xf32, #tpu.memory_space<vmem>>, %arg10: memref<1x256x256xbf16, #tpu.memory_space<vmem>>, %arg11: memref<1x1x256xf32, #tpu.memory_space<vmem>>, %arg12: memref<1x1x256xf32, #tpu.memory_space<vmem>>, %arg13: memref<1x1x256xf32, #tpu.memory_space<vmem>>, %arg14: memref<1x256x512xbf16, #tpu.memory_space<vmem>>, %arg15: memref<1x1x512xf32, #tpu.memory_space<vmem>>, %arg16: memref<1x512x256xbf16, #tpu.memory_space<vmem>>, %arg17: memref<1x1x256xf32, #tpu.memory_space<vmem>>, %arg18: memref<1x1x256xf32, #tpu.memory_space<vmem>>, %arg19: memref<1x1x256xf32, #tpu.memory_space<vmem>>, %arg20: memref<256x128xbf16, #tpu.memory_space<vmem>>, %arg21: memref<1x128xf32, #tpu.memory_space<vmem>>, %arg22: memref<1x1x128xf32, #tpu.memory_space<vmem>>, %arg23: memref<128x256xf32, #tpu.memory_space<vmem>>) attributes {dimension_semantics = [#tpu.dimension_semantics<parallel>, #tpu.dimension_semantics<arbitrary>], iteration_bounds = array<i64: 2, 2>, scalar_prefetch = 0 : i64, scratch_operands = 1 : i64, tpu.core_type = #tpu.core_type<tc>, window_params = [{transform_indices = @transform_0, window_bounds = array<i64: 1, 128, 256>}, {transform_indices = @transform_1, window_bounds = array<i64: 1, 1, 128>}, {transform_indices = @transform_2, window_bounds = array<i64: 1, 256, 256>}, {transform_indices = @transform_3, window_bounds = array<i64: 1, 1, 256>}, {transform_indices = @transform_4, window_bounds = array<i64: 1, 256, 256>}, {transform_indices = @transform_5, window_bounds = array<i64: 1, 1, 256>}, {transform_indices = @transform_6, window_bounds = array<i64: 1, 256, 256>}, {transform_indices = @transform_7, window_bounds = array<i64: 1, 1, 256>}, {transform_indices = @transform_8, window_bounds = array<i64: 1, 256, 256>}, {transform_indices = @transform_9, window_bounds = array<i64: 1, 1, 256>}, {transform_indices = @transform_10, window_bounds = array<i64: 1, 1, 256>}, {transform_indices = @transform_11, window_bounds = array<i64: 1, 1, 256>}, {transform_indices = @transform_12, window_bounds = array<i64: 1, 256, 512>}, {transform_indices = @transform_13, window_bounds = array<i64: 1, 1, 512>}, {transform_indices = @transform_14, window_bounds = array<i64: 1, 512, 256>}, {transform_indices = @transform_15, window_bounds = array<i64: 1, 1, 256>}, {transform_indices = @transform_16, window_bounds = array<i64: 1, 1, 256>}, {transform_indices = @transform_17, window_bounds = array<i64: 1, 1, 256>}, {pipeline_mode = #tpu.pipeline_mode<synchronous>, transform_indices = @transform_18, window_bounds = array<i64: 256, 128>}, {pipeline_mode = #tpu.pipeline_mode<synchronous>, transform_indices = @transform_19, window_bounds = array<i64: 1, 128>}, {transform_indices = @transform_20, window_bounds = array<i64: 1, 1, 128>}]} {
    %c0_i32 = arith.constant 0 : i32
    %0 = arith.cmpi eq, %arg1, %c0_i32 : i32
    %1 = arith.extui %0 : i1 to i32
    %c0_i32_0 = arith.constant 0 : i32
    %2 = arith.cmpi ne, %1, %c0_i32_0 : i32
    scf.if %2 {
      %c0_85 = arith.constant 0 : index
      %c0_86 = arith.constant 0 : index
      %c0_87 = arith.constant 0 : index
      %171 = vector.load %arg2[%c0_85, %c0_86, %c0_87] : memref<1x128x256xf32, #tpu.memory_space<vmem>>, vector<1x128x256xf32>
      %172 = vector.shape_cast %171 : vector<1x128x256xf32> to vector<128x256xf32>
      %c0_88 = arith.constant 0 : index
      %c0_89 = arith.constant 0 : index
      %173 = vector.load %arg23[%c0_88, %c0_89] : memref<128x256xf32, #tpu.memory_space<vmem>>, vector<128x256xf32>
      tpu.vector_store %arg23[%c0_88, %c0_89], %172 {strides = array<i32>} : memref<128x256xf32, #tpu.memory_space<vmem>>, vector<128x256xf32>,
    } else {
    }
    %c0 = arith.constant 0 : index
    %c0_1 = arith.constant 0 : index
    %3 = vector.load %arg23[%c0, %c0_1] : memref<128x256xf32, #tpu.memory_space<vmem>>, vector<128x256xf32>
    %4 = arith.truncf %3 : vector<128x256xf32> to vector<128x256xbf16>
    %c0_2 = arith.constant 0 : index
    %c0_3 = arith.constant 0 : index
    %c0_4 = arith.constant 0 : index
    %5 = vector.load %arg4[%c0_2, %c0_3, %c0_4] : memref<1x256x256xbf16, #tpu.memory_space<vmem>>, vector<1x256x256xbf16>
    %6 = vector.shape_cast %5 : vector<1x256x256xbf16> to vector<256x256xbf16>
    %cst = arith.constant dense<0.000000e+00> : vector<128x256xf32>
    %7 = tpu.matmul %4, %6, %cst {dimension_numbers = #tpu.dot_dimension_numbers<[1], [0], [0], [1], [0, 0, 1, 1], [], []>} : vector<128x256xbf16>, vector<256x256xbf16>, vector<128x256xf32> -> vector<128x256xf32>
    %c0_5 = arith.constant 0 : index
    %c0_6 = arith.constant 0 : index
    %c0_7 = arith.constant 0 : index
    %8 = vector.load %arg5[%c0_5, %c0_6, %c0_7] : memref<1x1x256xf32, #tpu.memory_space<vmem>>, vector<1x1x256xf32>
    %9 = vector.shape_cast %8 : vector<1x1x256xf32> to vector<1x256xf32>
    %10 = vector.broadcast %9 : vector<1x256xf32> to vector<128x256xf32>
    %11 = arith.addf %7, %10 : vector<128x256xf32>
    %c0_8 = arith.constant 0 : index
    %c0_9 = arith.constant 0 : index
    %c0_10 = arith.constant 0 : index
    %12 = vector.load %arg6[%c0_8, %c0_9, %c0_10] : memref<1x256x256xbf16, #tpu.memory_space<vmem>>, vector<1x256x256xbf16>
    %13 = vector.shape_cast %12 : vector<1x256x256xbf16> to vector<256x256xbf16>
    %cst_11 = arith.constant dense<0.000000e+00> : vector<128x256xf32>
    %14 = tpu.matmul %4, %13, %cst_11 {dimension_numbers = #tpu.dot_dimension_numbers<[1], [0], [0], [1], [0, 0, 1, 1], [], []>} : vector<128x256xbf16>, vector<256x256xbf16>, vector<128x256xf32> -> vector<128x256xf32>
    %c0_12 = arith.constant 0 : index
    %c0_13 = arith.constant 0 : index
    %c0_14 = arith.constant 0 : index
    %15 = vector.load %arg7[%c0_12, %c0_13, %c0_14] : memref<1x1x256xf32, #tpu.memory_space<vmem>>, vector<1x1x256xf32>
    %16 = vector.shape_cast %15 : vector<1x1x256xf32> to vector<1x256xf32>
    %17 = vector.broadcast %16 : vector<1x256xf32> to vector<128x256xf32>
    %18 = arith.addf %14, %17 : vector<128x256xf32>
    %c0_15 = arith.constant 0 : index
    %c0_16 = arith.constant 0 : index
    %c0_17 = arith.constant 0 : index
    %19 = vector.load %arg8[%c0_15, %c0_16, %c0_17] : memref<1x256x256xbf16, #tpu.memory_space<vmem>>, vector<1x256x256xbf16>
    %20 = vector.shape_cast %19 : vector<1x256x256xbf16> to vector<256x256xbf16>
    %cst_18 = arith.constant dense<0.000000e+00> : vector<128x256xf32>
    %21 = tpu.matmul %4, %20, %cst_18 {dimension_numbers = #tpu.dot_dimension_numbers<[1], [0], [0], [1], [0, 0, 1, 1], [], []>} : vector<128x256xbf16>, vector<256x256xbf16>, vector<128x256xf32> -> vector<128x256xf32>
    %c0_19 = arith.constant 0 : index
    %c0_20 = arith.constant 0 : index
    %c0_21 = arith.constant 0 : index
    %22 = vector.load %arg9[%c0_19, %c0_20, %c0_21] : memref<1x1x256xf32, #tpu.memory_space<vmem>>, vector<1x1x256xf32>
    %23 = vector.shape_cast %22 : vector<1x1x256xf32> to vector<1x256xf32>
    %24 = vector.broadcast %23 : vector<1x256xf32> to vector<128x256xf32>
    %25 = arith.addf %21, %24 : vector<128x256xf32>
    %c0_22 = arith.constant 0 : index
    %c0_23 = arith.constant 0 : index
    %c0_24 = arith.constant 0 : index
    %26 = vector.load %arg3[%c0_22, %c0_23, %c0_24] : memref<1x1x128xf32, #tpu.memory_space<vmem>>, vector<1x1x128xf32>
    %27 = vector.shape_cast %26 : vector<1x1x128xf32> to vector<1x128xf32>
    %28 = tpu.transpose %18, [1, 0] : vector<128x256xf32> -> vector<256x128xf32>
    %29 = vector.extract_strided_slice %11 {offsets = [0, 0], sizes = [128, 128], strides = [1, 1]} : vector<128x256xf32> to vector<128x128xf32>
    %30 = arith.truncf %29 : vector<128x128xf32> to vector<128x128xbf16>
    %31 = vector.extract_strided_slice %28 {offsets = [0, 0], sizes = [128, 128], strides = [1, 1]} : vector<256x128xf32> to vector<128x128xf32>
    %32 = arith.truncf %31 : vector<128x128xf32> to vector<128x128xbf16>
    %33 = vector.extract_strided_slice %25 {offsets = [0, 0], sizes = [128, 128], strides = [1, 1]} : vector<128x256xf32> to vector<128x128xf32>
    %34 = arith.truncf %33 : vector<128x128xf32> to vector<128x128xbf16>
    %cst_25 = arith.constant dense<0.000000e+00> : vector<128x128xf32>
    %35 = tpu.matmul %30, %32, %cst_25 {dimension_numbers = #tpu.dot_dimension_numbers<[1], [0], [0], [1], [0, 0, 1, 1], [], []>} : vector<128x128xbf16>, vector<128x128xbf16>, vector<128x128xf32> -> vector<128x128xf32>
    %cst_26 = arith.constant 0.0883883461 : f32
    %36 = vector.broadcast %cst_26 : f32 to vector<128x128xf32>
    %37 = arith.mulf %35, %36 : vector<128x128xf32>
    %38 = vector.broadcast %27 : vector<1x128xf32> to vector<128x128xf32>
    %39 = arith.addf %37, %38 : vector<128x128xf32>
    %cst_27 = arith.constant dense<0xFF800000> : vector<128xf32>
    %40 = vector.multi_reduction <maximumf>, %39, %cst_27 [1] : vector<128x128xf32> to vector<128xf32>
    %41 = vector.shape_cast %40 : vector<128xf32> to vector<128x1xf32>
    %42 = vector.broadcast %41 : vector<128x1xf32> to vector<128x128xf32>
    %43 = arith.subf %39, %42 : vector<128x128xf32>
    %44 = math.exp %43 : vector<128x128xf32>
    %cst_28 = arith.constant dense<0.000000e+00> : vector<128xf32>
    %45 = vector.multi_reduction <add>, %44, %cst_28 [1] : vector<128x128xf32> to vector<128xf32>
    %46 = vector.shape_cast %45 : vector<128xf32> to vector<128x1xf32>
    %47 = tpu.reciprocal %46 {approx = true} : vector<128x1xf32> -> vector<128x1xf32>
    %48 = vector.broadcast %47 : vector<128x1xf32> to vector<128x128xf32>
    %49 = arith.mulf %44, %48 : vector<128x128xf32>
    %50 = arith.truncf %49 : vector<128x128xf32> to vector<128x128xbf16>
    %cst_29 = arith.constant dense<0.000000e+00> : vector<128x128xf32>
    %51 = tpu.matmul %50, %34, %cst_29 {dimension_numbers = #tpu.dot_dimension_numbers<[1], [0], [0], [1], [0, 0, 1, 1], [], []>} : vector<128x128xbf16>, vector<128x128xbf16>, vector<128x128xf32> -> vector<128x128xf32>
    %52 = vector.extract_strided_slice %11 {offsets = [0, 128], sizes = [128, 128], strides = [1, 1]} : vector<128x256xf32> to vector<128x128xf32>
    %53 = arith.truncf %52 : vector<128x128xf32> to vector<128x128xbf16>
    %54 = vector.extract_strided_slice %28 {offsets = [128, 0], sizes = [128, 128], strides = [1, 1]} : vector<256x128xf32> to vector<128x128xf32>
    %55 = arith.truncf %54 : vector<128x128xf32> to vector<128x128xbf16>
    %56 = vector.extract_strided_slice %25 {offsets = [0, 128], sizes = [128, 128], strides = [1, 1]} : vector<128x256xf32> to vector<128x128xf32>
    %57 = arith.truncf %56 : vector<128x128xf32> to vector<128x128xbf16>
    %cst_30 = arith.constant dense<0.000000e+00> : vector<128x128xf32>
    %58 = tpu.matmul %53, %55, %cst_30 {dimension_numbers = #tpu.dot_dimension_numbers<[1], [0], [0], [1], [0, 0, 1, 1], [], []>} : vector<128x128xbf16>, vector<128x128xbf16>, vector<128x128xf32> -> vector<128x128xf32>
    %cst_31 = arith.constant 0.0883883461 : f32
    %59 = vector.broadcast %cst_31 : f32 to vector<128x128xf32>
    %60 = arith.mulf %58, %59 : vector<128x128xf32>
    %61 = vector.broadcast %27 : vector<1x128xf32> to vector<128x128xf32>
    %62 = arith.addf %60, %61 : vector<128x128xf32>
    %cst_32 = arith.constant dense<0xFF800000> : vector<128xf32>
    %63 = vector.multi_reduction <maximumf>, %62, %cst_32 [1] : vector<128x128xf32> to vector<128xf32>
    %64 = vector.shape_cast %63 : vector<128xf32> to vector<128x1xf32>
    %65 = vector.broadcast %64 : vector<128x1xf32> to vector<128x128xf32>
    %66 = arith.subf %62, %65 : vector<128x128xf32>
    %67 = math.exp %66 : vector<128x128xf32>
    %cst_33 = arith.constant dense<0.000000e+00> : vector<128xf32>
    %68 = vector.multi_reduction <add>, %67, %cst_33 [1] : vector<128x128xf32> to vector<128xf32>
    %69 = vector.shape_cast %68 : vector<128xf32> to vector<128x1xf32>
    %70 = tpu.reciprocal %69 {approx = true} : vector<128x1xf32> -> vector<128x1xf32>
    %71 = vector.broadcast %70 : vector<128x1xf32> to vector<128x128xf32>
    %72 = arith.mulf %67, %71 : vector<128x128xf32>
    %73 = arith.truncf %72 : vector<128x128xf32> to vector<128x128xbf16>
    %cst_34 = arith.constant dense<0.000000e+00> : vector<128x128xf32>
    %74 = tpu.matmul %73, %57, %cst_34 {dimension_numbers = #tpu.dot_dimension_numbers<[1], [0], [0], [1], [0, 0, 1, 1], [], []>} : vector<128x128xbf16>, vector<128x128xbf16>, vector<128x128xf32> -> vector<128x128xf32>
    %75 = tpu.concatenate %51, %74 in 1 : vector<128x128xf32>, vector<128x128xf32> -> vector<128x256xf32>
    %76 = arith.truncf %75 : vector<128x256xf32> to vector<128x256xbf16>
    %c0_35 = arith.constant 0 : index
    %c0_36 = arith.constant 0 : index
    %c0_37 = arith.constant 0 : index
    %77 = vector.load %arg10[%c0_35, %c0_36, %c0_37] : memref<1x256x256xbf16, #tpu.memory_space<vmem>>, vector<1x256x256xbf16>
    %78 = vector.shape_cast %77 : vector<1x256x256xbf16> to vector<256x256xbf16>
    %cst_38 = arith.constant dense<0.000000e+00> : vector<128x256xf32>
    %79 = tpu.matmul %76, %78, %cst_38 {dimension_numbers = #tpu.dot_dimension_numbers<[1], [0], [0], [1], [0, 0, 1, 1], [], []>} : vector<128x256xbf16>, vector<256x256xbf16>, vector<128x256xf32> -> vector<128x256xf32>
    %c0_39 = arith.constant 0 : index
    %c0_40 = arith.constant 0 : index
    %c0_41 = arith.constant 0 : index
    %80 = vector.load %arg11[%c0_39, %c0_40, %c0_41] : memref<1x1x256xf32, #tpu.memory_space<vmem>>, vector<1x1x256xf32>
    %81 = vector.shape_cast %80 : vector<1x1x256xf32> to vector<1x256xf32>
    %82 = vector.broadcast %81 : vector<1x256xf32> to vector<128x256xf32>
    %83 = arith.addf %79, %82 : vector<128x256xf32>
    %84 = arith.addf %3, %83 : vector<128x256xf32>
    %c0_42 = arith.constant 0 : index
    %c0_43 = arith.constant 0 : index
    %c0_44 = arith.constant 0 : index
    %85 = vector.load %arg12[%c0_42, %c0_43, %c0_44] : memref<1x1x256xf32, #tpu.memory_space<vmem>>, vector<1x1x256xf32>
    %86 = vector.shape_cast %85 : vector<1x1x256xf32> to vector<1x256xf32>
    %c0_45 = arith.constant 0 : index
    %c0_46 = arith.constant 0 : index
    %c0_47 = arith.constant 0 : index
    %87 = vector.load %arg13[%c0_45, %c0_46, %c0_47] : memref<1x1x256xf32, #tpu.memory_space<vmem>>, vector<1x1x256xf32>
    %88 = vector.shape_cast %87 : vector<1x1x256xf32> to vector<1x256xf32>
    %cst_48 = arith.constant dense<0.000000e+00> : vector<128xf32>
    %89 = vector.multi_reduction <add>, %84, %cst_48 [1] : vector<128x256xf32> to vector<128xf32>
    %90 = vector.shape_cast %89 : vector<128xf32> to vector<128x1xf32>
    %cst_49 = arith.constant 2.560000e+02 : f32
    %91 = vector.broadcast %cst_49 : f32 to vector<128x1xf32>
    %92 = arith.divf %90, %91 : vector<128x1xf32>
    %93 = vector.broadcast %92 : vector<128x1xf32> to vector<128x256xf32>
    %94 = arith.subf %84, %93 : vector<128x256xf32>
    %95 = arith.mulf %94, %94 : vector<128x256xf32>
    %cst_50 = arith.constant dense<0.000000e+00> : vector<128xf32>
    %96 = vector.multi_reduction <add>, %95, %cst_50 [1] : vector<128x256xf32> to vector<128xf32>
    %97 = vector.shape_cast %96 : vector<128xf32> to vector<128x1xf32>
    %cst_51 = arith.constant 2.560000e+02 : f32
    %98 = vector.broadcast %cst_51 : f32 to vector<128x1xf32>
    %99 = arith.divf %97, %98 : vector<128x1xf32>
    %100 = vector.broadcast %92 : vector<128x1xf32> to vector<128x256xf32>
    %101 = arith.subf %84, %100 : vector<128x256xf32>
    %cst_52 = arith.constant 9.99999974E-6 : f32
    %102 = vector.broadcast %cst_52 : f32 to vector<128x1xf32>
    %103 = arith.addf %99, %102 : vector<128x1xf32>
    %104 = math.rsqrt %103 : vector<128x1xf32>
    %105 = vector.broadcast %104 : vector<128x1xf32> to vector<128x256xf32>
    %106 = arith.mulf %101, %105 : vector<128x256xf32>
    %107 = vector.broadcast %86 : vector<1x256xf32> to vector<128x256xf32>
    %108 = arith.mulf %106, %107 : vector<128x256xf32>
    %109 = vector.broadcast %88 : vector<1x256xf32> to vector<128x256xf32>
    %110 = arith.addf %108, %109 : vector<128x256xf32>
    %111 = arith.truncf %110 : vector<128x256xf32> to vector<128x256xbf16>
    %c0_53 = arith.constant 0 : index
    %c0_54 = arith.constant 0 : index
    %c0_55 = arith.constant 0 : index
    %112 = vector.load %arg14[%c0_53, %c0_54, %c0_55] : memref<1x256x512xbf16, #tpu.memory_space<vmem>>, vector<1x256x512xbf16>
    %113 = vector.shape_cast %112 : vector<1x256x512xbf16> to vector<256x512xbf16>
    %cst_56 = arith.constant dense<0.000000e+00> : vector<128x512xf32>
    %114 = tpu.matmul %111, %113, %cst_56 {dimension_numbers = #tpu.dot_dimension_numbers<[1], [0], [0], [1], [0, 0, 1, 1], [], []>} : vector<128x256xbf16>, vector<256x512xbf16>, vector<128x512xf32> -> vector<128x512xf32>
    %c0_57 = arith.constant 0 : index
    %c0_58 = arith.constant 0 : index
    %c0_59 = arith.constant 0 : index
    %115 = vector.load %arg15[%c0_57, %c0_58, %c0_59] : memref<1x1x512xf32, #tpu.memory_space<vmem>>, vector<1x1x512xf32>
    %116 = vector.shape_cast %115 : vector<1x1x512xf32> to vector<1x512xf32>
    %117 = vector.broadcast %116 : vector<1x512xf32> to vector<128x512xf32>
    %118 = arith.addf %114, %117 : vector<128x512xf32>
    %119 = arith.mulf %118, %118 : vector<128x512xf32>
    %120 = arith.mulf %118, %119 : vector<128x512xf32>
    %cst_60 = arith.constant 4.471500e-02 : f32
    %121 = vector.broadcast %cst_60 : f32 to vector<128x512xf32>
    %122 = arith.mulf %121, %120 : vector<128x512xf32>
    %123 = arith.addf %118, %122 : vector<128x512xf32>
    %cst_61 = arith.constant 0.797884583 : f32
    %124 = vector.broadcast %cst_61 : f32 to vector<128x512xf32>
    %125 = arith.mulf %124, %123 : vector<128x512xf32>
    %126 = math.tanh %125 : vector<128x512xf32>
    %cst_62 = arith.constant 1.000000e+00 : f32
    %127 = vector.broadcast %cst_62 : f32 to vector<128x512xf32>
    %128 = arith.addf %127, %126 : vector<128x512xf32>
    %cst_63 = arith.constant 5.000000e-01 : f32
    %129 = vector.broadcast %cst_63 : f32 to vector<128x512xf32>
    %130 = arith.mulf %129, %128 : vector<128x512xf32>
    %131 = arith.mulf %118, %130 : vector<128x512xf32>
    %132 = arith.truncf %131 : vector<128x512xf32> to vector<128x512xbf16>
    %c0_64 = arith.constant 0 : index
    %c0_65 = arith.constant 0 : index
    %c0_66 = arith.constant 0 : index
    %133 = vector.load %arg16[%c0_64, %c0_65, %c0_66] : memref<1x512x256xbf16, #tpu.memory_space<vmem>>, vector<1x512x256xbf16>
    %134 = vector.shape_cast %133 : vector<1x512x256xbf16> to vector<512x256xbf16>
    %cst_67 = arith.constant dense<0.000000e+00> : vector<128x256xf32>
    %135 = tpu.matmul %132, %134, %cst_67 {dimension_numbers = #tpu.dot_dimension_numbers<[1], [0], [0], [1], [0, 0, 1, 1], [], []>} : vector<128x512xbf16>, vector<512x256xbf16>, vector<128x256xf32> -> vector<128x256xf32>
    %c0_68 = arith.constant 0 : index
    %c0_69 = arith.constant 0 : index
    %c0_70 = arith.constant 0 : index
    %136 = vector.load %arg17[%c0_68, %c0_69, %c0_70] : memref<1x1x256xf32, #tpu.memory_space<vmem>>, vector<1x1x256xf32>
    %137 = vector.shape_cast %136 : vector<1x1x256xf32> to vector<1x256xf32>
    %138 = vector.broadcast %137 : vector<1x256xf32> to vector<128x256xf32>
    %139 = arith.addf %135, %138 : vector<128x256xf32>
    %140 = arith.addf %110, %139 : vector<128x256xf32>
    %c0_71 = arith.constant 0 : index
    %c0_72 = arith.constant 0 : index
    %c0_73 = arith.constant 0 : index
    %141 = vector.load %arg18[%c0_71, %c0_72, %c0_73] : memref<1x1x256xf32, #tpu.memory_space<vmem>>, vector<1x1x256xf32>
    %142 = vector.shape_cast %141 : vector<1x1x256xf32> to vector<1x256xf32>
    %c0_74 = arith.constant 0 : index
    %c0_75 = arith.constant 0 : index
    %c0_76 = arith.constant 0 : index
    %143 = vector.load %arg19[%c0_74, %c0_75, %c0_76] : memref<1x1x256xf32, #tpu.memory_space<vmem>>, vector<1x1x256xf32>
    %144 = vector.shape_cast %143 : vector<1x1x256xf32> to vector<1x256xf32>
    %cst_77 = arith.constant dense<0.000000e+00> : vector<128xf32>
    %145 = vector.multi_reduction <add>, %140, %cst_77 [1] : vector<128x256xf32> to vector<128xf32>
    %146 = vector.shape_cast %145 : vector<128xf32> to vector<128x1xf32>
    %cst_78 = arith.constant 2.560000e+02 : f32
    %147 = vector.broadcast %cst_78 : f32 to vector<128x1xf32>
    %148 = arith.divf %146, %147 : vector<128x1xf32>
    %149 = vector.broadcast %148 : vector<128x1xf32> to vector<128x256xf32>
    %150 = arith.subf %140, %149 : vector<128x256xf32>
    %151 = arith.mulf %150, %150 : vector<128x256xf32>
    %cst_79 = arith.constant dense<0.000000e+00> : vector<128xf32>
    %152 = vector.multi_reduction <add>, %151, %cst_79 [1] : vector<128x256xf32> to vector<128xf32>
    %153 = vector.shape_cast %152 : vector<128xf32> to vector<128x1xf32>
    %cst_80 = arith.constant 2.560000e+02 : f32
    %154 = vector.broadcast %cst_80 : f32 to vector<128x1xf32>
    %155 = arith.divf %153, %154 : vector<128x1xf32>
    %156 = vector.broadcast %148 : vector<128x1xf32> to vector<128x256xf32>
    %157 = arith.subf %140, %156 : vector<128x256xf32>
    %cst_81 = arith.constant 9.99999974E-6 : f32
    %158 = vector.broadcast %cst_81 : f32 to vector<128x1xf32>
    %159 = arith.addf %155, %158 : vector<128x1xf32>
    %160 = math.rsqrt %159 : vector<128x1xf32>
    %161 = vector.broadcast %160 : vector<128x1xf32> to vector<128x256xf32>
    %162 = arith.mulf %157, %161 : vector<128x256xf32>
    %163 = vector.broadcast %142 : vector<1x256xf32> to vector<128x256xf32>
    %164 = arith.mulf %162, %163 : vector<128x256xf32>
    %165 = vector.broadcast %144 : vector<1x256xf32> to vector<128x256xf32>
    %166 = arith.addf %164, %165 : vector<128x256xf32>
    %c0_82 = arith.constant 0 : index
    %c0_83 = arith.constant 0 : index
    %167 = vector.load %arg23[%c0_82, %c0_83] : memref<128x256xf32, #tpu.memory_space<vmem>>, vector<128x256xf32>
    tpu.vector_store %arg23[%c0_82, %c0_83], %166 {strides = array<i32>} : memref<128x256xf32, #tpu.memory_space<vmem>>, vector<128x256xf32>,
    %c1_i32 = arith.constant 1 : i32
    %168 = arith.cmpi eq, %arg1, %c1_i32 : i32
    %169 = arith.extui %168 : i1 to i32
    %c0_i32_84 = arith.constant 0 : i32
    %170 = arith.cmpi ne, %169, %c0_i32_84 : i32
    scf.if %170 {
      %171 = vector.extract_strided_slice %166 {offsets = [0, 0], sizes = [1, 256], strides = [1, 1]} : vector<128x256xf32> to vector<1x256xf32>
      %172 = arith.truncf %171 : vector<1x256xf32> to vector<1x256xbf16>
      %c0_85 = arith.constant 0 : index
      %c0_86 = arith.constant 0 : index
      %173 = vector.load %arg20[%c0_85, %c0_86] : memref<256x128xbf16, #tpu.memory_space<vmem>>, vector<256x128xbf16>
      %cst_87 = arith.constant dense<0.000000e+00> : vector<1x128xf32>
      %174 = tpu.matmul %172, %173, %cst_87 {dimension_numbers = #tpu.dot_dimension_numbers<[1], [0], [0], [1], [0, 0, 1, 1], [], []>} : vector<1x256xbf16>, vector<256x128xbf16>, vector<1x128xf32> -> vector<1x128xf32>
      %c0_88 = arith.constant 0 : index
      %c0_89 = arith.constant 0 : index
      %175 = vector.load %arg21[%c0_88, %c0_89] : memref<1x128xf32, #tpu.memory_space<vmem>>, vector<1x128xf32>
      %176 = arith.addf %174, %175 : vector<1x128xf32>
      %c0_90 = arith.constant 0 : index
      %c0_91 = arith.constant 0 : index
      %c0_92 = arith.constant 0 : index
      %177 = vector.load %arg22[%c0_90, %c0_91, %c0_92] : memref<1x1x128xf32, #tpu.memory_space<vmem>>, vector<1x1x128xf32>
      %178 = vector.shape_cast %177 : vector<1x1x128xf32> to vector<1x128xf32>
      %179 = vector.shape_cast %176 : vector<1x128xf32> to vector<1x1x128xf32>
      tpu.vector_store %arg22[%c0_90, %c0_91, %c0_92], %179 {strides = array<i32>} : memref<1x1x128xf32, #tpu.memory_space<vmem>>, vector<1x1x128xf32>,
    } else {
    }
    return
  }
  func.func @transform_0(%arg0: i32, %arg1: i32) -> (i32, i32, i32) {
    %c0_i32 = arith.constant 0 : i32
    %c0_i32_0 = arith.constant 0 : i32
    %c0_i32_1 = arith.constant 0 : i32
    return %arg0, %c0_i32, %c0_i32_0 : i32, i32, i32
  }
  func.func @transform_1(%arg0: i32, %arg1: i32) -> (i32, i32, i32) {
    %c0_i32 = arith.constant 0 : i32
    %c0_i32_0 = arith.constant 0 : i32
    %c0_i32_1 = arith.constant 0 : i32
    return %arg0, %c0_i32, %c0_i32_0 : i32, i32, i32
  }
  func.func @transform_2(%arg0: i32, %arg1: i32) -> (i32, i32, i32) {
    %c0_i32 = arith.constant 0 : i32
    %c0_i32_0 = arith.constant 0 : i32
    %c0_i32_1 = arith.constant 0 : i32
    return %arg1, %c0_i32, %c0_i32_0 : i32, i32, i32
  }
  func.func @transform_3(%arg0: i32, %arg1: i32) -> (i32, i32, i32) {
    %c0_i32 = arith.constant 0 : i32
    %c0_i32_0 = arith.constant 0 : i32
    %c0_i32_1 = arith.constant 0 : i32
    return %arg1, %c0_i32, %c0_i32_0 : i32, i32, i32
  }
  func.func @transform_4(%arg0: i32, %arg1: i32) -> (i32, i32, i32) {
    %c0_i32 = arith.constant 0 : i32
    %c0_i32_0 = arith.constant 0 : i32
    %c0_i32_1 = arith.constant 0 : i32
    return %arg1, %c0_i32, %c0_i32_0 : i32, i32, i32
  }
  func.func @transform_5(%arg0: i32, %arg1: i32) -> (i32, i32, i32) {
    %c0_i32 = arith.constant 0 : i32
    %c0_i32_0 = arith.constant 0 : i32
    %c0_i32_1 = arith.constant 0 : i32
    return %arg1, %c0_i32, %c0_i32_0 : i32, i32, i32
  }
  func.func @transform_6(%arg0: i32, %arg1: i32) -> (i32, i32, i32) {
    %c0_i32 = arith.constant 0 : i32
    %c0_i32_0 = arith.constant 0 : i32
    %c0_i32_1 = arith.constant 0 : i32
    return %arg1, %c0_i32, %c0_i32_0 : i32, i32, i32
  }
  func.func @transform_7(%arg0: i32, %arg1: i32) -> (i32, i32, i32) {
    %c0_i32 = arith.constant 0 : i32
    %c0_i32_0 = arith.constant 0 : i32
    %c0_i32_1 = arith.constant 0 : i32
    return %arg1, %c0_i32, %c0_i32_0 : i32, i32, i32
  }
  func.func @transform_8(%arg0: i32, %arg1: i32) -> (i32, i32, i32) {
    %c0_i32 = arith.constant 0 : i32
    %c0_i32_0 = arith.constant 0 : i32
    %c0_i32_1 = arith.constant 0 : i32
    return %arg1, %c0_i32, %c0_i32_0 : i32, i32, i32
  }
  func.func @transform_9(%arg0: i32, %arg1: i32) -> (i32, i32, i32) {
    %c0_i32 = arith.constant 0 : i32
    %c0_i32_0 = arith.constant 0 : i32
    %c0_i32_1 = arith.constant 0 : i32
    return %arg1, %c0_i32, %c0_i32_0 : i32, i32, i32
  }
  func.func @transform_10(%arg0: i32, %arg1: i32) -> (i32, i32, i32) {
    %c0_i32 = arith.constant 0 : i32
    %c0_i32_0 = arith.constant 0 : i32
    %c0_i32_1 = arith.constant 0 : i32
    return %arg1, %c0_i32, %c0_i32_0 : i32, i32, i32
  }
  func.func @transform_11(%arg0: i32, %arg1: i32) -> (i32, i32, i32) {
    %c0_i32 = arith.constant 0 : i32
    %c0_i32_0 = arith.constant 0 : i32
    %c0_i32_1 = arith.constant 0 : i32
    return %arg1, %c0_i32, %c0_i32_0 : i32, i32, i32
  }
  func.func @transform_12(%arg0: i32, %arg1: i32) -> (i32, i32, i32) {
    %c0_i32 = arith.constant 0 : i32
    %c0_i32_0 = arith.constant 0 : i32
    %c0_i32_1 = arith.constant 0 : i32
    return %arg1, %c0_i32, %c0_i32_0 : i32, i32, i32
  }
  func.func @transform_13(%arg0: i32, %arg1: i32) -> (i32, i32, i32) {
    %c0_i32 = arith.constant 0 : i32
    %c0_i32_0 = arith.constant 0 : i32
    %c0_i32_1 = arith.constant 0 : i32
    return %arg1, %c0_i32, %c0_i32_0 : i32, i32, i32
  }
  func.func @transform_14(%arg0: i32, %arg1: i32) -> (i32, i32, i32) {
    %c0_i32 = arith.constant 0 : i32
    %c0_i32_0 = arith.constant 0 : i32
    %c0_i32_1 = arith.constant 0 : i32
    return %arg1, %c0_i32, %c0_i32_0 : i32, i32, i32
  }
  func.func @transform_15(%arg0: i32, %arg1: i32) -> (i32, i32, i32) {
    %c0_i32 = arith.constant 0 : i32
    %c0_i32_0 = arith.constant 0 : i32
    %c0_i32_1 = arith.constant 0 : i32
    return %arg1, %c0_i32, %c0_i32_0 : i32, i32, i32
  }
  func.func @transform_16(%arg0: i32, %arg1: i32) -> (i32, i32, i32) {
    %c0_i32 = arith.constant 0 : i32
    %c0_i32_0 = arith.constant 0 : i32
    %c0_i32_1 = arith.constant 0 : i32
    return %arg1, %c0_i32, %c0_i32_0 : i32, i32, i32
  }
  func.func @transform_17(%arg0: i32, %arg1: i32) -> (i32, i32, i32) {
    %c0_i32 = arith.constant 0 : i32
    %c0_i32_0 = arith.constant 0 : i32
    %c0_i32_1 = arith.constant 0 : i32
    return %arg1, %c0_i32, %c0_i32_0 : i32, i32, i32
  }
  func.func @transform_18(%arg0: i32, %arg1: i32) -> (i32, i32) {
    %c0_i32 = arith.constant 0 : i32
    %c0_i32_0 = arith.constant 0 : i32
    %c0_i32_1 = arith.constant 0 : i32
    return %c0_i32, %c0_i32_0 : i32, i32
  }
  func.func @transform_19(%arg0: i32, %arg1: i32) -> (i32, i32) {
    %c0_i32 = arith.constant 0 : i32
    %c0_i32_0 = arith.constant 0 : i32
    %c0_i32_1 = arith.constant 0 : i32
    return %c0_i32, %c0_i32_0 : i32, i32
  }
  func.func @transform_20(%arg0: i32, %arg1: i32) -> (i32, i32, i32) {
    %c0_i32 = arith.constant 0 : i32
    %c0_i32_0 = arith.constant 0 : i32
    %c0_i32_1 = arith.constant 0 : i32
    return %arg0, %c0_i32, %c0_i32_0 : i32, i32, i32
  }
}

</mosaic_0001>

<bundles_post_ra>
// kernel: tpu_custom_call.1
= control target key start
LH: loop header
LB: loop body
LE: loop exit
PB: predicated region body
PF: predicated region fallthrough
CT: control target
= control target key end

     0   :  { %s12212_s0 = inlined_call_operand.hbm [shape: f32[2,128,256], index: 0, kind: input, shape index: {}]   ;;  %s12213_s1 = inlined_call_operand.hbm [shape: f32[2,1,128], index: 1, kind: input, shape index: {}]   ;;  %s12214_s2 = inlined_call_operand.hbm [shape: bf16[2,256,256], index: 2, kind: input, shape index: {}]   ;;  %s12215_s3 = inlined_call_operand.vmem [shape: f32[2,1,256], index: 3, kind: input, shape index: {}]   ;;  %s12216_s4 = inlined_call_operand.hbm [shape: bf16[2,256,256], index: 4, kind: input, shape index: {}]   ;;  %s12217_s5 = inlined_call_operand.vmem [shape: f32[2,1,256], index: 5, kind: input, shape index: {}]   ;;  %s12218_s6 = inlined_call_operand.hbm [shape: bf16[2,256,256], index: 6, kind: input, shape index: {}]   ;;  %s12219_s7 = inlined_call_operand.vmem [shape: f32[2,1,256], index: 7, kind: input, shape index: {}]   ;;  %s12220_s8 = inlined_call_operand.hbm [shape: bf16[2,256,256], index: 8, kind: input, shape index: {}]   ;;  %s12221_s9 = inlined_call_operand.vmem [shape: f32[2,1,256], index: 9, kind: input, shape index: {}]   ;;  %s12222_s10 = inlined_call_operand.vmem [shape: f32[2,1,256], index: 10, kind: input, shape index: {}]   ;;  %s12223_s11 = inlined_call_operand.vmem [shape: f32[2,1,256], index: 11, kind: input, shape index: {}]   ;;  %s12224_s12 = inlined_call_operand.hbm [shape: bf16[2,256,512], index: 12, kind: input, shape index: {}]   ;;  %s12225_s13 = inlined_call_operand.vmem [shape: f32[2,1,512], index: 13, kind: input, shape index: {}]   ;;  %s12226_s14 = inlined_call_operand.hbm [shape: bf16[2,512,256], index: 14, kind: input, shape index: {}]   ;;  %s12227_s15 = inlined_call_operand.vmem [shape: f32[2,1,256], index: 15, kind: input, shape index: {}]   ;;  %s12228_s16 = inlined_call_operand.vmem [shape: f32[2,1,256], index: 16, kind: input, shape index: {}]   ;;  %s12229_s17 = inlined_call_operand.vmem [shape: f32[2,1,256], index: 17, kind: input, shape index: {}]   ;;  %s12230_s18 = inlined_call_operand.hbm [shape: bf16[256,128], index: 18, kind: input, shape index: {}]   ;;  %s12231_s19 = inlined_call_operand.vmem [shape: f32[1,128], index: 19, kind: input, shape index: {}]   ;;  %s12232_s20 = inlined_call_operand.hbm [shape: f32[2,1,128], index: 20, kind: output, shape index: {}]  }
   0x1   :  { %12353 = sst [smem:[#allocation141_spill]] %s12212_s0 }
   0x2   :  { %12354 = sst [smem:[#allocation142_spill]] %s12213_s1 }
   0x3   :  { %12355 = sst [smem:[#allocation143_spill]] %s12214_s2 }
   0x4   :  { %12356 = sst [smem:[#allocation144_spill]] %s12215_s3 }
   0x5   :  { %12357 = sst [smem:[#allocation145_spill]] %s12216_s4 }
   0x6   :  { %12358 = sst [smem:[#allocation146_spill]] %s12217_s5 }
   0x7   :  { %12359 = sst [smem:[#allocation147_spill]] %s12218_s6 }
   0x8   :  { %12360 = sst [smem:[#allocation148_spill]] %s12219_s7 }
   0x9   :  { %12361 = sst [smem:[#allocation149_spill]] %s12220_s8 }
   0xa   :  { %12362 = sst [smem:[#allocation150_spill]] %s12221_s9 }
   0xb   :  { %12363 = sst [smem:[#allocation151_spill]] %s12222_s10 }
   0xc   :  { %12364 = sst [smem:[#allocation152_spill]] %s12223_s11 }
   0xd   :  { %12365 = sst [smem:[#allocation153_spill]] %s12224_s12 }
   0xe   :  { %12366 = sst [smem:[#allocation154_spill]] %s12225_s13 }
   0xf   :  { %12367 = sst [smem:[#allocation155_spill]] %s12226_s14 }
  0x10   :  { %12368 = sst [smem:[#allocation156_spill]] %s12227_s15 }
  0x11   :  { %12369 = sst [smem:[#allocation157_spill]] %s12228_s16 }
  0x12   :  { %12370 = sst [smem:[#allocation158_spill]] %s12229_s17 }
  0x13   :  { %12371 = sst [smem:[#allocation159_spill]] %s12230_s18 }
  0x14   :  { %12372 = sst [smem:[#allocation160_spill]] %s12231_s19 }
  0x15   :  { %12373 = sst [smem:[#allocation161_spill]] %s12232_s20 }
  0x16   :  { %25 = vsyncpa [#allocation4], 0 }
  0x17   :  { %27 = vsyncpa [#allocation4 + $0x1], 0 }
  0x18   :  { %28 = vsyncpa [#allocation7], 0 }
  0x19   :  { %30 = vsyncpa [#allocation7 + $0x1], 0 }
  0x1a   :  { %31 = vsyncpa [#allocation10], 0 }
  0x1b   :  { %33 = vsyncpa [#allocation10 + $0x1], 0 }
  0x1c   :  { %34 = vsyncpa [#allocation13], 0 }
  0x1d   :  { %36 = vsyncpa [#allocation13 + $0x1], 0 }
  0x1e   :  { %37 = vsyncpa [#allocation16], 0 }
  0x1f   :  { %39 = vsyncpa [#allocation16 + $0x1], 0 }
  0x20   :  { %40 = vsyncpa [#allocation5], 0 }
  0x21   :  { %42 = vsyncpa [#allocation5 + $0x1], 0  ;;  %s8643_s1 = smov 0   ;;  %s8645_s22 = smov 0  }
  0x22   :  { %s8647_s23 = smov 0   ;;  %s8649_s24 = smov 0  }
  0x23   :  { %s8651_s2 = smov 0   ;;  %s8653_s25 = smov 0  }
  0x24   :  { %s8655_s3 = smov 0   ;;  %s8657_s26 = smov 0  }
  0x25   :  { %s8659_s27 = smov 0   ;;  %s8661_s28 = smov 0  }
  0x26   :  { %s8663_s4 = smov 0  }
  0x27 LB: > { %12374 = sst [smem:[#allocation27_spill]] %s8484_s22  ;;  %s8697_s29 = sadd.s32 4294967295, %s8520_s4   ;;  %s8520_s4 = sphi %s8663_s4, %s48_s4   ;;  %s8516_s28 = sphi %s8661_s28, %s12692_s28   ;;  %s8512_s27 = sphi %s8659_s27, %s12691_s27   ;;  %s8508_s26 = sphi %s8657_s26, %s12690_s26   ;;  %s8504_s3 = sphi %s8655_s3, %s12689_s3   ;;  %s8500_s25 = sphi %s8653_s25, %s12688_s25   ;;  %s8496_s2 = sphi %s8651_s2, %s12687_s2   ;;  %s8492_s24 = sphi %s8649_s24, %s12686_s24   ;;  %s8488_s23 = sphi %s8647_s23, %s12685_s23   ;;  %s8484_s22 = sphi %s8645_s22, %s12684_s22   ;;  %s8480_s1 = sphi %s8643_s1, %s12683_s1  }
  0x28   : > { %12375 = sst [smem:[#allocation28_spill]] %s8488_s23  ;;  %p132_p0 = scmp.ne.s32.totalorder %s8484_s22, %s8480_s1 }
  0x29   : > { %12376 = sst [smem:[#allocation29_spill]] %s8492_s24  ;;  %p12238_p1 = scmp.eq.s32.totalorder %s8697_s29, 0 }
  0x2a   : > { %12377 = sst [smem:[#allocation30_spill]] %s8496_s2  ;;  %p6593_p2 = scmp.ge.s32.totalorder %s8520_s4, 1 }
  0x2b   : > { %12378 = sst [smem:[#allocation31_spill]] %s8500_s25  ;;  %p601_p3 = scmp.lt.s32.totalorder %s8520_s4, 5 }
  0x2c   : > { %12379 = sst [smem:[#allocation32_spill]] %s8504_s3  ;;  %p8705_p4 = por %p132_p0, %p12238_p1 }
  0x2d   : > { %12380 = sst [smem:[#allocation33_spill]] %s8508_s26  ;;  %p8709_p5 = pnand %p6593_p2, %p601_p3 }
  0x2e   : > { %12381 = sst [smem:[#allocation34_spill]] %s8512_s27  ;;  %s8522_s21 = smov [#allocation17]  }
  0x2f   : > { %12382 = sst [smem:[#allocation35_spill]] %s8516_s28  ;;  %s613_s20 = sshll.u32 %s8522_s21, 4  ;;  %s614_s20 = int_to_ptr.vmem [resolvable:$true] %s613_s20 }
  0x30   : > { %12383 = sst [smem:[#allocation36_spill]] %s8520_s4  ;;  %p7222_p6 = pneg %p8709_p5 }
  0x31   : > { %12384 = sst [smem:[#allocation37_spill]] %s8697_s29  ;;  %s12389_s18 = sld [smem:[#allocation159_spill]] }
  0x32   : > { %s12385_s30 = scalar_select %p8705_p4, 1, 0 }
  0x33   : > { %s12387_s0 = scalar_select %p8709_p5, 1, 0 }
  0x34   : > { %12386 = sst [smem:[#allocation38_spill]] %s12385_s30  ;;  %p8717_p7 = pnand %p7222_p6, %p12238_p1 }
  0x36   : > { %p8108_p9 = pneg %p8717_p7 }
  0x37   : > { %s8106_s17 = scalar_lea.hbm %s12389_s18, 2048 }
  0x38   : > { %p8107_p8 = scmp.ne.s32.totalorder %s12389_s18, %s8106_s17  ;;  %p8113_p12 = scmp.lt.u32.totalorder %s8106_s17, %s12389_s18 }
  0x3a   : > { %p8109_p10 = pnand %p8108_p9, %p8107_p8 }
  0x3c   : > { %p8110_p11 = pneg %p8109_p10 }
  0x3e   : > { %p8115_p13 = pnand %p8113_p12, %p8110_p11 }
  0x40   : > { %8118 = shalt.err (!%p8115_p13)
}
  0x41   : > { %s8119_s11 = scalar_lea.vmem %s614_s20, 2048  ;;  %p8127_p6 = scmp.lt.s32.totalorder %s614_s20, %s614_s20 }
  0x42   : > { %p8120_p0 = scmp.ne.s32.totalorder %s614_s20, %s8119_s11  ;;  %p8128_p1 = scmp.lt.s32.totalorder %s8119_s11, %s8119_s11 }
  0x44   : > { %p8122_p2 = pnand %p8120_p0, %p8108_p9  ;;  %p8129_p4 = por %p8128_p1, %p8127_p6 }
  0x46   : > { %p8123_p3 = pneg %p8122_p2 }
  0x48   : > { %p8130_p5 = pnand %p8129_p4, %p8123_p3 }
  0x4a   : > { %8133 = shalt.err (!%p8130_p5)
}
  0x4b   : > { %s8523_s15 = smov 64   ;;  %s8524_s11 = smov 4  }
  0x4c   : > { %7225 = dma.hbm_to_vmem [thread:$0]  (!%p8717_p7), %s12389_s18, 2048, %s614_s20, [#allocation16], %s8523_s15, %s8523_s15, %s8524_s11  }
  0x4d   : > { %s6592_s17 = sadd.s32 4294967294, %s8520_s4   ;;  %s57_s19 = sadd.s32 1, %s8512_s27 }
  0x4e   : > { %s60_s26 = sadd.s32 1, %s8516_s28  ;;  %p58_p1 = scmp.ge.s32.totalorder %s57_s19, 2 }
  0x4f   : > { %s67_s21 = sadd.s32 1, %s8500_s25  ;;  %p74_p4 = scmp.ne.s32.totalorder %s8500_s25, %s8496_s2 }
  0x50   : > { %p75_p5 = scmp.eq.s32.totalorder %s8520_s4, 0  ;;  %s12694_s19 = smov (%p58_p1, %s57_s19), 0 }
  0x51   : > { %12390 = sst [smem:[#allocation39_spill]] %s12694_s19  ;;  %s12696_s26 = smov (!%p58_p1, %s60_s26), %s8516_s28 }
  0x52   : > { %p8752_p7 = por %p75_p5, %p74_p4  ;;  %p80_p8 = scmp.ne.s32.totalorder %s8496_s2, %s8492_s24 }
  0x53   : > { %p62_p9 = scmp.ge.s32.totalorder %s12696_s26, 2  ;;  %s116_s1 = ssub.s32 %s8512_s27, %s12694_s19 }
  0x54   : > { %p12392_p10 = scmp.eq.s32.totalorder %s8697_s29, 0  ;;  %p117_p12 = scmp.eq.s32.totalorder %s116_s1, 0 }
  0x55   : > { %s12698_s26 = smov (%p62_p9, %s12696_s26), 0  ;;  %s119_s11 = sadd.s32 1, %s8488_s23 }
  0x56   : > { %p8765_p11 = por %p12392_p10, %p80_p8  ;;  %12395 = sst [smem:[#allocation41_spill]] %s12698_s26 }
  0x57   : > { %p126_p13 = scmp.ne.s32.totalorder %s8488_s23, %s8484_s22  ;;  %s64_s13 = ssub.s32 %s8516_s28, %s12698_s26 }
  0x58   : > { %s12393_s15 = scalar_select %p8765_p11, 1, 0 }
  0x59   : > { %p588_p0 = scmp.eq.s32.totalorder %s8697_s29, 3  ;;  %p65_p2 = scmp.eq.s32.totalorder %s64_s13, 0 }
  0x5a   : > { %12394 = sst [smem:[#allocation40_spill]] %s12393_s15  ;;  %p8779_p3 = por %p126_p13, %p75_p5 }
  0x5b   : > { %s8784_s18 = scalar_select %p117_p12, %s8488_s23, %s119_s11  }
  0x5c   : > { %s8787_s1 = scalar_select %p65_p2, %s8500_s25, %s67_s21  }
  0x5d   : > { %12397 = sst [smem:[#allocation42_spill]] %s8784_s18  ;;  %p8792_p6 = por %p588_p0, %p74_p4 }
  0x5e   : > { %12398 = sst [smem:[#allocation43_spill]] %s8787_s1  ;;  %p594_p1 = scmp.eq.s32.totalorder %s6592_s17, 3 }
  0x5f   : > { %s12399_s19 = scalar_select %p8792_p6, 1, 0 }
  0x60   : > { %p12248_p9 = scmp.lt.s32.totalorder %s8520_s4, 4  ;;  %s8798_s10 = sand.u32 1, %s8500_s25  }
  0x61   : > { %12400 = sst [smem:[#allocation44_spill]] %s12399_s19  ;;  %p8803_p5 = por %p594_p1, %p80_p8 }
  0x62   : > { %p8812_p10 = pnand %p12248_p9, %p8752_p7  ;;  %s8817_s17 = sand.u32 1, %s8520_s4  }
  0x63   : > { %s12401_s13 = scalar_select %p8803_p5, 1, 0 }
  0x64   : > { %s12403_s21 = scalar_select %p8812_p10, 1, 0 }
  0x65   : > { %12402 = sst [smem:[#allocation45_spill]] %s12401_s13  ;;  %s6599_s26 = sshll.u32 %s8516_s28, 4 }
  0x66   : > { %s654_s1 = scalar_lea.vmem [#allocation6], %s8798_s10  ;;  %s12404_s19 = sld [smem:[#allocation142_spill]] }
  0x67   : > { %s661_s25 = sshll.u32 %s654_s1, 4  ;;  %p12255_p7 = pneg %p8812_p10  ;;  %s8826_s25 = int_to_ptr.vmem [resolvable:$true] %s661_s25 }
  0x6c   : > { %s8824_s9 = scalar_lea.hbm %s12404_s19, %s6599_s26  ;;  %s8139_s18 = scalar_lea.hbm %s12404_s19, 32 }
  0x6d   : > { %s8134_s11 = scalar_lea.hbm %s8824_s9, 16  ;;  %p8140_p13 = scmp.lt.u32.totalorder %s8824_s9, %s12404_s19 }
  0x6e   : > { %p8135_p4 = scmp.ne.s32.totalorder %s8824_s9, %s8134_s11  ;;  %p8141_p0 = scmp.lt.u32.totalorder %s8139_s18, %s8134_s11 }
  0x6f   : > { %p8143_p1 = scmp.lt.u32.totalorder %s8134_s11, %s8824_s9 }
  0x70   : > { %p8137_p8 = pnand %p12255_p7, %p8135_p4  ;;  %p8142_p2 = por %p8141_p0, %p8140_p13 }
  0x72   : > { %p8138_p12 = pneg %p8137_p8  ;;  %p8144_p9 = por %p8143_p1, %p8142_p2 }
  0x74   : > { %p8145_p5 = pnand %p8144_p9, %p8138_p12 }
  0x76   : > { %8148 = shalt.err (!%p8145_p5)
}
  0x77   : > { %s8149_s20 = scalar_lea.vmem %s8826_s25, 16  ;;  %s8525_s13 = smov [#allocation6]  }
  0x78   : > { %p8150_p4 = scmp.ne.s32.totalorder %s8826_s25, %s8149_s20  ;;  %s8154_s1 = sshll.u32 %s8525_s13, 4  ;;  %s8155_s1 = int_to_ptr.vmem [resolvable:$false] %s8154_s1 }
  0x79   : > { %s8156_s24 = scalar_lea.vmem %s8155_s1, 32  ;;  %p8157_p11 = scmp.lt.s32.totalorder %s8826_s25, %s8155_s1 }
  0x7a   : > { %p8152_p8 = pnand %p8150_p4, %p12255_p7  ;;  %p8158_p13 = scmp.lt.s32.totalorder %s8156_s24, %s8149_s20 }
  0x7c   : > { %p8153_p6 = pneg %p8152_p8  ;;  %p8159_p0 = por %p8158_p13, %p8157_p11 }
  0x7e   : > { %p8160_p2 = pnand %p8159_p0, %p8153_p6 }
  0x80   : > { %8163 = shalt.err (!%p8160_p2)
}
  0x81   : > { %s12405_s11 = scalar_lea.sflag [#allocation7], %s8817_s17  ;;  %p12406_p9 = scmp.lt.s32.totalorder %s8520_s4, 4 }
  0x82   : > { %7232 = dma.hbm_to_vmem [thread:$0]  (!%p8812_p10), %s8824_s9, 16, %s8826_s25, %s12405_s11  }
  0x83   : > { %p8860_p5 = pnand %p12406_p9, %p8779_p3  ;;  %s12252_s18 = sand.u32 1, %s8488_s23  }
  0x84   : > { %s8866_s26 = sshll.u32 %s8512_s27, 12  ;;  %s8870_s13 = sshll.u32 %s12252_s18, 8 }
  0x85   : > { %s12407_s20 = scalar_select %p8860_p5, 1, 0 }
  0x86   : > { %s12408_s19 = sld [smem:[#allocation145_spill]]  ;;  %s700_s9 = scalar_lea.vmem [#allocation9], %s8870_s13 }
  0x87   : > { %s707_s25 = sshll.u32 %s700_s9, 4  ;;  %p8886_p3 = pneg %p8860_p5  ;;  %s8879_s25 = int_to_ptr.vmem [resolvable:$true] %s707_s25 }
  0x8c   : > { %s8876_s7 = scalar_lea.hbm %s12408_s19, %s8866_s26  ;;  %s8169_s4 = scalar_lea.hbm %s12408_s19, 8192 }
  0x8d   : > { %s8164_s11 = scalar_lea.hbm %s8876_s7, 4096  ;;  %p8170_p1 = scmp.lt.u32.totalorder %s8876_s7, %s12408_s19 }
  0x8e   : > { %p8165_p11 = scmp.ne.s32.totalorder %s8876_s7, %s8164_s11  ;;  %p8171_p4 = scmp.lt.u32.totalorder %s8169_s4, %s8164_s11 }
  0x8f   : > { %p8173_p13 = scmp.lt.u32.totalorder %s8164_s11, %s8876_s7 }
  0x90   : > { %p8167_p6 = pnand %p8886_p3, %p8165_p11  ;;  %p8172_p8 = por %p8171_p4, %p8170_p1 }
  0x92   : > { %p8168_p12 = pneg %p8167_p6  ;;  %p8174_p0 = por %p8173_p13, %p8172_p8 }
  0x94   : > { %p8175_p2 = pnand %p8174_p0, %p8168_p12 }
  0x96   : > { %8178 = shalt.err (!%p8175_p2)
}
  0x97   : > { %s8179_s16 = scalar_lea.vmem %s8879_s25, 4096  ;;  %s8526_s1 = smov [#allocation9]  }
  0x98   : > { %p8180_p9 = scmp.ne.s32.totalorder %s8879_s25, %s8179_s16  ;;  %s8184_s24 = sshll.u32 %s8526_s1, 4  ;;  %s8185_s24 = int_to_ptr.vmem [resolvable:$false] %s8184_s24 }
  0x99   : > { %s8186_s5 = scalar_lea.vmem %s8185_s24, 8192  ;;  %p8187_p7 = scmp.lt.s32.totalorder %s8879_s25, %s8185_s24 }
  0x9a   : > { %p8182_p11 = pnand %p8180_p9, %p8886_p3  ;;  %p8188_p10 = scmp.lt.s32.totalorder %s8186_s5, %s8179_s16 }
  0x9c   : > { %p8183_p6 = pneg %p8182_p11  ;;  %p8189_p1 = por %p8188_p10, %p8187_p7 }
  0x9e   : > { %p8190_p4 = pnand %p8189_p1, %p8183_p6 }
  0xa0   : > { %8193 = shalt.err (!%p8190_p4)
}
  0xa1   : > { %s8527_s4 = smov 128   ;;  %s8528_s11 = smov 8  }
  0xa2   : > { %s12410_s9 = scalar_lea.sflag [#allocation10], %s8817_s17  ;;  %s12411_s8 = sld [smem:[#allocation149_spill]] }
  0xa3   : > { %7238 = dma.hbm_to_vmem [thread:$0]  (!%p8860_p5), %s8876_s7, 4096, %s8879_s25, %s12410_s9, %s8527_s4, %s8527_s4, %s8528_s11  }
  0xa4   : > { %s756_s5 = scalar_lea.vmem [#allocation12], %s8870_s13  ;;  %s6915_s3 = sshll.u32 %s8516_s28, 12 }
  0xa5   : > { %s763_s19 = sshll.u32 %s756_s5, 4  ;;  %s753_s30 = scalar_lea.sflag [#allocation13], %s8817_s17  ;;  %s8921_s19 = int_to_ptr.vmem [resolvable:$true] %s763_s19 }
  0xa8   : > { %s8918_s24 = scalar_lea.hbm %s12411_s8, %s8866_s26  ;;  %s8199_s9 = scalar_lea.hbm %s12411_s8, 8192 }
  0xa9   : > { %s8194_s22 = scalar_lea.hbm %s8918_s24, 4096  ;;  %p8200_p8 = scmp.lt.u32.totalorder %s8918_s24, %s12411_s8 }
  0xaa   : > { %p8195_p10 = scmp.ne.s32.totalorder %s8918_s24, %s8194_s22  ;;  %p8201_p13 = scmp.lt.u32.totalorder %s8199_s9, %s8194_s22 }
  0xab   : > { %p8203_p2 = scmp.lt.u32.totalorder %s8194_s22, %s8918_s24 }
  0xac   : > { %p8197_p7 = pnand %p8195_p10, %p8886_p3  ;;  %p8202_p0 = por %p8201_p13, %p8200_p8 }
  0xae   : > { %p8198_p12 = pneg %p8197_p7  ;;  %p8204_p9 = por %p8203_p2, %p8202_p0 }
  0xb0   : > { %p8205_p11 = pnand %p8204_p9, %p8198_p12 }
  0xb2   : > { %8208 = shalt.err (!%p8205_p11)
}
  0xb3   : > { %s8209_s5 = scalar_lea.vmem %s8921_s19, 4096  ;;  %s8529_s7 = smov [#allocation12]  }
  0xb4   : > { %p8210_p6 = scmp.ne.s32.totalorder %s8921_s19, %s8209_s5  ;;  %s8214_s25 = sshll.u32 %s8529_s7, 4  ;;  %s8215_s25 = int_to_ptr.vmem [resolvable:$false] %s8214_s25 }
  0xb5   : > { %s8216_s16 = scalar_lea.vmem %s8215_s25, 8192  ;;  %p8217_p10 = scmp.lt.s32.totalorder %s8921_s19, %s8215_s25 }
  0xb6   : > { %p8212_p1 = pnand %p8210_p6, %p8886_p3  ;;  %p8218_p7 = scmp.lt.s32.totalorder %s8216_s16, %s8209_s5 }
  0xb8   : > { %p8213_p4 = pneg %p8212_p1  ;;  %p8219_p8 = por %p8218_p7, %p8217_p10 }
  0xba   : > { %p8220_p13 = pnand %p8219_p8, %p8213_p4 }
  0xbc   : > { %8223 = shalt.err (!%p8220_p13)
}
  0xbd   : > { %7244 = dma.hbm_to_vmem [thread:$0]  (!%p8860_p5), %s8918_s24, 4096, %s8921_s19, %s753_s30, %s8527_s4, %s8527_s4, %s8528_s11  }
  0xbe   : > { %s12412_s1 = sld [smem:[#allocation141_spill]]  ;;  %s12414_s25 = sshll.u32 %s8798_s10, 8 }
  0xbf   : > { %s634_s16 = scalar_lea.vmem [#allocation3], %s12414_s25  ;;  %s631_s29 = scalar_lea.sflag [#allocation4], %s8798_s10 }
  0xc0   : > { %s641_s8 = sshll.u32 %s634_s16, 4  ;;  %p12415_p0 = scmp.ne.s32.totalorder %s12403_s21, 0  ;;  %s8960_s8 = int_to_ptr.vmem [resolvable:$true] %s641_s8 }
  0xc2   : > { %p12416_p2 = pneg %p12415_p0 }
  0xc4   : > { %s12413_s5 = smov %s12412_s1  ;;  %s8956_s7 = scalar_lea.hbm %s12412_s1, %s6915_s3 }
  0xc5   : > { %s8224_s15 = scalar_lea.hbm %s8956_s7, 4096  ;;  %s8229_s3 = scalar_lea.hbm %s12413_s5, 8192 }
  0xc6   : > { %p8225_p12 = scmp.ne.s32.totalorder %s8956_s7, %s8224_s15  ;;  %p8230_p6 = scmp.lt.u32.totalorder %s8956_s7, %s12413_s5 }
  0xc7   : > { %p8231_p1 = scmp.lt.u32.totalorder %s8229_s3, %s8224_s15  ;;  %p8233_p10 = scmp.lt.u32.totalorder %s8224_s15, %s8956_s7 }
  0xc8   : > { %p8227_p9 = pnand %p8225_p12, %p12416_p2 }
  0xc9   : > { %p8232_p4 = por %p8231_p1, %p8230_p6 }
  0xca   : > { %p8228_p11 = pneg %p8227_p9 }
  0xcb   : > { %p8234_p7 = por %p8233_p10, %p8232_p4 }
  0xcd   : > { %p8235_p8 = pnand %p8234_p7, %p8228_p11 }
  0xcf   : > { %8238 = shalt.err (!%p8235_p8)
}
  0xd0   : > { %s8239_s1 = scalar_lea.vmem %s8960_s8, 4096  ;;  %p12417_p12 = pmov %p12416_p2 }
  0xd1   : > { %p8240_p13 = scmp.ne.s32.totalorder %s8960_s8, %s8239_s1  ;;  %s8530_s25 = smov [#allocation3]  }
  0xd2   : > { %s8244_s16 = sshll.u32 %s8530_s25, 4  ;;  %s8245_s16 = int_to_ptr.vmem [resolvable:$false] %s8244_s16 }
  0xd3   : > { %p8242_p2 = pnand %p8240_p13, %p12417_p12  ;;  %s8246_s19 = scalar_lea.vmem %s8245_s16, 8192 }
  0xd4   : > { %p8247_p5 = scmp.lt.s32.totalorder %s8960_s8, %s8245_s16  ;;  %p8248_p6 = scmp.lt.s32.totalorder %s8246_s19, %s8239_s1 }
  0xd5   : > { %p8243_p9 = pneg %p8242_p2 }
  0xd6   : > { %p8249_p1 = por %p8248_p6, %p8247_p5 }
  0xd8   : > { %p8250_p4 = pnand %p8249_p1, %p8243_p9 }
  0xda   : > { %8253 = shalt.err (!%p8250_p4)
}
  0xdb   : > { %s8531_s15 = smov 256   ;;  %s8532_s24 = smov 16  }
  0xdc   : > { %7229 = dma.hbm_to_vmem [thread:$0]  (!%p12415_p0), %s8956_s7, 4096, %s8960_s8, %s631_s29, %s8531_s15, %s8531_s15, %s8532_s24  }
  0xdd   : > { %s12418_s9 = sld [smem:[#allocation143_spill]]  ;;  %s672_s25 = scalar_lea.vmem [#allocation8], %s8870_s13 }
  0xde   : > { %s679_s16 = sshll.u32 %s672_s25, 4  ;;  %s8998_s16 = int_to_ptr.vmem [resolvable:$true] %s679_s16 }
  0xe3   : > { %s8995_s1 = scalar_lea.hbm %s12418_s9, %s8866_s26  ;;  %s8259_s29 = scalar_lea.hbm %s12418_s9, 8192 }
  0xe4   : > { %s8254_s19 = scalar_lea.hbm %s8995_s1, 4096  ;;  %p8260_p0 = scmp.lt.u32.totalorder %s8995_s1, %s12418_s9 }
  0xe5   : > { %p8255_p5 = scmp.ne.s32.totalorder %s8995_s1, %s8254_s19  ;;  %p8261_p7 = scmp.lt.u32.totalorder %s8259_s29, %s8254_s19 }
  0xe6   : > { %p8263_p13 = scmp.lt.u32.totalorder %s8254_s19, %s8995_s1 }
  0xe7   : > { %p8257_p11 = pnand %p8255_p5, %p8886_p3  ;;  %p8262_p8 = por %p8261_p7, %p8260_p0 }
  0xe9   : > { %p8258_p10 = pneg %p8257_p11  ;;  %p8264_p12 = por %p8263_p13, %p8262_p8 }
  0xeb   : > { %p8265_p2 = pnand %p8264_p12, %p8258_p10 }
  0xed   : > { %8268 = shalt.err (!%p8265_p2)
}
  0xee   : > { %s8269_s3 = scalar_lea.vmem %s8998_s16, 4096  ;;  %s8533_s22 = smov [#allocation8]  }
  0xef   : > { %p8270_p9 = scmp.ne.s32.totalorder %s8998_s16, %s8269_s3  ;;  %s8274_s25 = sshll.u32 %s8533_s22, 4  ;;  %s8275_s25 = int_to_ptr.vmem [resolvable:$false] %s8274_s25 }
  0xf0   : > { %s8276_s10 = scalar_lea.vmem %s8275_s25, 8192  ;;  %p8277_p4 = scmp.lt.s32.totalorder %s8998_s16, %s8275_s25 }
  0xf1   : > { %p8272_p6 = pnand %p8270_p9, %p8886_p3  ;;  %p8278_p5 = scmp.lt.s32.totalorder %s8276_s10, %s8269_s3 }
  0xf3   : > { %p8273_p1 = pneg %p8272_p6  ;;  %p8279_p11 = por %p8278_p5, %p8277_p4 }
  0xf5   : > { %p8280_p0 = pnand %p8279_p11, %p8273_p1 }
  0xf7   : > { %8283 = shalt.err (!%p8280_p0)
}
  0xf8   : > { %p12419_p10 = scmp.ne.s32.totalorder %s12407_s20, 0  ;;  %s12420_s19 = scalar_lea.sflag [#allocation7], %s8817_s17 }
  0xf9   : > { %s12421_s6 = sld [smem:[#allocation147_spill]]  ;;  %s728_s7 = scalar_lea.vmem [#allocation11], %s8870_s13 }
  0xfa   : > { %7235 = dma.hbm_to_vmem [thread:$0]  (!%p12419_p10), %s8995_s1, 4096, %s8998_s16, %s12420_s19, %s8527_s4, %s8527_s4, %s8528_s11  }
  0xfb   : > { %s735_s3 = sshll.u32 %s728_s7, 4  ;;  %s12422_s22 = sand.u32 1, %s8488_s23   ;;  %s9033_s3 = int_to_ptr.vmem [resolvable:$true] %s735_s3 }
  0xfc   : > { %s9037_s25 = sshll.u32 %s12422_s22, 9 }
  0xff   : > { %s9030_s21 = scalar_lea.hbm %s12421_s6, %s8866_s26  ;;  %s8289_s26 = scalar_lea.hbm %s12421_s6, 8192 }
 0x100   : > { %s8284_s10 = scalar_lea.hbm %s9030_s21, 4096  ;;  %p8290_p12 = scmp.lt.u32.totalorder %s9030_s21, %s12421_s6 }
 0x101   : > { %p8285_p7 = scmp.ne.s32.totalorder %s9030_s21, %s8284_s10  ;;  %p8291_p2 = scmp.lt.u32.totalorder %s8289_s26, %s8284_s10 }
 0x102   : > { %p8293_p6 = scmp.lt.u32.totalorder %s8284_s10, %s9030_s21 }
 0x103   : > { %p8287_p8 = pnand %p8285_p7, %p8886_p3  ;;  %p8292_p9 = por %p8291_p2, %p8290_p12 }
 0x105   : > { %p8288_p13 = pneg %p8287_p8  ;;  %p8294_p1 = por %p8293_p6, %p8292_p9 }
 0x107   : > { %p8295_p4 = pnand %p8294_p1, %p8288_p13 }
 0x109   : > { %8298 = shalt.err (!%p8295_p4)
}
 0x10a   : > { %s8299_s13 = scalar_lea.vmem %s9033_s3, 4096  ;;  %s8534_s29 = smov [#allocation11]  }
 0x10b   : > { %p8300_p5 = scmp.ne.s32.totalorder %s9033_s3, %s8299_s13  ;;  %s8304_s7 = sshll.u32 %s8534_s29, 4  ;;  %s8305_s7 = int_to_ptr.vmem [resolvable:$false] %s8304_s7 }
 0x10c   : > { %s8306_s22 = scalar_lea.vmem %s8305_s7, 8192  ;;  %p8307_p7 = scmp.lt.s32.totalorder %s9033_s3, %s8305_s7 }
 0x10d   : > { %p8302_p11 = pnand %p8300_p5, %p8886_p3  ;;  %p8308_p8 = scmp.lt.s32.totalorder %s8306_s22, %s8299_s13 }
 0x10f   : > { %p8303_p0 = pneg %p8302_p11  ;;  %p8309_p12 = por %p8308_p8, %p8307_p7 }
 0x111   : > { %p8310_p2 = pnand %p8309_p12, %p8303_p0 }
 0x113   : > { %8313 = shalt.err (!%p8310_p2)
}
 0x114   : > { %s12423_s10 = scalar_lea.sflag [#allocation10], %s8817_s17  ;;  %s6920_s1 = sshll.u32 %s8512_s27, 13 }
 0x115   : > { %7241 = dma.hbm_to_vmem [thread:$0]  (!%p12419_p10), %s9030_s21, 4096, %s9033_s3, %s12423_s10, %s8527_s4, %s8527_s4, %s8528_s11  }
 0x116   : > { %s12424_s12 = sld [smem:[#allocation153_spill]]  ;;  %s798_s8 = scalar_lea.vmem [#allocation14], %s9037_s25 }
 0x117   : > { %s805_s13 = sshll.u32 %s798_s8, 4  ;;  %s9074_s13 = int_to_ptr.vmem [resolvable:$true] %s805_s13 }
 0x11c   : > { %s9071_s19 = scalar_lea.hbm %s12424_s12, %s6920_s1  ;;  %s8319_s7 = scalar_lea.hbm %s12424_s12, 16384 }
 0x11d   : > { %s8314_s29 = scalar_lea.hbm %s9071_s19, 8192  ;;  %p8320_p1 = scmp.lt.u32.totalorder %s9071_s19, %s12424_s12 }
 0x11e   : > { %p8315_p13 = scmp.ne.s32.totalorder %s9071_s19, %s8314_s29  ;;  %p8321_p4 = scmp.lt.u32.totalorder %s8319_s7, %s8314_s29 }
 0x11f   : > { %p8323_p11 = scmp.lt.u32.totalorder %s8314_s29, %s9071_s19 }
 0x120   : > { %p8317_p9 = pnand %p8315_p13, %p8886_p3  ;;  %p8322_p5 = por %p8321_p4, %p8320_p1 }
 0x122   : > { %p8318_p6 = pneg %p8317_p9  ;;  %p8324_p0 = por %p8323_p11, %p8322_p5 }
 0x124   : > { %p8325_p7 = pnand %p8324_p0, %p8318_p6 }
 0x126   : > { %8328 = shalt.err (!%p8325_p7)
}
 0x127   : > { %s8329_s16 = scalar_lea.vmem %s9074_s13, 8192  ;;  %s8535_s26 = smov [#allocation14]  }
 0x128   : > { %p8330_p8 = scmp.ne.s32.totalorder %s9074_s13, %s8329_s16  ;;  %s8334_s8 = sshll.u32 %s8535_s26, 4  ;;  %s8335_s8 = int_to_ptr.vmem [resolvable:$false] %s8334_s8 }
 0x129   : > { %s8336_s21 = scalar_lea.vmem %s8335_s8, 16384  ;;  %p8337_p13 = scmp.lt.s32.totalorder %s9074_s13, %s8335_s8 }
 0x12a   : > { %p8332_p12 = pnand %p8330_p8, %p8886_p3  ;;  %p8338_p9 = scmp.lt.s32.totalorder %s8336_s21, %s8329_s16 }
 0x12c   : > { %p8333_p2 = pneg %p8332_p12  ;;  %p8339_p1 = por %p8338_p9, %p8337_p13 }
 0x12e   : > { %p8340_p4 = pnand %p8339_p1, %p8333_p2 }
 0x130   : > { %8343 = shalt.err (!%p8340_p4)
}
 0x131   : > { %7247 = dma.hbm_to_vmem [thread:$0]  (!%p12419_p10), %s9071_s19, 8192, %s9074_s13, %s753_s30, %s8531_s15, %s8531_s15, %s8532_s24  }
 0x132   : > { %s12425_s14 = sld [smem:[#allocation155_spill]]  ;;  %s826_s22 = scalar_lea.vmem [#allocation15], %s9037_s25 }
 0x133   : > { %s833_s10 = sshll.u32 %s826_s22, 4  ;;  %s823_s16 = scalar_lea.sflag [#allocation16], %s8817_s17  ;;  %s9110_s10 = int_to_ptr.vmem [resolvable:$true] %s833_s10 }
 0x138   : > { %s9107_s7 = scalar_lea.hbm %s12425_s14, %s6920_s1  ;;  %s8349_s24 = scalar_lea.hbm %s12425_s14, 16384 }
 0x139   : > { %s8344_s26 = scalar_lea.hbm %s9107_s7, 8192  ;;  %p8350_p0 = scmp.lt.u32.totalorder %s9107_s7, %s12425_s14 }
 0x13a   : > { %p8345_p6 = scmp.ne.s32.totalorder %s9107_s7, %s8344_s26  ;;  %p8351_p7 = scmp.lt.u32.totalorder %s8349_s24, %s8344_s26 }
 0x13b   : > { %p8353_p12 = scmp.lt.u32.totalorder %s8344_s26, %s9107_s7 }
 0x13c   : > { %p8347_p5 = pnand %p8345_p6, %p8886_p3  ;;  %p8352_p8 = por %p8351_p7, %p8350_p0 }
 0x13e   : > { %p8348_p11 = pneg %p8347_p5  ;;  %p8354_p2 = por %p8353_p12, %p8352_p8 }
 0x140   : > { %p8355_p13 = pnand %p8354_p2, %p8348_p11 }
 0x142   : > { %8358 = shalt.err (!%p8355_p13)
}
 0x143   : > { %s8359_s25 = scalar_lea.vmem %s9110_s10, 8192  ;;  %s8536_s13 = smov [#allocation15]  }
 0x144   : > { %p8360_p9 = scmp.ne.s32.totalorder %s9110_s10, %s8359_s25  ;;  %s8364_s8 = sshll.u32 %s8536_s13, 4  ;;  %s8365_s8 = int_to_ptr.vmem [resolvable:$false] %s8364_s8 }
 0x145   : > { %s8366_s21 = scalar_lea.vmem %s8365_s8, 16384  ;;  %p8367_p6 = scmp.lt.s32.totalorder %s9110_s10, %s8365_s8 }
 0x146   : > { %p8362_p1 = pnand %p8360_p9, %p8886_p3  ;;  %p8368_p5 = scmp.lt.s32.totalorder %s8366_s21, %s8359_s25 }
 0x148   : > { %p8363_p4 = pneg %p8362_p1  ;;  %p8369_p0 = por %p8368_p5, %p8367_p6 }
 0x14a   : > { %p8370_p7 = pnand %p8369_p0, %p8363_p4 }
 0x14c   : > { %8373 = shalt.err (!%p8370_p7)
}
 0x14d   : > { %7250 = dma.hbm_to_vmem [thread:$0]  (!%p12419_p10), %s9107_s7, 8192, %s9110_s10, %s823_s16, %s8527_s4, %s8527_s4, %s8528_s11  }
 0x14e   : > { %p12426_p3 = scmp.ne.s32.totalorder %s12387_s0, 0 }
 0x150   : > { %866 = sbr.rel (%p12426_p3) target bundleno = 3457 (0xd81), region = 100 }
 0x157   : > { %s12427_s18 = sld [smem:[#allocation40_spill]]  ;;  %s9142_s29 = sand.u32 1, %s8496_s2  }
 0x158   : > { %s6619_s3 = sshll.u32 %s9142_s29, 8  ;;  %s869_s22 = scalar_lea.sflag [#allocation4], %s9142_s29 }
 0x159   : > { %s9146_s20 = scalar_lea.vmem [#allocation3], %s6619_s3 }
 0x15d   : > { %p12428_p11 = scmp.ne.s32.totalorder %s12427_s18, 0 }
 0x15f   : > { %8447 = dma.done.wait (%p12428_p11), %s869_s22, 4096  }
 0x160   : > { %8449 = vsyncadd (%p12428_p11), %s869_s22, 4294963200  ;;  %s12429_s17 = sld [smem:[#allocation37_spill]] }
 0x166   : > { %s877_s0 = sand.u32 1, %s12429_s17  }
 0x167   : > { %s878_s4 = scalar_lea.sflag [#allocation7], %s877_s0 }
 0x168   : > { %8451 = dma.done.wait (%p12428_p11), %s878_s4, 16  }
 0x169   : > { %8453 = vsyncadd (%p12428_p11), %s878_s4, 4294967280  ;;  %s12430_s7 = sld [smem:[#allocation27_spill]]  ;;  %s12431_s10 = sld [smem:[#allocation38_spill]] }
 0x16f   : > { %s887_s16 = sand.u32 1, %s12430_s7   ;;  %p12432_p10 = scmp.ne.s32.totalorder %s12431_s10, 0 }
 0x170   : > { %s6620_s26 = sshll.u32 %s887_s16, 8 }
 0x171   : > { %s9159_s30 = scalar_lea.vmem [#allocation8], %s6620_s26 }
 0x172   : > { %8455 = dma.done.wait (%p12432_p10), %s878_s4, 4096  }
 0x173   : > { %8457 = vsyncadd (%p12432_p10), %s878_s4, 4294963200  ;;  %s895_s15 = scalar_lea.sflag [#allocation10], %s877_s0  ;;  %s9165_s24 = scalar_lea.vmem [#allocation9], %s6620_s26 }
 0x174   : > { %8459 = dma.done.wait (%p12432_p10), %s895_s15, 8192  }
 0x175   : > { %8461 = vsyncadd (%p12432_p10), %s895_s15, 4294959104  ;;  %s9171_s1 = scalar_lea.vmem [#allocation11], %s6620_s26  ;;  %s913_s19 = scalar_lea.sflag [#allocation13], %s877_s0 }
 0x176   : > { %s9173_s25 = scalar_lea.vmem [#allocation12], %s6620_s26 }
 0x177   : > { %8463 = dma.done.wait (%p12432_p10), %s913_s19, 12288  }
 0x178   : > { %8465 = vsyncadd (%p12432_p10), %s913_s19, 4294955008  ;;  %s6624_s13 = sshll.u32 %s887_s16, 9  ;;  %s931_s21 = scalar_lea.sflag [#allocation16], %s877_s0 }
 0x179   : > { %s9179_s8 = scalar_lea.vmem [#allocation14], %s6624_s13  ;;  %s9181_s18 = scalar_lea.vmem [#allocation15], %s6624_s13 }
 0x17a   : > { %12433 = sst [smem:[#allocation46_spill]] %s9179_s8 }
 0x17b   : > { %12434 = sst [smem:[#allocation47_spill]] %s9181_s18 }
 0x17c   : > { %8467 = dma.done.wait (%p12432_p10), %s931_s21, 8192  }
 0x17d   : > { %8469 = vsyncadd (%p12432_p10), %s931_s21, 4294959104  ;;  %p12435_p8 = scmp.eq.s32.totalorder %s12429_s17, 0 }
 0x17f   : > { %8471 = dma.done.wait (%p12435_p8), [#allocation16], 2048   ;;  %p12436_p12 = pmov %p12435_p8 }
 0x180   : > { %s12437_s3 = sld [smem:[#allocation32_spill]]  ;;  %s12439_s19 = sld [smem:[#allocation146_spill]] }
 0x181   : > { %8473 = vsyncadd (%p12436_p12), [#allocation16], 4294965248  ;;  %s12443_s7 = sld [smem:[#allocation152_spill]]  ;;  %s12444_s26 = sld [smem:[#allocation154_spill]] }
 0x182   : > { %s12445_s5 = sld [smem:[#allocation156_spill]]  ;;  %s12446_s14 = sld [smem:[#allocation157_spill]] }
 0x183   : > { %s12447_s23 = sld [smem:[#allocation158_spill]] }
 0x186   : > { %p1068_p2 = scmp.lt.s32.totalorder %s12437_s3, 1  ;;  %p6637_p13 = scmp.ne.s32.totalorder %s12437_s3, 0 }
 0x187   : > { %v1113_v0 = vld [vmem:[%s9146_s20] sm:$0xff] (!%p6637_p13)  ;;  %v1114_v1 = vld [vmem:[%s9146_s20 + $0x8] sm:$0xff] (!%p6637_p13)  ;;  %v1115_v2 = vld [vmem:[%s9146_s20 + $0x10] sm:$0xff] (!%p6637_p13) }
 0x188   : > { %s1069_s22 = scalar_select %p1068_p2, %s12437_s3, 1 }
 0x189   : > { %1112 = sbr.rel (%p6637_p13) target bundleno = 409 (0x199), region = 140  ;;  %1145 = vst [vmem:[#allocation2] sm:$0xff] (!%p6637_p13), %v1113_v0  ;;  %1146 = vst [vmem:[#allocation2 + $0x8] sm:$0xff] (!%p6637_p13), %v1114_v1  ;;  %v1116_v3 = vld [vmem:[%s9146_s20 + $0x18] sm:$0xff] (!%p6637_p13)  ;;  %v1117_v4 = vld [vmem:[%s9146_s20 + $0x20] sm:$0xff] (!%p6637_p13) }
 0x18a   : > { %s9193_s4 = sshll.u32 %s1069_s22, 1  ;;  %s6633_s0 = sshll.u32 %s1069_s22, 2  ;;  %1147 = vst [vmem:[#allocation2 + $0x10] sm:$0xff] (!%p6637_p13), %v1115_v2  ;;  %v1118_v5 = vld [vmem:[%s9146_s20 + $0x28] sm:$0xff] (!%p6637_p13)  ;;  %1148 = vst [vmem:[#allocation2 + $0x18] sm:$0xff] (!%p6637_p13), %v1116_v3  ;;  %v1119_v6 = vld [vmem:[%s9146_s20 + $0x30] sm:$0xff] (!%p6637_p13) }
 0x18b   : > { %s1075_s13 = scalar_lea.vmem %s12439_s19, %s9193_s4  ;;  %s1091_s17 = scalar_lea.vmem %s12443_s7, %s9193_s4  ;;  %1149 = vst [vmem:[#allocation2 + $0x20] sm:$0xff] (!%p6637_p13), %v1117_v4  ;;  %1150 = vst [vmem:[#allocation2 + $0x28] sm:$0xff] (!%p6637_p13), %v1118_v5  ;;  %v1120_v7 = vld [vmem:[%s9146_s20 + $0x38] sm:$0xff] (!%p6637_p13)  ;;  %v1121_v8 = vld [vmem:[%s9146_s20 + $0x40] sm:$0xff] (!%p6637_p13) }
 0x18c   : > { %s9222_s15 = scalar_lea.vmem %s12444_s26, %s6633_s0  ;;  %s1099_s21 = scalar_lea.vmem %s12445_s5, %s9193_s4  ;;  %1151 = vst [vmem:[#allocation2 + $0x30] sm:$0xff] (!%p6637_p13), %v1119_v6  ;;  %1152 = vst [vmem:[#allocation2 + $0x38] sm:$0xff] (!%p6637_p13), %v1120_v7  ;;  %v1122_v9 = vld [vmem:[%s9146_s20 + $0x48] sm:$0xff] (!%p6637_p13)  ;;  %v1123_v10 = vld [vmem:[%s9146_s20 + $0x50] sm:$0xff] (!%p6637_p13) }
 0x18d   : > { %s1103_s9 = scalar_lea.vmem %s12446_s14, %s9193_s4  ;;  %s1107_s27 = scalar_lea.vmem %s12447_s23, %s9193_s4  ;;  %1153 = vst [vmem:[#allocation2 + $0x40] sm:$0xff] (!%p6637_p13), %v1121_v8  ;;  %v1124_v11 = vld [vmem:[%s9146_s20 + $0x58] sm:$0xff] (!%p6637_p13)  ;;  %1154 = vst [vmem:[#allocation2 + $0x48] sm:$0xff] (!%p6637_p13), %v1122_v9  ;;  %v1125_v12 = vld [vmem:[%s9146_s20 + $0x60] sm:$0xff] (!%p6637_p13) }
 0x18e   : > { %s1067_s22 = scalar_lea.vmem [#allocation18], %s9142_s29  ;;  %1155 = vst [vmem:[#allocation2 + $0x50] sm:$0xff] (!%p6637_p13), %v1123_v10  ;;  %1156 = vst [vmem:[#allocation2 + $0x58] sm:$0xff] (!%p6637_p13), %v1124_v11  ;;  %v1126_v13 = vld [vmem:[%s9146_s20 + $0x68] sm:$0xff] (!%p6637_p13)  ;;  %v1127_v14 = vld [vmem:[%s9146_s20 + $0x70] sm:$0xff] (!%p6637_p13) }
 0x18f   : > { %1157 = vst [vmem:[#allocation2 + $0x60] sm:$0xff] (!%p6637_p13), %v1125_v12  ;;  %1158 = vst [vmem:[#allocation2 + $0x68] sm:$0xff] (!%p6637_p13), %v1126_v13  ;;  %v1128_v15 = vld [vmem:[%s9146_s20 + $0x78] sm:$0xff] (!%p6637_p13)  ;;  %v1129_v16 = vld [vmem:[%s9146_s20 + $0x80] sm:$0xff] (!%p6637_p13) }
 0x190   : > { %1159 = vst [vmem:[#allocation2 + $0x70] sm:$0xff] %v1127_v14  ;;  %v1130_v17 = vld [vmem:[%s9146_s20 + $0x88] sm:$0xff]  ;;  %1160 = vst [vmem:[#allocation2 + $0x78] sm:$0xff] %v1128_v15  ;;  %v1131_v18 = vld [vmem:[%s9146_s20 + $0x90] sm:$0xff] }
 0x191   : > { %1161 = vst [vmem:[#allocation2 + $0x80] sm:$0xff] %v1129_v16  ;;  %1162 = vst [vmem:[#allocation2 + $0x88] sm:$0xff] %v1130_v17  ;;  %v1132_v19 = vld [vmem:[%s9146_s20 + $0x98] sm:$0xff]  ;;  %v1133_v20 = vld [vmem:[%s9146_s20 + $0xa0] sm:$0xff] }
 0x192   : > { %1163 = vst [vmem:[#allocation2 + $0x90] sm:$0xff] %v1131_v18  ;;  %1164 = vst [vmem:[#allocation2 + $0x98] sm:$0xff] %v1132_v19  ;;  %v1134_v21 = vld [vmem:[%s9146_s20 + $0xa8] sm:$0xff]  ;;  %v1135_v22 = vld [vmem:[%s9146_s20 + $0xb0] sm:$0xff] }
 0x193   : > { %1165 = vst [vmem:[#allocation2 + $0xa0] sm:$0xff] %v1133_v20  ;;  %v1136_v23 = vld [vmem:[%s9146_s20 + $0xb8] sm:$0xff]  ;;  %1166 = vst [vmem:[#allocation2 + $0xa8] sm:$0xff] %v1134_v21  ;;  %v1137_v24 = vld [vmem:[%s9146_s20 + $0xc0] sm:$0xff] }
 0x194   : > { %1167 = vst [vmem:[#allocation2 + $0xb0] sm:$0xff] %v1135_v22  ;;  %1168 = vst [vmem:[#allocation2 + $0xb8] sm:$0xff] %v1136_v23  ;;  %v1138_v25 = vld [vmem:[%s9146_s20 + $0xc8] sm:$0xff]  ;;  %v1139_v26 = vld [vmem:[%s9146_s20 + $0xd0] sm:$0xff] }
 0x195   : > { %1169 = vst [vmem:[#allocation2 + $0xc0] sm:$0xff] %v1137_v24  ;;  %1170 = vst [vmem:[#allocation2 + $0xc8] sm:$0xff] %v1138_v25  ;;  %v1140_v27 = vld [vmem:[%s9146_s20 + $0xd8] sm:$0xff]  ;;  %v1141_v28 = vld [vmem:[%s9146_s20 + $0xe0] sm:$0xff] }
 0x196   : > { %1171 = vst [vmem:[#allocation2 + $0xd0] sm:$0xff] %v1139_v26  ;;  %v1142_v29 = vld [vmem:[%s9146_s20 + $0xe8] sm:$0xff]  ;;  %1172 = vst [vmem:[#allocation2 + $0xd8] sm:$0xff] %v1140_v27  ;;  %v1143_v30 = vld [vmem:[%s9146_s20 + $0xf0] sm:$0xff] }
 0x197   : > { %1173 = vst [vmem:[#allocation2 + $0xe0] sm:$0xff] %v1141_v28  ;;  %1174 = vst [vmem:[#allocation2 + $0xe8] sm:$0xff] %v1142_v29  ;;  %v1144_v31 = vld [vmem:[%s9146_s20 + $0xf8] sm:$0xff] }
 0x198   : > { %1175 = vst [vmem:[#allocation2 + $0xf0] sm:$0xff] %v1143_v30  ;;  %1176 = vst [vmem:[#allocation2 + $0xf8] sm:$0xff] %v1144_v31 }
 0x199 PF: > { %v7354_v32 = vld [vmem:[%s9165_s24 + $0x4] ss:$8 sps:$4 sm:$0xff]   ;;  %v7356_v33 = vld [vmem:[%s9165_s24] ss:$8 sps:$4 sm:$0xff]   ;;  %v7357_v34 = vld [vmem:[%s9165_s24 + $0x14] ss:$8 sps:$4 sm:$0xff]  }
 0x19a   : > { %1746 = vmatprep.subr.bf16.mxu1 %v7354_v32  ;;  %v7359_v35 = vld [vmem:[%s9165_s24 + $0x10] ss:$8 sps:$4 sm:$0xff]   ;;  %v7360_v36 = vld [vmem:[%s9165_s24 + $0x24] ss:$8 sps:$4 sm:$0xff]   ;;  %v7362_v37 = vld [vmem:[%s9165_s24 + $0x20] ss:$8 sps:$4 sm:$0xff]  }
 0x19b   : > { %1747 = vmatpush1.bf16.msra.mxu1 %v7356_v33  ;;  %v7363_v38 = vld [vmem:[%s9165_s24 + $0x34] ss:$8 sps:$4 sm:$0xff]   ;;  %v7365_v39 = vld [vmem:[%s9165_s24 + $0x30] ss:$8 sps:$4 sm:$0xff]   ;;  %v7366_v40 = vld [vmem:[%s9165_s24 + $0x44] ss:$8 sps:$4 sm:$0xff]  }
 0x19c   : > { %1748 = vmatprep.subr.bf16.mxu1 %v7357_v34  ;;  %v7368_v41 = vld [vmem:[%s9165_s24 + $0x40] ss:$8 sps:$4 sm:$0xff]   ;;  %v7369_v42 = vld [vmem:[%s9165_s24 + $0x54] ss:$8 sps:$4 sm:$0xff]   ;;  %v7371_v43 = vld [vmem:[%s9165_s24 + $0x50] ss:$8 sps:$4 sm:$0xff]  }
 0x19d   : > { %v7372_v44 = vld [vmem:[%s9165_s24 + $0x64] ss:$8 sps:$4 sm:$0xff]   ;;  %v1180_v46 = vld [vmem:[#allocation2 + $0x18] sm:$0xff]  ;;  %v7374_v48 = vld [vmem:[%s9165_s24 + $0x60] ss:$8 sps:$4 sm:$0xff]   ;;  %s12454_s0 = sld [smem:[#allocation148_spill]] }
 0x19e   : > { %v1178_v45 = vld [vmem:[#allocation2 + $0x8] sm:$0xff]  ;;  %v7375_v49 = vld [vmem:[%s9165_s24 + $0x74] ss:$8 sps:$4 sm:$0xff]   ;;  %v7377_v50 = vld [vmem:[%s9165_s24 + $0x70] ss:$8 sps:$4 sm:$0xff]   ;;  %s12472_s10 = sld [smem:[#allocation150_spill]] }
 0x19f   : > { %1749 = vmatpush1.bf16.msra.mxu1 %v7359_v35  ;;  %v9283_v47 = vpack.c.bf16 %v1180_v46, %v1178_v45  ;;  %v7378_v51 = vld [vmem:[%s9165_s24 + $0x84] ss:$8 sps:$4 sm:$0xff]   ;;  %v7380_v52 = vld [vmem:[%s9165_s24 + $0x80] ss:$8 sps:$4 sm:$0xff]   ;;  %v7381_v53 = vld [vmem:[%s9165_s24 + $0x94] ss:$8 sps:$4 sm:$0xff]  }
 0x1a0   : > { %1750 = vmatprep.subr.bf16.mxu1 %v7360_v36  ;;  %v7402_v54 = vld [vmem:[%s9159_s30 + $0x4] ss:$8 sps:$4 sm:$0xff]   ;;  %v7404_v55 = vld [vmem:[%s9159_s30] ss:$8 sps:$4 sm:$0xff]   ;;  %v7383_v56 = vld [vmem:[%s9165_s24 + $0x90] ss:$8 sps:$4 sm:$0xff]  }
 0x1a1   : > { %1778 = vmatprep.mubr.bf16.mxu1 %v9283_v47  ;;  %1461 = vmatprep.mubr.bf16.mxu0 %v9283_v47  ;;  %v7405_v57 = vld [vmem:[%s9159_s30 + $0x14] ss:$8 sps:$4 sm:$0xff]   ;;  %v7384_v58 = vld [vmem:[%s9165_s24 + $0xa4] ss:$8 sps:$4 sm:$0xff]   ;;  %v7407_v59 = vld [vmem:[%s9159_s30 + $0x10] ss:$8 sps:$4 sm:$0xff]  }
 0x1a2   : > { %1429 = vmatprep.subr.bf16.mxu0 %v7402_v54  ;;  %v7408_v60 = vld [vmem:[%s9159_s30 + $0x24] ss:$8 sps:$4 sm:$0xff]   ;;  %v7386_v61 = vld [vmem:[%s9165_s24 + $0xa0] ss:$8 sps:$4 sm:$0xff]   ;;  %v7387_v62 = vld [vmem:[%s9165_s24 + $0xb4] ss:$8 sps:$4 sm:$0xff]  }
 0x1a3   : > { %1751 = vmatpush1.bf16.msra.mxu1 %v7362_v37  ;;  %1430 = vmatpush1.bf16.msra.mxu0 %v7404_v55  ;;  %v7410_v63 = vld [vmem:[%s9159_s30 + $0x20] ss:$8 sps:$4 sm:$0xff]   ;;  %v7411_v0 = vld [vmem:[%s9159_s30 + $0x34] ss:$8 sps:$4 sm:$0xff]   ;;  %v7389_v1 = vld [vmem:[%s9165_s24 + $0xb0] ss:$8 sps:$4 sm:$0xff]   ;;  %s12455_s16 = scalar_lea.vmem %s12454_s0, %s9193_s4 }
 0x1a4   : > { %1752 = vmatprep.subr.bf16.mxu1 %v7363_v38  ;;  %1431 = vmatprep.subr.bf16.mxu0 %v7405_v57  ;;  %v7390_v2 = vld [vmem:[%s9165_s24 + $0xc4] ss:$8 sps:$4 sm:$0xff]   ;;  %v7413_v3 = vld [vmem:[%s9159_s30 + $0x30] ss:$8 sps:$4 sm:$0xff]   ;;  %v7392_v5 = vld [vmem:[%s9165_s24 + $0xc0] ss:$8 sps:$4 sm:$0xff]   ;;  %s12473_s26 = scalar_lea.vmem %s12472_s10, %s9193_s4 }
 0x1a5   : > { %v7414_v4 = vld [vmem:[%s9159_s30 + $0x44] ss:$8 sps:$4 sm:$0xff]   ;;  %v7393_v6 = vld [vmem:[%s9165_s24 + $0xd4] ss:$8 sps:$4 sm:$0xff]   ;;  %v7416_v7 = vld [vmem:[%s9159_s30 + $0x40] ss:$8 sps:$4 sm:$0xff]  }
 0x1a6   : > { %v7417_v8 = vld [vmem:[%s9159_s30 + $0x54] ss:$8 sps:$4 sm:$0xff]   ;;  %v7395_v9 = vld [vmem:[%s9165_s24 + $0xd0] ss:$8 sps:$4 sm:$0xff]   ;;  %v7396_v10 = vld [vmem:[%s9165_s24 + $0xe4] ss:$8 sps:$4 sm:$0xff]  }
 0x1a7   : > { %1753 = vmatpush1.bf16.msra.mxu1 %v7365_v39  ;;  %1432 = vmatpush1.bf16.msra.mxu0 %v7407_v59  ;;  %v7419_v11 = vld [vmem:[%s9159_s30 + $0x50] ss:$8 sps:$4 sm:$0xff]   ;;  %v7420_v12 = vld [vmem:[%s9159_s30 + $0x64] ss:$8 sps:$4 sm:$0xff]   ;;  %v7398_v13 = vld [vmem:[%s9165_s24 + $0xe0] ss:$8 sps:$4 sm:$0xff]  }
 0x1a8   : > { %1754 = vmatprep.subr.bf16.mxu1 %v7366_v40  ;;  %1433 = vmatprep.subr.bf16.mxu0 %v7408_v60  ;;  %v7422_v14 = vld [vmem:[%s9159_s30 + $0x60] ss:$8 sps:$4 sm:$0xff]   ;;  %v7399_v15 = vld [vmem:[%s9165_s24 + $0xf4] ss:$8 sps:$4 sm:$0xff]   ;;  %v7401_v17 = vld [vmem:[%s9165_s24 + $0xf0] ss:$8 sps:$4 sm:$0xff]  }
 0x1a9   : > { %v7423_v16 = vld [vmem:[%s9159_s30 + $0x74] ss:$8 sps:$4 sm:$0xff]   ;;  %v7425_v20 = vld [vmem:[%s9159_s30 + $0x70] ss:$8 sps:$4 sm:$0xff]   ;;  %v1182_v21 = vld [vmem:[#allocation2 + $0x28] sm:$0xff]  ;;  %s12474_s19 = sld [smem:[#allocation46_spill]] }
 0x1aa   : > { %v1177_v18 = vld [vmem:[#allocation2] sm:$0xff]  ;;  %v1179_v19 = vld [vmem:[#allocation2 + $0x10] sm:$0xff]  ;;  %v1184_v22 = vld [vmem:[#allocation2 + $0x38] sm:$0xff]  ;;  %s12475_s11 = sld [smem:[#allocation47_spill]]  ;;  %s12476_s14 = sld [smem:[#allocation151_spill]] }
 0x1ab   : > { %1755 = vmatpush1.bf16.msra.mxu1 %v7368_v41  ;;  %1434 = vmatpush1.bf16.msra.mxu0 %v7410_v63  ;;  %v7426_v23 = vld [vmem:[%s9159_s30 + $0x84] ss:$8 sps:$4 sm:$0xff]   ;;  %v7428_v24 = vld [vmem:[%s9159_s30 + $0x80] ss:$8 sps:$4 sm:$0xff]   ;;  %v9324_v25 = vpack.c.bf16 %v1179_v19, %v1177_v18  ;;  %v7429_v26 = vld [vmem:[%s9159_s30 + $0x94] ss:$8 sps:$4 sm:$0xff]   ;;  %v9327_v27 = vpack.c.bf16 %v1184_v22, %v1182_v21 }
 0x1ac   : > { %1756 = vmatprep.subr.bf16.mxu1 %v7369_v42  ;;  %1435 = vmatprep.subr.bf16.mxu0 %v7411_v0  ;;  %v1181_v28 = vld [vmem:[#allocation2 + $0x20] sm:$0xff]  ;;  %v1183_v29 = vld [vmem:[#allocation2 + $0x30] sm:$0xff]  ;;  %v1186_v31 = vld [vmem:[#allocation2 + $0x48] sm:$0xff] }
 0x1ad   : > { %v7431_v30 = vld [vmem:[%s9159_s30 + $0x90] ss:$8 sps:$4 sm:$0xff]   ;;  %v7432_v33 = vld [vmem:[%s9159_s30 + $0xa4] ss:$8 sps:$4 sm:$0xff]   ;;  %v7434_v34 = vld [vmem:[%s9159_s30 + $0xa0] ss:$8 sps:$4 sm:$0xff]   ;;  %v9334_v35 = vpack.c.bf16 %v1183_v29, %v1181_v28 }
 0x1ae   : > { %v1188_v32 = vld [vmem:[#allocation2 + $0x58] sm:$0xff]  ;;  %v1185_v38 = vld [vmem:[#allocation2 + $0x40] sm:$0xff]  ;;  %v1187_v39 = vld [vmem:[#allocation2 + $0x50] sm:$0xff] }
 0x1af   : > { %1757 = vmatpush1.bf16.msra.mxu1 %v7371_v43  ;;  %1436 = vmatpush1.bf16.msra.mxu0 %v7413_v3  ;;  %v7435_v36 = vld [vmem:[%s9159_s30 + $0xb4] ss:$8 sps:$4 sm:$0xff]   ;;  %v9337_v37 = vpack.c.bf16 %v1188_v32, %v1186_v31  ;;  %v7437_v40 = vld [vmem:[%s9159_s30 + $0xb0] ss:$8 sps:$4 sm:$0xff]   ;;  %v1190_v41 = vld [vmem:[#allocation2 + $0x68] sm:$0xff]  ;;  %v9344_v45 = vpack.c.bf16 %v1187_v39, %v1185_v38 }
 0x1b0   : > { %1758 = vmatprep.subr.bf16.mxu1 %v7372_v44  ;;  %1437 = vmatprep.subr.bf16.mxu0 %v7414_v4  ;;  %v1192_v42 = vld [vmem:[#allocation2 + $0x78] sm:$0xff]  ;;  %v7438_v43 = vld [vmem:[%s9159_s30 + $0xc4] ss:$8 sps:$4 sm:$0xff]   ;;  %v7440_v44 = vld [vmem:[%s9159_s30 + $0xc0] ss:$8 sps:$4 sm:$0xff]   ;;  %s12477_s2 = scalar_lea.vmem %s12476_s14, %s9193_s4 }
 0x1b1   : > { %v7441_v46 = vld [vmem:[%s9159_s30 + $0xd4] ss:$8 sps:$4 sm:$0xff]   ;;  %v7444_v54 = vld [vmem:[%s9159_s30 + $0xe4] ss:$8 sps:$4 sm:$0xff]   ;;  %v7446_v55 = vld [vmem:[%s9159_s30 + $0xe0] ss:$8 sps:$4 sm:$0xff]  }
 0x1b2   : > { %v7447_v57 = vld [vmem:[%s9159_s30 + $0xf4] ss:$8 sps:$4 sm:$0xff]   ;;  %v1202_v4 = vld [vmem:[#allocation2 + $0xc8] sm:$0xff]  ;;  %v7465_v29 = vld [vmem:[%s9171_s1 + $0x50] ss:$8 sps:$4 sm:$0xff]  }
 0x1b3   : > { %1759 = vmatpush1.bf16.msra.mxu1 %v7374_v48  ;;  %1438 = vmatpush1.bf16.msra.mxu0 %v7416_v7  ;;  %v9347_v48 = vpack.c.bf16 %v1192_v42, %v1190_v41  ;;  %v1193_v59 = vld [vmem:[#allocation2 + $0x80] sm:$0xff]  ;;  %v1195_v60 = vld [vmem:[#allocation2 + $0x90] sm:$0xff]  ;;  %v1200_v63 = vld [vmem:[#allocation2 + $0xb8] sm:$0xff] }
 0x1b4   : > { %1760 = vmatprep.subr.bf16.mxu1 %v7375_v49  ;;  %1439 = vmatprep.subr.bf16.mxu0 %v7417_v8  ;;  %v1189_v49 = vld [vmem:[#allocation2 + $0x60] sm:$0xff]  ;;  %v9362_v0 = vpack.c.bf16 %v1195_v60, %v1193_v59  ;;  %v1199_v3 = vld [vmem:[#allocation2 + $0xb0] sm:$0xff] }
 0x1b5   : > { %v1201_v8 = vld [vmem:[#allocation2 + $0xc0] sm:$0xff]  ;;  %v7477_v39 = vld [vmem:[%s9171_s1 + $0x90] ss:$8 sps:$4 sm:$0xff]  }
 0x1b6   : > { %v7450_v18 = vld [vmem:[%s9171_s1] ss:$8 sps:$4 sm:$0xff]   ;;  %v7455_v19 = vld [vmem:[%s9171_s1 + $0x14] ss:$8 sps:$4 sm:$0xff]   ;;  %v7458_v21 = vld [vmem:[%s9171_s1 + $0x24] ss:$8 sps:$4 sm:$0xff]  }
 0x1b7   : > { %1761 = vmatpush1.bf16.msra.mxu1 %v7377_v50  ;;  %1440 = vmatpush1.bf16.msra.mxu0 %v7419_v11  ;;  %v1191_v50 = vld [vmem:[#allocation2 + $0x70] sm:$0xff]  ;;  %v1208_v11 = vld [vmem:[#allocation2 + $0xf8] sm:$0xff]  ;;  %v7456_v22 = vld [vmem:[%s9171_s1 + $0x20] ss:$8 sps:$4 sm:$0xff]  }
 0x1b8   : > { %1762 = vmatprep.subr.bf16.mxu1 %v7378_v51  ;;  %1441 = vmatprep.subr.bf16.mxu0 %v7420_v12  ;;  %v7443_v51 = vld [vmem:[%s9159_s30 + $0xd0] ss:$8 sps:$4 sm:$0xff]   ;;  %v7467_v28 = vld [vmem:[%s9171_s1 + $0x54] ss:$8 sps:$4 sm:$0xff]   ;;  %v7468_v31 = vld [vmem:[%s9171_s1 + $0x60] ss:$8 sps:$4 sm:$0xff]  }
 0x1b9   : > { %v7473_v32 = vld [vmem:[%s9171_s1 + $0x74] ss:$8 sps:$4 sm:$0xff]   ;;  %v7480_v41 = vld [vmem:[%s9171_s1 + $0xa0] ss:$8 sps:$4 sm:$0xff]  }
 0x1ba   : > { %v7479_v38 = vld [vmem:[%s9171_s1 + $0x94] ss:$8 sps:$4 sm:$0xff]  }
 0x1bb   : > { %1763 = vmatpush1.bf16.msra.mxu1 %v7380_v52  ;;  %1442 = vmatpush1.bf16.msra.mxu0 %v7422_v14  ;;  %v1194_v52 = vld [vmem:[#allocation2 + $0x88] sm:$0xff]  ;;  %v1205_v14 = vld [vmem:[#allocation2 + $0xe0] sm:$0xff] }
 0x1bc   : > { %1764 = vmatprep.subr.bf16.mxu1 %v7381_v53  ;;  %1443 = vmatprep.subr.bf16.mxu0 %v7423_v16  ;;  %v1196_v53 = vld [vmem:[#allocation2 + $0x98] sm:$0xff] }
 0x1bd   : > { %v7485_v42 = vld [vmem:[%s9171_s1 + $0xb4] ss:$8 sps:$4 sm:$0xff]  }
 0x1bf   : > { %1765 = vmatpush1.bf16.msra.mxu1 %v7383_v56  ;;  %1444 = vmatpush1.bf16.msra.mxu0 %v7425_v20  ;;  %v9354_v56 = vpack.c.bf16 %v1191_v50, %v1189_v49  ;;  %v7453_v20 = vld [vmem:[%s9171_s1 + $0x10] ss:$8 sps:$4 sm:$0xff]   ;;  %v7491_v49 = vld [vmem:[%s9171_s1 + $0xd4] ss:$8 sps:$4 sm:$0xff]  }
 0x1c0   : > { %1766 = vmatprep.subr.bf16.mxu1 %v7384_v58  ;;  %1445 = vmatprep.subr.bf16.mxu0 %v7426_v23  ;;  %v9357_v58 = vpack.c.bf16 %v1196_v53, %v1194_v52  ;;  %v7461_v23 = vld [vmem:[%s9171_s1 + $0x34] ss:$8 sps:$4 sm:$0xff]   ;;  %v7489_v50 = vld [vmem:[%s9171_s1 + $0xd0] ss:$8 sps:$4 sm:$0xff]   ;;  %v7494_v52 = vld [vmem:[%s9171_s1 + $0xe4] ss:$8 sps:$4 sm:$0xff]  }
 0x1c1   : > { %v7497_v53 = vld [vmem:[%s9171_s1 + $0xf4] ss:$8 sps:$4 sm:$0xff]  }
 0x1c3   : > { %1767 = vmatpush1.bf16.msra.mxu1 %v7386_v61  ;;  %1446 = vmatpush1.bf16.msra.mxu0 %v7428_v24  ;;  %v7449_v61 = vld [vmem:[%s9159_s30 + $0xf0] ss:$8 sps:$4 sm:$0xff]   ;;  %v7464_v24 = vld [vmem:[%s9171_s1 + $0x44] ss:$8 sps:$4 sm:$0xff]  }
 0x1c4   : > { %1768 = vmatprep.subr.bf16.mxu1 %v7387_v62  ;;  %1447 = vmatprep.subr.bf16.mxu0 %v7429_v26  ;;  %v1198_v62 = vld [vmem:[#allocation2 + $0xa8] sm:$0xff] }
 0x1c5   : > { %v7462_v26 = vld [vmem:[%s9171_s1 + $0x40] ss:$8 sps:$4 sm:$0xff]  }
 0x1c7   : > { %1769 = vmatpush1.bf16.msra.mxu1 %v7389_v1  ;;  %1448 = vmatpush1.bf16.msra.mxu0 %v7431_v30  ;;  %v9364_v1 = vpack.c.bf16 %v1200_v63, %v1198_v62  ;;  %v7470_v30 = vld [vmem:[%s9171_s1 + $0x64] ss:$8 sps:$4 sm:$0xff]  }
 0x1c8   : > { %1770 = vmatprep.subr.bf16.mxu1 %v7390_v2  ;;  %1449 = vmatprep.subr.bf16.mxu0 %v7432_v33  ;;  %v1197_v2 = vld [vmem:[#allocation2 + $0xa0] sm:$0xff]  ;;  %v7471_v33 = vld [vmem:[%s9171_s1 + $0x70] ss:$8 sps:$4 sm:$0xff]  }
 0x1cb   : > { %1771 = vmatpush1.bf16.msra.mxu1 %v7392_v5  ;;  %1450 = vmatpush1.bf16.msra.mxu0 %v7434_v34  ;;  %v1204_v5 = vld [vmem:[#allocation2 + $0xd8] sm:$0xff]  ;;  %v7476_v34 = vld [vmem:[%s9171_s1 + $0x84] ss:$8 sps:$4 sm:$0xff]  }
 0x1cc   : > { %1772 = vmatprep.subr.bf16.mxu1 %v7393_v6  ;;  %1451 = vmatprep.subr.bf16.mxu0 %v7435_v36  ;;  %v9370_v6 = vpack.c.bf16 %v1199_v3, %v1197_v2  ;;  %v9372_v7 = vpack.c.bf16 %v1204_v5, %v1202_v4  ;;  %v7474_v36 = vld [vmem:[%s9171_s1 + $0x80] ss:$8 sps:$4 sm:$0xff]  }
 0x1cf   : > { %1773 = vmatpush1.bf16.msra.mxu1 %v7395_v9  ;;  %1452 = vmatpush1.bf16.msra.mxu0 %v7437_v40  ;;  %v1203_v9 = vld [vmem:[#allocation2 + $0xd0] sm:$0xff] }
 0x1d0   : > { %1774 = vmatprep.subr.bf16.mxu1 %v7396_v10  ;;  %1453 = vmatprep.subr.bf16.mxu0 %v7438_v43  ;;  %v1206_v10 = vld [vmem:[#allocation2 + $0xe8] sm:$0xff]  ;;  %v9378_v12 = vpack.c.bf16 %v1203_v9, %v1201_v8  ;;  %v7483_v43 = vld [vmem:[%s9171_s1 + $0xb0] ss:$8 sps:$4 sm:$0xff]  }
 0x1d1   : > { %v7482_v40 = vld [vmem:[%s9171_s1 + $0xa4] ss:$8 sps:$4 sm:$0xff]  }
 0x1d3   : > { %1775 = vmatpush1.bf16.msra.mxu1 %v7398_v13  ;;  %1454 = vmatpush1.bf16.msra.mxu0 %v7440_v44  ;;  %v9380_v13 = vpack.c.bf16 %v1208_v11, %v1206_v10  ;;  %v7488_v44 = vld [vmem:[%s9171_s1 + $0xc4] ss:$8 sps:$4 sm:$0xff]  }
 0x1d4   : > { %1776 = vmatprep.subr.bf16.mxu1 %v7399_v15  ;;  %1455 = vmatprep.subr.bf16.mxu0 %v7441_v46  ;;  %v1207_v15 = vld [vmem:[#allocation2 + $0xf0] sm:$0xff]  ;;  %v7486_v46 = vld [vmem:[%s9171_s1 + $0xc0] ss:$8 sps:$4 sm:$0xff]  }
 0x1d5   : > { %v9386_v16 = vpack.c.bf16 %v1207_v15, %v1205_v14 }
 0x1d7   : > { %1777 = vmatpush1.bf16.msra.mxu1 %v7401_v17  ;;  %1456 = vmatpush1.bf16.msra.mxu0 %v7443_v51  ;;  %v7452_v17 = vld [vmem:[%s9171_s1 + $0x4] ss:$8 sps:$4 sm:$0xff]   ;;  %v7492_v51 = vld [vmem:[%s9171_s1 + $0xe0] ss:$8 sps:$4 sm:$0xff]  }
 0x1d8   : > { %1457 = vmatprep.subr.bf16.mxu0 %v7444_v54  ;;  %v7495_v54 = vld [vmem:[%s9171_s1 + $0xf0] ss:$8 sps:$4 sm:$0xff]  }
 0x1da   : > { %1779 = vmatmul.mubr.bf16.vlgmr.msra.gmra.mrb[0].mxu1 %v9324_v25 }
 0x1db   : > { %1788 = vmatprep.mubr.bf16.mxu1 %v9327_v27  ;;  %1458 = vmatpush1.bf16.msra.mxu0 %v7446_v55  ;;  %v1259_v55 = vlaneseq }
 0x1dc   : > { %1459 = vmatprep.subr.bf16.mxu0 %v7447_v57 }
 0x1df   : > { %1460 = vmatpush1.bf16.msra.mxu0 %v7449_v61 }
 0x1e0   : > { %2063 = vmatprep.subr.bf16.mxu0 %v7452_v17 }
 0x1e2   : > { %1789 = vmatmul.mubr.bf16.gmra.mrb[4].mxu1 %v9334_v35  ;;  %1462 = vmatmul.mubr.bf16.vlgmr.msra.gmra.mrb[0].mxu0 %v9324_v25 }
 0x1e3   : > { %1798 = vmatprep.mubr.bf16.mxu1 %v9337_v37  ;;  %1471 = vmatprep.mubr.bf16.mxu0 %v9327_v27 }
 0x1e4   : > { %2064 = vmatpush1.bf16.msra.mxu0 %v7450_v18 }
 0x1e5   : > { %2065 = vmatprep.subr.bf16.mxu0 %v7455_v19 }
 0x1e8   : > { %2066 = vmatpush1.bf16.msra.mxu0 %v7453_v20 }
 0x1e9   : > { %2067 = vmatprep.subr.bf16.mxu0 %v7458_v21 }
 0x1ea   : > { %1799 = vmatmul.mubr.bf16.gmra.mrb[8].mxu1 %v9344_v45  ;;  %1472 = vmatmul.mubr.bf16.gmra.mrb[4].mxu0 %v9334_v35 }
 0x1eb   : > { %1808 = vmatprep.mubr.bf16.mxu1 %v9347_v48  ;;  %1481 = vmatprep.mubr.bf16.mxu0 %v9337_v37 }
 0x1ec   : > { %2068 = vmatpush1.bf16.msra.mxu0 %v7456_v22 }
 0x1ed   : > { %2069 = vmatprep.subr.bf16.mxu0 %v7461_v23 }
 0x1f2   : > { %1809 = vmatmul.mubr.bf16.gmra.mrb[12].mxu1 %v9354_v56  ;;  %1482 = vmatmul.mubr.bf16.gmra.mrb[8].mxu0 %v9344_v45 }
 0x1f3   : > { %1818 = vmatprep.mubr.bf16.mxu1 %v9357_v58  ;;  %1491 = vmatprep.mubr.bf16.mxu0 %v9347_v48 }
 0x1fa   : > { %1819 = vmatmul.mubr.bf16.gmra.mrb[16].mxu1 %v9362_v0  ;;  %1492 = vmatmul.mubr.bf16.gmra.mrb[12].mxu0 %v9354_v56 }
 0x1fb   : > { %1828 = vmatprep.mubr.bf16.mxu1 %v9364_v1  ;;  %1501 = vmatprep.mubr.bf16.mxu0 %v9357_v58 }
 0x202   : > { %1829 = vmatmul.mubr.bf16.gmra.mrb[20].mxu1 %v9370_v6  ;;  %1502 = vmatmul.mubr.bf16.gmra.mrb[16].mxu0 %v9362_v0 }
 0x203   : > { %1838 = vmatprep.mubr.bf16.mxu1 %v9372_v7  ;;  %1511 = vmatprep.mubr.bf16.mxu0 %v9364_v1 }
 0x20a   : > { %1839 = vmatmul.mubr.bf16.gmra.mrb[24].mxu1 %v9378_v12  ;;  %1512 = vmatmul.mubr.bf16.gmra.mrb[20].mxu0 %v9370_v6 }
 0x20b   : > { %1848 = vmatprep.mubr.bf16.mxu1 %v9380_v13  ;;  %1521 = vmatprep.mubr.bf16.mxu0 %v9372_v7 }
 0x212   : > { %1849 = vmatmul.mubr.bf16.gmra.mrb[28].mxu1 %v9386_v16  ;;  %1522 = vmatmul.mubr.bf16.gmra.mrb[24].mxu0 %v9378_v12 }
 0x213   : > { %1531 = vmatprep.mubr.bf16.mxu0 %v9380_v13 }
 0x21a   : > { %1532 = vmatmul.mubr.bf16.gmra.mrb[28].mxu0 %v9386_v16 }
 0x21b   : > { %2095 = vmatprep.mubr.bf16.mxu0 %v9283_v47  ;;  %v7459_v47 = vld [vmem:[%s9171_s1 + $0x30] ss:$8 sps:$4 sm:$0xff]   ;;  %s12452_s1 = sld [smem:[#allocation144_spill]] }
 0x21c   : > { %2070 = vmatpush1.bf16.msra.mxu0 %v7459_v47 }
 0x21d   : > { %2071 = vmatprep.subr.bf16.mxu0 %v7464_v24 }
 0x220   : > { %2072 = vmatpush1.bf16.msra.mxu0 %v7462_v26 }
 0x221   : > { %2073 = vmatprep.subr.bf16.mxu0 %v7467_v28  ;;  %s12453_s8 = scalar_lea.vmem %s12452_s1, %s9193_s4  ;;  %s12673_s4 = sld [smem:[#allocation32_spill]] }
 0x222   : > { %v1257_v47 = vld [vmem:[%s12453_s8] sm:$0x3] }
 0x224   : > { %2074 = vmatpush1.bf16.msra.mxu0 %v7465_v29 }
 0x225   : > { %2075 = vmatprep.subr.bf16.mxu0 %v7470_v30 }
 0x227   : > { %p6895_p9 = scmp.ne.s32.totalorder %s12673_s4, 1 }
 0x228   : > { %2076 = vmatpush1.bf16.msra.mxu0 %v7468_v31  ;;  %s12674_s3 = sld [smem:[#allocation160_spill]] (!%p6895_p9) }
 0x229   : > { %2077 = vmatprep.subr.bf16.mxu0 %v7473_v32 }
 0x22c   : > { %2078 = vmatpush1.bf16.msra.mxu0 %v7471_v33 }
 0x22d   : > { %2079 = vmatprep.subr.bf16.mxu0 %v7476_v34 }
 0x230   : > { %2080 = vmatpush1.bf16.msra.mxu0 %v7474_v36 }
 0x231   : > { %2081 = vmatprep.subr.bf16.mxu0 %v7479_v38 }
 0x234   : > { %2082 = vmatpush1.bf16.msra.mxu0 %v7477_v39 }
 0x235   : > { %2083 = vmatprep.subr.bf16.mxu0 %v7482_v40 }
 0x238   : > { %2084 = vmatpush1.bf16.msra.mxu0 %v7480_v41 }
 0x239   : > { %2085 = vmatprep.subr.bf16.mxu0 %v7485_v42 }
 0x23c   : > { %2086 = vmatpush1.bf16.msra.mxu0 %v7483_v43 }
 0x23d   : > { %2087 = vmatprep.subr.bf16.mxu0 %v7488_v44 }
 0x240   : > { %2088 = vmatpush1.bf16.msra.mxu0 %v7486_v46 }
 0x241   : > { %2089 = vmatprep.subr.bf16.mxu0 %v7491_v49 }
 0x244   : > { %2090 = vmatpush1.bf16.msra.mxu0 %v7489_v50 }
 0x245   : > { %2091 = vmatprep.subr.bf16.mxu0 %v7494_v52 }
 0x248   : > { %2092 = vmatpush1.bf16.msra.mxu0 %v7492_v51 }
 0x249   : > { %2093 = vmatprep.subr.bf16.mxu0 %v7497_v53 }
 0x24c   : > { %2094 = vmatpush1.bf16.msra.mxu0 %v7495_v54 }
 0x24f   : > { %2096 = vmatmul.mubr.bf16.vlgmr.msra.gmra.mrb[32].mxu0 %v9324_v25  ;;  %v9443_v25 = vshrl.u32 %v1259_v55, 7 }
 0x250   : > { %2105 = vmatprep.mubr.bf16.mxu0 %v9327_v27 }
 0x251   : > { %12448 = vst [vmem:[#allocation48_spill] sm:$0xff] %v9443_v25  ;;  %v9446_v27 = vsub.s32 0, %v9443_v25 }
 0x253   : > { %12449 = vst [vmem:[#allocation49_spill] sm:$0xff] %v9446_v27  ;;  %v9487_v24 = vrot.slane %v1257_v47, %v9446_v27 }
 0x257   : > { %2106 = vmatmul.mubr.bf16.gmra.mrb[36].mxu0 %v9334_v35  ;;  %v1574_v35 = vld [vmem:[%s1075_s13] sm:$0x3]  ;;  %s12471_s13 = scalar_lea.vmem [#allocation6], %s9142_s29 }
 0x258   : > { %2115 = vmatprep.mubr.bf16.mxu0 %v9337_v37  ;;  %v9454_v37 = vsub.s32 1, %v9443_v25 }
 0x25a   : > { %12451 = vst [vmem:[#allocation50_spill] sm:$0xff] %v9454_v37  ;;  %v9490_v26 = vrot.slane %v1257_v47, %v9454_v37 }
 0x25f   : > { %2116 = vmatmul.mubr.bf16.gmra.mrb[40].mxu0 %v9344_v45  ;;  %v9459_v45 = vrot.slane %v1574_v35, %v9446_v27 }
 0x260   : > { %2125 = vmatprep.mubr.bf16.mxu0 %v9347_v48  ;;  %v9462_v48 = vrot.slane %v1574_v35, %v9454_v37 }
 0x267   : > { %2126 = vmatmul.mubr.bf16.gmra.mrb[44].mxu0 %v9354_v56 }
 0x268   : > { %2135 = vmatprep.mubr.bf16.mxu0 %v9357_v58 }
 0x26f   : > { %2136 = vmatmul.mubr.bf16.gmra.mrb[48].mxu0 %v9362_v0 }
 0x270   : > { %2145 = vmatprep.mubr.bf16.mxu0 %v9364_v1 }
 0x277   : > { %2146 = vmatmul.mubr.bf16.gmra.mrb[52].mxu0 %v9370_v6 }
 0x278   : > { %2155 = vmatprep.mubr.bf16.mxu0 %v9372_v7 }
 0x27f   : > { %2156 = vmatmul.mubr.bf16.gmra.mrb[56].mxu0 %v9378_v12 }
 0x280   : > { %2165 = vmatprep.mubr.bf16.mxu0 %v9380_v13 }
 0x287   : > { %2166 = vmatmul.mubr.bf16.gmra.mrb[60].mxu0 %v9386_v16 }
 0x2ad   : > { %v1780_v56 = vpop.f32.mrb[0].mxu1 }
 0x2ae   : > { %v1782_v57 = vpop.f32.mrb[1].mxu1  ;;  %v1781_v58 = vadd.f32 %v1780_v56, %v9459_v45 }
 0x2af   : > { %v1784_v59 = vpop.f32.mrb[2].mxu1  ;;  %v1783_v60 = vadd.f32 %v1782_v57, %v9462_v48 }
 0x2b0   : > { %v1786_v61 = vpop.f32.mrb[3].mxu1  ;;  %2177 = vxpose.xlu0.b32.start [1/16] %v1781_v58, 128  ;;  %v1785_v62 = vadd.f32 %v1784_v59, %v9459_v45 }
 0x2b1   : > { %2209 = vxpose.xlu1.b32.start [1/16] %v1783_v60, 128  ;;  %v1787_v63 = vadd.f32 %v1786_v61, %v9462_v48 }
 0x2b4   : > { %2178 = vxpose.xlu0.b32.cont [2/16] %v1785_v62, 128 }
 0x2b5   : > { %v1790_v0 = vpop.f32.mrb[4].mxu1  ;;  %2210 = vxpose.xlu1.b32.cont [2/16] %v1787_v63, 128  ;;  %v1463_v29 = vpop.f32.mrb[0].mxu0 }
 0x2b6   : > { %v1791_v1 = vadd.f32 %v1790_v0, %v9459_v45  ;;  %v1792_v2 = vpop.f32.mrb[5].mxu1  ;;  %v1464_v32 = vadd.f32 %v1463_v29, %v9487_v24  ;;  %v1465_v33 = vpop.f32.mrb[1].mxu0 }
 0x2b7   : > { %v1793_v3 = vadd.f32 %v1792_v2, %v9462_v48  ;;  %v1794_v4 = vpop.f32.mrb[6].mxu1  ;;  %v9496_v38 = vadd.f32 %v1465_v33, %v9490_v26  ;;  %v1467_v39 = vpop.f32.mrb[2].mxu0 }
 0x2b8   : > { %v1796_v5 = vpop.f32.mrb[7].mxu1  ;;  %2179 = vxpose.xlu0.b32.cont [3/16] %v1791_v1, 128  ;;  %v1795_v6 = vadd.f32 %v1794_v4, %v9459_v45  ;;  %v1468_v41 = vadd.f32 %v1467_v39, %v9487_v24  ;;  %v1469_v42 = vpop.f32.mrb[3].mxu0 }
 0x2b9   : > { %2211 = vxpose.xlu1.b32.cont [3/16] %v1793_v3, 128  ;;  %v1797_v7 = vadd.f32 %v1796_v5, %v9462_v48  ;;  %v9500_v43 = vadd.f32 %v1469_v42, %v9490_v26 }
 0x2ba   : > { %v2241_v46 = vpack.c.bf16 %v1468_v41, %v1464_v32 }
 0x2bc   : > { %2180 = vxpose.xlu0.b32.cont [4/16] %v1795_v6, 128  ;;  %7024 = vmatprep.mubr.bf16.mxu0 %v2241_v46 }
 0x2bd   : > { %v1800_v8 = vpop.f32.mrb[8].mxu1  ;;  %2212 = vxpose.xlu1.b32.cont [4/16] %v1797_v7, 128  ;;  %v1473_v52 = vpop.f32.mrb[4].mxu0 }
 0x2be   : > { %v1801_v9 = vadd.f32 %v1800_v8, %v9459_v45  ;;  %v1802_v10 = vpop.f32.mrb[9].mxu1  ;;  %v9508_v55 = vadd.f32 %v1473_v52, %v9487_v24  ;;  %v1475_v35 = vpop.f32.mrb[5].mxu0 }
 0x2bf   : > { %v1803_v11 = vadd.f32 %v1802_v10, %v9462_v48  ;;  %v1804_v12 = vpop.f32.mrb[10].mxu1  ;;  %v9512_v58 = vadd.f32 %v1475_v35, %v9490_v26  ;;  %v1477_v59 = vpop.f32.mrb[6].mxu0 }
 0x2c0   : > { %v1806_v13 = vpop.f32.mrb[11].mxu1  ;;  %2181 = vxpose.xlu0.b32.cont [5/16] %v1801_v9, 128  ;;  %v1805_v14 = vadd.f32 %v1804_v12, %v9459_v45  ;;  %v9515_v61 = vadd.f32 %v1477_v59, %v9487_v24  ;;  %v1479_v62 = vpop.f32.mrb[7].mxu0 }
 0x2c1   : > { %2213 = vxpose.xlu1.b32.cont [5/16] %v1803_v11, 128  ;;  %v1807_v15 = vadd.f32 %v1806_v13, %v9462_v48  ;;  %v9518_v63 = vadd.f32 %v1479_v62, %v9490_v26 }
 0x2c4   : > { %2182 = vxpose.xlu0.b32.cont [6/16] %v1805_v14, 128 }
 0x2c5   : > { %v1810_v16 = vpop.f32.mrb[12].mxu1  ;;  %2214 = vxpose.xlu1.b32.cont [6/16] %v1807_v15, 128  ;;  %v1483_v5 = vpop.f32.mrb[8].mxu0 }
 0x2c6   : > { %v1811_v17 = vadd.f32 %v1810_v16, %v9459_v45  ;;  %v1812_v18 = vpop.f32.mrb[13].mxu1  ;;  %v9528_v8 = vadd.f32 %v1483_v5, %v9487_v24  ;;  %v1485_v9 = vpop.f32.mrb[9].mxu0 }
 0x2c7   : > { %v1813_v19 = vadd.f32 %v1812_v18, %v9462_v48  ;;  %v1814_v20 = vpop.f32.mrb[14].mxu1  ;;  %v9532_v12 = vadd.f32 %v1485_v9, %v9490_v26  ;;  %v1487_v13 = vpop.f32.mrb[10].mxu0 }
 0x2c8   : > { %v1816_v21 = vpop.f32.mrb[15].mxu1  ;;  %2183 = vxpose.xlu0.b32.cont [7/16] %v1811_v17, 128  ;;  %v1815_v22 = vadd.f32 %v1814_v20, %v9459_v45  ;;  %v9535_v15 = vadd.f32 %v1487_v13, %v9487_v24  ;;  %v1489_v16 = vpop.f32.mrb[11].mxu0 }
 0x2c9   : > { %2215 = vxpose.xlu1.b32.cont [7/16] %v1813_v19, 128  ;;  %v1817_v23 = vadd.f32 %v1816_v21, %v9462_v48  ;;  %v9538_v17 = vadd.f32 %v1489_v16, %v9490_v26 }
 0x2cc   : > { %2184 = vxpose.xlu0.b32.cont [8/16] %v1815_v22, 128 }
 0x2cd   : > { %v1820_v28 = vpop.f32.mrb[16].mxu1  ;;  %2216 = vxpose.xlu1.b32.cont [8/16] %v1817_v23, 128  ;;  %v1493_v23 = vpop.f32.mrb[12].mxu0 }
 0x2ce   : > { %v1821_v30 = vadd.f32 %v1820_v28, %v9459_v45  ;;  %v1822_v31 = vpop.f32.mrb[17].mxu1  ;;  %v9548_v29 = vadd.f32 %v1493_v23, %v9487_v24 }
 0x2cf   : > { %v1823_v34 = vadd.f32 %v1822_v31, %v9462_v48  ;;  %v1824_v36 = vpop.f32.mrb[18].mxu1 }
 0x2d0   : > { %v1826_v40 = vpop.f32.mrb[19].mxu1  ;;  %2185 = vxpose.xlu0.b32.cont [9/16] %v1821_v30, 128  ;;  %v1825_v44 = vadd.f32 %v1824_v36, %v9459_v45  ;;  %v1495_v30 = vpop.f32.mrb[13].mxu0 }
 0x2d1   : > { %2217 = vxpose.xlu1.b32.cont [9/16] %v1823_v34, 128  ;;  %v1827_v49 = vadd.f32 %v1826_v40, %v9462_v48  ;;  %v9552_v33 = vadd.f32 %v1495_v30, %v9490_v26  ;;  %v1497_v34 = vpop.f32.mrb[14].mxu0 }
 0x2d2   : > { %v9555_v39 = vadd.f32 %v1497_v34, %v9487_v24  ;;  %v1499_v40 = vpop.f32.mrb[15].mxu0 }
 0x2d3   : > { %v9558_v41 = vadd.f32 %v1499_v40, %v9490_v26 }
 0x2d4   : > { %2186 = vxpose.xlu0.b32.cont [10/16] %v1825_v44, 128 }
 0x2d5   : > { %v1830_v51 = vpop.f32.mrb[20].mxu1  ;;  %2218 = vxpose.xlu1.b32.cont [10/16] %v1827_v49, 128 }
 0x2d6   : > { %v1831_v53 = vadd.f32 %v1830_v51, %v9459_v45  ;;  %v1832_v54 = vpop.f32.mrb[21].mxu1  ;;  %v1503_v51 = vpop.f32.mrb[16].mxu0 }
 0x2d7   : > { %v1833_v56 = vadd.f32 %v1832_v54, %v9462_v48  ;;  %v1834_v57 = vpop.f32.mrb[22].mxu1  ;;  %v9567_v52 = vadd.f32 %v1503_v51, %v9487_v24 }
 0x2d8   : > { %v1836_v60 = vpop.f32.mrb[23].mxu1  ;;  %2187 = vxpose.xlu0.b32.cont [11/16] %v1831_v53, 128  ;;  %v1835_v0 = vadd.f32 %v1834_v57, %v9459_v45  ;;  %v1505_v53 = vpop.f32.mrb[17].mxu0 }
 0x2d9   : > { %2219 = vxpose.xlu1.b32.cont [11/16] %v1833_v56, 128  ;;  %v1837_v2 = vadd.f32 %v1836_v60, %v9462_v48  ;;  %v9570_v54 = vadd.f32 %v1505_v53, %v9490_v26  ;;  %v1507_v35 = vpop.f32.mrb[18].mxu0 }
 0x2da   : > { %v1509_v56 = vpop.f32.mrb[19].mxu0 }
 0x2dc   : > { %2188 = vxpose.xlu0.b32.cont [12/16] %v1835_v0, 128 }
 0x2dd   : > { %v1840_v4 = vpop.f32.mrb[24].mxu1  ;;  %2220 = vxpose.xlu1.b32.cont [12/16] %v1837_v2, 128  ;;  %v1513_v60 = vpop.f32.mrb[20].mxu0 }
 0x2de   : > { %v1841_v6 = vadd.f32 %v1840_v4, %v9459_v45  ;;  %v1842_v7 = vpop.f32.mrb[25].mxu1  ;;  %v9583_v62 = vadd.f32 %v1513_v60, %v9487_v24  ;;  %v1515_v0 = vpop.f32.mrb[21].mxu0 }
 0x2df   : > { %v1843_v10 = vadd.f32 %v1842_v7, %v9462_v48  ;;  %v1844_v11 = vpop.f32.mrb[26].mxu1  ;;  %v9586_v2 = vadd.f32 %v1515_v0, %v9490_v26  ;;  %v1517_v4 = vpop.f32.mrb[22].mxu0 }
 0x2e0   : > { %v1846_v14 = vpop.f32.mrb[27].mxu1  ;;  %2189 = vxpose.xlu0.b32.cont [13/16] %v1841_v6, 128  ;;  %v1845_v18 = vadd.f32 %v1844_v11, %v9459_v45  ;;  %v9589_v5 = vadd.f32 %v1517_v4, %v9487_v24  ;;  %v1519_v6 = vpop.f32.mrb[23].mxu0 }
 0x2e1   : > { %2221 = vxpose.xlu1.b32.cont [13/16] %v1843_v10, 128  ;;  %v1847_v20 = vadd.f32 %v1846_v14, %v9462_v48  ;;  %v9592_v7 = vadd.f32 %v1519_v6, %v9490_v26 }
 0x2e4   : > { %2190 = vxpose.xlu0.b32.cont [14/16] %v1845_v18, 128 }
 0x2e5   : > { %v1850_v22 = vpop.f32.mrb[28].mxu1  ;;  %2222 = vxpose.xlu1.b32.cont [14/16] %v1847_v20, 128  ;;  %v1523_v11 = vpop.f32.mrb[24].mxu0 }
 0x2e6   : > { %v1851_v47 = vadd.f32 %v1850_v22, %v9459_v45  ;;  %v1852_v28 = vpop.f32.mrb[29].mxu1  ;;  %v9599_v13 = vadd.f32 %v1523_v11, %v9487_v24  ;;  %v1525_v14 = vpop.f32.mrb[25].mxu0 }
 0x2e7   : > { %v1853_v31 = vadd.f32 %v1852_v28, %v9462_v48  ;;  %v1854_v32 = vpop.f32.mrb[30].mxu1  ;;  %v9602_v16 = vadd.f32 %v1525_v14, %v9490_v26  ;;  %v1527_v18 = vpop.f32.mrb[26].mxu0 }
 0x2e8   : > { %v1856_v36 = vpop.f32.mrb[31].mxu1  ;;  %2191 = vxpose.xlu0.b32.cont [15/16] %v1851_v47, 128  ;;  %v1855_v42 = vadd.f32 %v1854_v32, %v9459_v45  ;;  %v9573_v45 = vadd.f32 %v1507_v35, %v9487_v24  ;;  %v9605_v20 = vadd.f32 %v1527_v18, %v9487_v24  ;;  %v1529_v22 = vpop.f32.mrb[27].mxu0 }
 0x2e9   : > { %2223 = vxpose.xlu1.b32.cont [15/16] %v1853_v31, 128  ;;  %v1857_v46 = vadd.f32 %v1856_v36, %v9462_v48  ;;  %v9576_v48 = vadd.f32 %v1509_v56, %v9490_v26  ;;  %v9608_v23 = vadd.f32 %v1529_v22, %v9490_v26 }
 0x2ec   : > { %2192 = vxpose.xlu0.b32.end [16/16] %v1855_v42, 128 }
 0x2ed   : > { %2224 = vxpose.xlu1.b32.end [16/16] %v1857_v46, 128  ;;  %v1533_v30 = vpop.f32.mrb[28].mxu0 }
 0x2ee   : > { %v9615_v31 = vadd.f32 %v1533_v30, %v9487_v24  ;;  %v1535_v32 = vpop.f32.mrb[29].mxu0 }
 0x2ef   : > { %v9618_v34 = vadd.f32 %v1535_v32, %v9490_v26  ;;  %v1537_v36 = vpop.f32.mrb[30].mxu0  ;;  %v1891_v32 = vld [vmem:[%s12455_s16] sm:$0x3] }
 0x2f0   : > { %v9621_v40 = vadd.f32 %v1537_v36, %v9487_v24  ;;  %v1539_v42 = vpop.f32.mrb[31].mxu0 }
 0x2f1   : > { %v9624_v46 = vadd.f32 %v1539_v42, %v9490_v26  ;;  %v9646_v42 = vrot.slane %v1891_v32, %v9446_v27 }
 0x330   : > { %v2193_v35 = vpop.trf.xlu0 }
 0x331   : > { %v9630_v56 = vpop.trf.xlu1 }
 0x334   : > { %v2194_v60 = vpop.trf.xlu0 }
 0x335   : > { %v2249_v0 = vpack.c.bf16 %v2194_v60, %v2193_v35  ;;  %v9632_v4 = vpop.trf.xlu1  ;;  %v9649_v60 = vrot.slane %v1891_v32, %v9454_v37 }
 0x337   : > { %7008 = vmatprep.subr.bf16.mxu0 %v2249_v0 }
 0x338   : > { %v2195_v24 = vpop.trf.xlu0  ;;  %7009 = vmatpush3.bf16.msra.mxu0 %v2249_v0 }
 0x339   : > { %v9634_v6 = vpop.trf.xlu1 }
 0x33c   : > { %v2196_v26 = vpop.trf.xlu0 }
 0x33d   : > { %v2250_v11 = vpack.c.bf16 %v2196_v26, %v2195_v24  ;;  %v9636_v14 = vpop.trf.xlu1  ;;  %v2097_v24 = vpop.f32.mrb[32].mxu0 }
 0x33e   : > { %v2098_v26 = vadd.f32 %v2097_v24, %v9646_v42 }
 0x33f   : > { %7010 = vmatprep.subr.bf16.mxu0 %v2250_v11 }
 0x340   : > { %v2197_v18 = vpop.trf.xlu0  ;;  %7011 = vmatpush3.bf16.msra.mxu0 %v2250_v11  ;;  %v2099_v11 = vpop.f32.mrb[33].mxu0 }
 0x341   : > { %v9638_v22 = vpop.trf.xlu1  ;;  %v2100_v28 = vadd.f32 %v2099_v11, %v9649_v60  ;;  %v2101_v10 = vpop.f32.mrb[34].mxu0 }
 0x342   : > { %v2103_v59 = vpop.f32.mrb[35].mxu0 }
 0x343   : > { %v2104_v49 = vadd.f32 %v2103_v59, %v9649_v60  ;;  %v2107_v24 = vpop.f32.mrb[36].mxu0 }
 0x344   : > { %v2198_v30 = vpop.trf.xlu0  ;;  %v2108_v11 = vadd.f32 %v2107_v24, %v9646_v42  ;;  %v2109_v50 = vpop.f32.mrb[37].mxu0 }
 0x345   : > { %v2251_v36 = vpack.c.bf16 %v2198_v30, %v2197_v18  ;;  %v9651_v0 = vpop.trf.xlu1  ;;  %v2102_v30 = vadd.f32 %v2101_v10, %v9646_v42  ;;  %v9659_v3 = vpack.c.bf16 %v2104_v49, %v2100_v28  ;;  %v2110_v10 = vadd.f32 %v2109_v50, %v9649_v60 }
 0x347   : > { %7012 = vmatprep.subr.bf16.mxu0 %v2251_v36  ;;  %v2257_v32 = vpack.c.bf16 %v2102_v30, %v2098_v26 }
 0x348   : > { %v2199_v35 = vpop.trf.xlu0  ;;  %7013 = vmatpush3.bf16.msra.mxu0 %v2251_v36 }
 0x349   : > { %v9657_v36 = vpop.trf.xlu1  ;;  %7040 = vmatprep.subr.bf16.mxu1 %v2257_v32 }
 0x34a   : > { %7041 = vmatpush3.bf16.msra.mxu1 %v2257_v32 }
 0x34c   : > { %v2200_v53 = vpop.trf.xlu0 }
 0x34d   : > { %v2252_v18 = vpack.c.bf16 %v2200_v53, %v2199_v35  ;;  %v2111_v35 = vpop.f32.mrb[38].mxu0  ;;  %v9663_v59 = vpop.trf.xlu1 }
 0x34e   : > { %v2112_v47 = vadd.f32 %v2111_v35, %v9646_v42  ;;  %v2113_v26 = vpop.f32.mrb[39].mxu0 }
 0x34f   : > { %7014 = vmatprep.subr.bf16.mxu0 %v2252_v18  ;;  %v2117_v32 = vpop.f32.mrb[40].mxu0 }
 0x350   : > { %v2201_v21 = vpop.trf.xlu0  ;;  %7015 = vmatpush3.bf16.msra.mxu0 %v2252_v18  ;;  %v2114_v18 = vadd.f32 %v2113_v26, %v9649_v60  ;;  %v2258_v49 = vpack.c.bf16 %v2112_v47, %v2108_v11  ;;  %v2118_v50 = vadd.f32 %v2117_v32, %v9646_v42 }
 0x351   : > { %v9669_v24 = vpop.trf.xlu1 }
 0x352   : > { %v9667_v30 = vpack.c.bf16 %v2114_v18, %v2110_v10  ;;  %7042 = vmatprep.subr.bf16.mxu1 %v2258_v49 }
 0x353   : > { %7043 = vmatpush3.bf16.msra.mxu1 %v2258_v49 }
 0x354   : > { %v2202_v53 = vpop.trf.xlu0 }
 0x355   : > { %v2253_v51 = vpack.c.bf16 %v2202_v53, %v2201_v21  ;;  %v2119_v21 = vpop.f32.mrb[41].mxu0  ;;  %v9677_v49 = vpop.trf.xlu1 }
 0x356   : > { %v2120_v35 = vadd.f32 %v2119_v21, %v9649_v60  ;;  %v2121_v9 = vpop.f32.mrb[42].mxu0 }
 0x357   : > { %7016 = vmatprep.subr.bf16.mxu0 %v2253_v51  ;;  %v2122_v26 = vadd.f32 %v2121_v9, %v9646_v42  ;;  %v2123_v47 = vpop.f32.mrb[43].mxu0 }
 0x358   : > { %v2203_v28 = vpop.trf.xlu0  ;;  %7017 = vmatpush3.bf16.msra.mxu0 %v2253_v51  ;;  %v2124_v51 = vadd.f32 %v2123_v47, %v9649_v60  ;;  %v2127_v32 = vpop.f32.mrb[44].mxu0 }
 0x359   : > { %v2259_v11 = vpack.c.bf16 %v2122_v26, %v2118_v50  ;;  %v2128_v21 = vadd.f32 %v2127_v32, %v9646_v42  ;;  %v2129_v44 = vpop.f32.mrb[45].mxu0 }
 0x35a   : > { %v9675_v18 = vpack.c.bf16 %v2124_v51, %v2120_v35  ;;  %v2130_v9 = vadd.f32 %v2129_v44, %v9649_v60  ;;  %v9683_v51 = vpop.trf.xlu1 }
 0x35b   : > { %7044 = vmatprep.subr.bf16.mxu1 %v2259_v11 }
 0x35c   : > { %v2204_v53 = vpop.trf.xlu0  ;;  %7045 = vmatpush3.bf16.msra.mxu1 %v2259_v11 }
 0x35d   : > { %v2254_v57 = vpack.c.bf16 %v2204_v53, %v2203_v28  ;;  %v2131_v53 = vpop.f32.mrb[46].mxu0 }
 0x35e   : > { %v2132_v47 = vadd.f32 %v2131_v53, %v9646_v42  ;;  %v2133_v50 = vpop.f32.mrb[47].mxu0 }
 0x35f   : > { %7018 = vmatprep.subr.bf16.mxu0 %v2254_v57  ;;  %v2137_v32 = vpop.f32.mrb[48].mxu0 }
 0x360   : > { %v2205_v10 = vpop.trf.xlu0  ;;  %7019 = vmatpush3.bf16.msra.mxu0 %v2254_v57  ;;  %v2134_v57 = vadd.f32 %v2133_v50, %v9649_v60  ;;  %v2260_v35 = vpack.c.bf16 %v2132_v47, %v2128_v21  ;;  %v2138_v44 = vadd.f32 %v2137_v32, %v9646_v42  ;;  %v2139_v1 = vpop.f32.mrb[49].mxu0 }
 0x361   : > { %v2141_v53 = vpop.f32.mrb[50].mxu0  ;;  %v2236_v47 = vpop.trf.xlu1 }
 0x362   : > { %v9685_v11 = vpack.c.bf16 %v2134_v57, %v2130_v9  ;;  %7046 = vmatprep.subr.bf16.mxu1 %v2260_v35  ;;  %v2142_v50 = vadd.f32 %v2141_v53, %v9646_v42  ;;  %v2143_v21 = vpop.f32.mrb[51].mxu0  ;;  %v2657_v9 = vpack.c.bf16 %v9632_v4, %v9630_v56  ;;  %v12457_v56 = vpack.c.bf16 %v9535_v15, %v9528_v8 }
 0x363   : > { %7047 = vmatpush3.bf16.msra.mxu1 %v2260_v35  ;;  %v2147_v32 = vpop.f32.mrb[52].mxu0 }
 0x364   : > { %v2206_v28 = vpop.trf.xlu0  ;;  %v2261_v57 = vpack.c.bf16 %v2142_v50, %v2138_v44  ;;  %v2149_v53 = vpop.f32.mrb[53].mxu0 }
 0x365   : > { %v2255_v19 = vpack.c.bf16 %v2206_v28, %v2205_v10  ;;  %v2140_v28 = vadd.f32 %v2139_v1, %v9649_v60  ;;  %v2658_v1 = vpack.c.bf16 %v9636_v14, %v9634_v6  ;;  %v2150_v4 = vadd.f32 %v2149_v53, %v9649_v60  ;;  %v2151_v44 = vpop.f32.mrb[54].mxu0 }
 0x366   : > { %7048 = vmatprep.subr.bf16.mxu1 %v2261_v57  ;;  %v2153_v6 = vpop.f32.mrb[55].mxu0  ;;  %v12460_v53 = vpack.c.bf16 %v9589_v5, %v9583_v62 }
 0x367   : > { %7020 = vmatprep.subr.bf16.mxu0 %v2255_v19  ;;  %7049 = vmatpush3.bf16.msra.mxu1 %v2261_v57  ;;  %v2154_v14 = vadd.f32 %v2153_v6, %v9649_v60  ;;  %v2157_v15 = vpop.f32.mrb[56].mxu0 }
 0x368   : > { %v2207_v26 = vpop.trf.xlu0  ;;  %7021 = vmatpush3.bf16.msra.mxu0 %v2255_v19  ;;  %v2144_v19 = vadd.f32 %v2143_v21, %v9649_v60  ;;  %v2660_v21 = vpack.c.bf16 %v9663_v59, %v9657_v36  ;;  %v2159_v57 = vpop.f32.mrb[57].mxu0 }
 0x369   : > { %v9709_v50 = vpack.c.bf16 %v2154_v14, %v2150_v4 }
 0x36a   : > { %v9693_v35 = vpack.c.bf16 %v2144_v19, %v2140_v28  ;;  %v2152_v28 = vadd.f32 %v2151_v44, %v9646_v42  ;;  %v12458_v19 = vpack.c.bf16 %v9555_v39, %v9548_v29  ;;  %v2661_v29 = vpack.c.bf16 %v9677_v49, %v9669_v24 }
 0x36b   : > { %v12461_v24 = vpack.c.bf16 %v9605_v20, %v9599_v13  ;;  %v12462_v13 = vpack.c.bf16 %v9621_v40, %v9615_v31  ;;  %v12463_v20 = vpack.c.bf16 %v9500_v43, %v9496_v38  ;;  %v12466_v31 = vpack.c.bf16 %v9558_v41, %v9552_v33 }
 0x36c   : > { %v2208_v10 = vpop.trf.xlu0  ;;  %v12467_v40 = vpack.c.bf16 %v9576_v48, %v9570_v54  ;;  %v12468_v38 = vpack.c.bf16 %v9592_v7, %v9586_v2  ;;  %v12469_v43 = vpack.c.bf16 %v9608_v23, %v9602_v16 }
 0x36d   : > { %v2256_v25 = vpack.c.bf16 %v2208_v10, %v2207_v26  ;;  %v12456_v26 = vpack.c.bf16 %v9515_v61, %v9508_v55  ;;  %v2148_v10 = vadd.f32 %v2147_v32, %v9646_v42  ;;  %v2659_v55 = vpack.c.bf16 %v9651_v0, %v9638_v22  ;;  %v2161_v32 = vpop.f32.mrb[58].mxu0 }
 0x36e   : > { %v12459_v22 = vpack.c.bf16 %v9573_v45, %v9567_v52  ;;  %v2160_v0 = vadd.f32 %v2159_v57, %v9649_v60  ;;  %v2662_v45 = vpack.c.bf16 %v2236_v47, %v9683_v51 }
 0x36f   : > { %7022 = vmatprep.subr.bf16.mxu0 %v2256_v25  ;;  %v2262_v61 = vpack.c.bf16 %v2152_v28, %v2148_v10 }
 0x370   : > { %7023 = vmatpush3.bf16.msra.mxu0 %v2256_v25  ;;  %v2237_v25 = vpop.trf.xlu1 }
 0x371   : > { %7072 = vmatprep.subr.bf16.mxu0 %v2657_v9  ;;  %7050 = vmatprep.subr.bf16.mxu1 %v2262_v61 }
 0x372   : > { %7051 = vmatpush3.bf16.msra.mxu1 %v2262_v61 }
 0x373   : > { %7025 = vmatmul.mubr.bf16.vlgmr.msra.gmra.mrb[64].mxu0 %v12456_v26  ;;  %v2163_v26 = vpop.f32.mrb[59].mxu0 }
 0x374   : > { %7028 = vmatprep.mubr.bf16.mxu0 %v12457_v56  ;;  %7073 = vmatpush3.bf16.msra.mxu0 %v2657_v9  ;;  %v2238_v8 = vpop.trf.xlu1  ;;  %v2158_v9 = vadd.f32 %v2157_v15, %v9646_v42  ;;  %v2164_v36 = vadd.f32 %v2163_v26, %v9649_v60  ;;  %v2167_v52 = vpop.f32.mrb[60].mxu0 }
 0x375   : > { %7074 = vmatprep.subr.bf16.mxu0 %v2658_v1  ;;  %v2168_v56 = vadd.f32 %v2167_v52, %v9646_v42  ;;  %v2169_v4 = vpop.f32.mrb[61].mxu0  ;;  %v2663_v62 = vpack.c.bf16 %v2238_v8, %v2237_v25 }
 0x376   : > { %v9725_v10 = vpack.c.bf16 %v2164_v36, %v2160_v0  ;;  %v2170_v49 = vadd.f32 %v2169_v4, %v9649_v60  ;;  %v2171_v44 = vpop.f32.mrb[62].mxu0 }
 0x377   : > { %v2172_v28 = vadd.f32 %v2171_v44, %v9646_v42  ;;  %v2173_v6 = vpop.f32.mrb[63].mxu0 }
 0x378   : > { %7075 = vmatpush3.bf16.msra.mxu0 %v2658_v1  ;;  %v2162_v1 = vadd.f32 %v2161_v32, %v9646_v42  ;;  %v2239_v59 = vpop.trf.xlu1  ;;  %v2174_v47 = vadd.f32 %v2173_v6, %v9649_v60  ;;  %v12464_v42 = vpack.c.bf16 %v9518_v63, %v9512_v58  ;;  %v12465_v60 = vpack.c.bf16 %v9538_v17, %v9532_v12  ;;  %v9770_v12 = vld [vmem:[%s12471_s13] ss:$0 sm:$0xff] }
 0x379   : > { %7076 = vmatprep.subr.bf16.mxu0 %v2659_v55  ;;  %v2264_v5 = vpack.c.bf16 %v2172_v28, %v2168_v56  ;;  %v12470_v58 = vpack.c.bf16 %v9624_v46, %v9618_v34 }
 0x37a   : > { %v2263_v39 = vpack.c.bf16 %v2162_v1, %v2158_v9  ;;  %v9738_v14 = vpack.c.bf16 %v2174_v47, %v2170_v49 }
 0x37b   : > { %7029 = vmatmul.mubr.bf16.gmra.mrb[68].mxu0 %v12458_v19 }
 0x37c   : > { %7032 = vmatprep.mubr.bf16.mxu0 %v12459_v22  ;;  %7077 = vmatpush3.bf16.msra.mxu0 %v2659_v55  ;;  %v2240_v51 = vpop.trf.xlu1 }
 0x37d   : > { %7078 = vmatprep.subr.bf16.mxu0 %v2660_v21  ;;  %7052 = vmatprep.subr.bf16.mxu1 %v2263_v39  ;;  %v2664_v55 = vpack.c.bf16 %v2240_v51, %v2239_v59 }
 0x37e   : > { %7053 = vmatpush3.bf16.msra.mxu1 %v2263_v39 }
 0x37f   : > { %7054 = vmatprep.subr.bf16.mxu1 %v2264_v5 }
 0x380   : > { %7079 = vmatpush3.bf16.msra.mxu0 %v2660_v21 }
 0x381   : > { %7080 = vmatprep.subr.bf16.mxu0 %v2661_v29 }
 0x382   : > { %7055 = vmatpush3.bf16.msra.mxu1 %v2264_v5 }
 0x383   : > { %7033 = vmatmul.mubr.bf16.gmra.mrb[72].mxu0 %v12460_v53  ;;  %7104 = vmatprep.subr.bf16.mxu1 %v9659_v3 }
 0x384   : > { %7081 = vmatpush3.bf16.msra.mxu0 %v2661_v29  ;;  %7036 = vmatprep.mubr.bf16.mxu0 %v12461_v24 }
 0x385   : > { %7082 = vmatprep.subr.bf16.mxu0 %v2662_v45 }
 0x388   : > { %7083 = vmatpush3.bf16.msra.mxu0 %v2662_v45 }
 0x389   : > { %7084 = vmatprep.subr.bf16.mxu0 %v2663_v62 }
 0x38b   : > { %7037 = vmatmul.mubr.bf16.gmra.mrb[76].mxu0 %v12462_v13 }
 0x38c   : > { %7085 = vmatpush3.bf16.msra.mxu0 %v2663_v62  ;;  %7088 = vmatprep.mubr.bf16.mxu0 %v12463_v20 }
 0x38d   : > { %7086 = vmatprep.subr.bf16.mxu0 %v2664_v55 }
 0x390   : > { %7087 = vmatpush3.bf16.msra.mxu0 %v2664_v55 }
 0x393   : > { %7089 = vmatmul.mubr.bf16.vlgmr.msra.gmra.mrb[80].mxu0 %v12464_v42 }
 0x394   : > { %7092 = vmatprep.mubr.bf16.mxu0 %v12465_v60 }
 0x39b   : > { %7093 = vmatmul.mubr.bf16.gmra.mrb[84].mxu0 %v12466_v31 }
 0x39c   : > { %7096 = vmatprep.mubr.bf16.mxu0 %v12467_v40 }
 0x3a3   : > { %7097 = vmatmul.mubr.bf16.gmra.mrb[88].mxu0 %v12468_v38 }
 0x3a4   : > { %7100 = vmatprep.mubr.bf16.mxu0 %v12469_v43 }
 0x3ab   : > { %7101 = vmatmul.mubr.bf16.gmra.mrb[92].mxu0 %v12470_v58 }
 0x446   : > { %v7026_v63 = vpop.f32.mrb[64].mxu0 }
 0x447   : > { %v2364_v17 = vmul.f32 0.088388346, %v7026_v63  ;;  %v2299_v33 = vpop.f32.mrb[65].mxu0 }
 0x448   : > { %v2362_v41 = vmul.f32 0.088388346, %v2299_v33  ;;  %v7027_v54 = vpop.f32.mrb[66].mxu0 }
 0x449   : > { %v2302_v48 = vpop.f32.mrb[67].mxu0  ;;  %v9773_v2 = vadd.f32 %v9770_v12, %v2364_v17  ;;  %v2365_v34 = vmul.f32 0.088388346, %v7027_v54 }
 0x44a   : > { %v2363_v7 = vmul.f32 0.088388346, %v2302_v48  ;;  %v9776_v16 = vadd.f32 %v9770_v12, %v2362_v41 }
 0x44b   : > { %2404 = vmax.xlane.f32.xlu1 %v9773_v2  ;;  %v9785_v21 = vadd.f32 %v9770_v12, %v2365_v34 }
 0x44c   : > { %2400 = vmax.xlane.f32.xlu0 %v9776_v16  ;;  %v9781_v23 = vadd.f32 %v9770_v12, %v2363_v7 }
 0x44e   : > { %v7030_v46 = vpop.f32.mrb[68].mxu0 }
 0x44f   : > { %2402 = vmax.xlane.f32.xlu1 %v9781_v23  ;;  %v2315_v25 = vpop.f32.mrb[69].mxu0  ;;  %v2368_v19 = vmul.f32 0.088388346, %v7030_v46 }
 0x450   : > { %v2366_v61 = vmul.f32 0.088388346, %v2315_v25  ;;  %v7031_v8 = vpop.f32.mrb[70].mxu0 }
 0x451   : > { %v2318_v15 = vpop.f32.mrb[71].mxu0  ;;  %v2369_v0 = vmul.f32 0.088388346, %v7031_v8  ;;  %v9796_v1 = vadd.f32 %v9770_v12, %v2368_v19 }
 0x452   : > { %v2367_v9 = vmul.f32 0.088388346, %v2318_v15  ;;  %v9788_v57 = vadd.f32 %v9770_v12, %v2366_v61 }
 0x453   : > { %2406 = vmax.xlane.f32.xlu1 %v9785_v21  ;;  %v9801_v59 = vadd.f32 %v9770_v12, %v2369_v0 }
 0x454   : > { %2408 = vmax.xlane.f32.xlu0 %v9788_v57  ;;  %v9793_v22 = vadd.f32 %v9770_v12, %v2367_v9 }
 0x456   : > { %v7034_v32 = vpop.f32.mrb[72].mxu0 }
 0x457   : > { %2410 = vmax.xlane.f32.xlu1 %v9793_v22  ;;  %v2331_v26 = vpop.f32.mrb[73].mxu0  ;;  %v2372_v52 = vmul.f32 0.088388346, %v7034_v32 }
 0x458   : > { %v2370_v36 = vmul.f32 0.088388346, %v2331_v26  ;;  %2412 = vmax.xlane.f32.xlu0 %v9796_v1  ;;  %v7035_v29 = vpop.f32.mrb[74].mxu0 }
 0x459   : > { %v2334_v39 = vpop.f32.mrb[75].mxu0  ;;  %v2373_v4 = vmul.f32 0.088388346, %v7035_v29  ;;  %v9812_v49 = vadd.f32 %v9770_v12, %v2372_v52 }
 0x45a   : > { %v2371_v45 = vmul.f32 0.088388346, %v2334_v39  ;;  %v9804_v53 = vadd.f32 %v9770_v12, %v2370_v36 }
 0x45b   : > { %2414 = vmax.xlane.f32.xlu1 %v9801_v59  ;;  %v9817_v47 = vadd.f32 %v9770_v12, %v2373_v4 }
 0x45c   : > { %2416 = vmax.xlane.f32.xlu0 %v9804_v53  ;;  %v9809_v56 = vadd.f32 %v9770_v12, %v2371_v45 }
 0x45e   : > { %v7038_v24 = vpop.f32.mrb[76].mxu0 }
 0x45f   : > { %2418 = vmax.xlane.f32.xlu1 %v9809_v56  ;;  %v2347_v44 = vpop.f32.mrb[77].mxu0  ;;  %v2376_v62 = vmul.f32 0.088388346, %v7038_v24 }
 0x460   : > { %v2374_v28 = vmul.f32 0.088388346, %v2347_v44  ;;  %2420 = vmax.xlane.f32.xlu0 %v9812_v49  ;;  %v7039_v6 = vpop.f32.mrb[78].mxu0 }
 0x461   : > { %v2350_v51 = vpop.f32.mrb[79].mxu0  ;;  %v2377_v20 = vmul.f32 0.088388346, %v7039_v6  ;;  %v9828_v60 = vadd.f32 %v9770_v12, %v2376_v62 }
 0x462   : > { %v2375_v5 = vmul.f32 0.088388346, %v2350_v51  ;;  %v9820_v55 = vadd.f32 %v9770_v12, %v2374_v28 }
 0x463   : > { %2422 = vmax.xlane.f32.xlu1 %v9817_v47  ;;  %v9833_v58 = vadd.f32 %v9770_v12, %v2377_v20 }
 0x464   : > { %2424 = vmax.xlane.f32.xlu0 %v9820_v55  ;;  %v9825_v13 = vadd.f32 %v9770_v12, %v2375_v5 }
 0x466   : > { %v7090_v42 = vpop.f32.mrb[80].mxu0 }
 0x467   : > { %v2707_v31 = vpop.f32.mrb[81].mxu0  ;;  %2426 = vmax.xlane.f32.xlu1 %v9825_v13  ;;  %v2772_v63 = vmul.f32 0.088388346, %v7090_v42 }
 0x468   : > { %v2770_v40 = vmul.f32 0.088388346, %v2707_v31  ;;  %2428 = vmax.xlane.f32.xlu0 %v9828_v60  ;;  %v7091_v38 = vpop.f32.mrb[82].mxu0 }
 0x469   : > { %v2710_v43 = vpop.f32.mrb[83].mxu0  ;;  %v2773_v54 = vmul.f32 0.088388346, %v7091_v38  ;;  %v9844_v7 = vadd.f32 %v9770_v12, %v2772_v63 }
 0x46a   : > { %v2771_v17 = vmul.f32 0.088388346, %v2710_v43  ;;  %v9836_v33 = vadd.f32 %v9770_v12, %v2770_v40 }
 0x46b   : > { %2430 = vmax.xlane.f32.xlu1 %v9833_v58  ;;  %v9849_v8 = vadd.f32 %v9770_v12, %v2773_v54 }
 0x46c   : > { %2802 = vmax.xlane.f32.xlu0 %v9836_v33  ;;  %v9841_v41 = vadd.f32 %v9770_v12, %v2771_v17 }
 0x46e   : > { %v7094_v48 = vpop.f32.mrb[84].mxu0 }
 0x46f   : > { %v2723_v34 = vpop.f32.mrb[85].mxu0  ;;  %2804 = vmax.xlane.f32.xlu1 %v9841_v41  ;;  %v2776_v15 = vmul.f32 0.088388346, %v7094_v48 }
 0x470   : > { %v2774_v46 = vmul.f32 0.088388346, %v2723_v34  ;;  %2806 = vmax.xlane.f32.xlu0 %v9844_v7  ;;  %v7095_v25 = vpop.f32.mrb[86].mxu0 }
 0x471   : > { %v2726_v61 = vpop.f32.mrb[87].mxu0  ;;  %v2777_v32 = vmul.f32 0.088388346, %v7095_v25  ;;  %v9860_v36 = vadd.f32 %v9770_v12, %v2776_v15 }
 0x472   : > { %v2775_v19 = vmul.f32 0.088388346, %v2726_v61  ;;  %v9852_v9 = vadd.f32 %v9770_v12, %v2774_v46 }
 0x473   : > { %2808 = vmax.xlane.f32.xlu1 %v9849_v8  ;;  %v9865_v4 = vadd.f32 %v9770_v12, %v2777_v32 }
 0x474   : > { %2810 = vmax.xlane.f32.xlu0 %v9852_v9  ;;  %v9857_v0 = vadd.f32 %v9770_v12, %v2775_v19 }
 0x476   : > { %v7098_v26 = vpop.f32.mrb[88].mxu0 }
 0x477   : > { %v2739_v29 = vpop.f32.mrb[89].mxu0  ;;  %2812 = vmax.xlane.f32.xlu1 %v9857_v0  ;;  %v2780_v24 = vmul.f32 0.088388346, %v7098_v26 }
 0x478   : > { %v2778_v39 = vmul.f32 0.088388346, %v2739_v29  ;;  %2814 = vmax.xlane.f32.xlu0 %v9860_v36  ;;  %v7099_v52 = vpop.f32.mrb[90].mxu0 }
 0x479   : > { %v2742_v45 = vpop.f32.mrb[91].mxu0  ;;  %v2781_v51 = vmul.f32 0.088388346, %v7099_v52  ;;  %v9876_v5 = vadd.f32 %v9770_v12, %v2780_v24 }
 0x47a   : > { %v2779_v44 = vmul.f32 0.088388346, %v2742_v45  ;;  %v9868_v28 = vadd.f32 %v9770_v12, %v2778_v39 }
 0x47b   : > { %2816 = vmax.xlane.f32.xlu1 %v9865_v4  ;;  %v9881_v43 = vadd.f32 %v9770_v12, %v2781_v51 }
 0x47c   : > { %2818 = vmax.xlane.f32.xlu0 %v9868_v28  ;;  %v9873_v6 = vadd.f32 %v9770_v12, %v2779_v44 }
 0x47e   : > { %v7102_v62 = vpop.f32.mrb[92].mxu0 }
 0x47f   : > { %v2784_v20 = vmul.f32 0.088388346, %v7102_v62  ;;  %v2755_v42 = vpop.f32.mrb[93].mxu0  ;;  %2820 = vmax.xlane.f32.xlu1 %v9873_v6 }
 0x480   : > { %2822 = vmax.xlane.f32.xlu0 %v9876_v5  ;;  %v7103_v31 = vpop.f32.mrb[94].mxu0  ;;  %v2782_v17 = vmul.f32 0.088388346, %v2755_v42 }
 0x481   : > { %v2785_v40 = vmul.f32 0.088388346, %v7103_v31  ;;  %v2758_v38 = vpop.f32.mrb[95].mxu0  ;;  %v9884_v63 = vadd.f32 %v9770_v12, %v2784_v20 }
 0x482   : > { %v2783_v54 = vmul.f32 0.088388346, %v2758_v38  ;;  %v9895_v46 = vadd.f32 %v9770_v12, %v2782_v17 }
 0x483   : > { %2824 = vmax.xlane.f32.xlu1 %v9881_v43  ;;  %v9892_v34 = vadd.f32 %v9770_v12, %v2785_v40 }
 0x484   : > { %2830 = vmax.xlane.f32.xlu0 %v9884_v63  ;;  %v9889_v48 = vadd.f32 %v9770_v12, %v2783_v54 }
 0x487   : > { %2832 = vmax.xlane.f32.xlu1 %v9892_v34 }
 0x488   : > { %2826 = vmax.xlane.f32.xlu0 %v9895_v46 }
 0x48b   : > { %2828 = vmax.xlane.f32.xlu1 %v9889_v48 }
 0x4d8   : > { %v2405_v25 = vpop.xlane.xlu1 %2404 }
 0x4d9   : > { %v2401_v61 = vpop.xlane.xlu0 %2400  ;;  %v2434_v15 = vsub.f32 %v9773_v2, %v2405_v25 }
 0x4da   : > { %v2432_v19 = vsub.f32 %v9776_v16, %v2401_v61 }
 0x4db   : > { %v2452_v39 = vmul.f32 1.442695, %v2434_v15 }
 0x4dc   : > { %v2448_v32 = vmul.f32 1.442695, %v2432_v19  ;;  %v2403_v26 = vpop.xlane.xlu1 %2402 }
 0x4dd   : > { %v2433_v29 = vsub.f32 %v9781_v23, %v2403_v26 }
 0x4de   : > { %7738 = vpow2.f32 %v2448_v32 }
 0x4df   : > { %v2450_v12 = vmul.f32 1.442695, %v2433_v29 }
 0x4e0   : > { %v2407_v52 = vpop.xlane.xlu1 %2406 }
 0x4e1   : > { %7740 = vpow2.f32 %v2450_v12  ;;  %v2435_v45 = vsub.f32 %v9785_v21, %v2407_v52  ;;  %v2409_v24 = vpop.xlane.xlu0 %2408 }
 0x4e2   : > { %7742 = vpow2.f32 %v2452_v39  ;;  %v2436_v44 = vsub.f32 %v9788_v57, %v2409_v24 }
 0x4e3   : > { %v2454_v51 = vmul.f32 1.442695, %v2435_v45 }
 0x4e4   : > { %v2456_v62 = vmul.f32 1.442695, %v2436_v44  ;;  %v2411_v2 = vpop.xlane.xlu1 %2410 }
 0x4e5   : > { %7744 = vpow2.f32 %v2454_v51  ;;  %v2437_v16 = vsub.f32 %v9793_v22, %v2411_v2  ;;  %v2413_v20 = vpop.xlane.xlu0 %2412 }
 0x4e6   : > { %7746 = vpow2.f32 %v2456_v62  ;;  %v2438_v23 = vsub.f32 %v9796_v1, %v2413_v20 }
 0x4e7   : > { %v2458_v42 = vmul.f32 1.442695, %v2437_v16 }
 0x4e8   : > { %v9907_v31 = vpop.eup %7738  ;;  %v2460_v40 = vmul.f32 1.442695, %v2438_v23  ;;  %v2415_v38 = vpop.xlane.xlu1 %2414 }
 0x4e9   : > { %7748 = vpow2.f32 %v2458_v42  ;;  %v2439_v21 = vsub.f32 %v9801_v59, %v2415_v38  ;;  %v2417_v17 = vpop.xlane.xlu0 %2416  ;;  %2480 = vadd.xlane.f32.xlu0 %v9907_v31 }
 0x4ea   : > { %7750 = vpow2.f32 %v2460_v40  ;;  %v2440_v57 = vsub.f32 %v9804_v53, %v2417_v17 }
 0x4eb   : > { %v9912_v54 = vpop.eup %7740  ;;  %v2462_v22 = vmul.f32 1.442695, %v2439_v21 }
 0x4ec   : > { %v9914_v25 = vpop.eup %7742  ;;  %v2464_v1 = vmul.f32 1.442695, %v2440_v57  ;;  %v2419_v61 = vpop.xlane.xlu1 %2418  ;;  %2482 = vadd.xlane.f32.xlu1 %v9912_v54 }
 0x4ed   : > { %7752 = vpow2.f32 %v2462_v22  ;;  %v2441_v15 = vsub.f32 %v9809_v56, %v2419_v61  ;;  %v2421_v19 = vpop.xlane.xlu0 %2420  ;;  %2484 = vadd.xlane.f32.xlu0 %v9914_v25 }
 0x4ee   : > { %7754 = vpow2.f32 %v2464_v1  ;;  %v2442_v59 = vsub.f32 %v9812_v49, %v2421_v19 }
 0x4ef   : > { %v9920_v32 = vpop.eup %7744  ;;  %v2466_v53 = vmul.f32 1.442695, %v2441_v15 }
 0x4f0   : > { %v9922_v26 = vpop.eup %7746  ;;  %v2468_v29 = vmul.f32 1.442695, %v2442_v59  ;;  %v2423_v39 = vpop.xlane.xlu1 %2422  ;;  %2486 = vadd.xlane.f32.xlu1 %v9920_v32 }
 0x4f1   : > { %7756 = vpow2.f32 %v2466_v53  ;;  %v2443_v12 = vsub.f32 %v9817_v47, %v2423_v39  ;;  %v2425_v52 = vpop.xlane.xlu0 %2424  ;;  %2488 = vadd.xlane.f32.xlu0 %v9922_v26 }
 0x4f2   : > { %7758 = vpow2.f32 %v2468_v29  ;;  %v2444_v56 = vsub.f32 %v9820_v55, %v2425_v52 }
 0x4f3   : > { %v9928_v45 = vpop.eup %7748  ;;  %v2470_v49 = vmul.f32 1.442695, %v2443_v12 }
 0x4f4   : > { %v9930_v24 = vpop.eup %7750  ;;  %v2472_v44 = vmul.f32 1.442695, %v2444_v56  ;;  %2490 = vadd.xlane.f32.xlu1 %v9928_v45  ;;  %v2427_v51 = vpop.xlane.xlu1 %2426 }
 0x4f5   : > { %7760 = vpow2.f32 %v2470_v49  ;;  %v2445_v62 = vsub.f32 %v9825_v13, %v2427_v51  ;;  %v2429_v2 = vpop.xlane.xlu0 %2428  ;;  %2492 = vadd.xlane.f32.xlu0 %v9930_v24 }
 0x4f6   : > { %7762 = vpow2.f32 %v2472_v44  ;;  %v2446_v47 = vsub.f32 %v9828_v60, %v2429_v2 }
 0x4f7   : > { %v9936_v16 = vpop.eup %7752  ;;  %v2474_v55 = vmul.f32 1.442695, %v2445_v62 }
 0x4f8   : > { %v9938_v20 = vpop.eup %7754  ;;  %v2476_v23 = vmul.f32 1.442695, %v2446_v47  ;;  %2494 = vadd.xlane.f32.xlu1 %v9936_v16  ;;  %v2431_v42 = vpop.xlane.xlu1 %2430 }
 0x4f9   : > { %7764 = vpow2.f32 %v2474_v55  ;;  %v2447_v40 = vsub.f32 %v9833_v58, %v2431_v42  ;;  %v2803_v38 = vpop.xlane.xlu0 %2802  ;;  %2496 = vadd.xlane.f32.xlu0 %v9938_v20 }
 0x4fa   : > { %7766 = vpow2.f32 %v2476_v23  ;;  %v2834_v13 = vsub.f32 %v9836_v33, %v2803_v38 }
 0x4fb   : > { %v9944_v21 = vpop.eup %7756  ;;  %v2478_v60 = vmul.f32 1.442695, %v2447_v40 }
 0x4fc   : > { %v9946_v17 = vpop.eup %7758  ;;  %v2850_v57 = vmul.f32 1.442695, %v2834_v13  ;;  %2498 = vadd.xlane.f32.xlu1 %v9944_v21  ;;  %v2805_v22 = vpop.xlane.xlu1 %2804 }
 0x4fd   : > { %7768 = vpow2.f32 %v2478_v60  ;;  %v2835_v1 = vsub.f32 %v9841_v41, %v2805_v22  ;;  %v2807_v61 = vpop.xlane.xlu0 %2806  ;;  %2500 = vadd.xlane.f32.xlu0 %v9946_v17 }
 0x4fe   : > { %7770 = vpow2.f32 %v2850_v57  ;;  %v2836_v58 = vsub.f32 %v9844_v7, %v2807_v61 }
 0x4ff   : > { %v9952_v15 = vpop.eup %7760  ;;  %v2852_v33 = vmul.f32 1.442695, %v2835_v1 }
 0x500   : > { %v9954_v19 = vpop.eup %7762  ;;  %v2854_v59 = vmul.f32 1.442695, %v2836_v58  ;;  %2502 = vadd.xlane.f32.xlu1 %v9952_v15  ;;  %v2809_v53 = vpop.xlane.xlu1 %2808 }
 0x501   : > { %7772 = vpow2.f32 %v2852_v33  ;;  %v2837_v29 = vsub.f32 %v9849_v8, %v2809_v53  ;;  %v2811_v39 = vpop.xlane.xlu0 %2810  ;;  %2504 = vadd.xlane.f32.xlu0 %v9954_v19 }
 0x502   : > { %7774 = vpow2.f32 %v2854_v59  ;;  %v2838_v41 = vsub.f32 %v9852_v9, %v2811_v39 }
 0x503   : > { %v9960_v12 = vpop.eup %7764  ;;  %v2856_v7 = vmul.f32 1.442695, %v2837_v29 }
 0x504   : > { %v9962_v52 = vpop.eup %7766  ;;  %v2858_v56 = vmul.f32 1.442695, %v2838_v41  ;;  %2506 = vadd.xlane.f32.xlu1 %v9960_v12  ;;  %v2813_v49 = vpop.xlane.xlu1 %2812 }
 0x505   : > { %7776 = vpow2.f32 %v2856_v7  ;;  %v2839_v44 = vsub.f32 %v9857_v0, %v2813_v49  ;;  %v2815_v51 = vpop.xlane.xlu0 %2814  ;;  %2508 = vadd.xlane.f32.xlu0 %v9962_v52 }
 0x506   : > { %7778 = vpow2.f32 %v2858_v56  ;;  %v2840_v8 = vsub.f32 %v9860_v36, %v2815_v51 }
 0x507   : > { %v9968_v62 = vpop.eup %7768  ;;  %v2860_v9 = vmul.f32 1.442695, %v2839_v44 }
 0x508   : > { %v9970_v2 = vpop.eup %7770  ;;  %v2862_v47 = vmul.f32 1.442695, %v2840_v8  ;;  %2510 = vadd.xlane.f32.xlu1 %v9968_v62  ;;  %v2817_v55 = vpop.xlane.xlu1 %2816 }
 0x509   : > { %7780 = vpow2.f32 %v2860_v9  ;;  %v2841_v23 = vsub.f32 %v9865_v4, %v2817_v55  ;;  %v2819_v42 = vpop.xlane.xlu0 %2818  ;;  %2882 = vadd.xlane.f32.xlu0 %v9970_v2 }
 0x50a   : > { %7782 = vpow2.f32 %v2862_v47  ;;  %v2842_v0 = vsub.f32 %v9868_v28, %v2819_v42 }
 0x50b   : > { %v9976_v40 = vpop.eup %7772  ;;  %v2864_v36 = vmul.f32 1.442695, %v2841_v23 }
 0x50c   : > { %v9978_v38 = vpop.eup %7774  ;;  %v2866_v13 = vmul.f32 1.442695, %v2842_v0  ;;  %2884 = vadd.xlane.f32.xlu1 %v9976_v40  ;;  %v2821_v60 = vpop.xlane.xlu1 %2820 }
 0x50d   : > { %7784 = vpow2.f32 %v2864_v36  ;;  %v2843_v57 = vsub.f32 %v9873_v6, %v2821_v60  ;;  %v2823_v22 = vpop.xlane.xlu0 %2822  ;;  %2886 = vadd.xlane.f32.xlu0 %v9978_v38  ;;  %v7500_v60 = vld [vmem:[%s9173_s25 + $0x4] ss:$8 sps:$4 sm:$0xff]  }
 0x50e   : > { %7786 = vpow2.f32 %v2866_v13  ;;  %v2844_v4 = vsub.f32 %v9876_v5, %v2823_v22  ;;  %v7498_v13 = vld [vmem:[%s9173_s25] ss:$8 sps:$4 sm:$0xff]   ;;  %3271 = vmatprep.subr.bf16.mxu0 %v7500_v60  ;;  %v7501_v22 = vld [vmem:[%s9173_s25 + $0x10] ss:$8 sps:$4 sm:$0xff]  }
 0x50f   : > { %v9984_v1 = vpop.eup %7776  ;;  %v2868_v28 = vmul.f32 1.442695, %v2843_v57  ;;  %v7503_v57 = vld [vmem:[%s9173_s25 + $0x14] ss:$8 sps:$4 sm:$0xff]   ;;  %3272 = vmatpush1.bf16.msra.mxu0 %v7498_v13 }
 0x510   : > { %v9986_v61 = vpop.eup %7778  ;;  %v2870_v58 = vmul.f32 1.442695, %v2844_v4  ;;  %2888 = vadd.xlane.f32.xlu1 %v9984_v1  ;;  %v2825_v33 = vpop.xlane.xlu1 %2824  ;;  %3273 = vmatprep.subr.bf16.mxu0 %v7503_v57  ;;  %v7506_v4 = vld [vmem:[%s9173_s25 + $0x24] ss:$8 sps:$4 sm:$0xff]  }
 0x511   : > { %7788 = vpow2.f32 %v2868_v28  ;;  %v2845_v59 = vsub.f32 %v9881_v43, %v2825_v33  ;;  %v2831_v53 = vpop.xlane.xlu0 %2830  ;;  %2890 = vadd.xlane.f32.xlu0 %v9986_v61  ;;  %v7504_v28 = vld [vmem:[%s9173_s25 + $0x20] ss:$8 sps:$4 sm:$0xff]   ;;  %v7507_v33 = vld [vmem:[%s9173_s25 + $0x30] ss:$8 sps:$4 sm:$0xff]  }
 0x512   : > { %7790 = vpow2.f32 %v2870_v58  ;;  %v2848_v7 = vsub.f32 %v9884_v63, %v2831_v53  ;;  %v7509_v58 = vld [vmem:[%s9173_s25 + $0x34] ss:$8 sps:$4 sm:$0xff]   ;;  %v7510_v53 = vld [vmem:[%s9173_s25 + $0x40] ss:$8 sps:$4 sm:$0xff]  }
 0x513   : > { %v9991_v6 = vpop.eup %7780  ;;  %v2872_v29 = vmul.f32 1.442695, %v2845_v59  ;;  %3274 = vmatpush1.bf16.msra.mxu0 %v7501_v22  ;;  %v7512_v59 = vld [vmem:[%s9173_s25 + $0x44] ss:$8 sps:$4 sm:$0xff]  }
 0x514   : > { %v9993_v5 = vpop.eup %7782  ;;  %2892 = vadd.xlane.f32.xlu1 %v9991_v6  ;;  %v2833_v39 = vpop.xlane.xlu1 %2832  ;;  %v2878_v47 = vmul.f32 1.442695, %v2848_v7  ;;  %3275 = vmatprep.subr.bf16.mxu0 %v7506_v4  ;;  %v7516_v7 = vld [vmem:[%s9173_s25 + $0x60] ss:$8 sps:$4 sm:$0xff]  }
 0x515   : > { %7792 = vpow2.f32 %v2872_v29  ;;  %2894 = vadd.xlane.f32.xlu0 %v9993_v5  ;;  %v2827_v41 = vpop.xlane.xlu0 %2826  ;;  %v2849_v8 = vsub.f32 %v9892_v34, %v2833_v39  ;;  %v7515_v29 = vld [vmem:[%s9173_s25 + $0x54] ss:$8 sps:$4 sm:$0xff]   ;;  %v7513_v39 = vld [vmem:[%s9173_s25 + $0x50] ss:$8 sps:$4 sm:$0xff]  }
 0x516   : > { %v2846_v43 = vsub.f32 %v9895_v46, %v2827_v41  ;;  %v7518_v41 = vld [vmem:[%s9173_s25 + $0x64] ss:$8 sps:$4 sm:$0xff]  }
 0x517   : > { %v9999_v56 = vpop.eup %7784  ;;  %v2880_v23 = vmul.f32 1.442695, %v2849_v8  ;;  %3276 = vmatpush1.bf16.msra.mxu0 %v7504_v28 }
 0x518   : > { %v10001_v49 = vpop.eup %7786  ;;  %v2874_v44 = vmul.f32 1.442695, %v2846_v43  ;;  %2896 = vadd.xlane.f32.xlu1 %v9999_v56  ;;  %v2829_v51 = vpop.xlane.xlu1 %2828  ;;  %3277 = vmatprep.subr.bf16.mxu0 %v7509_v58 }
 0x519   : > { %v2847_v9 = vsub.f32 %v9889_v48, %v2829_v51  ;;  %2898 = vadd.xlane.f32.xlu0 %v10001_v49 }
 0x51a   : > { %7794 = vpow2.f32 %v2874_v44 }
 0x51b   : > { %v10007_v55 = vpop.eup %7788  ;;  %v2876_v63 = vmul.f32 1.442695, %v2847_v9  ;;  %3278 = vmatpush1.bf16.msra.mxu0 %v7507_v33 }
 0x51c   : > { %v10009_v46 = vpop.eup %7790  ;;  %2900 = vadd.xlane.f32.xlu1 %v10007_v55  ;;  %3279 = vmatprep.subr.bf16.mxu0 %v7512_v59 }
 0x51d   : > { %7796 = vpow2.f32 %v2876_v63  ;;  %2902 = vadd.xlane.f32.xlu0 %v10009_v46 }
 0x51e   : > { %7798 = vpow2.f32 %v2878_v47 }
 0x51f   : > { %v10013_v48 = vpop.eup %7792  ;;  %7800 = vpow2.f32 %v2880_v23  ;;  %3280 = vmatpush1.bf16.msra.mxu0 %v7510_v53 }
 0x520   : > { %2904 = vadd.xlane.f32.xlu1 %v10013_v48  ;;  %3281 = vmatprep.subr.bf16.mxu0 %v7515_v29 }
 0x523   : > { %3282 = vmatpush1.bf16.msra.mxu0 %v7513_v39 }
 0x524   : > { %v10016_v34 = vpop.eup %7794  ;;  %3283 = vmatprep.subr.bf16.mxu0 %v7518_v41 }
 0x525   : > { %2906 = vadd.xlane.f32.xlu0 %v10016_v34 }
 0x527   : > { %v10019_v42 = vpop.eup %7796  ;;  %3284 = vmatpush1.bf16.msra.mxu0 %v7516_v7 }
 0x528   : > { %v10021_v0 = vpop.eup %7798  ;;  %2908 = vadd.xlane.f32.xlu1 %v10019_v42 }
 0x529   : > { %2910 = vadd.xlane.f32.xlu0 %v10021_v0  ;;  %v10025_v36 = vpop.eup %7800 }
 0x52c   : > { %2912 = vadd.xlane.f32.xlu1 %v10025_v36 }
 0x576   : > { %v2481_v43 = vpop.xlane.xlu0 %2480 }
 0x577   : > { %7802 = vrcp.f32 %v2481_v43 }
 0x579   : > { %v2483_v44 = vpop.xlane.xlu1 %2482 }
 0x57a   : > { %7804 = vrcp.f32 %v2483_v44  ;;  %v2485_v51 = vpop.xlane.xlu0 %2484 }
 0x57b   : > { %7806 = vrcp.f32 %v2485_v51 }
 0x57d   : > { %v2487_v8 = vpop.xlane.xlu1 %2486 }
 0x57e   : > { %7808 = vrcp.f32 %v2487_v8  ;;  %v2489_v9 = vpop.xlane.xlu0 %2488 }
 0x57f   : > { %7810 = vrcp.f32 %v2489_v9 }
 0x581   : > { %v2491_v47 = vpop.xlane.xlu1 %2490  ;;  %v7803_v63 = vpop.eup %7802 }
 0x582   : > { %7812 = vrcp.f32 %v2491_v47  ;;  %v2493_v23 = vpop.xlane.xlu0 %2492  ;;  %v2528_v57 = vmul.f32 %v7803_v63, %v9907_v31 }
 0x583   : > { %7814 = vrcp.f32 %v2493_v23 }
 0x584   : > { %v7805_v13 = vpop.eup %7804 }
 0x585   : > { %v2495_v60 = vpop.xlane.xlu1 %2494  ;;  %v2529_v22 = vmul.f32 %v7805_v13, %v9912_v54  ;;  %v7807_v4 = vpop.eup %7806 }
 0x586   : > { %7816 = vrcp.f32 %v2495_v60  ;;  %v2497_v28 = vpop.xlane.xlu0 %2496  ;;  %v2530_v59 = vmul.f32 %v7807_v4, %v9914_v25 }
 0x587   : > { %v2544_v58 = vpack.c.bf16 %v2529_v22, %v2528_v57  ;;  %7818 = vrcp.f32 %v2497_v28 }
 0x588   : > { %v7809_v33 = vpop.eup %7808 }
 0x589   : > { %v2531_v53 = vmul.f32 %v7809_v33, %v9920_v32  ;;  %7056 = vmatprep.mubr.bf16.mxu1 %v2544_v58  ;;  %v2499_v29 = vpop.xlane.xlu1 %2498  ;;  %v7811_v39 = vpop.eup %7810 }
 0x58a   : > { %7820 = vrcp.f32 %v2499_v29  ;;  %v2501_v41 = vpop.xlane.xlu0 %2500  ;;  %v2532_v54 = vmul.f32 %v7811_v39, %v9922_v26 }
 0x58b   : > { %v2545_v7 = vpack.c.bf16 %v2531_v53, %v2530_v59  ;;  %7822 = vrcp.f32 %v2501_v41 }
 0x58c   : > { %v7813_v43 = vpop.eup %7812 }
 0x58d   : > { %7057 = vmatmul.mubr.bf16.vlgmr.msra.gmra.mrb[32].mxu1 %v2545_v7  ;;  %v2503_v31 = vpop.xlane.xlu1 %2502  ;;  %v2533_v44 = vmul.f32 %v7813_v43, %v9928_v45  ;;  %v7815_v51 = vpop.eup %7814 }
 0x58e   : > { %7105 = vmatpush3.bf16.msra.mxu1 %v9659_v3  ;;  %7824 = vrcp.f32 %v2503_v31  ;;  %v2505_v25 = vpop.xlane.xlu0 %2504  ;;  %v2534_v47 = vmul.f32 %v7815_v51, %v9930_v24 }
 0x58f   : > { %7106 = vmatprep.subr.bf16.mxu1 %v9667_v30  ;;  %v2546_v32 = vpack.c.bf16 %v2533_v44, %v2532_v54  ;;  %7826 = vrcp.f32 %v2505_v25 }
 0x590   : > { %v7817_v8 = vpop.eup %7816 }
 0x591   : > { %7060 = vmatprep.mubr.bf16.mxu1 %v2546_v32  ;;  %v2507_v9 = vpop.xlane.xlu1 %2506  ;;  %v2535_v63 = vmul.f32 %v7817_v8, %v9936_v16  ;;  %v7819_v23 = vpop.eup %7818 }
 0x592   : > { %7107 = vmatpush3.bf16.msra.mxu1 %v9667_v30  ;;  %7828 = vrcp.f32 %v2507_v9  ;;  %v2509_v26 = vpop.xlane.xlu0 %2508  ;;  %v2536_v60 = vmul.f32 %v7819_v23, %v9938_v20 }
 0x593   : > { %7108 = vmatprep.subr.bf16.mxu1 %v9675_v18  ;;  %v2547_v3 = vpack.c.bf16 %v2535_v63, %v2534_v47  ;;  %7830 = vrcp.f32 %v2509_v26 }
 0x594   : > { %v7821_v45 = vpop.eup %7820 }
 0x595   : > { %7061 = vmatmul.mubr.bf16.gmra.mrb[36].mxu1 %v2547_v3  ;;  %v2511_v13 = vpop.xlane.xlu1 %2510  ;;  %v2537_v57 = vmul.f32 %v7821_v45, %v9944_v21  ;;  %v7823_v22 = vpop.eup %7822 }
 0x596   : > { %7109 = vmatpush3.bf16.msra.mxu1 %v9675_v18  ;;  %7832 = vrcp.f32 %v2511_v13  ;;  %v2883_v24 = vpop.xlane.xlu0 %2882  ;;  %v2538_v28 = vmul.f32 %v7823_v22, %v9946_v17 }
 0x597   : > { %7110 = vmatprep.subr.bf16.mxu1 %v9685_v11  ;;  %v2548_v30 = vpack.c.bf16 %v2537_v57, %v2536_v60  ;;  %7834 = vrcp.f32 %v2883_v24 }
 0x598   : > { %v7825_v16 = vpop.eup %7824 }
 0x599   : > { %7064 = vmatprep.mubr.bf16.mxu1 %v2548_v30  ;;  %v2885_v4 = vpop.xlane.xlu1 %2884  ;;  %v2539_v58 = vmul.f32 %v7825_v16, %v9952_v15  ;;  %v7827_v33 = vpop.eup %7826 }
 0x59a   : > { %7111 = vmatpush3.bf16.msra.mxu1 %v9685_v11  ;;  %7836 = vrcp.f32 %v2885_v4  ;;  %v2887_v20 = vpop.xlane.xlu0 %2886  ;;  %v2540_v53 = vmul.f32 %v7827_v33, %v9954_v19 }
 0x59b   : > { %7112 = vmatprep.subr.bf16.mxu1 %v9693_v35  ;;  %v2549_v18 = vpack.c.bf16 %v2539_v58, %v2538_v28  ;;  %7838 = vrcp.f32 %v2887_v20 }
 0x59c   : > { %v7829_v21 = vpop.eup %7828 }
 0x59d   : > { %7065 = vmatmul.mubr.bf16.gmra.mrb[40].mxu1 %v2549_v18  ;;  %v2889_v59 = vpop.xlane.xlu1 %2888  ;;  %v2541_v29 = vmul.f32 %v7829_v21, %v9960_v12  ;;  %v7831_v39 = vpop.eup %7830 }
 0x59e   : > { %7113 = vmatpush3.bf16.msra.mxu1 %v9693_v35  ;;  %7840 = vrcp.f32 %v2889_v59  ;;  %v2891_v17 = vpop.xlane.xlu0 %2890  ;;  %v2542_v7 = vmul.f32 %v7831_v39, %v9962_v52  ;;  %v7521_v39 = vld [vmem:[%s9173_s25 + $0x74] ss:$8 sps:$4 sm:$0xff]  }
 0x59f   : > { %7114 = vmatprep.subr.bf16.mxu1 %v9709_v50  ;;  %v2550_v11 = vpack.c.bf16 %v2541_v29, %v2540_v53  ;;  %7842 = vrcp.f32 %v2891_v17  ;;  %v7519_v17 = vld [vmem:[%s9173_s25 + $0x70] ss:$8 sps:$4 sm:$0xff]   ;;  %3285 = vmatprep.subr.bf16.mxu0 %v7521_v39 }
 0x5a0   : > { %v7833_v15 = vpop.eup %7832  ;;  %3286 = vmatpush1.bf16.msra.mxu0 %v7519_v17 }
 0x5a1   : > { %7068 = vmatprep.mubr.bf16.mxu1 %v2550_v11  ;;  %v2893_v41 = vpop.xlane.xlu1 %2892  ;;  %v2543_v43 = vmul.f32 %v7833_v15, %v9968_v62  ;;  %v7835_v31 = vpop.eup %7834  ;;  %v7527_v11 = vld [vmem:[%s9173_s25 + $0x94] ss:$8 sps:$4 sm:$0xff]   ;;  %v7528_v15 = vld [vmem:[%s9173_s25 + $0xa0] ss:$8 sps:$4 sm:$0xff]  }
 0x5a2   : > { %7115 = vmatpush3.bf16.msra.mxu1 %v9709_v50  ;;  %7844 = vrcp.f32 %v2893_v41  ;;  %v2895_v19 = vpop.xlane.xlu0 %2894  ;;  %v2930_v44 = vmul.f32 %v7835_v31, %v9970_v2  ;;  %v7533_v41 = vld [vmem:[%s9173_s25 + $0xb4] ss:$8 sps:$4 sm:$0xff]   ;;  %v7534_v31 = vld [vmem:[%s9173_s25 + $0xc0] ss:$8 sps:$4 sm:$0xff]  }
 0x5a3   : > { %7116 = vmatprep.subr.bf16.mxu1 %v9725_v10  ;;  %v2551_v35 = vpack.c.bf16 %v2543_v43, %v2542_v7  ;;  %7846 = vrcp.f32 %v2895_v19  ;;  %v7531_v7 = vld [vmem:[%s9173_s25 + $0xb0] ss:$8 sps:$4 sm:$0xff]   ;;  %v7536_v43 = vld [vmem:[%s9173_s25 + $0xc4] ss:$8 sps:$4 sm:$0xff]   ;;  %v7539_v19 = vld [vmem:[%s9173_s25 + $0xd4] ss:$8 sps:$4 sm:$0xff]  }
 0x5a4   : > { %v7837_v12 = vpop.eup %7836 }
 0x5a5   : > { %7069 = vmatmul.mubr.bf16.gmra.mrb[44].mxu1 %v2551_v35  ;;  %v2897_v54 = vpop.xlane.xlu1 %2896  ;;  %v2931_v51 = vmul.f32 %v7837_v12, %v9976_v40  ;;  %v7839_v25 = vpop.eup %7838  ;;  %v7537_v35 = vld [vmem:[%s9173_s25 + $0xd0] ss:$8 sps:$4 sm:$0xff]   ;;  %v7542_v12 = vld [vmem:[%s9173_s25 + $0xe4] ss:$8 sps:$4 sm:$0xff]  }
 0x5a6   : > { %7117 = vmatpush3.bf16.msra.mxu1 %v9725_v10  ;;  %7848 = vrcp.f32 %v2897_v54  ;;  %v2899_v52 = vpop.xlane.xlu0 %2898  ;;  %v2932_v32 = vmul.f32 %v7839_v25, %v9978_v38  ;;  %v7540_v54 = vld [vmem:[%s9173_s25 + $0xe0] ss:$8 sps:$4 sm:$0xff]  }
 0x5a7   : > { %7118 = vmatprep.subr.bf16.mxu1 %v9738_v14  ;;  %v2946_v50 = vpack.c.bf16 %v2931_v51, %v2930_v44  ;;  %7850 = vrcp.f32 %v2899_v52  ;;  %v7545_v44 = vld [vmem:[%s9173_s25 + $0xf4] ss:$8 sps:$4 sm:$0xff]   ;;  %v7543_v51 = vld [vmem:[%s9173_s25 + $0xf0] ss:$8 sps:$4 sm:$0xff]  }
 0x5a8   : > { %v7841_v62 = vpop.eup %7840 }
 0x5a9   : > { %v2933_v8 = vmul.f32 %v7841_v62, %v9984_v1  ;;  %7120 = vmatprep.mubr.bf16.mxu1 %v2946_v50  ;;  %v2901_v9 = vpop.xlane.xlu1 %2900  ;;  %v7843_v47 = vpop.eup %7842 }
 0x5aa   : > { %7119 = vmatpush3.bf16.msra.mxu1 %v9738_v14  ;;  %7852 = vrcp.f32 %v2901_v9  ;;  %v2903_v2 = vpop.xlane.xlu0 %2902  ;;  %v2934_v23 = vmul.f32 %v7843_v47, %v9986_v61 }
 0x5ab   : > { %v2947_v40 = vpack.c.bf16 %v2933_v8, %v2932_v32  ;;  %7854 = vrcp.f32 %v2903_v2 }
 0x5ac   : > { %v7845_v10 = vpop.eup %7844 }
 0x5ad   : > { %7121 = vmatmul.mubr.bf16.vlgmr.msra.gmra.mrb[48].mxu1 %v2947_v40  ;;  %v2905_v63 = vpop.xlane.xlu1 %2904  ;;  %v2935_v26 = vmul.f32 %v7845_v10, %v9991_v6  ;;  %v7847_v3 = vpop.eup %7846 }
 0x5ae   : > { %7856 = vrcp.f32 %v2905_v63  ;;  %v2936_v45 = vmul.f32 %v7847_v3, %v9993_v5 }
 0x5af   : > { %v2948_v38 = vpack.c.bf16 %v2935_v26, %v2934_v23 }
 0x5b0   : > { %v7849_v1 = vpop.eup %7848 }
 0x5b1   : > { %7124 = vmatprep.mubr.bf16.mxu1 %v2948_v38  ;;  %v2937_v14 = vmul.f32 %v7849_v1, %v9999_v56  ;;  %v7851_v13 = vpop.eup %7850 }
 0x5b2   : > { %v2907_v60 = vpop.xlane.xlu0 %2906  ;;  %v2938_v61 = vmul.f32 %v7851_v13, %v10001_v49 }
 0x5b3   : > { %v2949_v57 = vpack.c.bf16 %v2937_v14, %v2936_v45  ;;  %7858 = vrcp.f32 %v2907_v60 }
 0x5b4   : > { %v7853_v22 = vpop.eup %7852 }
 0x5b5   : > { %7125 = vmatmul.mubr.bf16.gmra.mrb[52].mxu1 %v2949_v57  ;;  %v2909_v24 = vpop.xlane.xlu1 %2908  ;;  %v2939_v6 = vmul.f32 %v7853_v22, %v10007_v55  ;;  %v7855_v30 = vpop.eup %7854 }
 0x5b6   : > { %7860 = vrcp.f32 %v2909_v24  ;;  %v2911_v16 = vpop.xlane.xlu0 %2910  ;;  %v2940_v56 = vmul.f32 %v7855_v30, %v10009_v46 }
 0x5b7   : > { %v2950_v4 = vpack.c.bf16 %v2939_v6, %v2938_v61  ;;  %7862 = vrcp.f32 %v2911_v16 }
 0x5b8   : > { %v7857_v28 = vpop.eup %7856 }
 0x5b9   : > { %7128 = vmatprep.mubr.bf16.mxu1 %v2950_v4  ;;  %v2913_v5 = vpop.xlane.xlu1 %2912  ;;  %v2941_v58 = vmul.f32 %v7857_v28, %v10013_v48 }
 0x5ba   : > { %7864 = vrcp.f32 %v2913_v5 }
 0x5bb   : > { %v2951_v33 = vpack.c.bf16 %v2941_v58, %v2940_v56 }
 0x5bd   : > { %7129 = vmatmul.mubr.bf16.gmra.mrb[56].mxu1 %v2951_v33  ;;  %v7859_v49 = vpop.eup %7858 }
 0x5be   : > { %v2942_v20 = vmul.f32 %v7859_v49, %v10016_v34  ;;  %v7524_v34 = vld [vmem:[%s9173_s25 + $0x84] ss:$8 sps:$4 sm:$0xff]  }
 0x5bf   : > { %3287 = vmatprep.subr.bf16.mxu0 %v7524_v34 }
 0x5c0   : > { %v7861_v55 = vpop.eup %7860 }
 0x5c1   : > { %v2943_v18 = vmul.f32 %v7861_v55, %v10019_v42  ;;  %v7863_v21 = vpop.eup %7862  ;;  %v7522_v42 = vld [vmem:[%s9173_s25 + $0x80] ss:$8 sps:$4 sm:$0xff]  }
 0x5c2   : > { %v2944_v48 = vmul.f32 %v7863_v21, %v10021_v0  ;;  %3288 = vmatpush1.bf16.msra.mxu0 %v7522_v42  ;;  %v7525_v0 = vld [vmem:[%s9173_s25 + $0x90] ss:$8 sps:$4 sm:$0xff]  }
 0x5c3   : > { %v2952_v59 = vpack.c.bf16 %v2943_v18, %v2942_v20  ;;  %3289 = vmatprep.subr.bf16.mxu0 %v7527_v11  ;;  %v3099_v11 = vld [vmem:[%s12473_s26] sm:$0x3] }
 0x5c4   : > { %v7865_v46 = vpop.eup %7864 }
 0x5c5   : > { %7132 = vmatprep.mubr.bf16.mxu1 %v2952_v59  ;;  %v2945_v53 = vmul.f32 %v7865_v46, %v10025_v36  ;;  %v7530_v36 = vld [vmem:[%s9173_s25 + $0xa4] ss:$8 sps:$4 sm:$0xff]  }
 0x5c6   : > { %3290 = vmatpush1.bf16.msra.mxu0 %v7525_v0  ;;  %v10113_v0 = vrot.slane %v3099_v11, %v9446_v27 }
 0x5c7   : > { %v2953_v29 = vpack.c.bf16 %v2945_v53, %v2944_v48  ;;  %3291 = vmatprep.subr.bf16.mxu0 %v7530_v36  ;;  %v10116_v36 = vrot.slane %v3099_v11, %v9454_v37  ;;  %v8070_v11 = vld [vmem:[#allocation2 + $0x60] sm:$0xff] }
 0x5c9   : > { %7133 = vmatmul.mubr.bf16.gmra.mrb[60].mxu1 %v2953_v29 }
 0x5ca   : > { %3292 = vmatpush1.bf16.msra.mxu0 %v7528_v15 }
 0x5cb   : > { %3293 = vmatprep.subr.bf16.mxu0 %v7533_v41 }
 0x5ce   : > { %3294 = vmatpush1.bf16.msra.mxu0 %v7531_v7 }
 0x5cf   : > { %3295 = vmatprep.subr.bf16.mxu0 %v7536_v43 }
 0x5d2   : > { %3296 = vmatpush1.bf16.msra.mxu0 %v7534_v31 }
 0x5d3   : > { %3297 = vmatprep.subr.bf16.mxu0 %v7539_v19  ;;  %v8058_v19 = vld [vmem:[#allocation2] sm:$0xff] }
 0x5d6   : > { %3298 = vmatpush1.bf16.msra.mxu0 %v7537_v35 }
 0x5d7   : > { %3299 = vmatprep.subr.bf16.mxu0 %v7542_v12 }
 0x5da   : > { %3300 = vmatpush1.bf16.msra.mxu0 %v7540_v54 }
 0x5db   : > { %3301 = vmatprep.subr.bf16.mxu0 %v7545_v44  ;;  %v8059_v44 = vld [vmem:[#allocation2 + $0x8] sm:$0xff] }
 0x5de   : > { %3302 = vmatpush1.bf16.msra.mxu0 %v7543_v51 }
 0x660   : > { %v7058_v25 = vpop.f32.mrb[32].mxu1 }
 0x661   : > { %v2586_v52 = vpop.f32.mrb[33].mxu1 }
 0x662   : > { %v7059_v50 = vpop.f32.mrb[34].mxu1 }
 0x663   : > { %v3053_v62 = vpack.c.bf16 %v7059_v50, %v7058_v25  ;;  %v2589_v32 = vpop.f32.mrb[35].mxu1 }
 0x664   : > { %v3051_v8 = vpack.c.bf16 %v2589_v32, %v2586_v52  ;;  %v8060_v52 = vld [vmem:[#allocation2 + $0x10] sm:$0xff] }
 0x668   : > { %v7062_v9 = vpop.f32.mrb[36].mxu1 }
 0x669   : > { %v2602_v47 = vpop.f32.mrb[37].mxu1 }
 0x66a   : > { %v7063_v2 = vpop.f32.mrb[38].mxu1 }
 0x66b   : > { %v3057_v40 = vpack.c.bf16 %v7063_v2, %v7062_v9  ;;  %v2605_v10 = vpop.f32.mrb[39].mxu1 }
 0x66c   : > { %v3055_v63 = vpack.c.bf16 %v2605_v10, %v2602_v47 }
 0x670   : > { %v7066_v23 = vpop.f32.mrb[40].mxu1 }
 0x671   : > { %v2618_v26 = vpop.f32.mrb[41].mxu1 }
 0x672   : > { %v7067_v3 = vpop.f32.mrb[42].mxu1 }
 0x673   : > { %v3061_v38 = vpack.c.bf16 %v7067_v3, %v7066_v23  ;;  %v2621_v1 = vpop.f32.mrb[43].mxu1  ;;  %v8062_v23 = vld [vmem:[#allocation2 + $0x20] sm:$0xff] }
 0x674   : > { %v3059_v45 = vpack.c.bf16 %v2621_v1, %v2618_v26  ;;  %v8063_v1 = vld [vmem:[#allocation2 + $0x28] sm:$0xff] }
 0x678   : > { %v7070_v14 = vpop.f32.mrb[44].mxu1 }
 0x679   : > { %v2634_v13 = vpop.f32.mrb[45].mxu1 }
 0x67a   : > { %v7071_v60 = vpop.f32.mrb[46].mxu1 }
 0x67b   : > { %v3065_v57 = vpack.c.bf16 %v7071_v60, %v7070_v14  ;;  %v2637_v22 = vpop.f32.mrb[47].mxu1 }
 0x67c   : > { %v3063_v24 = vpack.c.bf16 %v2637_v22, %v2634_v13  ;;  %v8064_v13 = vld [vmem:[#allocation2 + $0x30] sm:$0xff] }
 0x680   : > { %v7122_v61 = vpop.f32.mrb[48].mxu1 }
 0x681   : > { %v2988_v6 = vpop.f32.mrb[49].mxu1 }
 0x682   : > { %v7123_v30 = vpop.f32.mrb[50].mxu1 }
 0x683   : > { %v3054_v16 = vpack.c.bf16 %v7123_v30, %v7122_v61  ;;  %v2991_v4 = vpop.f32.mrb[51].mxu1 }
 0x684   : > { %v3052_v28 = vpack.c.bf16 %v2991_v4, %v2988_v6 }
 0x686   : > { %3303 = vmatprep.mubr.bf16.mxu0 %v3052_v28 }
 0x687   : > { %3304 = vmatmul.mubr.bf16.vlgmr.msra.gmra.mrb[96].mxu0 %v3051_v8 }
 0x688   : > { %v7126_v5 = vpop.f32.mrb[52].mxu1  ;;  %3313 = vmatprep.mubr.bf16.mxu0 %v3054_v16 }
 0x689   : > { %v3004_v56 = vpop.f32.mrb[53].mxu1 }
 0x68a   : > { %v7127_v58 = vpop.f32.mrb[54].mxu1 }
 0x68b   : > { %v3058_v33 = vpack.c.bf16 %v7127_v58, %v7126_v5  ;;  %v3007_v49 = vpop.f32.mrb[55].mxu1  ;;  %v8066_v5 = vld [vmem:[#allocation2 + $0x40] sm:$0xff] }
 0x68c   : > { %v3056_v55 = vpack.c.bf16 %v3007_v49, %v3004_v56  ;;  %v8067_v49 = vld [vmem:[#allocation2 + $0x48] sm:$0xff] }
 0x68f   : > { %3314 = vmatmul.mubr.bf16.gmra.mrb[100].mxu0 %v3053_v62  ;;  %v8061_v62 = vld [vmem:[#allocation2 + $0x18] sm:$0xff] }
 0x690   : > { %v7130_v20 = vpop.f32.mrb[56].mxu1  ;;  %3323 = vmatprep.mubr.bf16.mxu0 %v3056_v55 }
 0x691   : > { %v3020_v18 = vpop.f32.mrb[57].mxu1 }
 0x692   : > { %v7131_v21 = vpop.f32.mrb[58].mxu1 }
 0x693   : > { %v3062_v59 = vpack.c.bf16 %v7131_v21, %v7130_v20  ;;  %v3023_v46 = vpop.f32.mrb[59].mxu1 }
 0x694   : > { %v3060_v48 = vpack.c.bf16 %v3023_v46, %v3020_v18  ;;  %v8068_v18 = vld [vmem:[#allocation2 + $0x50] sm:$0xff] }
 0x697   : > { %3324 = vmatmul.mubr.bf16.gmra.mrb[104].mxu0 %v3055_v63 }
 0x698   : > { %3333 = vmatprep.mubr.bf16.mxu0 %v3058_v33 }
 0x69c   : > { %v7134_v53 = vpop.f32.mrb[60].mxu1 }
 0x69d   : > { %v3036_v29 = vpop.f32.mrb[61].mxu1 }
 0x69e   : > { %v7135_v39 = vpop.f32.mrb[62].mxu1 }
 0x69f   : > { %v3066_v17 = vpack.c.bf16 %v7135_v39, %v7134_v53  ;;  %v3039_v34 = vpop.f32.mrb[63].mxu1  ;;  %3334 = vmatmul.mubr.bf16.gmra.mrb[108].mxu0 %v3057_v40 }
 0x6a0   : > { %v3064_v42 = vpack.c.bf16 %v3039_v34, %v3036_v29  ;;  %3343 = vmatprep.mubr.bf16.mxu0 %v3060_v48 }
 0x6a7   : > { %3344 = vmatmul.mubr.bf16.gmra.mrb[112].mxu0 %v3059_v45 }
 0x6a8   : > { %3353 = vmatprep.mubr.bf16.mxu0 %v3062_v59  ;;  %v8069_v59 = vld [vmem:[#allocation2 + $0x58] sm:$0xff] }
 0x6af   : > { %3354 = vmatmul.mubr.bf16.gmra.mrb[116].mxu0 %v3061_v38 }
 0x6b0   : > { %3363 = vmatprep.mubr.bf16.mxu0 %v3064_v42 }
 0x6b7   : > { %3364 = vmatmul.mubr.bf16.gmra.mrb[120].mxu0 %v3063_v24 }
 0x6b8   : > { %3373 = vmatprep.mubr.bf16.mxu0 %v3066_v17 }
 0x6bf   : > { %3374 = vmatmul.mubr.bf16.gmra.mrb[124].mxu0 %v3065_v57  ;;  %v8065_v57 = vld [vmem:[#allocation2 + $0x38] sm:$0xff] }
 0x75a   : > { %v3305_v15 = vpop.f32.mrb[96].mxu0 }
 0x75b   : > { %v3306_v41 = vadd.f32 %v3305_v15, %v10113_v0  ;;  %v3307_v7 = vpop.f32.mrb[97].mxu0 }
 0x75c   : > { %v3308_v43 = vadd.f32 %v3307_v7, %v10116_v36  ;;  %v3309_v31 = vpop.f32.mrb[98].mxu0 }
 0x75d   : > { %v10120_v35 = vadd.f32 %v8058_v19, %v3306_v41  ;;  %v3310_v12 = vadd.f32 %v3309_v31, %v10113_v0  ;;  %v3311_v54 = vpop.f32.mrb[99].mxu0 }
 0x75e   : > { %v10123_v51 = vadd.f32 %v8059_v44, %v3308_v43  ;;  %v3312_v25 = vadd.f32 %v3311_v54, %v10116_v36  ;;  %v8071_v43 = vld [vmem:[#allocation2 + $0x68] sm:$0xff]  ;;  %v8073_v44 = vld [vmem:[#allocation2 + $0x78] sm:$0xff] }
 0x75f   : > { %v10126_v50 = vadd.f32 %v8060_v52, %v3310_v12  ;;  %v8072_v12 = vld [vmem:[#allocation2 + $0x70] sm:$0xff] }
 0x760   : > { %v10128_v32 = vadd.f32 %v8061_v62, %v3312_v25  ;;  %v3418_v8 = vadd.f32 %v10123_v51, %v10120_v35 }
 0x762   : > { %v3315_v9 = vpop.f32.mrb[100].mxu0  ;;  %3419 = vadd.xlane.f32.xlu0 %v3418_v8  ;;  %v3421_v47 = vadd.f32 %v10128_v32, %v10126_v50 }
 0x763   : > { %v3316_v2 = vadd.f32 %v3315_v9, %v10113_v0  ;;  %v3317_v40 = vpop.f32.mrb[101].mxu0 }
 0x764   : > { %v3318_v10 = vadd.f32 %v3317_v40, %v10116_v36  ;;  %v3319_v63 = vpop.f32.mrb[102].mxu0  ;;  %3422 = vadd.xlane.f32.xlu1 %v3421_v47 }
 0x765   : > { %v10136_v26 = vadd.f32 %v8062_v23, %v3316_v2  ;;  %v3320_v3 = vadd.f32 %v3319_v63, %v10113_v0  ;;  %v3321_v38 = vpop.f32.mrb[103].mxu0 }
 0x766   : > { %v10139_v45 = vadd.f32 %v8063_v1, %v3318_v10  ;;  %v3322_v14 = vadd.f32 %v3321_v38, %v10116_v36  ;;  %v8074_v10 = vld [vmem:[#allocation2 + $0x80] sm:$0xff]  ;;  %v8075_v38 = vld [vmem:[#allocation2 + $0x88] sm:$0xff] }
 0x767   : > { %v10142_v60 = vadd.f32 %v8064_v13, %v3320_v3  ;;  %v8076_v13 = vld [vmem:[#allocation2 + $0x90] sm:$0xff] }
 0x768   : > { %v10144_v22 = vadd.f32 %v8065_v57, %v3322_v14  ;;  %v3424_v24 = vadd.f32 %v10139_v45, %v10136_v26 }
 0x76a   : > { %3425 = vadd.xlane.f32.xlu0 %v3424_v24  ;;  %v3325_v61 = vpop.f32.mrb[104].mxu0  ;;  %v3427_v6 = vadd.f32 %v10144_v22, %v10142_v60  ;;  %v8077_v24 = vld [vmem:[#allocation2 + $0x98] sm:$0xff] }
 0x76b   : > { %v3326_v30 = vadd.f32 %v3325_v61, %v10113_v0  ;;  %v3327_v16 = vpop.f32.mrb[105].mxu0 }
 0x76c   : > { %v3328_v4 = vadd.f32 %v3327_v16, %v10116_v36  ;;  %3428 = vadd.xlane.f32.xlu1 %v3427_v6  ;;  %v3329_v28 = vpop.f32.mrb[106].mxu0 }
 0x76d   : > { %v10152_v56 = vadd.f32 %v8066_v5, %v3326_v30  ;;  %v3330_v58 = vadd.f32 %v3329_v28, %v10113_v0  ;;  %v3331_v33 = vpop.f32.mrb[107].mxu0 }
 0x76e   : > { %v10155_v55 = vadd.f32 %v8067_v49, %v3328_v4  ;;  %v3332_v20 = vadd.f32 %v3331_v33, %v10116_v36  ;;  %v8078_v33 = vld [vmem:[#allocation2 + $0xa0] sm:$0xff] }
 0x76f   : > { %v10158_v21 = vadd.f32 %v8068_v18, %v3330_v58 }
 0x770   : > { %v10160_v46 = vadd.f32 %v8069_v59, %v3332_v20  ;;  %v3430_v48 = vadd.f32 %v10155_v55, %v10152_v56  ;;  %v8079_v59 = vld [vmem:[#allocation2 + $0xa8] sm:$0xff] }
 0x772   : > { %v3335_v53 = vpop.f32.mrb[108].mxu0  ;;  %3431 = vadd.xlane.f32.xlu0 %v3430_v48  ;;  %v3433_v29 = vadd.f32 %v10160_v46, %v10158_v21 }
 0x773   : > { %v3336_v39 = vadd.f32 %v3335_v53, %v10113_v0  ;;  %v3337_v17 = vpop.f32.mrb[109].mxu0 }
 0x774   : > { %v3338_v34 = vadd.f32 %v3337_v17, %v10116_v36  ;;  %v3339_v42 = vpop.f32.mrb[110].mxu0  ;;  %3434 = vadd.xlane.f32.xlu1 %v3433_v29  ;;  %v8080_v29 = vld [vmem:[#allocation2 + $0xb0] sm:$0xff]  ;;  %v8081_v17 = vld [vmem:[#allocation2 + $0xb8] sm:$0xff] }
 0x775   : > { %v10168_v15 = vadd.f32 %v8070_v11, %v3336_v39  ;;  %v3340_v41 = vadd.f32 %v3339_v42, %v10113_v0  ;;  %v3341_v7 = vpop.f32.mrb[111].mxu0 }
 0x776   : > { %v10171_v31 = vadd.f32 %v8071_v43, %v3338_v34  ;;  %v3342_v19 = vadd.f32 %v3341_v7, %v10116_v36 }
 0x777   : > { %v10174_v54 = vadd.f32 %v8072_v12, %v3340_v41 }
 0x778   : > { %v10176_v25 = vadd.f32 %v8073_v44, %v3342_v19  ;;  %v3436_v52 = vadd.f32 %v10171_v31, %v10168_v15  ;;  %v8082_v44 = vld [vmem:[#allocation2 + $0xc0] sm:$0xff] }
 0x77a   : > { %3437 = vadd.xlane.f32.xlu0 %v3436_v52  ;;  %v3345_v62 = vpop.f32.mrb[112].mxu0  ;;  %v3439_v8 = vadd.f32 %v10176_v25, %v10174_v54 }
 0x77b   : > { %v3346_v9 = vadd.f32 %v3345_v62, %v10113_v0  ;;  %v3347_v47 = vpop.f32.mrb[113].mxu0 }
 0x77c   : > { %v3348_v2 = vadd.f32 %v3347_v47, %v10116_v36  ;;  %3440 = vadd.xlane.f32.xlu1 %v3439_v8  ;;  %v3349_v40 = vpop.f32.mrb[114].mxu0 }
 0x77d   : > { %v10184_v63 = vadd.f32 %v8074_v10, %v3346_v9  ;;  %v3350_v23 = vadd.f32 %v3349_v40, %v10113_v0  ;;  %v3351_v3 = vpop.f32.mrb[115].mxu0  ;;  %v8083_v9 = vld [vmem:[#allocation2 + $0xc8] sm:$0xff]  ;;  %v8084_v40 = vld [vmem:[#allocation2 + $0xd0] sm:$0xff] }
 0x77e   : > { %v10187_v1 = vadd.f32 %v8075_v38, %v3348_v2  ;;  %v3352_v14 = vadd.f32 %v3351_v3, %v10116_v36 }
 0x77f   : > { %v10190_v57 = vadd.f32 %v8076_v13, %v3350_v23  ;;  %v8085_v23 = vld [vmem:[#allocation2 + $0xd8] sm:$0xff] }
 0x780   : > { %v10192_v61 = vadd.f32 %v8077_v24, %v3352_v14  ;;  %v3442_v6 = vadd.f32 %v10187_v1, %v10184_v63 }
 0x782   : > { %v3355_v30 = vpop.f32.mrb[116].mxu0  ;;  %3443 = vadd.xlane.f32.xlu0 %v3442_v6  ;;  %v3445_v16 = vadd.f32 %v10192_v61, %v10190_v57 }
 0x783   : > { %v3356_v4 = vadd.f32 %v3355_v30, %v10113_v0  ;;  %v3357_v28 = vpop.f32.mrb[117].mxu0 }
 0x784   : > { %v3358_v5 = vadd.f32 %v3357_v28, %v10116_v36  ;;  %v3359_v58 = vpop.f32.mrb[118].mxu0  ;;  %3446 = vadd.xlane.f32.xlu1 %v3445_v16 }
 0x785   : > { %v10200_v49 = vadd.f32 %v8078_v33, %v3356_v4  ;;  %v3360_v20 = vadd.f32 %v3359_v58, %v10113_v0  ;;  %v3361_v18 = vpop.f32.mrb[119].mxu0  ;;  %v8086_v4 = vld [vmem:[#allocation2 + $0xe0] sm:$0xff]  ;;  %v8087_v33 = vld [vmem:[#allocation2 + $0xe8] sm:$0xff] }
 0x786   : > { %v10203_v48 = vadd.f32 %v8079_v59, %v3358_v5  ;;  %v3362_v53 = vadd.f32 %v3361_v18, %v10116_v36  ;;  %v8088_v59 = vld [vmem:[#allocation2 + $0xf0] sm:$0xff] }
 0x787   : > { %v10206_v39 = vadd.f32 %v8080_v29, %v3360_v20  ;;  %v8089_v29 = vld [vmem:[#allocation2 + $0xf8] sm:$0xff] }
 0x788   : > { %v10208_v34 = vadd.f32 %v8081_v17, %v3362_v53  ;;  %v3448_v42 = vadd.f32 %v10203_v48, %v10200_v49 }
 0x78a   : > { %3449 = vadd.xlane.f32.xlu0 %v3448_v42  ;;  %v3365_v11 = vpop.f32.mrb[120].mxu0  ;;  %v3451_v41 = vadd.f32 %v10208_v34, %v10206_v39 }
 0x78b   : > { %v3366_v7 = vadd.f32 %v3365_v11, %v10113_v0  ;;  %v3367_v43 = vpop.f32.mrb[121].mxu0  ;;  %v7546_v11 = vld [vmem:[%s12474_s19] ss:$16 sps:$4 sm:$0xff]  }
 0x78c   : > { %v3368_v19 = vadd.f32 %v3367_v43, %v10116_v36  ;;  %3452 = vadd.xlane.f32.xlu1 %v3451_v41  ;;  %v3369_v12 = vpop.f32.mrb[122].mxu0  ;;  %v7549_v41 = vld [vmem:[%s12474_s19 + $0x8] ss:$16 sps:$4 sm:$0xff]   ;;  %v7554_v43 = vld [vmem:[%s12474_s19 + $0x24] ss:$16 sps:$4 sm:$0xff]  }
 0x78d   : > { %v10216_v52 = vadd.f32 %v8082_v44, %v3366_v7  ;;  %v3370_v62 = vadd.f32 %v3369_v12, %v10113_v0  ;;  %v3371_v8 = vpop.f32.mrb[123].mxu0  ;;  %v7551_v7 = vld [vmem:[%s12474_s19 + $0xc] ss:$16 sps:$4 sm:$0xff]   ;;  %v7552_v12 = vld [vmem:[%s12474_s19 + $0x20] ss:$16 sps:$4 sm:$0xff]  }
 0x78e   : > { %v10219_v47 = vadd.f32 %v8083_v9, %v3368_v19  ;;  %v3372_v2 = vadd.f32 %v3371_v8, %v10116_v36  ;;  %v7557_v19 = vld [vmem:[%s12474_s19 + $0x2c] ss:$16 sps:$4 sm:$0xff]   ;;  %4296 = vmatprep.subr.bf16.mxu0 %v7551_v7  ;;  %v7555_v44 = vld [vmem:[%s12474_s19 + $0x28] ss:$16 sps:$4 sm:$0xff]   ;;  %v7558_v9 = vld [vmem:[%s12474_s19 + $0x40] ss:$16 sps:$4 sm:$0xff]  }
 0x78f   : > { %v10222_v10 = vadd.f32 %v8084_v40, %v3370_v62  ;;  %4297 = vmatpush1.bf16.msra.mxu0 %v7549_v41  ;;  %v7560_v62 = vld [vmem:[%s12474_s19 + $0x44] ss:$16 sps:$4 sm:$0xff]   ;;  %v7563_v8 = vld [vmem:[%s12474_s19 + $0x4c] ss:$16 sps:$4 sm:$0xff]  }
 0x790   : > { %v10224_v3 = vadd.f32 %v8085_v23, %v3372_v2  ;;  %v3454_v38 = vadd.f32 %v10219_v47, %v10216_v52  ;;  %4298 = vmatprep.subr.bf16.mxu0 %v7557_v19  ;;  %v7561_v2 = vld [vmem:[%s12474_s19 + $0x48] ss:$16 sps:$4 sm:$0xff]   ;;  %v7566_v40 = vld [vmem:[%s12474_s19 + $0x64] ss:$16 sps:$4 sm:$0xff]   ;;  %v7569_v23 = vld [vmem:[%s12474_s19 + $0x6c] ss:$16 sps:$4 sm:$0xff]  }
 0x791   : > { %v7596_v41 = vld [vmem:[%s12474_s19 + $0x104] ss:$16 sps:$4 sm:$0xff]   ;;  %v7599_v7 = vld [vmem:[%s12474_s19 + $0x10c] ss:$16 sps:$4 sm:$0xff]   ;;  %v7597_v19 = vld [vmem:[%s12474_s19 + $0x108] ss:$16 sps:$4 sm:$0xff]  }
 0x792   : > { %v3375_v14 = vpop.f32.mrb[124].mxu0  ;;  %3455 = vadd.xlane.f32.xlu0 %v3454_v38  ;;  %v3457_v13 = vadd.f32 %v10224_v3, %v10222_v10  ;;  %v7564_v38 = vld [vmem:[%s12474_s19 + $0x60] ss:$16 sps:$4 sm:$0xff]  }
 0x793   : > { %v3376_v24 = vadd.f32 %v3375_v14, %v10113_v0  ;;  %v3377_v6 = vpop.f32.mrb[125].mxu0  ;;  %4299 = vmatpush1.bf16.msra.mxu0 %v7555_v44  ;;  %v7567_v14 = vld [vmem:[%s12474_s19 + $0x68] ss:$16 sps:$4 sm:$0xff]   ;;  %v7605_v44 = vld [vmem:[%s12474_s19 + $0x12c] ss:$16 sps:$4 sm:$0xff]  }
 0x794   : > { %v3378_v30 = vadd.f32 %v3377_v6, %v10116_v36  ;;  %v3379_v16 = vpop.f32.mrb[126].mxu0  ;;  %3458 = vadd.xlane.f32.xlu1 %v3457_v13  ;;  %4300 = vmatprep.subr.bf16.mxu0 %v7563_v8  ;;  %v7572_v13 = vld [vmem:[%s12474_s19 + $0x84] ss:$16 sps:$4 sm:$0xff]   ;;  %v7570_v6 = vld [vmem:[%s12474_s19 + $0x80] ss:$16 sps:$4 sm:$0xff]  }
 0x795   : > { %v10232_v28 = vadd.f32 %v8086_v4, %v3376_v24  ;;  %v3380_v5 = vadd.f32 %v3379_v16, %v10113_v0  ;;  %v3381_v58 = vpop.f32.mrb[127].mxu0  ;;  %v7575_v24 = vld [vmem:[%s12474_s19 + $0x8c] ss:$16 sps:$4 sm:$0xff]   ;;  %v7578_v16 = vld [vmem:[%s12474_s19 + $0xa4] ss:$16 sps:$4 sm:$0xff]  }
 0x796   : > { %v10235_v20 = vadd.f32 %v8087_v33, %v3378_v30  ;;  %v3382_v18 = vadd.f32 %v3381_v58, %v10116_v36  ;;  %v7548_v36 = vld [vmem:[%s12474_s19 + $0x4] ss:$16 sps:$4 sm:$0xff]   ;;  %v7573_v30 = vld [vmem:[%s12474_s19 + $0x88] ss:$16 sps:$4 sm:$0xff]   ;;  %v7581_v4 = vld [vmem:[%s12474_s19 + $0xac] ss:$16 sps:$4 sm:$0xff]  }
 0x797   : > { %v10238_v53 = vadd.f32 %v8088_v59, %v3380_v5  ;;  %4183 = vmatprep.subr.bf16.mxu1 %v7548_v36  ;;  %4301 = vmatpush1.bf16.msra.mxu0 %v7561_v2  ;;  %v7576_v5 = vld [vmem:[%s12474_s19 + $0xa0] ss:$16 sps:$4 sm:$0xff]   ;;  %v7579_v58 = vld [vmem:[%s12474_s19 + $0xa8] ss:$16 sps:$4 sm:$0xff]   ;;  %v7584_v33 = vld [vmem:[%s12474_s19 + $0xc4] ss:$16 sps:$4 sm:$0xff]  }
 0x798   : > { %v10240_v17 = vadd.f32 %v8089_v29, %v3382_v18  ;;  %v3460_v42 = vadd.f32 %v10235_v20, %v10232_v28  ;;  %4184 = vmatpush1.bf16.msra.mxu1 %v7546_v11  ;;  %4302 = vmatprep.subr.bf16.mxu0 %v7569_v23  ;;  %v7587_v18 = vld [vmem:[%s12474_s19 + $0xcc] ss:$16 sps:$4 sm:$0xff]   ;;  %v7582_v59 = vld [vmem:[%s12474_s19 + $0xc0] ss:$16 sps:$4 sm:$0xff]   ;;  %v7585_v29 = vld [vmem:[%s12474_s19 + $0xc8] ss:$16 sps:$4 sm:$0xff]  }
 0x799   : > { %4185 = vmatprep.subr.bf16.mxu1 %v7554_v43  ;;  %v7588_v11 = vld [vmem:[%s12474_s19 + $0xe0] ss:$16 sps:$4 sm:$0xff]   ;;  %v7591_v36 = vld [vmem:[%s12474_s19 + $0xe8] ss:$16 sps:$4 sm:$0xff]  }
 0x79a   : > { %3461 = vadd.xlane.f32.xlu0 %v3460_v42  ;;  %v3463_v0 = vadd.f32 %v10240_v17, %v10238_v53  ;;  %v7590_v42 = vld [vmem:[%s12474_s19 + $0xe4] ss:$16 sps:$4 sm:$0xff]   ;;  %v7594_v43 = vld [vmem:[%s12474_s19 + $0x100] ss:$16 sps:$4 sm:$0xff]   ;;  %v7603_v8 = vld [vmem:[%s12474_s19 + $0x128] ss:$16 sps:$4 sm:$0xff]  }
 0x79b   : > { %4303 = vmatpush1.bf16.msra.mxu0 %v7567_v14 }
 0x79c   : > { %3464 = vadd.xlane.f32.xlu1 %v3463_v0  ;;  %4186 = vmatpush1.bf16.msra.mxu1 %v7552_v12  ;;  %v7593_v0 = vld [vmem:[%s12474_s19 + $0xec] ss:$16 sps:$4 sm:$0xff]   ;;  %v7602_v12 = vld [vmem:[%s12474_s19 + $0x124] ss:$16 sps:$4 sm:$0xff]  }
 0x79d   : > { %4187 = vmatprep.subr.bf16.mxu1 %v7560_v62  ;;  %4304 = vmatprep.subr.bf16.mxu0 %v7575_v24  ;;  %v7600_v62 = vld [vmem:[%s12474_s19 + $0x120] ss:$16 sps:$4 sm:$0xff]  }
 0x79f   : > { %4305 = vmatpush1.bf16.msra.mxu0 %v7573_v30 }
 0x7a0   : > { %4188 = vmatpush1.bf16.msra.mxu1 %v7558_v9  ;;  %4306 = vmatprep.subr.bf16.mxu0 %v7581_v4 }
 0x7a1   : > { %4189 = vmatprep.subr.bf16.mxu1 %v7566_v40 }
 0x7a3   : > { %4307 = vmatpush1.bf16.msra.mxu0 %v7579_v58 }
 0x7a4   : > { %4190 = vmatpush1.bf16.msra.mxu1 %v7564_v38  ;;  %4308 = vmatprep.subr.bf16.mxu0 %v7587_v18 }
 0x7a5   : > { %4191 = vmatprep.subr.bf16.mxu1 %v7572_v13 }
 0x7a7   : > { %4309 = vmatpush1.bf16.msra.mxu0 %v7585_v29 }
 0x7a8   : > { %4192 = vmatpush1.bf16.msra.mxu1 %v7570_v6  ;;  %4310 = vmatprep.subr.bf16.mxu0 %v7593_v0 }
 0x7a9   : > { %4193 = vmatprep.subr.bf16.mxu1 %v7578_v16 }
 0x7ab   : > { %4311 = vmatpush1.bf16.msra.mxu0 %v7591_v36 }
 0x7ac   : > { %4194 = vmatpush1.bf16.msra.mxu1 %v7576_v5  ;;  %4312 = vmatprep.subr.bf16.mxu0 %v7599_v7 }
 0x7ad   : > { %4195 = vmatprep.subr.bf16.mxu1 %v7584_v33 }
 0x7af   : > { %4313 = vmatpush1.bf16.msra.mxu0 %v7597_v19 }
 0x7b0   : > { %4196 = vmatpush1.bf16.msra.mxu1 %v7582_v59  ;;  %4314 = vmatprep.subr.bf16.mxu0 %v7605_v44 }
 0x7b1   : > { %4197 = vmatprep.subr.bf16.mxu1 %v7590_v42 }
 0x7b3   : > { %4315 = vmatpush1.bf16.msra.mxu0 %v7603_v8 }
 0x7b4   : > { %4198 = vmatpush1.bf16.msra.mxu1 %v7588_v11 }
 0x7b5   : > { %4199 = vmatprep.subr.bf16.mxu1 %v7596_v41 }
 0x7b8   : > { %4200 = vmatpush1.bf16.msra.mxu1 %v7594_v43 }
 0x7b9   : > { %4201 = vmatprep.subr.bf16.mxu1 %v7602_v12 }
 0x7bc   : > { %4202 = vmatpush1.bf16.msra.mxu1 %v7600_v62 }
 0x7ef   : > { %v3420_v9 = vpop.xlane.xlu0 %3419 }
 0x7f0   : > { %v3467_v2 = vmul.f32 0.00390625, %v3420_v9 }
 0x7f1   : > { %v3423_v40 = vpop.xlane.xlu1 %3422 }
 0x7f2   : > { %v10287_v23 = vsub.f32 %v10120_v35, %v3467_v2  ;;  %v10290_v38 = vsub.f32 %v10123_v51, %v3467_v2  ;;  %v3468_v14 = vmul.f32 0.00390625, %v3423_v40  ;;  %v7608_v40 = vld [vmem:[%s12474_s19 + $0x144] ss:$16 sps:$4 sm:$0xff]  }
 0x7f3   : > { %4203 = vmatprep.subr.bf16.mxu1 %v7608_v40 }
 0x7f4   : > { %v3515_v13 = vmul.f32 %v10287_v23, %v10287_v23  ;;  %v3516_v24 = vmul.f32 %v10290_v38, %v10290_v38  ;;  %v10297_v6 = vsub.f32 %v10126_v50, %v3468_v14  ;;  %v10300_v30 = vsub.f32 %v10128_v32, %v3468_v14  ;;  %v7611_v14 = vld [vmem:[%s12474_s19 + $0x14c] ss:$16 sps:$4 sm:$0xff]  }
 0x7f5   : > { %4316 = vmatprep.subr.bf16.mxu0 %v7611_v14 }
 0x7f6   : > { %v3517_v35 = vmul.f32 %v10297_v6, %v10297_v6  ;;  %v3518_v51 = vmul.f32 %v10300_v30, %v10300_v30  ;;  %v3547_v16 = vadd.f32 %v3516_v24, %v3515_v13 }
 0x7f7   : > { %v3426_v4 = vpop.xlane.xlu0 %3425 }
 0x7f8   : > { %v3469_v5 = vmul.f32 0.00390625, %v3426_v4  ;;  %3548 = vadd.xlane.f32.xlu0 %v3547_v16  ;;  %v3550_v58 = vadd.f32 %v3518_v51, %v3517_v35  ;;  %v7609_v35 = vld [vmem:[%s12474_s19 + $0x148] ss:$16 sps:$4 sm:$0xff]  }
 0x7f9   : > { %v3429_v33 = vpop.xlane.xlu1 %3428  ;;  %4317 = vmatpush1.bf16.msra.mxu0 %v7609_v35 }
 0x7fa   : > { %v10307_v18 = vsub.f32 %v10136_v26, %v3469_v5  ;;  %v10310_v50 = vsub.f32 %v10139_v45, %v3469_v5  ;;  %v3470_v32 = vmul.f32 0.00390625, %v3429_v33  ;;  %3551 = vadd.xlane.f32.xlu1 %v3550_v58  ;;  %v7614_v5 = vld [vmem:[%s12474_s19 + $0x164] ss:$16 sps:$4 sm:$0xff]   ;;  %v7617_v58 = vld [vmem:[%s12474_s19 + $0x16c] ss:$16 sps:$4 sm:$0xff]  }
 0x7fb   : > { %4318 = vmatprep.subr.bf16.mxu0 %v7617_v58 }
 0x7fc   : > { %v3519_v59 = vmul.f32 %v10307_v18, %v10307_v18  ;;  %v3520_v29 = vmul.f32 %v10310_v50, %v10310_v50  ;;  %v10317_v42 = vsub.f32 %v10142_v60, %v3470_v32  ;;  %v10320_v0 = vsub.f32 %v10144_v22, %v3470_v32 }
 0x7fe   : > { %v3521_v26 = vmul.f32 %v10317_v42, %v10317_v42  ;;  %v3522_v45 = vmul.f32 %v10320_v0, %v10320_v0  ;;  %v3553_v11 = vadd.f32 %v3520_v29, %v3519_v59  ;;  %v7612_v59 = vld [vmem:[%s12474_s19 + $0x160] ss:$16 sps:$4 sm:$0xff]   ;;  %v7615_v29 = vld [vmem:[%s12474_s19 + $0x168] ss:$16 sps:$4 sm:$0xff]  }
 0x7ff   : > { %v3432_v36 = vpop.xlane.xlu0 %3431  ;;  %4319 = vmatpush1.bf16.msra.mxu0 %v7615_v29 }
 0x800   : > { %v3471_v41 = vmul.f32 0.00390625, %v3432_v36  ;;  %3554 = vadd.xlane.f32.xlu0 %v3553_v11  ;;  %v3556_v7 = vadd.f32 %v3522_v45, %v3521_v26 }
 0x801   : > { %v3435_v43 = vpop.xlane.xlu1 %3434 }
 0x802   : > { %v10327_v60 = vsub.f32 %v10152_v56, %v3471_v41  ;;  %v10330_v22 = vsub.f32 %v10155_v55, %v3471_v41  ;;  %v3472_v19 = vmul.f32 0.00390625, %v3435_v43  ;;  %3557 = vadd.xlane.f32.xlu1 %v3556_v7  ;;  %v7618_v43 = vld [vmem:[%s12474_s19 + $0x180] ss:$16 sps:$4 sm:$0xff]  }
 0x804   : > { %v3523_v12 = vmul.f32 %v10327_v60, %v10327_v60  ;;  %v3524_v44 = vmul.f32 %v10330_v22, %v10330_v22  ;;  %v10337_v62 = vsub.f32 %v10158_v21, %v3472_v19  ;;  %v10340_v8 = vsub.f32 %v10160_v46, %v3472_v19  ;;  %v7606_v21 = vld [vmem:[%s12474_s19 + $0x140] ss:$16 sps:$4 sm:$0xff]   ;;  %v7621_v19 = vld [vmem:[%s12474_s19 + $0x188] ss:$16 sps:$4 sm:$0xff]  }
 0x805   : > { %4204 = vmatpush1.bf16.msra.mxu1 %v7606_v21 }
 0x806   : > { %v3525_v56 = vmul.f32 %v10337_v62, %v10337_v62  ;;  %v3526_v55 = vmul.f32 %v10340_v8, %v10340_v8  ;;  %v3559_v9 = vadd.f32 %v3524_v44, %v3523_v12  ;;  %4205 = vmatprep.subr.bf16.mxu1 %v7614_v5 }
 0x807   : > { %v3438_v2 = vpop.xlane.xlu0 %3437 }
 0x808   : > { %v3473_v13 = vmul.f32 0.00390625, %v3438_v2  ;;  %3560 = vadd.xlane.f32.xlu0 %v3559_v9  ;;  %v3562_v24 = vadd.f32 %v3526_v55, %v3525_v56  ;;  %v7626_v9 = vld [vmem:[%s12474_s19 + $0x1a4] ss:$16 sps:$4 sm:$0xff]   ;;  %v7629_v2 = vld [vmem:[%s12474_s19 + $0x1ac] ss:$16 sps:$4 sm:$0xff]  }
 0x809   : > { %v3441_v46 = vpop.xlane.xlu1 %3440  ;;  %4206 = vmatpush1.bf16.msra.mxu1 %v7612_v59 }
 0x80a   : > { %v10351_v51 = vsub.f32 %v10168_v15, %v3473_v13  ;;  %v10354_v16 = vsub.f32 %v10171_v31, %v3473_v13  ;;  %v3474_v4 = vmul.f32 0.00390625, %v3441_v46  ;;  %3563 = vadd.xlane.f32.xlu1 %v3562_v24  ;;  %v7624_v13 = vld [vmem:[%s12474_s19 + $0x1a0] ss:$16 sps:$4 sm:$0xff]   ;;  %v7627_v24 = vld [vmem:[%s12474_s19 + $0x1a8] ss:$16 sps:$4 sm:$0xff]  }
 0x80c   : > { %v3527_v33 = vmul.f32 %v10351_v51, %v10351_v51  ;;  %v3528_v32 = vmul.f32 %v10354_v16, %v10354_v16  ;;  %v10363_v15 = vsub.f32 %v10174_v54, %v3474_v4  ;;  %v10366_v31 = vsub.f32 %v10176_v25, %v3474_v4  ;;  %v7620_v54 = vld [vmem:[%s12474_s19 + $0x184] ss:$16 sps:$4 sm:$0xff]   ;;  %v7623_v25 = vld [vmem:[%s12474_s19 + $0x18c] ss:$16 sps:$4 sm:$0xff]  }
 0x80d   : > { %4207 = vmatprep.subr.bf16.mxu1 %v7620_v54  ;;  %4320 = vmatprep.subr.bf16.mxu0 %v7623_v25 }
 0x80e   : > { %v3529_v26 = vmul.f32 %v10363_v15, %v10363_v15  ;;  %v3530_v45 = vmul.f32 %v10366_v31, %v10366_v31  ;;  %v3565_v11 = vadd.f32 %v3528_v32, %v3527_v33  ;;  %4208 = vmatpush1.bf16.msra.mxu1 %v7618_v43  ;;  %4321 = vmatpush1.bf16.msra.mxu0 %v7621_v19  ;;  %v7630_v33 = vld [vmem:[%s12474_s19 + $0x1c0] ss:$16 sps:$4 sm:$0xff]   ;;  %v7633_v32 = vld [vmem:[%s12474_s19 + $0x1c8] ss:$16 sps:$4 sm:$0xff]  }
 0x80f   : > { %v3444_v36 = vpop.xlane.xlu0 %3443  ;;  %4209 = vmatprep.subr.bf16.mxu1 %v7626_v9  ;;  %4322 = vmatprep.subr.bf16.mxu0 %v7629_v2 }
 0x810   : > { %v3475_v41 = vmul.f32 0.00390625, %v3444_v36  ;;  %3566 = vadd.xlane.f32.xlu0 %v3565_v11  ;;  %v3568_v7 = vadd.f32 %v3530_v45, %v3529_v26  ;;  %v7638_v11 = vld [vmem:[%s12474_s19 + $0x1e4] ss:$16 sps:$4 sm:$0xff]   ;;  %v7641_v36 = vld [vmem:[%s12474_s19 + $0x1ec] ss:$16 sps:$4 sm:$0xff]  }
 0x811   : > { %v3447_v12 = vpop.xlane.xlu1 %3446 }
 0x812   : > { %v10379_v44 = vsub.f32 %v10184_v63, %v3475_v41  ;;  %v10382_v56 = vsub.f32 %v10187_v1, %v3475_v41  ;;  %v3476_v55 = vmul.f32 0.00390625, %v3447_v12  ;;  %3569 = vadd.xlane.f32.xlu1 %v3568_v7  ;;  %4210 = vmatpush1.bf16.msra.mxu1 %v7624_v13  ;;  %v7639_v7 = vld [vmem:[%s12474_s19 + $0x1e8] ss:$16 sps:$4 sm:$0xff]  }
 0x813   : > { %4323 = vmatpush1.bf16.msra.mxu0 %v7627_v24 }
 0x814   : > { %v3531_v40 = vmul.f32 %v10379_v44, %v10379_v44  ;;  %v3532_v14 = vmul.f32 %v10382_v56, %v10382_v56  ;;  %v10391_v63 = vsub.f32 %v10190_v57, %v3476_v55  ;;  %v10394_v1 = vsub.f32 %v10192_v61, %v3476_v55  ;;  %v7632_v57 = vld [vmem:[%s12474_s19 + $0x1c4] ss:$16 sps:$4 sm:$0xff]   ;;  %v7635_v61 = vld [vmem:[%s12474_s19 + $0x1cc] ss:$16 sps:$4 sm:$0xff]  }
 0x815   : > { %4211 = vmatprep.subr.bf16.mxu1 %v7632_v57  ;;  %4324 = vmatprep.subr.bf16.mxu0 %v7635_v61 }
 0x816   : > { %v3533_v21 = vmul.f32 %v10391_v63, %v10391_v63  ;;  %v3534_v35 = vmul.f32 %v10394_v1, %v10394_v1  ;;  %v3571_v46 = vadd.f32 %v3532_v14, %v3531_v40  ;;  %4212 = vmatpush1.bf16.msra.mxu1 %v7630_v33 }
 0x817   : > { %v3450_v4 = vpop.xlane.xlu0 %3449  ;;  %4325 = vmatpush1.bf16.msra.mxu0 %v7633_v32  ;;  %4213 = vmatprep.subr.bf16.mxu1 %v7638_v11 }
 0x818   : > { %v3477_v5 = vmul.f32 0.00390625, %v3450_v4  ;;  %3572 = vadd.xlane.f32.xlu0 %v3571_v46  ;;  %v3574_v58 = vadd.f32 %v3534_v35, %v3533_v21  ;;  %4326 = vmatprep.subr.bf16.mxu0 %v7641_v36 }
 0x819   : > { %v3453_v59 = vpop.xlane.xlu1 %3452 }
 0x81a   : > { %v10407_v29 = vsub.f32 %v10200_v49, %v3477_v5  ;;  %v10410_v26 = vsub.f32 %v10203_v48, %v3477_v5  ;;  %v3478_v45 = vmul.f32 0.00390625, %v3453_v59  ;;  %3575 = vadd.xlane.f32.xlu1 %v3574_v58  ;;  %v7636_v48 = vld [vmem:[%s12474_s19 + $0x1e0] ss:$16 sps:$4 sm:$0xff]  }
 0x81b   : > { %4214 = vmatpush1.bf16.msra.mxu1 %v7636_v48  ;;  %4327 = vmatpush1.bf16.msra.mxu0 %v7639_v7 }
 0x81c   : > { %v3535_v54 = vmul.f32 %v10407_v29, %v10407_v29  ;;  %v3536_v25 = vmul.f32 %v10410_v26, %v10410_v26  ;;  %v10419_v41 = vsub.f32 %v10206_v39, %v3478_v45  ;;  %v10422_v49 = vsub.f32 %v10208_v34, %v3478_v45 }
 0x81e   : > { %v3537_v43 = vmul.f32 %v10419_v41, %v10419_v41  ;;  %v3538_v19 = vmul.f32 %v10422_v49, %v10422_v49  ;;  %v3577_v12 = vadd.f32 %v3536_v25, %v3535_v54  ;;  %v7644_v54 = vld [vmem:[%s12475_s11 + $0x4] ss:$8 sps:$4 sm:$0xff]  }
 0x81f   : > { %v3456_v55 = vpop.xlane.xlu0 %3455  ;;  %5413 = vmatprep.subr.bf16.mxu1 %v7644_v54 }
 0x820   : > { %v3479_v9 = vmul.f32 0.00390625, %v3456_v55  ;;  %3578 = vadd.xlane.f32.xlu0 %v3577_v12  ;;  %v3580_v39 = vadd.f32 %v3538_v19, %v3537_v43 }
 0x821   : > { %v3459_v2 = vpop.xlane.xlu1 %3458 }
 0x822   : > { %v10431_v34 = vsub.f32 %v10216_v52, %v3479_v9  ;;  %v10434_v40 = vsub.f32 %v10219_v47, %v3479_v9  ;;  %v3480_v14 = vmul.f32 0.00390625, %v3459_v2  ;;  %3581 = vadd.xlane.f32.xlu1 %v3580_v39  ;;  %v3416_v9 = vld [vmem:[%s12477_s2] sm:$0x3] }
 0x824   : > { %v3539_v13 = vmul.f32 %v10431_v34, %v10431_v34  ;;  %v3540_v24 = vmul.f32 %v10434_v40, %v10434_v40  ;;  %v10441_v21 = vsub.f32 %v10222_v10, %v3480_v14  ;;  %v10444_v35 = vsub.f32 %v10224_v3, %v3480_v14 }
 0x826   : > { %v3541_v52 = vmul.f32 %v10441_v21, %v10441_v21  ;;  %v3542_v47 = vmul.f32 %v10444_v35, %v10444_v35  ;;  %v3583_v46 = vadd.f32 %v3540_v24, %v3539_v13  ;;  %v10477_v13 = vrot.slane %v3416_v9, %v9446_v27  ;;  %v3417_v24 = vld [vmem:[%s1091_s17] sm:$0x3] }
 0x827   : > { %v3462_v4 = vpop.xlane.xlu0 %3461 }
 0x828   : > { %v3481_v57 = vmul.f32 0.00390625, %v3462_v4  ;;  %3584 = vadd.xlane.f32.xlu0 %v3583_v46  ;;  %v3586_v61 = vadd.f32 %v3542_v47, %v3541_v52  ;;  %v10485_v52 = vrot.slane %v3416_v9, %v9454_v37 }
 0x829   : > { %v3465_v5 = vpop.xlane.xlu1 %3464 }
 0x82a   : > { %v10451_v58 = vsub.f32 %v10232_v28, %v3481_v57  ;;  %v10454_v10 = vsub.f32 %v10235_v20, %v3481_v57  ;;  %v3482_v3 = vmul.f32 0.00390625, %v3465_v5  ;;  %3587 = vadd.xlane.f32.xlu1 %v3586_v61 }
 0x82c   : > { %v3543_v33 = vmul.f32 %v10451_v58, %v10451_v58  ;;  %v3544_v32 = vmul.f32 %v10454_v10, %v10454_v10  ;;  %v10461_v59 = vsub.f32 %v10238_v53, %v3482_v3  ;;  %v10464_v45 = vsub.f32 %v10240_v17, %v3482_v3 }
 0x82d   : > { %v10490_v3 = vrot.slane %v3417_v24, %v9446_v27 }
 0x82e   : > { %v3545_v28 = vmul.f32 %v10461_v59, %v10461_v59  ;;  %v3546_v20 = vmul.f32 %v10464_v45, %v10464_v45  ;;  %v3589_v11 = vadd.f32 %v3544_v32, %v3543_v33  ;;  %v10493_v33 = vrot.slane %v3417_v24, %v9454_v37  ;;  %v7647_v24 = vld [vmem:[%s12475_s11 + $0x14] ss:$8 sps:$4 sm:$0xff]  }
 0x830   : > { %3590 = vadd.xlane.f32.xlu0 %v3589_v11  ;;  %v3592_v36 = vadd.f32 %v3546_v20, %v3545_v28 }
 0x832   : > { %3593 = vadd.xlane.f32.xlu1 %v3592_v36 }
 0x885   : > { %v3549_v25 = vpop.xlane.xlu0 %3548 }
 0x886   : > { %v3595_v48 = vmul.f32 0.00390625, %v3549_v25 }
 0x887   : > { %v3552_v53 = vpop.xlane.xlu1 %3551 }
 0x888   : > { %v3611_v7 = vadd.f32 1e-05, %v3595_v48  ;;  %v3596_v17 = vmul.f32 0.00390625, %v3552_v53 }
 0x88a   : > { %7866 = vrsqrt.f32 %v3611_v7  ;;  %v3612_v43 = vadd.f32 1e-05, %v3596_v17 }
 0x88c   : > { %7868 = vrsqrt.f32 %v3612_v43 }
 0x88d   : > { %v3555_v19 = vpop.xlane.xlu0 %3554 }
 0x88e   : > { %v3597_v12 = vmul.f32 0.00390625, %v3555_v19 }
 0x88f   : > { %v3558_v55 = vpop.xlane.xlu1 %3557 }
 0x890   : > { %v3613_v39 = vadd.f32 1e-05, %v3597_v12  ;;  %v3598_v2 = vmul.f32 0.00390625, %v3558_v55 }
 0x892   : > { %7870 = vrsqrt.f32 %v3613_v39  ;;  %v3614_v14 = vadd.f32 1e-05, %v3598_v2  ;;  %v7642_v39 = vld [vmem:[%s12475_s11] ss:$8 sps:$4 sm:$0xff]  }
 0x894   : > { %v7867_v47 = vpop.eup %7866  ;;  %7872 = vrsqrt.f32 %v3614_v14 }
 0x895   : > { %v3643_v46 = vmul.f32 %v7867_v47, %v10287_v23  ;;  %v3561_v4 = vpop.xlane.xlu0 %3560  ;;  %v3644_v57 = vmul.f32 %v7867_v47, %v10290_v38 }
 0x896   : > { %v7869_v61 = vpop.eup %7868  ;;  %v3599_v5 = vmul.f32 0.00390625, %v3561_v4 }
 0x897   : > { %v3686_v32 = vmul.f32 %v10477_v13, %v3643_v46  ;;  %v3645_v28 = vmul.f32 %v7869_v61, %v10297_v6  ;;  %v3564_v20 = vpop.xlane.xlu1 %3563  ;;  %v3646_v11 = vmul.f32 %v7869_v61, %v10300_v30  ;;  %v3687_v23 = vmul.f32 %v10485_v52, %v3644_v57 }
 0x898   : > { %v3615_v36 = vadd.f32 1e-05, %v3599_v5  ;;  %v3600_v54 = vmul.f32 0.00390625, %v3564_v20 }
 0x899   : > { %v3688_v38 = vmul.f32 %v10477_v13, %v3645_v28  ;;  %v3689_v25 = vmul.f32 %v10485_v52, %v3646_v11  ;;  %v10502_v53 = vadd.f32 %v10493_v33, %v3687_v23  ;;  %v10508_v30 = vadd.f32 %v10490_v3, %v3686_v32  ;;  %v7645_v28 = vld [vmem:[%s12475_s11 + $0x10] ss:$8 sps:$4 sm:$0xff]  }
 0x89a   : > { %7874 = vrsqrt.f32 %v3615_v36  ;;  %v3616_v48 = vadd.f32 1e-05, %v3600_v54 }
 0x89b   : > { %12479 = vst [vmem:[#allocation51_spill] sm:$0xff] %v10502_v53  ;;  %v10505_v6 = vadd.f32 %v10493_v33, %v3689_v25  ;;  %12481 = vst [vmem:[#allocation53_spill] sm:$0xff] %v10508_v30  ;;  %v10511_v7 = vadd.f32 %v10490_v3, %v3688_v38 }
 0x89c   : > { %v7871_v17 = vpop.eup %7870  ;;  %7876 = vrsqrt.f32 %v3616_v48 }
 0x89d   : > { %12480 = vst [vmem:[#allocation52_spill] sm:$0xff] %v10505_v6  ;;  %12482 = vst [vmem:[#allocation54_spill] sm:$0xff] %v10511_v7  ;;  %v3567_v43 = vpop.xlane.xlu0 %3566  ;;  %v3762_v19 = vpack.c.bf16 %v10505_v6, %v10502_v53  ;;  %v3761_v12 = vpack.c.bf16 %v10511_v7, %v10508_v30  ;;  %v3648_v55 = vmul.f32 %v7871_v17, %v10310_v50 }
 0x89e   : > { %v3647_v9 = vmul.f32 %v7871_v17, %v10307_v18  ;;  %v7873_v2 = vpop.eup %7872  ;;  %v3601_v14 = vmul.f32 0.00390625, %v3567_v43 }
 0x89f   : > { %4215 = vmatprep.mubr.bf16.mxu1 %v3762_v19  ;;  %4328 = vmatprep.mubr.bf16.mxu0 %v3762_v19  ;;  %v3570_v47 = vpop.xlane.xlu1 %3569  ;;  %v3650_v46 = vmul.f32 %v7873_v2, %v10320_v0  ;;  %v3691_v4 = vmul.f32 %v10485_v52, %v3648_v55  ;;  %v3649_v57 = vmul.f32 %v7873_v2, %v10317_v42  ;;  %v7650_v0 = vld [vmem:[%s12475_s11 + $0x24] ss:$8 sps:$4 sm:$0xff]   ;;  %v7648_v19 = vld [vmem:[%s12475_s11 + $0x20] ss:$8 sps:$4 sm:$0xff]  }
 0x8a0   : > { %v3617_v61 = vadd.f32 1e-05, %v3601_v14  ;;  %v3602_v5 = vmul.f32 0.00390625, %v3570_v47  ;;  %4216 = vmatmul.mubr.bf16.vlgmr.msra.gmra.mrb[64].mxu1 %v3761_v12  ;;  %4329 = vmatmul.mubr.bf16.vlgmr.msra.gmra.mrb[128].mxu0 %v3761_v12  ;;  %v3690_v18 = vmul.f32 %v10477_v13, %v3647_v9  ;;  %v7653_v9 = vld [vmem:[%s12475_s11 + $0x34] ss:$8 sps:$4 sm:$0xff]  }
 0x8a1   : > { %v3693_v50 = vmul.f32 %v10485_v52, %v3650_v46  ;;  %v3692_v32 = vmul.f32 %v10477_v13, %v3649_v57  ;;  %5414 = vmatpush1.bf16.msra.mxu1 %v7642_v39  ;;  %v10530_v11 = vadd.f32 %v10493_v33, %v3691_v4  ;;  %v7651_v57 = vld [vmem:[%s12475_s11 + $0x30] ss:$8 sps:$4 sm:$0xff]  }
 0x8a2   : > { %7878 = vrsqrt.f32 %v3617_v61  ;;  %v3618_v20 = vadd.f32 1e-05, %v3602_v5  ;;  %5415 = vmatprep.subr.bf16.mxu1 %v7647_v24  ;;  %v10536_v23 = vadd.f32 %v10490_v3, %v3690_v18 }
 0x8a3   : > { %12483 = vst [vmem:[#allocation55_spill] sm:$0xff] %v10530_v11  ;;  %v10533_v42 = vadd.f32 %v10493_v33, %v3693_v50  ;;  %v10539_v36 = vadd.f32 %v10490_v3, %v3692_v32 }
 0x8a4   : > { %12485 = vst [vmem:[#allocation57_spill] sm:$0xff] %v10536_v23  ;;  %v7875_v54 = vpop.eup %7874  ;;  %7880 = vrsqrt.f32 %v3618_v20 }
 0x8a5   : > { %12484 = vst [vmem:[#allocation56_spill] sm:$0xff] %v10533_v42  ;;  %12486 = vst [vmem:[#allocation58_spill] sm:$0xff] %v10539_v36  ;;  %v3573_v38 = vpop.xlane.xlu0 %3572  ;;  %v3764_v25 = vpack.c.bf16 %v10533_v42, %v10530_v11  ;;  %v3763_v48 = vpack.c.bf16 %v10539_v36, %v10536_v23  ;;  %v3652_v17 = vmul.f32 %v7875_v54, %v10330_v22  ;;  %5416 = vmatpush1.bf16.msra.mxu1 %v7645_v28 }
 0x8a6   : > { %v3651_v43 = vmul.f32 %v7875_v54, %v10327_v60  ;;  %v7877_v12 = vpop.eup %7876  ;;  %v3603_v55 = vmul.f32 0.00390625, %v3573_v38  ;;  %5417 = vmatprep.subr.bf16.mxu1 %v7650_v0 }
 0x8a7   : > { %4225 = vmatprep.mubr.bf16.mxu1 %v3764_v25  ;;  %4338 = vmatprep.mubr.bf16.mxu0 %v3764_v25  ;;  %v3576_v39 = vpop.xlane.xlu1 %3575  ;;  %v3654_v2 = vmul.f32 %v7877_v12, %v10340_v8  ;;  %v3695_v14 = vmul.f32 %v10485_v52, %v3652_v17  ;;  %v3653_v24 = vmul.f32 %v7877_v12, %v10337_v62  ;;  %v7656_v8 = vld [vmem:[%s12475_s11 + $0x44] ss:$8 sps:$4 sm:$0xff]   ;;  %v7654_v25 = vld [vmem:[%s12475_s11 + $0x40] ss:$8 sps:$4 sm:$0xff]  }
 0x8a8   : > { %v3619_v22 = vadd.f32 1e-05, %v3603_v55  ;;  %v3604_v47 = vmul.f32 0.00390625, %v3576_v39  ;;  %4226 = vmatmul.mubr.bf16.gmra.mrb[68].mxu1 %v3763_v48  ;;  %4339 = vmatmul.mubr.bf16.gmra.mrb[132].mxu0 %v3763_v48  ;;  %v3694_v60 = vmul.f32 %v10477_v13, %v3651_v43  ;;  %v7659_v43 = vld [vmem:[%s12475_s11 + $0x54] ss:$8 sps:$4 sm:$0xff]  }
 0x8a9   : > { %v3697_v46 = vmul.f32 %v10485_v52, %v3654_v2  ;;  %v3696_v4 = vmul.f32 %v10477_v13, %v3653_v24  ;;  %5418 = vmatpush1.bf16.msra.mxu1 %v7648_v19  ;;  %v10558_v5 = vadd.f32 %v10493_v33, %v3695_v14  ;;  %v7657_v24 = vld [vmem:[%s12475_s11 + $0x50] ss:$8 sps:$4 sm:$0xff]  }
 0x8aa   : > { %7882 = vrsqrt.f32 %v3619_v22  ;;  %v3620_v61 = vadd.f32 1e-05, %v3604_v47  ;;  %5419 = vmatprep.subr.bf16.mxu1 %v7653_v9  ;;  %v10564_v18 = vadd.f32 %v10490_v3, %v3694_v60 }
 0x8ab   : > { %12487 = vst [vmem:[#allocation59_spill] sm:$0xff] %v10558_v5  ;;  %v10561_v62 = vadd.f32 %v10493_v33, %v3697_v46  ;;  %v10567_v50 = vadd.f32 %v10490_v3, %v3696_v4 }
 0x8ac   : > { %12489 = vst [vmem:[#allocation61_spill] sm:$0xff] %v10564_v18  ;;  %v7879_v32 = vpop.eup %7878  ;;  %7884 = vrsqrt.f32 %v3620_v61 }
 0x8ad   : > { %12488 = vst [vmem:[#allocation60_spill] sm:$0xff] %v10561_v62  ;;  %12490 = vst [vmem:[#allocation62_spill] sm:$0xff] %v10567_v50  ;;  %v3579_v28 = vpop.xlane.xlu0 %3578  ;;  %v3766_v20 = vpack.c.bf16 %v10561_v62, %v10558_v5  ;;  %v3765_v0 = vpack.c.bf16 %v10567_v50, %v10564_v18  ;;  %v3656_v54 = vmul.f32 %v7879_v32, %v10354_v16  ;;  %5420 = vmatpush1.bf16.msra.mxu1 %v7651_v57 }
 0x8ae   : > { %v3655_v38 = vmul.f32 %v7879_v32, %v10351_v51  ;;  %v7881_v48 = vpop.eup %7880  ;;  %v3605_v17 = vmul.f32 0.00390625, %v3579_v28  ;;  %5421 = vmatprep.subr.bf16.mxu1 %v7656_v8 }
 0x8af   : > { %4235 = vmatprep.mubr.bf16.mxu1 %v3766_v20  ;;  %4348 = vmatprep.mubr.bf16.mxu0 %v3766_v20  ;;  %v3582_v19 = vpop.xlane.xlu1 %3581  ;;  %v3658_v12 = vmul.f32 %v7881_v48, %v10366_v31  ;;  %v3699_v55 = vmul.f32 %v10485_v52, %v3656_v54  ;;  %v3657_v9 = vmul.f32 %v7881_v48, %v10363_v15  ;;  %v7662_v31 = vld [vmem:[%s12475_s11 + $0x64] ss:$8 sps:$4 sm:$0xff]   ;;  %v7660_v20 = vld [vmem:[%s12475_s11 + $0x60] ss:$8 sps:$4 sm:$0xff]  }
 0x8b0   : > { %v3621_v16 = vadd.f32 1e-05, %v3605_v17  ;;  %v3606_v39 = vmul.f32 0.00390625, %v3582_v19  ;;  %4236 = vmatmul.mubr.bf16.gmra.mrb[72].mxu1 %v3765_v0  ;;  %4349 = vmatmul.mubr.bf16.gmra.mrb[136].mxu0 %v3765_v0  ;;  %v3698_v51 = vmul.f32 %v10477_v13, %v3655_v38 }
 0x8b1   : > { %v3701_v2 = vmul.f32 %v10485_v52, %v3658_v12  ;;  %v3700_v14 = vmul.f32 %v10477_v13, %v3657_v9  ;;  %5422 = vmatpush1.bf16.msra.mxu1 %v7654_v25  ;;  %v10586_v47 = vadd.f32 %v10493_v33, %v3699_v55 }
 0x8b2   : > { %7886 = vrsqrt.f32 %v3621_v16  ;;  %v3622_v22 = vadd.f32 1e-05, %v3606_v39  ;;  %5423 = vmatprep.subr.bf16.mxu1 %v7659_v43  ;;  %v10592_v60 = vadd.f32 %v10490_v3, %v3698_v51 }
 0x8b3   : > { %12491 = vst [vmem:[#allocation63_spill] sm:$0xff] %v10586_v47  ;;  %v10589_v15 = vadd.f32 %v10493_v33, %v3701_v2  ;;  %v10595_v46 = vadd.f32 %v10490_v3, %v3700_v14 }
 0x8b4   : > { %12493 = vst [vmem:[#allocation65_spill] sm:$0xff] %v10592_v60  ;;  %v7883_v4 = vpop.eup %7882  ;;  %7888 = vrsqrt.f32 %v3622_v22 }
 0x8b5   : > { %12492 = vst [vmem:[#allocation64_spill] sm:$0xff] %v10589_v15  ;;  %12494 = vst [vmem:[#allocation66_spill] sm:$0xff] %v10595_v46  ;;  %v3585_v57 = vpop.xlane.xlu0 %3584  ;;  %v3768_v61 = vpack.c.bf16 %v10589_v15, %v10586_v47  ;;  %v3767_v8 = vpack.c.bf16 %v10595_v46, %v10592_v60  ;;  %v3660_v32 = vmul.f32 %v7883_v4, %v10382_v56  ;;  %5424 = vmatpush1.bf16.msra.mxu1 %v7657_v24 }
 0x8b6   : > { %v3659_v28 = vmul.f32 %v7883_v4, %v10379_v44  ;;  %v7885_v0 = vpop.eup %7884  ;;  %v3607_v54 = vmul.f32 0.00390625, %v3585_v57  ;;  %5425 = vmatprep.subr.bf16.mxu1 %v7662_v31 }
 0x8b7   : > { %4245 = vmatprep.mubr.bf16.mxu1 %v3768_v61  ;;  %4358 = vmatprep.mubr.bf16.mxu0 %v3768_v61  ;;  %v3588_v38 = vpop.xlane.xlu1 %3587  ;;  %v3662_v25 = vmul.f32 %v7885_v0, %v10394_v1  ;;  %v3703_v48 = vmul.f32 %v10485_v52, %v3660_v32  ;;  %v3661_v17 = vmul.f32 %v7885_v0, %v10391_v63 }
 0x8b8   : > { %v3623_v43 = vadd.f32 1e-05, %v3607_v54  ;;  %v3608_v19 = vmul.f32 0.00390625, %v3588_v38  ;;  %4246 = vmatmul.mubr.bf16.gmra.mrb[76].mxu1 %v3767_v8  ;;  %4359 = vmatmul.mubr.bf16.gmra.mrb[140].mxu0 %v3767_v8  ;;  %v3702_v44 = vmul.f32 %v10477_v13, %v3659_v28 }
 0x8b9   : > { %v3705_v56 = vmul.f32 %v10485_v52, %v3662_v25  ;;  %v3704_v12 = vmul.f32 %v10477_v13, %v3661_v17  ;;  %5426 = vmatpush1.bf16.msra.mxu1 %v7660_v20  ;;  %v10611_v9 = vadd.f32 %v10493_v33, %v3703_v48 }
 0x8ba   : > { %7890 = vrsqrt.f32 %v3623_v43  ;;  %v3624_v55 = vadd.f32 1e-05, %v3608_v19  ;;  %v10617_v63 = vadd.f32 %v10490_v3, %v3702_v44 }
 0x8bb   : > { %12495 = vst [vmem:[#allocation67_spill] sm:$0xff] %v10611_v9  ;;  %v10614_v1 = vadd.f32 %v10493_v33, %v3705_v56  ;;  %v10620_v16 = vadd.f32 %v10490_v3, %v3704_v12 }
 0x8bc   : > { %12497 = vst [vmem:[#allocation69_spill] sm:$0xff] %v10617_v63  ;;  %v7887_v39 = vpop.eup %7886  ;;  %7892 = vrsqrt.f32 %v3624_v55 }
 0x8bd   : > { %12496 = vst [vmem:[#allocation68_spill] sm:$0xff] %v10614_v1  ;;  %12498 = vst [vmem:[#allocation70_spill] sm:$0xff] %v10620_v16  ;;  %v3591_v51 = vpop.xlane.xlu0 %3590  ;;  %v3770_v2 = vpack.c.bf16 %v10614_v1, %v10611_v9  ;;  %v3769_v14 = vpack.c.bf16 %v10620_v16, %v10617_v63  ;;  %v3664_v24 = vmul.f32 %v7887_v39, %v10410_v26 }
 0x8be   : > { %v3663_v22 = vmul.f32 %v7887_v39, %v10407_v29  ;;  %v7889_v31 = vpop.eup %7888  ;;  %v3609_v4 = vmul.f32 0.00390625, %v3591_v51 }
 0x8bf   : > { %4255 = vmatprep.mubr.bf16.mxu1 %v3770_v2  ;;  %4368 = vmatprep.mubr.bf16.mxu0 %v3770_v2  ;;  %v3594_v57 = vpop.xlane.xlu1 %3593  ;;  %v3666_v61 = vmul.f32 %v7889_v31, %v10422_v49  ;;  %v3707_v8 = vmul.f32 %v10485_v52, %v3664_v24  ;;  %v3665_v32 = vmul.f32 %v7889_v31, %v10419_v41 }
 0x8c0   : > { %v3625_v28 = vadd.f32 1e-05, %v3609_v4  ;;  %v3610_v20 = vmul.f32 0.00390625, %v3594_v57  ;;  %4256 = vmatmul.mubr.bf16.gmra.mrb[80].mxu1 %v3769_v14  ;;  %4369 = vmatmul.mubr.bf16.gmra.mrb[144].mxu0 %v3769_v14  ;;  %v3706_v0 = vmul.f32 %v10477_v13, %v3663_v22 }
 0x8c1   : > { %v3709_v26 = vmul.f32 %v10485_v52, %v3666_v61  ;;  %v3708_v29 = vmul.f32 %v10477_v13, %v3665_v32  ;;  %v10635_v38 = vadd.f32 %v10493_v33, %v3707_v8 }
 0x8c2   : > { %7894 = vrsqrt.f32 %v3625_v28  ;;  %v3626_v54 = vadd.f32 1e-05, %v3610_v20  ;;  %v10641_v41 = vadd.f32 %v10490_v3, %v3706_v0 }
 0x8c3   : > { %12499 = vst [vmem:[#allocation71_spill] sm:$0xff] %v10635_v38  ;;  %v10638_v49 = vadd.f32 %v10493_v33, %v3709_v26  ;;  %v10644_v25 = vadd.f32 %v10490_v3, %v3708_v29  ;;  %v7663_v29 = vld [vmem:[%s12475_s11 + $0x70] ss:$8 sps:$4 sm:$0xff]  }
 0x8c4   : > { %12501 = vst [vmem:[#allocation73_spill] sm:$0xff] %v10641_v41  ;;  %v7891_v48 = vpop.eup %7890  ;;  %7896 = vrsqrt.f32 %v3626_v54  ;;  %v7666_v54 = vld [vmem:[%s12475_s11 + $0x80] ss:$8 sps:$4 sm:$0xff]  }
 0x8c5   : > { %12500 = vst [vmem:[#allocation72_spill] sm:$0xff] %v10638_v49  ;;  %12502 = vst [vmem:[#allocation74_spill] sm:$0xff] %v10644_v25  ;;  %v3772_v17 = vpack.c.bf16 %v10638_v49, %v10635_v38  ;;  %v3771_v43 = vpack.c.bf16 %v10644_v25, %v10641_v41  ;;  %v3668_v19 = vmul.f32 %v7891_v48, %v10434_v40 }
 0x8c6   : > { %v3667_v44 = vmul.f32 %v7891_v48, %v10431_v34  ;;  %v7893_v56 = vpop.eup %7892  ;;  %v7671_v48 = vld [vmem:[%s12475_s11 + $0x94] ss:$8 sps:$4 sm:$0xff]  }
 0x8c7   : > { %4265 = vmatprep.mubr.bf16.mxu1 %v3772_v17  ;;  %4378 = vmatprep.mubr.bf16.mxu0 %v3772_v17  ;;  %v3670_v12 = vmul.f32 %v7893_v56, %v10444_v35  ;;  %v3711_v55 = vmul.f32 %v10485_v52, %v3668_v19  ;;  %v3669_v39 = vmul.f32 %v7893_v56, %v10441_v21  ;;  %v7669_v17 = vld [vmem:[%s12475_s11 + $0x90] ss:$8 sps:$4 sm:$0xff]   ;;  %v7672_v19 = vld [vmem:[%s12475_s11 + $0xa0] ss:$8 sps:$4 sm:$0xff]  }
 0x8c8   : > { %4266 = vmatmul.mubr.bf16.gmra.mrb[84].mxu1 %v3771_v43  ;;  %4379 = vmatmul.mubr.bf16.gmra.mrb[148].mxu0 %v3771_v43  ;;  %v3710_v51 = vmul.f32 %v10477_v13, %v3667_v44  ;;  %v7674_v43 = vld [vmem:[%s12475_s11 + $0xa4] ss:$8 sps:$4 sm:$0xff]   ;;  %v7677_v44 = vld [vmem:[%s12475_s11 + $0xb4] ss:$8 sps:$4 sm:$0xff]   ;;  %v7675_v56 = vld [vmem:[%s12475_s11 + $0xb0] ss:$8 sps:$4 sm:$0xff]  }
 0x8c9   : > { %v3713_v2 = vmul.f32 %v10485_v52, %v3670_v12  ;;  %v3712_v14 = vmul.f32 %v10477_v13, %v3669_v39  ;;  %v10659_v40 = vadd.f32 %v10493_v33, %v3711_v55  ;;  %v7680_v12 = vld [vmem:[%s12475_s11 + $0xc4] ss:$8 sps:$4 sm:$0xff]   ;;  %v7678_v55 = vld [vmem:[%s12475_s11 + $0xc0] ss:$8 sps:$4 sm:$0xff]   ;;  %v7683_v39 = vld [vmem:[%s12475_s11 + $0xd4] ss:$8 sps:$4 sm:$0xff]  }
 0x8ca   : > { %v10665_v35 = vadd.f32 %v10490_v3, %v3710_v51  ;;  %v7681_v51 = vld [vmem:[%s12475_s11 + $0xd0] ss:$8 sps:$4 sm:$0xff]  }
 0x8cb   : > { %12503 = vst [vmem:[#allocation75_spill] sm:$0xff] %v10659_v40  ;;  %v10662_v34 = vadd.f32 %v10493_v33, %v3713_v2  ;;  %v10668_v24 = vadd.f32 %v10490_v3, %v3712_v14  ;;  %v7686_v2 = vld [vmem:[%s12475_s11 + $0xe4] ss:$8 sps:$4 sm:$0xff]   ;;  %v7684_v14 = vld [vmem:[%s12475_s11 + $0xe0] ss:$8 sps:$4 sm:$0xff]  }
 0x8cc   : > { %12505 = vst [vmem:[#allocation77_spill] sm:$0xff] %v10665_v35  ;;  %v7895_v21 = vpop.eup %7894 }
 0x8cd   : > { %12504 = vst [vmem:[#allocation76_spill] sm:$0xff] %v10662_v34  ;;  %12506 = vst [vmem:[#allocation78_spill] sm:$0xff] %v10668_v24  ;;  %v3774_v22 = vpack.c.bf16 %v10662_v34, %v10659_v40  ;;  %v3773_v31 = vpack.c.bf16 %v10668_v24, %v10665_v35  ;;  %v3672_v4 = vmul.f32 %v7895_v21, %v10454_v10 }
 0x8ce   : > { %v3671_v57 = vmul.f32 %v7895_v21, %v10451_v58  ;;  %v7897_v61 = vpop.eup %7896  ;;  %v7689_v21 = vld [vmem:[%s12475_s11 + $0xf4] ss:$8 sps:$4 sm:$0xff]  }
 0x8cf   : > { %4275 = vmatprep.mubr.bf16.mxu1 %v3774_v22  ;;  %4388 = vmatprep.mubr.bf16.mxu0 %v3774_v22  ;;  %v3674_v8 = vmul.f32 %v7897_v61, %v10464_v45  ;;  %v3715_v32 = vmul.f32 %v10485_v52, %v3672_v4  ;;  %v3673_v28 = vmul.f32 %v7897_v61, %v10461_v59  ;;  %v7687_v22 = vld [vmem:[%s12475_s11 + $0xf0] ss:$8 sps:$4 sm:$0xff]   ;;  %v12511_v4 = vld [vmem:[#allocation48_spill] sm:$0xff]  ;;  %v3841_v61 = vld [vmem:[%s9222_s15] sm:$0xf] }
 0x8d0   : > { %4276 = vmatmul.mubr.bf16.gmra.mrb[88].mxu1 %v3773_v31  ;;  %4389 = vmatmul.mubr.bf16.gmra.mrb[152].mxu0 %v3773_v31  ;;  %v3714_v20 = vmul.f32 %v10477_v13, %v3671_v57  ;;  %v7692_v31 = vld [vmem:[%s12475_s11 + $0x104] ss:$8 sps:$4 sm:$0xff]   ;;  %v3853_v57 = vsub.s32 2, %v12511_v4 }
 0x8d1   : > { %v3717_v0 = vmul.f32 %v10485_v52, %v3674_v8  ;;  %v3716_v58 = vmul.f32 %v10477_v13, %v3673_v28  ;;  %v10683_v10 = vadd.f32 %v10493_v33, %v3715_v32  ;;  %v3857_v8 = vsub.s32 3, %v12511_v4 }
 0x8d2   : > { %v10689_v59 = vadd.f32 %v10490_v3, %v3714_v20  ;;  %v10721_v32 = vrot.slane %v3841_v61, %v9446_v27  ;;  %v10723_v28 = vrot.slane %v3841_v61, %v3853_v57  ;;  %v10726_v20 = vrot.slane %v3841_v61, %v9454_v37 }
 0x8d3   : > { %12507 = vst [vmem:[#allocation79_spill] sm:$0xff] %v10683_v10  ;;  %v10686_v45 = vadd.f32 %v10493_v33, %v3717_v0  ;;  %v10692_v26 = vadd.f32 %v10490_v3, %v3716_v58  ;;  %v7665_v33 = vld [vmem:[%s12475_s11 + $0x74] ss:$8 sps:$4 sm:$0xff]   ;;  %v7668_v3 = vld [vmem:[%s12475_s11 + $0x84] ss:$8 sps:$4 sm:$0xff]   ;;  %v10728_v0 = vrot.slane %v3841_v61, %v3857_v8 }
 0x8d4   : > { %12509 = vst [vmem:[#allocation81_spill] sm:$0xff] %v10689_v59  ;;  %5427 = vmatprep.subr.bf16.mxu1 %v7665_v33 }
 0x8d5   : > { %12508 = vst [vmem:[#allocation80_spill] sm:$0xff] %v10686_v45  ;;  %12510 = vst [vmem:[#allocation82_spill] sm:$0xff] %v10692_v26  ;;  %v3776_v52 = vpack.c.bf16 %v10686_v45, %v10683_v10  ;;  %v3775_v13 = vpack.c.bf16 %v10692_v26, %v10689_v59  ;;  %5428 = vmatpush1.bf16.msra.mxu1 %v7663_v29 }
 0x8d6   : > { %5429 = vmatprep.subr.bf16.mxu1 %v7668_v3 }
 0x8d7   : > { %4285 = vmatprep.mubr.bf16.mxu1 %v3776_v52  ;;  %4398 = vmatprep.mubr.bf16.mxu0 %v3776_v52 }
 0x8d8   : > { %4286 = vmatmul.mubr.bf16.gmra.mrb[92].mxu1 %v3775_v13  ;;  %4399 = vmatmul.mubr.bf16.gmra.mrb[156].mxu0 %v3775_v13 }
 0x8d9   : > { %5430 = vmatpush1.bf16.msra.mxu1 %v7666_v54 }
 0x8da   : > { %5431 = vmatprep.subr.bf16.mxu1 %v7671_v48 }
 0x8dd   : > { %5432 = vmatpush1.bf16.msra.mxu1 %v7669_v17 }
 0x8de   : > { %5433 = vmatprep.subr.bf16.mxu1 %v7674_v43 }
 0x8e1   : > { %5434 = vmatpush1.bf16.msra.mxu1 %v7672_v19 }
 0x8e2   : > { %5435 = vmatprep.subr.bf16.mxu1 %v7677_v44 }
 0x8e5   : > { %5436 = vmatpush1.bf16.msra.mxu1 %v7675_v56 }
 0x8e6   : > { %5437 = vmatprep.subr.bf16.mxu1 %v7680_v12 }
 0x8e9   : > { %5438 = vmatpush1.bf16.msra.mxu1 %v7678_v55 }
 0x8ea   : > { %5439 = vmatprep.subr.bf16.mxu1 %v7683_v39 }
 0x8ed   : > { %5440 = vmatpush1.bf16.msra.mxu1 %v7681_v51 }
 0x8ee   : > { %5441 = vmatprep.subr.bf16.mxu1 %v7686_v2 }
 0x8f1   : > { %5442 = vmatpush1.bf16.msra.mxu1 %v7684_v14 }
 0x8f2   : > { %5443 = vmatprep.subr.bf16.mxu1 %v7689_v21 }
 0x8f5   : > { %5444 = vmatpush1.bf16.msra.mxu1 %v7687_v22 }
 0x8f6   : > { %5526 = vmatprep.subr.bf16.mxu1 %v7692_v31 }
 0x973   : > { %v4217_v58 = vpop.f32.mrb[64].mxu1  ;;  %v4330_v52 = vpop.f32.mrb[128].mxu0 }
 0x974   : > { %v10731_v13 = vadd.f32 %v4217_v58, %v10721_v32  ;;  %v10734_v33 = vadd.f32 %v4330_v52, %v10723_v28  ;;  %v4219_v29 = vpop.f32.mrb[65].mxu1  ;;  %v4332_v3 = vpop.f32.mrb[129].mxu0 }
 0x975   : > { %v10737_v54 = vadd.f32 %v4219_v29, %v10726_v20  ;;  %v10740_v48 = vadd.f32 %v4332_v3, %v10728_v0  ;;  %v4221_v17 = vpop.f32.mrb[66].mxu1  ;;  %v4334_v43 = vpop.f32.mrb[130].mxu0 }
 0x976   : > { %v4409_v19 = vmul.f32 %v10731_v13, %v10731_v13  ;;  %v4411_v44 = vmul.f32 %v10734_v33, %v10734_v33  ;;  %v10747_v56 = vadd.f32 %v4221_v17, %v10721_v32  ;;  %v10750_v12 = vadd.f32 %v4334_v43, %v10723_v28  ;;  %v4223_v55 = vpop.f32.mrb[67].mxu1  ;;  %v4336_v39 = vpop.f32.mrb[131].mxu0 }
 0x977   : > { %12512 = vst [vmem:[#allocation48_spill] sm:$0xff] %v10740_v48  ;;  %v4410_v51 = vmul.f32 %v10737_v54, %v10737_v54  ;;  %v4412_v2 = vmul.f32 %v10740_v48, %v10740_v48  ;;  %v10757_v14 = vadd.f32 %v4223_v55, %v10726_v20  ;;  %v10760_v21 = vadd.f32 %v4336_v39, %v10728_v0 }
 0x978   : > { %v4473_v22 = vmul.f32 %v4409_v19, %v10731_v13  ;;  %v4475_v31 = vmul.f32 %v4411_v44, %v10734_v33  ;;  %v4413_v4 = vmul.f32 %v10747_v56, %v10747_v56  ;;  %v4415_v57 = vmul.f32 %v10750_v12, %v10750_v12 }
 0x979   : > { %12513 = vst [vmem:[#allocation83_spill] sm:$0xff] %v10760_v21  ;;  %v4474_v61 = vmul.f32 %v4410_v51, %v10737_v54  ;;  %v4476_v8 = vmul.f32 %v4412_v2, %v10740_v48  ;;  %v4414_v58 = vmul.f32 %v10757_v14, %v10757_v14  ;;  %v4416_v52 = vmul.f32 %v10760_v21, %v10760_v21 }
 0x97a   : > { %v4537_v29 = vmul.f32 0.044715, %v4473_v22  ;;  %v4539_v3 = vmul.f32 0.044715, %v4475_v31  ;;  %v4477_v17 = vmul.f32 %v4413_v4, %v10747_v56  ;;  %v4479_v43 = vmul.f32 %v4415_v57, %v10750_v12 }
 0x97b   : > { %v4538_v19 = vmul.f32 0.044715, %v4474_v61  ;;  %v4540_v44 = vmul.f32 0.044715, %v4476_v8  ;;  %v4478_v55 = vmul.f32 %v4414_v58, %v10757_v14  ;;  %v4480_v39 = vmul.f32 %v4416_v52, %v10760_v21  ;;  %v4227_v51 = vpop.f32.mrb[68].mxu1  ;;  %v4340_v2 = vpop.f32.mrb[132].mxu0 }
 0x97c   : > { %v4601_v45 = vadd.f32 %v4537_v29, %v10731_v13  ;;  %v4603_v26 = vadd.f32 %v4539_v3, %v10734_v33  ;;  %v4541_v10 = vmul.f32 0.044715, %v4477_v17  ;;  %v4543_v59 = vmul.f32 0.044715, %v4479_v43  ;;  %v4229_v22 = vpop.f32.mrb[69].mxu1  ;;  %v4342_v31 = vpop.f32.mrb[133].mxu0 }
 0x97d   : > { %v4602_v4 = vadd.f32 %v4538_v19, %v10737_v54  ;;  %v4604_v57 = vadd.f32 %v4540_v44, %v10740_v48  ;;  %v4542_v61 = vmul.f32 0.044715, %v4478_v55  ;;  %v4544_v8 = vmul.f32 0.044715, %v4480_v39  ;;  %v4231_v34 = vpop.f32.mrb[70].mxu1  ;;  %v4344_v58 = vpop.f32.mrb[134].mxu0 }
 0x97e   : > { %v4665_v24 = vmul.f32 0.7978846, %v4601_v45  ;;  %v4667_v52 = vmul.f32 0.7978846, %v4603_v26  ;;  %v4605_v40 = vadd.f32 %v4541_v10, %v10747_v56  ;;  %v4607_v29 = vadd.f32 %v4543_v59, %v10750_v12  ;;  %v4233_v35 = vpop.f32.mrb[71].mxu1  ;;  %v4346_v3 = vpop.f32.mrb[135].mxu0 }
 0x97f   : > { %v4666_v17 = vmul.f32 0.7978846, %v4602_v4  ;;  %v4668_v43 = vmul.f32 0.7978846, %v4604_v57  ;;  %v4606_v49 = vadd.f32 %v4542_v61, %v10757_v14  ;;  %v4608_v19 = vadd.f32 %v4544_v8, %v10760_v21 }
 0x980   : > { %7898 = vtanh.f32 %v4665_v24  ;;  %v4669_v44 = vmul.f32 0.7978846, %v4605_v40  ;;  %v4671_v55 = vmul.f32 0.7978846, %v4607_v29  ;;  %v10787_v39 = vadd.f32 %v4227_v51, %v10721_v32 }
 0x981   : > { %7900 = vtanh.f32 %v4667_v52  ;;  %v4670_v45 = vmul.f32 0.7978846, %v4606_v49  ;;  %v4672_v26 = vmul.f32 0.7978846, %v4608_v19  ;;  %v10790_v10 = vadd.f32 %v4340_v2, %v10723_v28 }
 0x982   : > { %7902 = vtanh.f32 %v4666_v17  ;;  %v4417_v59 = vmul.f32 %v10787_v39, %v10787_v39  ;;  %v10795_v4 = vadd.f32 %v4229_v22, %v10726_v20  ;;  %v10798_v24 = vadd.f32 %v4342_v31, %v10728_v0 }
 0x983   : > { %12514 = vst [vmem:[#allocation84_spill] sm:$0xff] %v10790_v10  ;;  %7904 = vtanh.f32 %v4668_v43  ;;  %v4419_v40 = vmul.f32 %v10790_v10, %v10790_v10  ;;  %v10803_v49 = vadd.f32 %v4231_v34, %v10721_v32  ;;  %v10806_v51 = vadd.f32 %v4344_v58, %v10723_v28  ;;  %v10808_v2 = vpop.f32.mrb[72].mxu1  ;;  %v10810_v57 = vpop.f32.mrb[136].mxu0 }
 0x984   : > { %12515 = vst [vmem:[#allocation85_spill] sm:$0xff] %v10798_v24  ;;  %7906 = vtanh.f32 %v4669_v44  ;;  %v4481_v22 = vmul.f32 %v4417_v59, %v10787_v39  ;;  %v4418_v31 = vmul.f32 %v10795_v4, %v10795_v4  ;;  %v4420_v61 = vmul.f32 %v10798_v24, %v10798_v24  ;;  %v10817_v8 = vpop.f32.mrb[73].mxu1  ;;  %v10819_v34 = vpop.f32.mrb[137].mxu0 }
 0x985   : > { %12516 = vst [vmem:[#allocation86_spill] sm:$0xff] %v10806_v51  ;;  %7908 = vtanh.f32 %v4671_v55  ;;  %v4483_v58 = vmul.f32 %v4419_v40, %v10790_v10  ;;  %v4421_v52 = vmul.f32 %v10803_v49, %v10803_v49  ;;  %v4423_v29 = vmul.f32 %v10806_v51, %v10806_v51  ;;  %v10826_v17 = vpop.f32.mrb[74].mxu1  ;;  %v10828_v43 = vpop.f32.mrb[138].mxu0 }
 0x986   : > { %7910 = vtanh.f32 %v4670_v45  ;;  %v4545_v19 = vmul.f32 0.044715, %v4481_v22  ;;  %v4482_v44 = vmul.f32 %v4418_v31, %v10795_v4  ;;  %v4484_v59 = vmul.f32 %v4420_v61, %v10798_v24  ;;  %v10832_v25 = vpop.f32.mrb[75].mxu1  ;;  %v10834_v55 = vpop.f32.mrb[139].mxu0 }
 0x987   : > { %7912 = vtanh.f32 %v4672_v26  ;;  %v4547_v40 = vmul.f32 0.044715, %v4483_v58  ;;  %v4485_v38 = vmul.f32 %v4421_v52, %v10803_v49  ;;  %v4487_v41 = vmul.f32 %v4423_v29, %v10806_v51 }
 0x988   : > { %v4609_v1 = vadd.f32 %v4545_v19, %v10787_v39  ;;  %v4546_v16 = vmul.f32 0.044715, %v4482_v44  ;;  %v4548_v9 = vmul.f32 0.044715, %v4484_v59  ;;  %v10840_v45 = vadd.f32 %v4233_v35, %v10726_v20 }
 0x989   : > { %v4611_v22 = vadd.f32 %v4547_v40, %v10790_v10  ;;  %v4549_v31 = vmul.f32 0.044715, %v4485_v38  ;;  %v4551_v61 = vmul.f32 0.044715, %v4487_v41  ;;  %v10844_v63 = vadd.f32 %v4346_v3, %v10728_v0 }
 0x98a   : > { %v7899_v26 = vpop.eup %7898  ;;  %v4673_v58 = vmul.f32 0.7978846, %v4609_v1  ;;  %v4610_v52 = vadd.f32 %v4546_v16, %v10795_v4  ;;  %v4612_v29 = vadd.f32 %v4548_v9, %v10798_v24  ;;  %v4422_v19 = vmul.f32 %v10840_v45, %v10840_v45 }
 0x98b   : > { %12517 = vst [vmem:[#allocation87_spill] sm:$0xff] %v10844_v63  ;;  %v7901_v44 = vpop.eup %7900  ;;  %v4793_v59 = vadd.f32 1.0, %v7899_v26  ;;  %v4675_v35 = vmul.f32 0.7978846, %v4611_v22  ;;  %v4613_v15 = vadd.f32 %v4549_v31, %v10803_v49  ;;  %v4615_v38 = vadd.f32 %v4551_v61, %v10806_v51  ;;  %v10852_v41 = vpop.f32.mrb[76].mxu1 }
 0x98c   : > { %v10854_v3 = vpop.f32.mrb[140].mxu0  ;;  %v10856_v40 = vpop.eup %7902  ;;  %v4795_v1 = vadd.f32 1.0, %v7901_v44  ;;  %7914 = vtanh.f32 %v4673_v58  ;;  %v4674_v16 = vmul.f32 0.7978846, %v4610_v52  ;;  %v4676_v9 = vmul.f32 0.7978846, %v4612_v29 }
 0x98d   : > { %v10858_v46 = vpop.f32.mrb[77].mxu1  ;;  %v10860_v47 = vpop.eup %7904  ;;  %v4857_v26 = vmul.f32 0.5, %v4793_v59  ;;  %7916 = vtanh.f32 %v4675_v35  ;;  %v4677_v22 = vmul.f32 0.7978846, %v4613_v15  ;;  %v4679_v31 = vmul.f32 0.7978846, %v4615_v38 }
 0x98e   : > { %12518 = vst [vmem:[#allocation88_spill] sm:$0xff] %v10860_v47  ;;  %v10862_v60 = vpop.f32.mrb[141].mxu0  ;;  %v7907_v61 = vpop.eup %7906  ;;  %v4859_v62 = vmul.f32 0.5, %v4795_v1  ;;  %7918 = vtanh.f32 %v4674_v16  ;;  %v4486_v50 = vmul.f32 %v4422_v19, %v10840_v45  ;;  %v4424_v58 = vmul.f32 %v10844_v63, %v10844_v63 }
 0x98f   : > { %v10867_v52 = vpop.f32.mrb[78].mxu1  ;;  %v10869_v29 = vpop.f32.mrb[142].mxu0  ;;  %v10872_v59 = vmul.f32 %v4857_v26, %v10731_v13  ;;  %v4797_v15 = vadd.f32 1.0, %v7907_v61  ;;  %7920 = vtanh.f32 %v4676_v9  ;;  %v10876_v35 = vadd.f32 %v10808_v2, %v10721_v32 }
 0x990   : > { %v7909_v44 = vpop.eup %7908  ;;  %v10878_v38 = vpop.f32.mrb[79].mxu1  ;;  %v10885_v16 = vmul.f32 %v4859_v62, %v10734_v33  ;;  %7922 = vtanh.f32 %v4677_v22  ;;  %v4550_v18 = vmul.f32 0.044715, %v4486_v50  ;;  %v4488_v9 = vmul.f32 %v4424_v58, %v10844_v63 }
 0x991   : > { %12519 = vst [vmem:[#allocation89_spill] sm:$0xff] %v10876_v35  ;;  %v10880_v19 = vpop.f32.mrb[143].mxu0  ;;  %v10882_v1 = vpop.eup %7910  ;;  %v4799_v5 = vadd.f32 1.0, %v7909_v44  ;;  %v4861_v26 = vmul.f32 0.5, %v4797_v15  ;;  %7924 = vtanh.f32 %v4679_v31  ;;  %v4425_v2 = vmul.f32 %v10876_v35, %v10876_v35 }
 0x992   : > { %12520 = vst [vmem:[#allocation90_spill] sm:$0xff] %v10885_v16  ;;  %v10887_v13 = vpop.eup %7912  ;;  %v4614_v42 = vadd.f32 %v4550_v18, %v10840_v45  ;;  %v10895_v36 = vadd.f32 %v10810_v57, %v10723_v28  ;;  %v10899_v62 = vadd.f32 %v10817_v8, %v10726_v20  ;;  %v4552_v33 = vmul.f32 0.044715, %v4488_v9 }
 0x993   : > { %12521 = vst [vmem:[#allocation91_spill] sm:$0xff] %v10887_v13  ;;  %v4863_v61 = vmul.f32 0.5, %v4799_v5  ;;  %v10902_v50 = vmul.f32 %v4861_v26, %v10747_v56  ;;  %v4489_v22 = vmul.f32 %v4425_v2, %v10876_v35  ;;  %v10907_v31 = vadd.f32 %v10819_v34, %v10728_v0  ;;  %v10909_v5 = vpop.f32.mrb[80].mxu1  ;;  %v10911_v18 = vpop.f32.mrb[144].mxu0 }
 0x994   : > { %12522 = vst [vmem:[#allocation92_spill] sm:$0xff] %v10895_v36  ;;  %12523 = vst [vmem:[#allocation93_spill] sm:$0xff] %v10899_v62  ;;  %v4678_v58 = vmul.f32 0.7978846, %v4614_v42  ;;  %v4427_v8 = vmul.f32 %v10895_v36, %v10895_v36  ;;  %v4426_v56 = vmul.f32 %v10899_v62, %v10899_v62  ;;  %v10920_v44 = vpop.f32.mrb[81].mxu1  ;;  %v10922_v15 = vpop.f32.mrb[145].mxu0  ;;  %v4616_v26 = vadd.f32 %v4552_v33, %v10844_v63 }
 0x995   : > { %12524 = vst [vmem:[#allocation94_spill] sm:$0xff] %v10907_v31  ;;  %v10914_v57 = vmul.f32 %v4863_v61, %v10750_v12  ;;  %v4553_v9 = vmul.f32 0.044715, %v4489_v22  ;;  %v4428_v12 = vmul.f32 %v10907_v31, %v10907_v31  ;;  %v10929_v42 = vpop.f32.mrb[82].mxu1  ;;  %v10931_v2 = vpop.f32.mrb[146].mxu0  ;;  %v10949_v37 = vadd.f32 %v10826_v17, %v10721_v32 }
 0x996   : > { %v10933_v61 = vpop.eup %7914  ;;  %7926 = vtanh.f32 %v4678_v58  ;;  %v4491_v23 = vmul.f32 %v4427_v8, %v10895_v36  ;;  %v4490_v34 = vmul.f32 %v4426_v56, %v10899_v62  ;;  %v10939_v6 = vpop.f32.mrb[83].mxu1  ;;  %v4680_v7 = vmul.f32 0.7978846, %v4616_v26 }
 0x997   : > { %12525 = vst [vmem:[#allocation95_spill] sm:$0xff] %v10914_v57  ;;  %v10941_v33 = vpop.f32.mrb[147].mxu0  ;;  %v10943_v22 = vpop.eup %7916  ;;  %v4617_v53 = vadd.f32 %v4553_v9, %v10876_v35  ;;  %v4492_v30 = vmul.f32 %v4428_v12, %v10907_v31  ;;  %12527 = vst [vmem:[#allocation97_spill] sm:$0xff] %v10949_v37  ;;  %v10955_v56 = vadd.f32 %v10828_v43, %v10723_v28 }
 0x998   : > { %12526 = vst [vmem:[#allocation96_spill] sm:$0xff] %v10943_v22  ;;  %v10951_v58 = vpop.eup %7918  ;;  %v4555_v8 = vmul.f32 0.044715, %v4491_v23  ;;  %v4554_v11 = vmul.f32 0.044715, %v4490_v34  ;;  %v10959_v27 = vadd.f32 %v10832_v25, %v10726_v20  ;;  %7928 = vtanh.f32 %v4680_v7 }
 0x999   : > { %12528 = vst [vmem:[#allocation98_spill] sm:$0xff] %v10955_v56  ;;  %v10961_v26 = vpop.eup %7920  ;;  %v4681_v9 = vmul.f32 0.7978846, %v4617_v53  ;;  %v4556_v12 = vmul.f32 0.044715, %v4492_v30  ;;  %v4429_v17 = vmul.f32 %v10949_v37, %v10949_v37  ;;  %v4431_v43 = vmul.f32 %v10955_v56, %v10955_v56 }
 0x99a   : > { %12529 = vst [vmem:[#allocation99_spill] sm:$0xff] %v10959_v27  ;;  %12530 = vst [vmem:[#allocation100_spill] sm:$0xff] %v10961_v26  ;;  %v10965_v16 = vpop.eup %7922  ;;  %v4619_v23 = vadd.f32 %v4555_v8, %v10895_v36  ;;  %v4618_v34 = vadd.f32 %v4554_v11, %v10899_v62  ;;  %v4430_v25 = vmul.f32 %v10959_v27, %v10959_v27 }
 0x99b   : > { %v10973_v57 = vpop.eup %7924  ;;  %7930 = vtanh.f32 %v4681_v9  ;;  %v4620_v53 = vadd.f32 %v4556_v12, %v10907_v31  ;;  %v4493_v30 = vmul.f32 %v4429_v17, %v10949_v37  ;;  %v10979_v7 = vadd.f32 %v10834_v55, %v10728_v0  ;;  %v10981_v8 = vpop.f32.mrb[84].mxu1 }
 0x99c   : > { %12531 = vst [vmem:[#allocation101_spill] sm:$0xff] %v10973_v57  ;;  %v10983_v11 = vpop.f32.mrb[148].mxu0  ;;  %v4683_v36 = vmul.f32 0.7978846, %v4619_v23  ;;  %v4682_v51 = vmul.f32 0.7978846, %v4618_v34  ;;  %v4495_v10 = vmul.f32 %v4431_v43, %v10955_v56  ;;  %v4494_v63 = vmul.f32 %v4430_v25, %v10959_v27 }
 0x99d   : > { %12532 = vst [vmem:[#allocation102_spill] sm:$0xff] %v10979_v7  ;;  %v10987_v24 = vpop.f32.mrb[85].mxu1  ;;  %v10989_v9 = vpop.f32.mrb[149].mxu0  ;;  %v4684_v12 = vmul.f32 0.7978846, %v4620_v53  ;;  %v4432_v55 = vmul.f32 %v10979_v7, %v10979_v7  ;;  %v10995_v31 = vadd.f32 %v10852_v41, %v10721_v32  ;;  %v11003_v25 = vadd.f32 %v10854_v3, %v10723_v28 }
 0x99e   : > { %v4557_v17 = vmul.f32 0.044715, %v4493_v30  ;;  %v10997_v21 = vpop.f32.mrb[86].mxu1  ;;  %v10999_v23 = vpop.f32.mrb[150].mxu0  ;;  %7932 = vtanh.f32 %v4683_v36  ;;  %v4559_v34 = vmul.f32 0.044715, %v4495_v10  ;;  %v11062_v35 = vadd.f32 %v10869_v29, %v10723_v28 }
 0x99f   : > { %12533 = vst [vmem:[#allocation103_spill] sm:$0xff] %v10995_v31  ;;  %v4558_v43 = vmul.f32 0.044715, %v4494_v63  ;;  %12534 = vst [vmem:[#allocation104_spill] sm:$0xff] %v11003_v25  ;;  %v11005_v53 = vpop.f32.mrb[87].mxu1  ;;  %v11007_v30 = vpop.f32.mrb[151].mxu0  ;;  %7934 = vtanh.f32 %v4682_v51  ;;  %v4496_v41 = vmul.f32 %v4432_v55, %v10979_v7  ;;  %v4433_v48 = vmul.f32 %v10995_v31, %v10995_v31 }
 0x9a0   : > { %v4621_v57 = vadd.f32 %v4557_v17, %v10949_v37  ;;  %v11013_v22 = vpop.eup %7926  ;;  %7936 = vtanh.f32 %v4684_v12  ;;  %v4623_v36 = vadd.f32 %v4559_v34, %v10955_v56  ;;  %v4435_v10 = vmul.f32 %v11003_v25, %v11003_v25  ;;  %12540 = vst [vmem:[#allocation110_spill] sm:$0xff] %v11062_v35 }
 0x9a1   : > { %v4622_v63 = vadd.f32 %v4558_v43, %v10959_v27  ;;  %v4560_v26 = vmul.f32 0.044715, %v4496_v41  ;;  %v4497_v51 = vmul.f32 %v4433_v48, %v10995_v31  ;;  %v11022_v17 = vadd.f32 %v10858_v46, %v10726_v20 }
 0x9a2   : > { %v4685_v3 = vmul.f32 0.7978846, %v4621_v57  ;;  %v4687_v55 = vmul.f32 0.7978846, %v4623_v36  ;;  %v4499_v47 = vmul.f32 %v4435_v10, %v11003_v25  ;;  %v11027_v12 = vadd.f32 %v10862_v60, %v10728_v0  ;;  %v11029_v34 = vpop.eup %7928 }
 0x9a3   : > { %12535 = vst [vmem:[#allocation105_spill] sm:$0xff] %v11022_v17  ;;  %v4686_v13 = vmul.f32 0.7978846, %v4622_v63  ;;  %12537 = vst [vmem:[#allocation107_spill] sm:$0xff] %v11029_v34  ;;  %v4624_v57 = vadd.f32 %v4560_v26, %v10979_v7  ;;  %v4561_v43 = vmul.f32 0.044715, %v4497_v51  ;;  %v4434_v48 = vmul.f32 %v11022_v17, %v11022_v17 }
 0x9a4   : > { %12536 = vst [vmem:[#allocation106_spill] sm:$0xff] %v11027_v12  ;;  %7938 = vtanh.f32 %v4685_v3  ;;  %v11034_v41 = vpop.f32.mrb[88].mxu1  ;;  %v11036_v46 = vpop.f32.mrb[152].mxu0  ;;  %v4563_v36 = vmul.f32 0.044715, %v4499_v47  ;;  %v4436_v63 = vmul.f32 %v11027_v12, %v11027_v12  ;;  %v11042_v60 = vadd.f32 %v10867_v52, %v10721_v32 }
 0x9a5   : > { %7940 = vtanh.f32 %v4687_v55  ;;  %v11044_v10 = vpop.f32.mrb[89].mxu1  ;;  %v11046_v26 = vpop.f32.mrb[153].mxu0  ;;  %v4688_v51 = vmul.f32 0.7978846, %v4624_v57  ;;  %v4625_v56 = vadd.f32 %v4561_v43, %v10995_v31  ;;  %v4498_v55 = vmul.f32 %v4434_v48, %v11022_v17 }
 0x9a6   : > { %12538 = vst [vmem:[#allocation108_spill] sm:$0xff] %v11042_v60  ;;  %v11048_v3 = vpop.eup %7930  ;;  %7942 = vtanh.f32 %v4686_v13  ;;  %v11052_v47 = vpop.f32.mrb[90].mxu1  ;;  %v4627_v34 = vadd.f32 %v4563_v36, %v11003_v25  ;;  %v4500_v52 = vmul.f32 %v4436_v63, %v11027_v12  ;;  %v4437_v37 = vmul.f32 %v11042_v60, %v11042_v60 }
 0x9a7   : > { %12539 = vst [vmem:[#allocation109_spill] sm:$0xff] %v11048_v3  ;;  %v11054_v7 = vpop.f32.mrb[154].mxu0  ;;  %v11064_v13 = vpop.f32.mrb[91].mxu1  ;;  %7944 = vtanh.f32 %v4688_v51  ;;  %v4689_v43 = vmul.f32 0.7978846, %v4625_v56  ;;  %v11070_v31 = vadd.f32 %v10878_v38, %v10726_v20  ;;  %v4439_v29 = vmul.f32 %v11062_v35, %v11062_v35 }
 0x9a8   : > { %v11066_v57 = vpop.f32.mrb[155].mxu0  ;;  %v4562_v48 = vmul.f32 0.044715, %v4498_v55  ;;  %v11072_v36 = vpop.eup %7932  ;;  %v4691_v63 = vmul.f32 0.7978846, %v4627_v34  ;;  %v4501_v27 = vmul.f32 %v4437_v37, %v11042_v60  ;;  %v11084_v38 = vadd.f32 %v10880_v19, %v10728_v0 }
 0x9a9   : > { %12541 = vst [vmem:[#allocation111_spill] sm:$0xff] %v11070_v31  ;;  %12542 = vst [vmem:[#allocation112_spill] sm:$0xff] %v11072_v36  ;;  %v4564_v25 = vmul.f32 0.044715, %v4500_v52  ;;  %v11077_v62 = vpop.eup %7934  ;;  %7946 = vtanh.f32 %v4689_v43  ;;  %v4438_v56 = vmul.f32 %v11070_v31, %v11070_v31  ;;  %v4503_v52 = vmul.f32 %v4439_v29, %v11062_v35 }
 0x9aa   : > { %v4626_v51 = vadd.f32 %v4562_v48, %v11022_v17  ;;  %12543 = vst [vmem:[#allocation113_spill] sm:$0xff] %v11084_v38  ;;  %v11086_v55 = vpop.eup %7936  ;;  %7948 = vtanh.f32 %v4691_v63  ;;  %v4565_v34 = vmul.f32 0.044715, %v4501_v27  ;;  %v4440_v48 = vmul.f32 %v11084_v38, %v11084_v38 }
 0x9ab   : > { %12544 = vst [vmem:[#allocation114_spill] sm:$0xff] %v11086_v55  ;;  %v4628_v37 = vadd.f32 %v4564_v25, %v11027_v12  ;;  %v4502_v43 = vmul.f32 %v4438_v56, %v11070_v31  ;;  %v11095_v17 = vadd.f32 %v10909_v5, %v10721_v32  ;;  %v11097_v19 = vpop.f32.mrb[92].mxu1  ;;  %v11099_v3 = vpop.f32.mrb[156].mxu0  ;;  %v4567_v27 = vmul.f32 0.044715, %v4503_v52 }
 0x9ac   : > { %v4690_v36 = vmul.f32 0.7978846, %v4626_v51  ;;  %12546 = vst [vmem:[#allocation116_spill] sm:$0xff] %v11099_v3  ;;  %v4629_v25 = vadd.f32 %v4565_v34, %v11042_v60  ;;  %v11104_v29 = vadd.f32 %v10911_v18, %v10723_v28  ;;  %v11106_v51 = vpop.f32.mrb[93].mxu1  ;;  %v11108_v56 = vpop.f32.mrb[157].mxu0  ;;  %v4504_v55 = vmul.f32 %v4440_v48, %v11084_v38 }
 0x9ad   : > { %12545 = vst [vmem:[#allocation115_spill] sm:$0xff] %v11095_v17  ;;  %v4692_v63 = vmul.f32 0.7978846, %v4628_v37  ;;  %12548 = vst [vmem:[#allocation118_spill] sm:$0xff] %v11106_v51  ;;  %v4566_v5 = vmul.f32 0.044715, %v4502_v43  ;;  %v4441_v37 = vmul.f32 %v11095_v17, %v11095_v17  ;;  %v4631_v60 = vadd.f32 %v4567_v27, %v11062_v35 }
 0x9ae   : > { %12547 = vst [vmem:[#allocation117_spill] sm:$0xff] %v11104_v29  ;;  %12549 = vst [vmem:[#allocation119_spill] sm:$0xff] %v11108_v56  ;;  %v11110_v12 = vpop.eup %7938  ;;  %7950 = vtanh.f32 %v4690_v36  ;;  %v11115_v3 = vpop.f32.mrb[94].mxu1  ;;  %v4693_v18 = vmul.f32 0.7978846, %v4629_v25  ;;  %v4443_v56 = vmul.f32 %v11104_v29, %v11104_v29  ;;  %v11139_v35 = vadd.f32 %v10922_v15, %v10728_v0 }
 0x9af   : > { %12550 = vst [vmem:[#allocation120_spill] sm:$0xff] %v11115_v3  ;;  %v11117_v34 = vpop.f32.mrb[158].mxu0  ;;  %v11119_v52 = vpop.eup %7940  ;;  %7952 = vtanh.f32 %v4692_v63  ;;  %v4630_v51 = vadd.f32 %v4566_v5, %v11070_v31  ;;  %v4568_v3 = vmul.f32 0.044715, %v4504_v55  ;;  %v11134_v63 = vadd.f32 %v10920_v44, %v10726_v20 }
 0x9b0   : > { %12551 = vst [vmem:[#allocation121_spill] sm:$0xff] %v11117_v34  ;;  %12552 = vst [vmem:[#allocation122_spill] sm:$0xff] %v11119_v52  ;;  %v11124_v36 = vpop.f32.mrb[95].mxu1  ;;  %v11126_v43 = vpop.f32.mrb[159].mxu0  ;;  %v4505_v34 = vmul.f32 %v4441_v37, %v11095_v17  ;;  %7954 = vtanh.f32 %v4693_v18  ;;  %v4695_v25 = vmul.f32 0.7978846, %v4631_v60  ;;  %v4507_v27 = vmul.f32 %v4443_v56, %v11104_v29 }
 0x9b1   : > { %12553 = vst [vmem:[#allocation123_spill] sm:$0xff] %v11126_v43  ;;  %v11128_v48 = vpop.eup %7942  ;;  %12554 = vst [vmem:[#allocation124_spill] sm:$0xff] %v11134_v63  ;;  %v4694_v43 = vmul.f32 0.7978846, %v4630_v51  ;;  %v4632_v5 = vadd.f32 %v4568_v3, %v11084_v38  ;;  %v4442_v37 = vmul.f32 %v11134_v63, %v11134_v63  ;;  %v4444_v60 = vmul.f32 %v11139_v35, %v11139_v35 }
 0x9b2   : > { %12555 = vst [vmem:[#allocation125_spill] sm:$0xff] %v11139_v35  ;;  %v11141_v52 = vpop.eup %7944  ;;  %v4569_v55 = vmul.f32 0.044715, %v4505_v34  ;;  %7956 = vtanh.f32 %v4695_v25  ;;  %v4571_v44 = vmul.f32 0.044715, %v4507_v27  ;;  %v11150_v56 = vadd.f32 %v10929_v42, %v10721_v32 }
 0x9b3   : > { %12556 = vst [vmem:[#allocation126_spill] sm:$0xff] %v11141_v52  ;;  %v11152_v15 = vpop.eup %7946  ;;  %7958 = vtanh.f32 %v4694_v43  ;;  %v4696_v18 = vmul.f32 0.7978846, %v4632_v5  ;;  %v4506_v3 = vmul.f32 %v4442_v37, %v11134_v63  ;;  %v4508_v27 = vmul.f32 %v4444_v60, %v11139_v35 }
 0x9b4   : > { %v4633_v51 = vadd.f32 %v4569_v55, %v11095_v17  ;;  %v11156_v34 = vpop.eup %7948  ;;  %v4635_v25 = vadd.f32 %v4571_v44, %v11104_v29  ;;  %v4445_v38 = vmul.f32 %v11150_v56, %v11150_v56  ;;  %v11164_v42 = vadd.f32 %v10931_v2, %v10723_v28 }
 0x9b5   : > { %12557 = vst [vmem:[#allocation127_spill] sm:$0xff] %v11156_v34  ;;  %7960 = vtanh.f32 %v4696_v18  ;;  %v4570_v5 = vmul.f32 0.044715, %v4506_v3  ;;  %v11168_v55 = vadd.f32 %v10939_v6, %v10726_v20  ;;  %v4572_v34 = vmul.f32 0.044715, %v4508_v27 }
 0x9b6   : > { %12558 = vst [vmem:[#allocation128_spill] sm:$0xff] %v11164_v42  ;;  %v4697_v43 = vmul.f32 0.7978846, %v4633_v51  ;;  %v4699_v37 = vmul.f32 0.7978846, %v4635_v25  ;;  %v4509_v44 = vmul.f32 %v4445_v38, %v11150_v56  ;;  %v4447_v60 = vmul.f32 %v11164_v42, %v11164_v42 }
 0x9b7   : > { %v4634_v2 = vadd.f32 %v4570_v5, %v11134_v63  ;;  %v4446_v18 = vmul.f32 %v11168_v55, %v11168_v55  ;;  %v11180_v51 = vadd.f32 %v10941_v33, %v10728_v0  ;;  %v4636_v38 = vadd.f32 %v4572_v34, %v11139_v35 }
 0x9b8   : > { %v11173_v29 = vpop.eup %7950  ;;  %7962 = vtanh.f32 %v4697_v43  ;;  %v4573_v3 = vmul.f32 0.044715, %v4509_v44  ;;  %v4511_v25 = vmul.f32 %v4447_v60, %v11164_v42  ;;  %v4794_v52 = vadd.f32 1.0, %v10856_v40 }
 0x9b9   : > { %12559 = vst [vmem:[#allocation129_spill] sm:$0xff] %v11180_v51  ;;  %v11182_v6 = vpop.eup %7952  ;;  %7964 = vtanh.f32 %v4699_v37  ;;  %v4698_v27 = vmul.f32 0.7978846, %v4634_v2  ;;  %v4510_v43 = vmul.f32 %v4446_v18, %v11168_v55  ;;  %v4448_v5 = vmul.f32 %v11180_v51, %v11180_v51 }
 0x9ba   : > { %12560 = vst [vmem:[#allocation130_spill] sm:$0xff] %v11182_v6  ;;  %v11190_v17 = vpop.eup %7954  ;;  %v4700_v33 = vmul.f32 0.7978846, %v4636_v38  ;;  %v4637_v63 = vadd.f32 %v4573_v3, %v11150_v56  ;;  %v4575_v6 = vmul.f32 0.044715, %v4511_v25  ;;  %v4798_v37 = vadd.f32 1.0, %v10882_v1 }
 0x9bb   : > { %7966 = vtanh.f32 %v4698_v27  ;;  %v4574_v34 = vmul.f32 0.044715, %v4510_v43  ;;  %v4512_v44 = vmul.f32 %v4448_v5, %v11180_v51  ;;  %v4858_v60 = vmul.f32 0.5, %v4794_v52 }
 0x9bc   : > { %v11195_v2 = vpop.eup %7956  ;;  %7968 = vtanh.f32 %v4700_v33  ;;  %v4701_v18 = vmul.f32 0.7978846, %v4637_v63  ;;  %v4639_v35 = vadd.f32 %v4575_v6, %v11164_v42  ;;  %v4862_v40 = vmul.f32 0.5, %v4798_v37  ;;  %v7696_v42 = vld [vmem:[%s12475_s11 + $0x120] ss:$8 sps:$4 sm:$0xff]  }
 0x9bd   : > { %12561 = vst [vmem:[#allocation131_spill] sm:$0xff] %v11195_v2  ;;  %v11198_v31 = vpop.eup %7958  ;;  %v4638_v38 = vadd.f32 %v4574_v34, %v11168_v55  ;;  %v4576_v3 = vmul.f32 0.044715, %v4512_v44  ;;  %v4922_v1 = vmul.f32 %v4858_v60, %v10737_v54  ;;  %v11204_v25 = vadd.f32 %v10981_v8, %v10721_v32  ;;  %v7695_v60 = vld [vmem:[%s12475_s11 + $0x114] ss:$8 sps:$4 sm:$0xff]  }
 0x9be   : > { %7970 = vtanh.f32 %v4701_v18  ;;  %v4703_v52 = vmul.f32 0.7978846, %v4639_v35  ;;  %v4926_v27 = vmul.f32 %v4862_v40, %v10757_v14  ;;  %v11209_v63 = vadd.f32 %v10983_v11, %v10723_v28  ;;  %v7690_v14 = vld [vmem:[%s12475_s11 + $0x100] ss:$8 sps:$4 sm:$0xff]  }
 0x9bf   : > { %v11211_v6 = vpop.eup %7960  ;;  %v4702_v43 = vmul.f32 0.7978846, %v4638_v38  ;;  %v4640_v5 = vadd.f32 %v4576_v3, %v11180_v51  ;;  %v4449_v54 = vmul.f32 %v11204_v25, %v11204_v25  ;;  %v11218_v8 = vadd.f32 %v10987_v24, %v10726_v20 }
 0x9c0   : > { %12562 = vst [vmem:[#allocation132_spill] sm:$0xff] %v11209_v63  ;;  %7972 = vtanh.f32 %v4703_v52  ;;  %v4986_v35 = vpack.c.bf16 %v4926_v27, %v4922_v1  ;;  %v4451_v33 = vmul.f32 %v11209_v63, %v11209_v63  ;;  %v11225_v11 = vadd.f32 %v10989_v9, %v10728_v0 }
 0x9c1   : > { %7974 = vtanh.f32 %v4702_v43  ;;  %v4704_v34 = vmul.f32 0.7978846, %v4640_v5  ;;  %v4513_v44 = vmul.f32 %v4449_v54, %v11204_v25  ;;  %v4450_v24 = vmul.f32 %v11218_v8, %v11218_v8  ;;  %v7693_v5 = vld [vmem:[%s12475_s11 + $0x110] ss:$8 sps:$4 sm:$0xff]  }
 0x9c2   : > { %v11227_v37 = vpop.eup %7962  ;;  %5445 = vmatprep.mubr.bf16.mxu1 %v4986_v35  ;;  %v4515_v40 = vmul.f32 %v4451_v33, %v11209_v63  ;;  %v4452_v9 = vmul.f32 %v11225_v11, %v11225_v11  ;;  %v11240_v38 = vadd.f32 %v10997_v21, %v10721_v32  ;;  %v11244_v3 = vadd.f32 %v10999_v23, %v10723_v28 }
 0x9c3   : > { %v11233_v18 = vpop.eup %7964  ;;  %7976 = vtanh.f32 %v4704_v34  ;;  %v12565_v1 = vpack.c.bf16 %v10902_v50, %v10872_v59  ;;  %v4577_v52 = vmul.f32 0.044715, %v4513_v44  ;;  %v4514_v27 = vmul.f32 %v4450_v24, %v11218_v8  ;;  %v7698_v34 = vld [vmem:[%s12475_s11 + $0x124] ss:$8 sps:$4 sm:$0xff]  }
 0x9c4   : > { %12563 = vst [vmem:[#allocation133_spill] sm:$0xff] %v11233_v18  ;;  %12564 = vst [vmem:[#allocation134_spill] sm:$0xff] %v11244_v3  ;;  %v11252_v43 = vadd.f32 %v11005_v53, %v10726_v20  ;;  %v4579_v21 = vmul.f32 0.044715, %v4515_v40  ;;  %v4516_v54 = vmul.f32 %v4452_v9, %v11225_v11  ;;  %v4453_v23 = vmul.f32 %v11240_v38, %v11240_v38 }
 0x9c5   : > { %5446 = vmatmul.mubr.bf16.vlgmr.msra.gmra.mrb[96].mxu1 %v12565_v1  ;;  %v4455_v59 = vmul.f32 %v11244_v3, %v11244_v3  ;;  %v11260_v50 = vpop.eup %7966  ;;  %v4641_v35 = vadd.f32 %v4577_v52, %v11204_v25  ;;  %v4578_v33 = vmul.f32 0.044715, %v4514_v27 }
 0x9c6   : > { %5527 = vmatpush1.bf16.msra.mxu1 %v7690_v14  ;;  %v4454_v53 = vmul.f32 %v11252_v43, %v11252_v43  ;;  %v11267_v14 = vadd.f32 %v11007_v30, %v10728_v0  ;;  %v11270_v44 = vpop.eup %7968  ;;  %v4643_v24 = vadd.f32 %v4579_v21, %v11209_v63  ;;  %v4580_v40 = vmul.f32 0.044715, %v4516_v54 }
 0x9c7   : > { %5528 = vmatprep.subr.bf16.mxu1 %v7695_v60  ;;  %12567 = vst [vmem:[#allocation136_spill] sm:$0xff] %v11270_v44  ;;  %v4517_v9 = vmul.f32 %v4453_v23, %v11240_v38  ;;  %v4519_v1 = vmul.f32 %v4455_v59, %v11244_v3  ;;  %v4705_v52 = vmul.f32 0.7978846, %v4641_v35  ;;  %v4642_v60 = vadd.f32 %v4578_v33, %v11218_v8 }
 0x9c8   : > { %12566 = vst [vmem:[#allocation135_spill] sm:$0xff] %v11267_v14  ;;  %v4518_v27 = vmul.f32 %v4454_v53, %v11252_v43  ;;  %v4456_v30 = vmul.f32 %v11267_v14, %v11267_v14  ;;  %v11280_v51 = vpop.eup %7970  ;;  %v4707_v18 = vmul.f32 0.7978846, %v4643_v24  ;;  %v4644_v21 = vadd.f32 %v4580_v40, %v11225_v11  ;;  %v7701_v53 = vld [vmem:[%s12475_s11 + $0x134] ss:$8 sps:$4 sm:$0xff]  }
 0x9c9   : > { %v4581_v54 = vmul.f32 0.044715, %v4517_v9  ;;  %v4583_v23 = vmul.f32 0.044715, %v4519_v1  ;;  %7978 = vtanh.f32 %v4705_v52  ;;  %v4706_v59 = vmul.f32 0.7978846, %v4642_v60 }
 0x9ca   : > { %5529 = vmatpush1.bf16.msra.mxu1 %v7693_v5  ;;  %v4582_v35 = vmul.f32 0.044715, %v4518_v27  ;;  %v4520_v33 = vmul.f32 %v4456_v30, %v11267_v14  ;;  %v11285_v63 = vpop.eup %7972  ;;  %7980 = vtanh.f32 %v4707_v18  ;;  %v4708_v44 = vmul.f32 0.7978846, %v4644_v21  ;;  %v7699_v52 = vld [vmem:[%s12475_s11 + $0x130] ss:$8 sps:$4 sm:$0xff]  }
 0x9cb   : > { %5530 = vmatprep.subr.bf16.mxu1 %v7698_v34  ;;  %v4645_v2 = vadd.f32 %v4581_v54, %v11240_v38  ;;  %v4647_v24 = vadd.f32 %v4583_v23, %v11244_v3  ;;  %v11289_v40 = vpop.eup %7974  ;;  %7982 = vtanh.f32 %v4706_v59  ;;  %v4802_v1 = vadd.f32 1.0, %v10951_v58  ;;  %v7704_v59 = vld [vmem:[%s12475_s11 + $0x144] ss:$8 sps:$4 sm:$0xff]  }
 0x9cc   : > { %v4646_v5 = vadd.f32 %v4582_v35, %v11252_v43  ;;  %v4584_v9 = vmul.f32 0.044715, %v4520_v33  ;;  %7984 = vtanh.f32 %v4708_v44  ;;  %v4806_v18 = vadd.f32 1.0, %v11013_v22 }
 0x9cd   : > { %v4709_v34 = vmul.f32 0.7978846, %v4645_v2  ;;  %v4711_v60 = vmul.f32 0.7978846, %v4647_v24  ;;  %v11295_v27 = vpop.eup %7976  ;;  %v4866_v54 = vmul.f32 0.5, %v4802_v1  ;;  %v4801_v23 = vadd.f32 1.0, %v10933_v61 }
 0x9ce   : > { %5531 = vmatpush1.bf16.msra.mxu1 %v7696_v42  ;;  %v4710_v30 = vmul.f32 0.7978846, %v4646_v5  ;;  %v4648_v21 = vadd.f32 %v4584_v9, %v11267_v14  ;;  %v4870_v58 = vmul.f32 0.5, %v4806_v18  ;;  %v4805_v44 = vadd.f32 1.0, %v10965_v16  ;;  %v7702_v24 = vld [vmem:[%s12475_s11 + $0x140] ss:$8 sps:$4 sm:$0xff]  }
 0x9cf   : > { %5532 = vmatprep.subr.bf16.mxu1 %v7701_v53  ;;  %7986 = vtanh.f32 %v4709_v34  ;;  %v11303_v2 = vadd.f32 %v11034_v41, %v10721_v32  ;;  %v4930_v42 = vmul.f32 %v4866_v54, %v10795_v4  ;;  %v4865_v35 = vmul.f32 0.5, %v4801_v23  ;;  %v7707_v5 = vld [vmem:[%s12475_s11 + $0x154] ss:$8 sps:$4 sm:$0xff]  }
 0x9d0   : > { %7988 = vtanh.f32 %v4711_v60  ;;  %v4712_v22 = vmul.f32 0.7978846, %v4648_v21  ;;  %v4934_v61 = vmul.f32 %v4870_v58, %v10840_v45  ;;  %v4869_v33 = vmul.f32 0.5, %v4805_v44  ;;  %v7710_v44 = vld [vmem:[%s12475_s11 + $0x164] ss:$8 sps:$4 sm:$0xff]  }
 0x9d1   : > { %7990 = vtanh.f32 %v4710_v30  ;;  %v4457_v53 = vmul.f32 %v11303_v2, %v11303_v2  ;;  %v4929_v16 = vmul.f32 %v4865_v35, %v10787_v39  ;;  %v11313_v41 = vadd.f32 %v11036_v46, %v10723_v28 }
 0x9d2   : > { %5533 = vmatpush1.bf16.msra.mxu1 %v7699_v52  ;;  %7992 = vtanh.f32 %v4712_v22  ;;  %v11317_v4 = vadd.f32 %v11044_v10, %v10726_v20  ;;  %v4990_v45 = vpack.c.bf16 %v4934_v61, %v4930_v42  ;;  %v4933_v9 = vmul.f32 %v4869_v33, %v10803_v49 }
 0x9d3   : > { %12568 = vst [vmem:[#allocation137_spill] sm:$0xff] %v11313_v41  ;;  %5534 = vmatprep.subr.bf16.mxu1 %v7704_v59  ;;  %v4521_v1 = vmul.f32 %v4457_v53, %v11303_v2  ;;  %v11324_v52 = vadd.f32 %v11046_v26, %v10728_v0  ;;  %v11326_v39 = vpop.eup %7978  ;;  %v4459_v46 = vmul.f32 %v11313_v41, %v11313_v41 }
 0x9d4   : > { %v4458_v10 = vmul.f32 %v11317_v4, %v11317_v4  ;;  %v11334_v34 = vadd.f32 %v11052_v47, %v10721_v32  ;;  %v11338_v49 = vadd.f32 %v11054_v7, %v10723_v28  ;;  %v11340_v60 = vpop.eup %7980  ;;  %5455 = vmatprep.mubr.bf16.mxu1 %v4990_v45  ;;  %v4989_v26 = vpack.c.bf16 %v4933_v9, %v4929_v16  ;;  %v7705_v47 = vld [vmem:[%s12475_s11 + $0x150] ss:$8 sps:$4 sm:$0xff]  }
 0x9d5   : > { %12569 = vst [vmem:[#allocation138_spill] sm:$0xff] %v11324_v52  ;;  %v4585_v18 = vmul.f32 0.044715, %v4521_v1  ;;  %v4460_v30 = vmul.f32 %v11324_v52, %v11324_v52  ;;  %v11346_v21 = vadd.f32 %v11064_v13, %v10726_v20  ;;  %v11349_v54 = vpop.eup %7982  ;;  %v4523_v23 = vmul.f32 %v4459_v46, %v11313_v41 }
 0x9d6   : > { %12570 = vst [vmem:[#allocation139_spill] sm:$0xff] %v11338_v49  ;;  %5535 = vmatpush1.bf16.msra.mxu1 %v7702_v24  ;;  %v4522_v7 = vmul.f32 %v4458_v10, %v11317_v4  ;;  %v4461_v59 = vmul.f32 %v11334_v34, %v11334_v34  ;;  %v4463_v58 = vmul.f32 %v11338_v49, %v11338_v49  ;;  %v11358_v22 = vpop.eup %7984 }
 0x9d7   : > { %5536 = vmatprep.subr.bf16.mxu1 %v7707_v5  ;;  %5456 = vmatmul.mubr.bf16.gmra.mrb[100].mxu1 %v4989_v26  ;;  %v4649_v13 = vadd.f32 %v4585_v18, %v11303_v2  ;;  %v4524_v42 = vmul.f32 %v4460_v30, %v11324_v52  ;;  %v4462_v35 = vmul.f32 %v11346_v21, %v11346_v21  ;;  %v4587_v33 = vmul.f32 0.044715, %v4523_v23 }
 0x9d8   : > { %v11366_v61 = vadd.f32 %v11066_v57, %v10728_v0  ;;  %v4586_v53 = vmul.f32 0.044715, %v4522_v7  ;;  %v4525_v24 = vmul.f32 %v4461_v59, %v11334_v34  ;;  %v4527_v16 = vmul.f32 %v4463_v58, %v11338_v49  ;;  %v7708_v57 = vld [vmem:[%s12475_s11 + $0x160] ss:$8 sps:$4 sm:$0xff]   ;;  %v7713_v7 = vld [vmem:[%s12475_s11 + $0x174] ss:$8 sps:$4 sm:$0xff]  }
 0x9d9   : > { %v11370_v5 = vpop.eup %7986  ;;  %v4713_v45 = vmul.f32 0.7978846, %v4649_v13  ;;  %v4588_v9 = vmul.f32 0.044715, %v4524_v42  ;;  %v4526_v1 = vmul.f32 %v4462_v35, %v11346_v21  ;;  %v4651_v26 = vadd.f32 %v4587_v33, %v11313_v41  ;;  %v7711_v42 = vld [vmem:[%s12475_s11 + $0x170] ss:$8 sps:$4 sm:$0xff]  }
 0x9da   : > { %12571 = vst [vmem:[#allocation140_spill] sm:$0xff] %v11366_v61  ;;  %v4464_v46 = vmul.f32 %v11366_v61, %v11366_v61  ;;  %5537 = vmatpush1.bf16.msra.mxu1 %v7705_v47  ;;  %v11376_v10 = vpop.eup %7988  ;;  %v4650_v18 = vadd.f32 %v4586_v53, %v11317_v4  ;;  %v4589_v30 = vmul.f32 0.044715, %v4525_v24  ;;  %v4591_v23 = vmul.f32 0.044715, %v4527_v16 }
 0x9db   : > { %5538 = vmatprep.subr.bf16.mxu1 %v7710_v44  ;;  %v11381_v59 = vpop.eup %7990  ;;  %7994 = vtanh.f32 %v4713_v45  ;;  %v4652_v58 = vadd.f32 %v4588_v9, %v11324_v52  ;;  %v4590_v13 = vmul.f32 0.044715, %v4526_v1  ;;  %v4715_v3 = vmul.f32 0.7978846, %v4651_v26  ;;  %v7716_v16 = vld [vmem:[%s12475_s11 + $0x184] ss:$8 sps:$4 sm:$0xff]  }
 0x9dc   : > { %v4528_v47 = vmul.f32 %v4464_v46, %v11366_v61  ;;  %v11386_v35 = vpop.eup %7992  ;;  %v4714_v33 = vmul.f32 0.7978846, %v4650_v18  ;;  %v4653_v53 = vadd.f32 %v4589_v30, %v11334_v34  ;;  %v4655_v24 = vadd.f32 %v4591_v23, %v11338_v49 }
 0x9dd   : > { %v4716_v44 = vmul.f32 0.7978846, %v4652_v58  ;;  %v4654_v41 = vadd.f32 %v4590_v13, %v11346_v21  ;;  %v4810_v45 = vadd.f32 1.0, %v11077_v62  ;;  %7996 = vtanh.f32 %v4715_v3  ;;  %v12572_v58 = vld [vmem:[#allocation109_spill] sm:$0xff] }
 0x9de   : > { %v4592_v14 = vmul.f32 0.044715, %v4528_v47  ;;  %5539 = vmatpush1.bf16.msra.mxu1 %v7708_v57  ;;  %v4717_v9 = vmul.f32 0.7978846, %v4653_v53  ;;  %v4719_v1 = vmul.f32 0.7978846, %v4655_v24  ;;  %7998 = vtanh.f32 %v4714_v33 }
 0x9df   : > { %v4814_v46 = vadd.f32 1.0, %v11128_v48  ;;  %5540 = vmatprep.subr.bf16.mxu1 %v7713_v7  ;;  %v4718_v26 = vmul.f32 0.7978846, %v4654_v41  ;;  %v4874_v30 = vmul.f32 0.5, %v4810_v45  ;;  %8000 = vtanh.f32 %v4716_v44  ;;  %v12573_v3 = vld [vmem:[#allocation93_spill] sm:$0xff]  ;;  %v12575_v24 = vld [vmem:[#allocation116_spill] sm:$0xff] }
 0x9e0   : > { %v4656_v18 = vadd.f32 %v4592_v14, %v11366_v61  ;;  %v4809_v13 = vadd.f32 1.0, %v12572_v58  ;;  %v4813_v47 = vadd.f32 1.0, %v11110_v12  ;;  %8002 = vtanh.f32 %v4717_v9  ;;  %v7714_v41 = vld [vmem:[%s12475_s11 + $0x180] ss:$8 sps:$4 sm:$0xff]  }
 0x9e1   : > { %v4878_v23 = vmul.f32 0.5, %v4814_v46  ;;  %v4938_v57 = vmul.f32 %v4874_v30, %v12573_v3  ;;  %v11400_v48 = vadd.f32 %v11097_v19, %v10721_v32  ;;  %8004 = vtanh.f32 %v4719_v1  ;;  %v12574_v14 = vld [vmem:[#allocation99_spill] sm:$0xff]  ;;  %v12577_v19 = vld [vmem:[#allocation118_spill] sm:$0xff]  ;;  %v12578_v1 = vld [vmem:[#allocation89_spill] sm:$0xff] }
 0x9e2   : > { %v4720_v62 = vmul.f32 0.7978846, %v4656_v18  ;;  %5541 = vmatpush1.bf16.msra.mxu1 %v7711_v42  ;;  %v4873_v33 = vmul.f32 0.5, %v4809_v13  ;;  %v4877_v53 = vmul.f32 0.5, %v4813_v47  ;;  %8006 = vtanh.f32 %v4718_v26  ;;  %v7719_v42 = vld [vmem:[%s12475_s11 + $0x194] ss:$8 sps:$4 sm:$0xff]  }
 0x9e3   : > { %v4942_v7 = vmul.f32 %v4878_v23, %v12574_v14  ;;  %5542 = vmatprep.subr.bf16.mxu1 %v7716_v16  ;;  %v4465_v12 = vmul.f32 %v11400_v48, %v11400_v48  ;;  %v11408_v44 = vadd.f32 %v12575_v24, %v10723_v28  ;;  %v11412_v45 = vadd.f32 %v12577_v19, %v10726_v20  ;;  %v12579_v16 = vld [vmem:[#allocation97_spill] sm:$0xff]  ;;  %v12580_v13 = vld [vmem:[#allocation119_spill] sm:$0xff] }
 0x9e4   : > { %8008 = vtanh.f32 %v4720_v62  ;;  %v4937_v46 = vmul.f32 %v4873_v33, %v12578_v1  ;;  %v4941_v18 = vmul.f32 %v4877_v53, %v12579_v16  ;;  %v11426_v47 = vadd.f32 %v12580_v13, %v10728_v0  ;;  %v7717_v62 = vld [vmem:[%s12475_s11 + $0x190] ss:$8 sps:$4 sm:$0xff]   ;;  %v12584_v1 = vld [vmem:[#allocation123_spill] sm:$0xff] }
 0x9e5   : > { %12576 = vst [vmem:[#allocation109_spill] sm:$0xff] %v11408_v44  ;;  %v4994_v9 = vpack.c.bf16 %v4942_v7, %v4938_v57  ;;  %v11417_v26 = vpop.eup %7994  ;;  %v4529_v30 = vmul.f32 %v4465_v12, %v11400_v48  ;;  %v4467_v23 = vmul.f32 %v11408_v44, %v11408_v44  ;;  %v4466_v58 = vmul.f32 %v11412_v45, %v11412_v45  ;;  %v12581_v57 = vld [vmem:[#allocation120_spill] sm:$0xff]  ;;  %v12582_v7 = vld [vmem:[#allocation121_spill] sm:$0xff] }
 0x9e6   : > { %5543 = vmatpush1.bf16.msra.mxu1 %v7714_v41  ;;  %v4993_v3 = vpack.c.bf16 %v4941_v18, %v4937_v46  ;;  %v11431_v14 = vadd.f32 %v12581_v57, %v10721_v32  ;;  %v11435_v33 = vadd.f32 %v12582_v7, %v10723_v28  ;;  %v11439_v53 = vadd.f32 %v11124_v36, %v10726_v20  ;;  %v7722_v12 = vld [vmem:[%s12475_s11 + $0x1a4] ss:$8 sps:$4 sm:$0xff]  }
 0x9e7   : > { %5465 = vmatprep.mubr.bf16.mxu1 %v4994_v9  ;;  %v4593_v24 = vmul.f32 0.044715, %v4529_v30  ;;  %v4531_v19 = vmul.f32 %v4467_v23, %v11408_v44  ;;  %v4530_v41 = vmul.f32 %v4466_v58, %v11412_v45  ;;  %v4468_v9 = vmul.f32 %v11426_v47, %v11426_v47  ;;  %5544 = vmatprep.subr.bf16.mxu1 %v7719_v42  ;;  %v11446_v32 = vpop.eup %7996  ;;  %v7720_v58 = vld [vmem:[%s12475_s11 + $0x1a0] ss:$8 sps:$4 sm:$0xff]  }
 0x9e8   : > { %12583 = vst [vmem:[#allocation93_spill] sm:$0xff] %v11446_v32  ;;  %5466 = vmatmul.mubr.bf16.gmra.mrb[104].mxu1 %v4993_v3  ;;  %v4469_v28 = vmul.f32 %v11431_v14, %v11431_v14  ;;  %v4471_v20 = vmul.f32 %v11435_v33, %v11435_v33  ;;  %v4470_v36 = vmul.f32 %v11439_v53, %v11439_v53  ;;  %v11458_v16 = vpop.eup %7998 }
 0x9e9   : > { %v11456_v46 = vadd.f32 %v12584_v1, %v10728_v0  ;;  %v4657_v42 = vadd.f32 %v4593_v24, %v11400_v48  ;;  %v4595_v18 = vmul.f32 0.044715, %v4531_v19  ;;  %v4594_v30 = vmul.f32 0.044715, %v4530_v41  ;;  %v11463_v13 = vpop.eup %8000  ;;  %v7725_v1 = vld [vmem:[%s12475_s11 + $0x1b4] ss:$8 sps:$4 sm:$0xff]  }
 0x9ea   : > { %v4532_v23 = vmul.f32 %v4468_v9, %v11426_v47  ;;  %5545 = vmatpush1.bf16.msra.mxu1 %v7717_v62  ;;  %v4533_v3 = vmul.f32 %v4469_v28, %v11431_v14  ;;  %v4535_v57 = vmul.f32 %v4471_v20, %v11435_v33  ;;  %v4534_v7 = vmul.f32 %v4470_v36, %v11439_v53  ;;  %v11471_v24 = vpop.eup %8002 }
 0x9eb   : > { %v4472_v0 = vmul.f32 %v11456_v46, %v11456_v46  ;;  %5546 = vmatprep.subr.bf16.mxu1 %v7722_v12  ;;  %v4721_v19 = vmul.f32 0.7978846, %v4657_v42  ;;  %v4659_v62 = vadd.f32 %v4595_v18, %v11408_v44  ;;  %v4658_v41 = vadd.f32 %v4594_v30, %v11412_v45  ;;  %v11475_v49 = vpop.eup %8004  ;;  %v7723_v18 = vld [vmem:[%s12475_s11 + $0x1b0] ss:$8 sps:$4 sm:$0xff]  }
 0x9ec   : > { %v4596_v9 = vmul.f32 0.044715, %v4532_v23  ;;  %v4597_v28 = vmul.f32 0.044715, %v4533_v3  ;;  %v4599_v20 = vmul.f32 0.044715, %v4535_v57  ;;  %v11478_v52 = vpop.eup %8006 }
 0x9ed   : > { %v4598_v36 = vmul.f32 0.044715, %v4534_v7  ;;  %v4536_v61 = vmul.f32 %v4472_v0, %v11456_v46  ;;  %8010 = vtanh.f32 %v4721_v19  ;;  %v4723_v12 = vmul.f32 0.7978846, %v4659_v62  ;;  %v7728_v7 = vld [vmem:[%s12475_s11 + $0x1c4] ss:$8 sps:$4 sm:$0xff]  }
 0x9ee   : > { %v4722_v32 = vmul.f32 0.7978846, %v4658_v41  ;;  %v4660_v42 = vadd.f32 %v4596_v9, %v11426_v47  ;;  %5547 = vmatpush1.bf16.msra.mxu1 %v7720_v58  ;;  %v11482_v44 = vpop.eup %8008  ;;  %v4661_v30 = vadd.f32 %v4597_v28, %v11431_v14  ;;  %v4663_v23 = vadd.f32 %v4599_v20, %v11435_v33 }
 0x9ef   : > { %v4662_v3 = vadd.f32 %v4598_v36, %v11439_v53  ;;  %v4600_v57 = vmul.f32 0.044715, %v4536_v61  ;;  %5548 = vmatprep.subr.bf16.mxu1 %v7725_v1  ;;  %8012 = vtanh.f32 %v4723_v12  ;;  %v4818_v19 = vadd.f32 1.0, %v11173_v29  ;;  %v7726_v61 = vld [vmem:[%s12475_s11 + $0x1c0] ss:$8 sps:$4 sm:$0xff]  }
 0x9f0   : > { %v4724_v0 = vmul.f32 0.7978846, %v4660_v42  ;;  %v4822_v62 = vadd.f32 1.0, %v11198_v31  ;;  %8014 = vtanh.f32 %v4722_v32  ;;  %v4725_v58 = vmul.f32 0.7978846, %v4661_v30  ;;  %v12585_v42 = vld [vmem:[#allocation105_spill] sm:$0xff] }
 0x9f1   : > { %v4727_v41 = vmul.f32 0.7978846, %v4663_v23  ;;  %v4726_v9 = vmul.f32 0.7978846, %v4662_v3  ;;  %v4664_v28 = vadd.f32 %v4600_v57, %v11456_v46  ;;  %v4882_v20 = vmul.f32 0.5, %v4818_v19  ;;  %v12586_v23 = vld [vmem:[#allocation111_spill] sm:$0xff] }
 0x9f2   : > { %8016 = vtanh.f32 %v4724_v0  ;;  %v4886_v36 = vmul.f32 0.5, %v4822_v62  ;;  %5549 = vmatpush1.bf16.msra.mxu1 %v7723_v18  ;;  %v4817_v1 = vadd.f32 1.0, %v11152_v15  ;;  %v4821_v12 = vadd.f32 1.0, %v11190_v17  ;;  %v7731_v31 = vld [vmem:[%s12475_s11 + $0x1d4] ss:$8 sps:$4 sm:$0xff]  }
 0x9f3   : > { %8018 = vtanh.f32 %v4725_v58  ;;  %v4826_v29 = vadd.f32 1.0, %v11260_v50  ;;  %5550 = vmatprep.subr.bf16.mxu1 %v7728_v7  ;;  %v4728_v32 = vmul.f32 0.7978846, %v4664_v28  ;;  %v4946_v30 = vmul.f32 %v4882_v20, %v12585_v42  ;;  %v7729_v7 = vld [vmem:[%s12475_s11 + $0x1d0] ss:$8 sps:$4 sm:$0xff]   ;;  %v12587_v19 = vld [vmem:[#allocation103_spill] sm:$0xff] }
 0x9f4   : > { %8020 = vtanh.f32 %v4727_v41  ;;  %v4950_v3 = vmul.f32 %v4886_v36, %v12586_v23  ;;  %v4881_v18 = vmul.f32 0.5, %v4817_v1  ;;  %v4885_v57 = vmul.f32 0.5, %v4821_v12  ;;  %v12588_v58 = vld [vmem:[#allocation108_spill] sm:$0xff] }
 0x9f5   : > { %8022 = vtanh.f32 %v4726_v9  ;;  %v4830_v0 = vadd.f32 1.0, %v11289_v40  ;;  %v4890_v17 = vmul.f32 0.5, %v4826_v29  ;;  %v4825_v50 = vadd.f32 1.0, %v11227_v37  ;;  %v7734_v9 = vld [vmem:[%s12475_s11 + $0x1e4] ss:$8 sps:$4 sm:$0xff]  }
 0x9f6   : > { %8024 = vtanh.f32 %v4728_v32  ;;  %v4998_v15 = vpack.c.bf16 %v4950_v3, %v4946_v30  ;;  %5551 = vmatpush1.bf16.msra.mxu1 %v7726_v61  ;;  %v4945_v62 = vmul.f32 %v4881_v18, %v12587_v19  ;;  %v4949_v41 = vmul.f32 %v4885_v57, %v12588_v58  ;;  %v12589_v40 = vld [vmem:[#allocation124_spill] sm:$0xff] }
 0x9f7   : > { %v4894_v28 = vmul.f32 0.5, %v4830_v0  ;;  %v4829_v20 = vadd.f32 1.0, %v11280_v51  ;;  %5552 = vmatprep.subr.bf16.mxu1 %v7731_v31  ;;  %v8011_v36 = vpop.eup %8010  ;;  %v4954_v1 = vmul.f32 %v4890_v17, %v12589_v40  ;;  %v4889_v12 = vmul.f32 0.5, %v4825_v50  ;;  %v12590_v31 = vld [vmem:[#allocation115_spill] sm:$0xff] }
 0x9f8   : > { %5475 = vmatprep.mubr.bf16.mxu1 %v4998_v15  ;;  %v4834_v29 = vadd.f32 1.0, %v11349_v54  ;;  %v4838_v37 = vadd.f32 1.0, %v11381_v59  ;;  %v4997_v61 = vpack.c.bf16 %v4949_v41, %v4945_v62  ;;  %v4833_v30 = vadd.f32 1.0, %v11326_v39  ;;  %v7732_v0 = vld [vmem:[%s12475_s11 + $0x1e0] ss:$8 sps:$4 sm:$0xff]  }
 0x9f9   : > { %v4958_v32 = vmul.f32 %v4894_v28, %v11168_v55  ;;  %v4893_v42 = vmul.f32 0.5, %v4829_v20  ;;  %v11510_v51 = vpop.eup %8012  ;;  %v4953_v23 = vmul.f32 %v4889_v12, %v12590_v31  ;;  %v4837_v57 = vadd.f32 1.0, %v11370_v5  ;;  %v7737_v39 = vld [vmem:[%s12475_s11 + $0x1f4] ss:$8 sps:$4 sm:$0xff]  }
 0x9fa   : > { %v4898_v3 = vmul.f32 0.5, %v4834_v29  ;;  %v4902_v18 = vmul.f32 0.5, %v4838_v37  ;;  %5553 = vmatpush1.bf16.msra.mxu1 %v7729_v7  ;;  %v8015_v54 = vpop.eup %8014  ;;  %v4897_v55 = vmul.f32 0.5, %v4833_v30  ;;  %v4842_v17 = vadd.f32 1.0, %v11458_v16 }
 0x9fb   : > { %5476 = vmatmul.mubr.bf16.gmra.mrb[108].mxu1 %v4997_v61  ;;  %v5002_v59 = vpack.c.bf16 %v4958_v32, %v4954_v1  ;;  %v4957_v15 = vmul.f32 %v4893_v42, %v11150_v56  ;;  %5554 = vmatprep.subr.bf16.mxu1 %v7734_v9  ;;  %v4901_v5 = vmul.f32 0.5, %v4837_v57  ;;  %v4846_v7 = vadd.f32 1.0, %v11478_v52  ;;  %v7735_v1 = vld [vmem:[%s12475_s11 + $0x1f0] ss:$8 sps:$4 sm:$0xff]  }
 0x9fc   : > { %v11518_v50 = vpop.eup %8016  ;;  %v4962_v19 = vmul.f32 %v4898_v3, %v11218_v8  ;;  %v4966_v62 = vmul.f32 %v4902_v18, %v11252_v43  ;;  %v11524_v56 = vmul.f32 %v4897_v55, %v11204_v25  ;;  %v4906_v28 = vmul.f32 0.5, %v4842_v17  ;;  %v12591_v18 = vld [vmem:[#allocation88_spill] sm:$0xff] }
 0x9fd   : > { %v8019_v58 = vpop.eup %8018  ;;  %5485 = vmatprep.mubr.bf16.mxu1 %v5002_v59  ;;  %v5001_v41 = vpack.c.bf16 %v4957_v15, %v4953_v23  ;;  %v4841_v16 = vadd.f32 1.0, %v11417_v26  ;;  %v4965_v8 = vmul.f32 %v4901_v5, %v11240_v38  ;;  %v4910_v40 = vmul.f32 0.5, %v4846_v7  ;;  %v12593_v17 = vld [vmem:[#allocation100_spill] sm:$0xff] }
 0x9fe   : > { %v11527_v20 = vpop.eup %8020  ;;  %v5006_v9 = vpack.c.bf16 %v4966_v62, %v4962_v19  ;;  %v4845_v43 = vadd.f32 1.0, %v11471_v24  ;;  %5555 = vmatpush1.bf16.msra.mxu1 %v7732_v0  ;;  %v4970_v12 = vmul.f32 %v4906_v28, %v11317_v4  ;;  %v4850_v37 = vadd.f32 1.0, %v8015_v54  ;;  %v12594_v62 = vld [vmem:[#allocation107_spill] sm:$0xff] }
 0x9ff   : > { %v8023_v52 = vpop.eup %8022  ;;  %v4905_v29 = vmul.f32 0.5, %v4841_v16  ;;  %v4849_v25 = vadd.f32 1.0, %v8011_v36  ;;  %5556 = vmatprep.subr.bf16.mxu1 %v7737_v39  ;;  %v5005_v26 = vpack.c.bf16 %v4965_v8, %v11524_v56  ;;  %v4974_v32 = vmul.f32 %v4910_v40, %v11346_v21  ;;  %v12598_v8 = vld [vmem:[#allocation83_spill] sm:$0xff] }
 0xa00   : > { %v11533_v61 = vpop.eup %8024  ;;  %v4909_v42 = vmul.f32 0.5, %v4845_v43  ;;  %v4854_v38 = vadd.f32 1.0, %v8023_v52  ;;  %v4914_v24 = vmul.f32 0.5, %v4850_v37  ;;  %v4853_v31 = vadd.f32 1.0, %v8019_v58 }
 0xa01   : > { %v11538_v30 = vmul.f32 %v4905_v29, %v11303_v2  ;;  %v4913_v23 = vmul.f32 0.5, %v4849_v25  ;;  %v5010_v3 = vpack.c.bf16 %v4974_v32, %v4970_v12  ;;  %v4796_v57 = vadd.f32 1.0, %v12591_v18  ;;  %v12592_v2 = vld [vmem:[#allocation91_spill] sm:$0xff]  ;;  %v12600_v29 = vld [vmem:[#allocation114_spill] sm:$0xff] }
 0xa02   : > { %v11541_v4 = vmul.f32 %v4909_v42, %v11334_v34  ;;  %v4918_v36 = vmul.f32 0.5, %v4854_v38  ;;  %5557 = vmatpush1.bf16.msra.mxu1 %v7735_v1  ;;  %v11545_v0 = vmul.f32 %v4914_v24, %v11412_v45  ;;  %v4917_v21 = vmul.f32 0.5, %v4853_v31  ;;  %v12599_v1 = vld [vmem:[#allocation85_spill] sm:$0xff]  ;;  %v12601_v25 = vld [vmem:[#allocation126_spill] sm:$0xff]  ;;  %v12602_v38 = vld [vmem:[#allocation87_spill] sm:$0xff] }
 0xa03   : > { %5486 = vmatmul.mubr.bf16.gmra.mrb[112].mxu1 %v5001_v41  ;;  %v11548_v54 = vmul.f32 %v4913_v23, %v11400_v48  ;;  %v4800_v59 = vadd.f32 1.0, %v12592_v2  ;;  %v4860_v55 = vmul.f32 0.5, %v4796_v57  ;;  %v4804_v39 = vadd.f32 1.0, %v12593_v17  ;;  %v12595_v48 = vld [vmem:[#allocation96_spill] sm:$0xff] }
 0xa04   : > { %5495 = vmatprep.mubr.bf16.mxu1 %v5006_v9  ;;  %v5009_v15 = vpack.c.bf16 %v11541_v4, %v11538_v30  ;;  %v11554_v34 = vmul.f32 %v4918_v36, %v11439_v53  ;;  %v11558_v19 = vmul.f32 %v4917_v21, %v11431_v14  ;;  %v4808_v5 = vadd.f32 1.0, %v12594_v62  ;;  %v12596_v41 = vld [vmem:[#allocation48_spill] sm:$0xff]  ;;  %v12597_v53 = vld [vmem:[#allocation101_spill] sm:$0xff]  ;;  %v12605_v36 = vld [vmem:[#allocation86_spill] sm:$0xff] }
 0xa05   : > { %v4864_v45 = vmul.f32 0.5, %v4800_v59  ;;  %v4803_v7 = vadd.f32 1.0, %v12595_v48  ;;  %v11565_v56 = vmul.f32 %v4860_v55, %v12596_v41  ;;  %v4868_v28 = vmul.f32 0.5, %v4804_v39  ;;  %v12603_v24 = vld [vmem:[#allocation84_spill] sm:$0xff]  ;;  %v12606_v21 = vld [vmem:[#allocation122_spill] sm:$0xff] }
 0xa06   : > { %v5014_v58 = vpack.c.bf16 %v11554_v34, %v11545_v0  ;;  %v4807_v16 = vadd.f32 1.0, %v12597_v53  ;;  %v5013_v9 = vpack.c.bf16 %v11558_v19, %v11548_v54  ;;  %v4872_v40 = vmul.f32 0.5, %v4808_v5  ;;  %v12604_v23 = vld [vmem:[#allocation112_spill] sm:$0xff]  ;;  %v12607_v55 = vld [vmem:[#allocation130_spill] sm:$0xff] }
 0xa07   : > { %v11571_v14 = vmul.f32 %v4864_v45, %v12598_v8  ;;  %v4867_v43 = vmul.f32 0.5, %v4803_v7  ;;  %v11574_v52 = vmul.f32 %v4868_v28, %v12599_v1  ;;  %v4812_v37 = vadd.f32 1.0, %v12600_v29  ;;  %v12608_v62 = vld [vmem:[#allocation94_spill] sm:$0xff]  ;;  %v12611_v8 = vld [vmem:[#allocation127_spill] sm:$0xff]  ;;  %v12614_v29 = vld [vmem:[#allocation136_spill] sm:$0xff] }
 0xa08   : > { %v4871_v12 = vmul.f32 0.5, %v4807_v16  ;;  %v4816_v32 = vadd.f32 1.0, %v12601_v25  ;;  %v11581_v30 = vmul.f32 %v4872_v40, %v12602_v38  ;;  %v4811_v4 = vadd.f32 1.0, %v12604_v23  ;;  %v12609_v48 = vld [vmem:[#allocation102_spill] sm:$0xff]  ;;  %v12613_v1 = vld [vmem:[#allocation131_spill] sm:$0xff]  ;;  %v12616_v38 = vld [vmem:[#allocation113_spill] sm:$0xff] }
 0xa09   : > { %v4988_v42 = vpack.c.bf16 %v11571_v14, %v11565_v56  ;;  %v11584_v31 = vmul.f32 %v4867_v43, %v12603_v24  ;;  %v4876_v57 = vmul.f32 0.5, %v4812_v37  ;;  %v4815_v2 = vadd.f32 1.0, %v12606_v21  ;;  %v12615_v25 = vld [vmem:[#allocation106_spill] sm:$0xff]  ;;  %v12617_v21 = vld [vmem:[#allocation133_spill] sm:$0xff] }
 0xa0a   : > { %v11588_v18 = vmul.f32 %v4871_v12, %v12605_v36  ;;  %v4880_v0 = vmul.f32 0.5, %v4816_v32  ;;  %v4992_v59 = vpack.c.bf16 %v11581_v30, %v11574_v52  ;;  %v4875_v34 = vmul.f32 0.5, %v4811_v4 }
 0xa0b   : > { %5496 = vmatmul.mubr.bf16.gmra.mrb[116].mxu1 %v5005_v26  ;;  %v4820_v17 = vadd.f32 1.0, %v12607_v55  ;;  %v4824_v39 = vadd.f32 1.0, %v11211_v6  ;;  %v11598_v5 = vmul.f32 %v4876_v57, %v12608_v62  ;;  %v4879_v41 = vmul.f32 0.5, %v4815_v2  ;;  %v12610_v26 = vld [vmem:[#allocation92_spill] sm:$0xff] }
 0xa0c   : > { %5505 = vmatprep.mubr.bf16.mxu1 %v5010_v3  ;;  %v4991_v45 = vpack.c.bf16 %v11588_v18, %v11584_v31  ;;  %v11601_v7 = vmul.f32 %v4880_v0, %v12609_v48  ;;  %v11604_v28 = vmul.f32 %v4875_v34, %v12610_v26  ;;  %v4819_v40 = vadd.f32 1.0, %v12611_v8  ;;  %v12612_v3 = vld [vmem:[#allocation98_spill] sm:$0xff]  ;;  %v12618_v55 = vld [vmem:[#allocation104_spill] sm:$0xff]  ;;  %v12620_v26 = vld [vmem:[#allocation125_spill] sm:$0xff] }
 0xa0d   : > { %v4884_v53 = vmul.f32 0.5, %v4820_v17  ;;  %v4888_v16 = vmul.f32 0.5, %v4824_v39  ;;  %v11610_v43 = vmul.f32 %v4879_v41, %v12612_v3  ;;  %v4823_v12 = vadd.f32 1.0, %v12613_v1  ;;  %v12619_v48 = vld [vmem:[#allocation110_spill] sm:$0xff]  ;;  %v12621_v8 = vld [vmem:[#allocation129_spill] sm:$0xff] }
 0xa0e   : > { %v4996_v6 = vpack.c.bf16 %v11601_v7, %v11598_v5  ;;  %v4828_v37 = vadd.f32 1.0, %v12614_v29  ;;  %v4883_v23 = vmul.f32 0.5, %v4819_v40  ;;  %v4832_v4 = vadd.f32 1.0, %v11295_v27  ;;  %v12639_v5 = vld [vmem:[#allocation53_spill] sm:$0xff] }
 0xa0f   : > { %v11615_v32 = vmul.f32 %v4884_v53, %v12615_v25  ;;  %v11618_v24 = vmul.f32 %v4888_v16, %v12616_v38  ;;  %v4995_v36 = vpack.c.bf16 %v11610_v43, %v11604_v28  ;;  %v4887_v57 = vmul.f32 0.5, %v4823_v12  ;;  %v12640_v43 = vld [vmem:[#allocation51_spill] sm:$0xff] }
 0xa10   : > { %v4892_v0 = vmul.f32 0.5, %v4828_v37  ;;  %v4827_v2 = vadd.f32 1.0, %v12617_v21  ;;  %v11627_v17 = vmul.f32 %v4883_v23, %v12618_v55  ;;  %v4896_v39 = vmul.f32 0.5, %v4832_v4  ;;  %v12622_v37 = vld [vmem:[#allocation117_spill] sm:$0xff]  ;;  %v12623_v4 = vld [vmem:[#allocation128_spill] sm:$0xff] }
 0xa11   : > { %v5000_v34 = vpack.c.bf16 %v11618_v24, %v11615_v32  ;;  %v4831_v62 = vadd.f32 1.0, %v11285_v63  ;;  %v4951_v41 = vmul.f32 %v4887_v57, %v12619_v48  ;;  %v4836_v16 = vadd.f32 1.0, %v11358_v22 }
 0xa12   : > { %v4956_v27 = vmul.f32 %v4892_v0, %v12620_v26  ;;  %v4891_v53 = vmul.f32 0.5, %v4827_v2  ;;  %v4960_v40 = vmul.f32 %v4896_v39, %v12621_v8  ;;  %v4840_v1 = vadd.f32 1.0, %v11386_v35  ;;  %v12624_v2 = vld [vmem:[#allocation135_spill] sm:$0xff] }
 0xa13   : > { %5506 = vmatmul.mubr.bf16.gmra.mrb[120].mxu1 %v5009_v15  ;;  %v4895_v3 = vmul.f32 0.5, %v4831_v62  ;;  %v4835_v12 = vadd.f32 1.0, %v11340_v60  ;;  %v4999_v29 = vpack.c.bf16 %v4951_v41, %v11627_v17  ;;  %v4900_v25 = vmul.f32 0.5, %v4836_v16  ;;  %v12625_v17 = vld [vmem:[#allocation132_spill] sm:$0xff]  ;;  %v12626_v62 = vld [vmem:[#allocation93_spill] sm:$0xff] }
 0xa14   : > { %5515 = vmatprep.mubr.bf16.mxu1 %v5014_v58  ;;  %v4955_v63 = vmul.f32 %v4891_v53, %v12622_v37  ;;  %v4839_v38 = vadd.f32 1.0, %v11376_v10  ;;  %v5004_v23 = vpack.c.bf16 %v4960_v40, %v4956_v27  ;;  %v4904_v22 = vmul.f32 0.5, %v4840_v1  ;;  %v12627_v10 = vld [vmem:[#allocation134_spill] sm:$0xff]  ;;  %v12629_v1 = vld [vmem:[#allocation140_spill] sm:$0xff] }
 0xa15   : > { %v4959_v57 = vmul.f32 %v4895_v3, %v12623_v4  ;;  %v4899_v15 = vmul.f32 0.5, %v4835_v12  ;;  %v4964_v0 = vmul.f32 %v4900_v25, %v11225_v11  ;;  %v4844_v35 = vadd.f32 1.0, %v11463_v13  ;;  %v12628_v40 = vld [vmem:[#allocation138_spill] sm:$0xff]  ;;  %v12631_v4 = vld [vmem:[#allocation139_spill] sm:$0xff] }
 0xa16   : > { %v4903_v21 = vmul.f32 0.5, %v4839_v38  ;;  %v4848_v60 = vadd.f32 1.0, %v11482_v44  ;;  %v4968_v55 = vmul.f32 %v4904_v22, %v12624_v2  ;;  %v4843_v48 = vadd.f32 1.0, %v12626_v62 }
 0xa17   : > { %v5003_v58 = vpack.c.bf16 %v4959_v57, %v4955_v63  ;;  %v4963_v39 = vmul.f32 %v4899_v15, %v12625_v17  ;;  %v4908_v26 = vmul.f32 0.5, %v4844_v35  ;;  %v4847_v53 = vadd.f32 1.0, %v11475_v49 }
 0xa18   : > { %v4967_v41 = vmul.f32 %v4903_v21, %v12627_v10  ;;  %v4912_v27 = vmul.f32 0.5, %v4848_v60  ;;  %v5008_v16 = vpack.c.bf16 %v4968_v55, %v4964_v0  ;;  %v4907_v11 = vmul.f32 0.5, %v4843_v48  ;;  %v12634_v60 = vld [vmem:[#allocation90_spill] sm:$0xff] }
 0xa19   : > { %v4852_v8 = vadd.f32 1.0, %v11518_v50  ;;  %v4856_v13 = vadd.f32 1.0, %v11533_v61  ;;  %v4972_v3 = vmul.f32 %v4908_v26, %v12628_v40  ;;  %v4911_v37 = vmul.f32 0.5, %v4847_v53  ;;  %v12630_v61 = vld [vmem:[#allocation137_spill] sm:$0xff]  ;;  %v12646_v40 = vld [vmem:[#allocation56_spill] sm:$0xff] }
 0xa1a   : > { %v5007_v44 = vpack.c.bf16 %v4967_v41, %v4963_v39  ;;  %v4976_v12 = vmul.f32 %v4912_v27, %v12629_v1  ;;  %v4851_v49 = vadd.f32 1.0, %v11510_v51  ;;  %v4971_v38 = vmul.f32 %v4907_v11, %v12630_v61  ;;  %v12632_v51 = vld [vmem:[#allocation109_spill] sm:$0xff] }
 0xa1b   : > { %5516 = vmatmul.mubr.bf16.gmra.mrb[124].mxu1 %v5013_v9  ;;  %v4916_v63 = vmul.f32 0.5, %v4852_v8  ;;  %v4920_v25 = vmul.f32 0.5, %v4856_v13  ;;  %v4975_v57 = vmul.f32 %v4911_v37, %v12631_v4  ;;  %v4855_v22 = vadd.f32 1.0, %v11527_v20  ;;  %v12638_v20 = vld [vmem:[#allocation50_spill] sm:$0xff]  ;;  %v12643_v41 = vld [vmem:[#allocation57_spill] sm:$0xff] }
 0xa1c   : > { %5558 = vmatprep.mubr.bf16.mxu1 %v4988_v42  ;;  %v5012_v50 = vpack.c.bf16 %v4976_v12, %v4972_v3  ;;  %v4915_v19 = vmul.f32 0.5, %v4851_v49  ;;  %v12633_v42 = vld [vmem:[#allocation95_spill] sm:$0xff]  ;;  %v12645_v13 = vld [vmem:[#allocation58_spill] sm:$0xff]  ;;  %v12647_v61 = vld [vmem:[#allocation61_spill] sm:$0xff] }
 0xa1d   : > { %v4980_v15 = vmul.f32 %v4916_v63, %v11426_v47  ;;  %v4984_v54 = vmul.f32 %v4920_v25, %v11456_v46  ;;  %v5011_v9 = vpack.c.bf16 %v4975_v57, %v4971_v38  ;;  %v4919_v0 = vmul.f32 0.5, %v4855_v22  ;;  %v5081_v47 = vld [vmem:[%s1099_s21] sm:$0x3] }
 0xa1e   : > { %v4979_v35 = vmul.f32 %v4915_v19, %v12632_v51  ;;  %v12635_v2 = vpack.c.bf16 %v12633_v42, %v12634_v60  ;;  %v11693_v52 = vrot.slane %v5081_v47, %v12638_v20  ;;  %v12648_v22 = vld [vmem:[#allocation59_spill] sm:$0xff]  ;;  %v12649_v19 = vld [vmem:[#allocation62_spill] sm:$0xff] }
 0xa1f   : > { %v5016_v21 = vpack.c.bf16 %v4984_v54, %v4980_v15  ;;  %v4983_v56 = vmul.f32 %v4919_v0, %v11435_v33  ;;  %v12637_v33 = vld [vmem:[#allocation49_spill] sm:$0xff]  ;;  %v12650_v0 = vld [vmem:[#allocation60_spill] sm:$0xff] }
 0xa20   : > { %v11690_v46 = vrot.slane %v5081_v47, %v12637_v33  ;;  %v12651_v47 = vld [vmem:[#allocation65_spill] sm:$0xff] }
 0xa21   : > { %v5015_v14 = vpack.c.bf16 %v4983_v56, %v4979_v35 }
 0xa23   : > { %5559 = vmatmul.mubr.bf16.vlgmr.msra.gmra.mrb[96].mxu1 %v12635_v2 }
 0xa24   : > { %5568 = vmatprep.mubr.bf16.mxu1 %v4992_v59 }
 0xa2b   : > { %5569 = vmatmul.mubr.bf16.gmra.mrb[100].mxu1 %v4991_v45 }
 0xa2c   : > { %5578 = vmatprep.mubr.bf16.mxu1 %v4996_v6 }
 0xa33   : > { %5579 = vmatmul.mubr.bf16.gmra.mrb[104].mxu1 %v4995_v36  ;;  %v12641_v36 = vld [vmem:[#allocation54_spill] sm:$0xff] }
 0xa34   : > { %5588 = vmatprep.mubr.bf16.mxu1 %v5000_v34 }
 0xa3b   : > { %5589 = vmatmul.mubr.bf16.gmra.mrb[108].mxu1 %v4999_v29  ;;  %v12642_v29 = vld [vmem:[#allocation52_spill] sm:$0xff] }
 0xa3c   : > { %5598 = vmatprep.mubr.bf16.mxu1 %v5004_v23 }
 0xa43   : > { %5599 = vmatmul.mubr.bf16.gmra.mrb[112].mxu1 %v5003_v58 }
 0xa44   : > { %5608 = vmatprep.mubr.bf16.mxu1 %v5008_v16  ;;  %v12644_v16 = vld [vmem:[#allocation55_spill] sm:$0xff] }
 0xa4b   : > { %5609 = vmatmul.mubr.bf16.gmra.mrb[116].mxu1 %v5007_v44 }
 0xa4c   : > { %5618 = vmatprep.mubr.bf16.mxu1 %v5012_v50 }
 0xa53   : > { %5619 = vmatmul.mubr.bf16.gmra.mrb[120].mxu1 %v5011_v9 }
 0xa54   : > { %5628 = vmatprep.mubr.bf16.mxu1 %v5016_v21 }
 0xa5b   : > { %5629 = vmatmul.mubr.bf16.gmra.mrb[124].mxu1 %v5015_v14 }
 0xaf6   : > { %v5560_v30 = vpop.f32.mrb[96].mxu1 }
 0xaf7   : > { %v7136_v31 = vadd.f32 %v5560_v30, %v11690_v46  ;;  %v5562_v18 = vpop.f32.mrb[97].mxu1 }
 0xaf8   : > { %v7137_v59 = vadd.f32 %v5562_v18, %v11693_v52  ;;  %v5564_v45 = vpop.f32.mrb[98].mxu1 }
 0xaf9   : > { %v11698_v7 = vadd.f32 %v7136_v31, %v12639_v5  ;;  %v7138_v28 = vadd.f32 %v5564_v45, %v11690_v46  ;;  %v5566_v6 = vpop.f32.mrb[99].mxu1 }
 0xafa   : > { %v11702_v32 = vadd.f32 %v7137_v59, %v12640_v43  ;;  %v7139_v24 = vadd.f32 %v5566_v6, %v11693_v52  ;;  %v12652_v59 = vld [vmem:[#allocation63_spill] sm:$0xff]  ;;  %v12654_v43 = vld [vmem:[#allocation64_spill] sm:$0xff] }
 0xafb   : > { %v11706_v34 = vadd.f32 %v7138_v28, %v12641_v36  ;;  %v12653_v28 = vld [vmem:[#allocation66_spill] sm:$0xff] }
 0xafc   : > { %v11709_v23 = vadd.f32 %v7139_v24, %v12642_v29  ;;  %v5673_v58 = vadd.f32 %v11702_v32, %v11698_v7 }
 0xafe   : > { %v5570_v55 = vpop.f32.mrb[100].mxu1  ;;  %5674 = vadd.xlane.f32.xlu0 %v5673_v58  ;;  %v5676_v17 = vadd.f32 %v11709_v23, %v11706_v34 }
 0xaff   : > { %v7140_v39 = vadd.f32 %v5570_v55, %v11690_v46  ;;  %v5572_v62 = vpop.f32.mrb[101].mxu1 }
 0xb00   : > { %v7141_v48 = vadd.f32 %v5572_v62, %v11693_v52  ;;  %v5574_v10 = vpop.f32.mrb[102].mxu1  ;;  %5677 = vadd.xlane.f32.xlu1 %v5676_v17 }
 0xb01   : > { %v11718_v26 = vadd.f32 %v7140_v39, %v12643_v41  ;;  %v7142_v27 = vadd.f32 %v5574_v10, %v11690_v46  ;;  %v5576_v53 = vpop.f32.mrb[103].mxu1 }
 0xb02   : > { %v11722_v11 = vadd.f32 %v7141_v48, %v12644_v16  ;;  %v7143_v8 = vadd.f32 %v5576_v53, %v11693_v52  ;;  %v12655_v48 = vld [vmem:[#allocation69_spill] sm:$0xff]  ;;  %v12656_v53 = vld [vmem:[#allocation67_spill] sm:$0xff] }
 0xb03   : > { %v11726_v44 = vadd.f32 %v7142_v27, %v12645_v13  ;;  %v12657_v13 = vld [vmem:[#allocation70_spill] sm:$0xff] }
 0xb04   : > { %v11729_v3 = vadd.f32 %v7143_v8, %v12646_v40  ;;  %v5679_v1 = vadd.f32 %v11722_v11, %v11718_v26 }
 0xb06   : > { %v5580_v12 = vpop.f32.mrb[104].mxu1  ;;  %5680 = vadd.xlane.f32.xlu0 %v5679_v1  ;;  %v5682_v37 = vadd.f32 %v11729_v3, %v11726_v44  ;;  %v12658_v1 = vld [vmem:[#allocation68_spill] sm:$0xff] }
 0xb07   : > { %v7144_v63 = vadd.f32 %v5580_v12, %v11690_v46  ;;  %v5582_v25 = vpop.f32.mrb[105].mxu1 }
 0xb08   : > { %v7145_v49 = vadd.f32 %v5582_v25, %v11693_v52  ;;  %v5584_v50 = vpop.f32.mrb[106].mxu1  ;;  %5683 = vadd.xlane.f32.xlu1 %v5682_v37 }
 0xb09   : > { %v11738_v38 = vadd.f32 %v7144_v63, %v12647_v61  ;;  %v7146_v4 = vadd.f32 %v5584_v50, %v11690_v46  ;;  %v5586_v57 = vpop.f32.mrb[107].mxu1 }
 0xb0a   : > { %v11742_v15 = vadd.f32 %v7145_v49, %v12648_v22  ;;  %v7147_v54 = vadd.f32 %v5586_v57, %v11693_v52  ;;  %v12659_v57 = vld [vmem:[#allocation73_spill] sm:$0xff] }
 0xb0b   : > { %v11746_v9 = vadd.f32 %v7146_v4, %v12649_v19 }
 0xb0c   : > { %v11749_v21 = vadd.f32 %v7147_v54, %v12650_v0  ;;  %v5685_v51 = vadd.f32 %v11742_v15, %v11738_v38  ;;  %v12660_v0 = vld [vmem:[#allocation71_spill] sm:$0xff] }
 0xb0e   : > { %v5590_v35 = vpop.f32.mrb[108].mxu1  ;;  %5686 = vadd.xlane.f32.xlu0 %v5685_v51  ;;  %v5688_v56 = vadd.f32 %v11749_v21, %v11746_v9 }
 0xb0f   : > { %v7148_v14 = vadd.f32 %v5590_v35, %v11690_v46  ;;  %v5592_v42 = vpop.f32.mrb[109].mxu1 }
 0xb10   : > { %v7149_v60 = vadd.f32 %v5592_v42, %v11693_v52  ;;  %v5594_v2 = vpop.f32.mrb[110].mxu1  ;;  %5689 = vadd.xlane.f32.xlu1 %v5688_v56  ;;  %v12661_v56 = vld [vmem:[#allocation74_spill] sm:$0xff]  ;;  %v12662_v42 = vld [vmem:[#allocation72_spill] sm:$0xff] }
 0xb11   : > { %v11758_v30 = vadd.f32 %v7148_v14, %v12651_v47  ;;  %v7150_v31 = vadd.f32 %v5594_v2, %v11690_v46  ;;  %v5596_v18 = vpop.f32.mrb[111].mxu1 }
 0xb12   : > { %v11762_v45 = vadd.f32 %v7149_v60, %v12652_v59  ;;  %v7151_v5 = vadd.f32 %v5596_v18, %v11693_v52 }
 0xb13   : > { %v11766_v6 = vadd.f32 %v7150_v31, %v12653_v28 }
 0xb14   : > { %v11769_v24 = vadd.f32 %v7151_v5, %v12654_v43  ;;  %v5691_v36 = vadd.f32 %v11762_v45, %v11758_v30  ;;  %v12663_v43 = vld [vmem:[#allocation77_spill] sm:$0xff] }
 0xb16   : > { %v5600_v29 = vpop.f32.mrb[112].mxu1  ;;  %5692 = vadd.xlane.f32.xlu0 %v5691_v36  ;;  %v5694_v58 = vadd.f32 %v11769_v24, %v11766_v6 }
 0xb17   : > { %v7152_v55 = vadd.f32 %v5600_v29, %v11690_v46  ;;  %v5602_v17 = vpop.f32.mrb[113].mxu1 }
 0xb18   : > { %v7153_v39 = vadd.f32 %v5602_v17, %v11693_v52  ;;  %v5604_v62 = vpop.f32.mrb[114].mxu1  ;;  %5695 = vadd.xlane.f32.xlu1 %v5694_v58 }
 0xb19   : > { %v11778_v10 = vadd.f32 %v7152_v55, %v12655_v48  ;;  %v7154_v41 = vadd.f32 %v5604_v62, %v11690_v46  ;;  %v5606_v27 = vpop.f32.mrb[115].mxu1  ;;  %v12664_v55 = vld [vmem:[#allocation75_spill] sm:$0xff]  ;;  %v12665_v62 = vld [vmem:[#allocation78_spill] sm:$0xff] }
 0xb1a   : > { %v11782_v16 = vadd.f32 %v7153_v39, %v12656_v53  ;;  %v7155_v8 = vadd.f32 %v5606_v27, %v11693_v52 }
 0xb1b   : > { %v11786_v40 = vadd.f32 %v7154_v41, %v12657_v13  ;;  %v12666_v41 = vld [vmem:[#allocation76_spill] sm:$0xff] }
 0xb1c   : > { %v11789_v12 = vadd.f32 %v7155_v8, %v12658_v1  ;;  %v5697_v37 = vadd.f32 %v11782_v16, %v11778_v10 }
 0xb1e   : > { %v5610_v63 = vpop.f32.mrb[116].mxu1  ;;  %5698 = vadd.xlane.f32.xlu0 %v5697_v37  ;;  %v5700_v25 = vadd.f32 %v11789_v12, %v11786_v40 }
 0xb1f   : > { %v7156_v49 = vadd.f32 %v5610_v63, %v11690_v46  ;;  %v5612_v50 = vpop.f32.mrb[117].mxu1 }
 0xb20   : > { %v7157_v61 = vadd.f32 %v5612_v50, %v11693_v52  ;;  %v5614_v4 = vpop.f32.mrb[118].mxu1  ;;  %5701 = vadd.xlane.f32.xlu1 %v5700_v25 }
 0xb21   : > { %v11798_v22 = vadd.f32 %v7156_v49, %v12659_v57  ;;  %v7158_v54 = vadd.f32 %v5614_v4, %v11690_v46  ;;  %v5616_v19 = vpop.f32.mrb[119].mxu1  ;;  %v12667_v49 = vld [vmem:[#allocation81_spill] sm:$0xff]  ;;  %v12668_v57 = vld [vmem:[#allocation79_spill] sm:$0xff] }
 0xb22   : > { %v11802_v51 = vadd.f32 %v7157_v61, %v12660_v0  ;;  %v7159_v35 = vadd.f32 %v5616_v19, %v11693_v52  ;;  %v12669_v0 = vld [vmem:[#allocation82_spill] sm:$0xff] }
 0xb23   : > { %v11806_v14 = vadd.f32 %v7158_v54, %v12661_v56  ;;  %v12670_v56 = vld [vmem:[#allocation80_spill] sm:$0xff] }
 0xb24   : > { %v11809_v60 = vadd.f32 %v7159_v35, %v12662_v42  ;;  %v5703_v2 = vadd.f32 %v11802_v51, %v11798_v22 }
 0xb26   : > { %v5620_v47 = vpop.f32.mrb[120].mxu1  ;;  %5704 = vadd.xlane.f32.xlu0 %v5703_v2  ;;  %v5706_v31 = vadd.f32 %v11809_v60, %v11806_v14 }
 0xb27   : > { %v7160_v18 = vadd.f32 %v5620_v47, %v11690_v46  ;;  %v5622_v59 = vpop.f32.mrb[121].mxu1 }
 0xb28   : > { %v7161_v5 = vadd.f32 %v5622_v59, %v11693_v52  ;;  %v5624_v28 = vpop.f32.mrb[122].mxu1  ;;  %5707 = vadd.xlane.f32.xlu1 %v5706_v31 }
 0xb29   : > { %v11818_v36 = vadd.f32 %v7160_v18, %v12663_v43  ;;  %v7162_v29 = vadd.f32 %v5624_v28, %v11690_v46  ;;  %v5626_v58 = vpop.f32.mrb[123].mxu1 }
 0xb2a   : > { %v11822_v17 = vadd.f32 %v7161_v5, %v12664_v55  ;;  %v7163_v39 = vadd.f32 %v5626_v58, %v11693_v52 }
 0xb2b   : > { %v11826_v48 = vadd.f32 %v7162_v29, %v12665_v62 }
 0xb2c   : > { %v11829_v27 = vadd.f32 %v7163_v39, %v12666_v41  ;;  %v5709_v53 = vadd.f32 %v11822_v17, %v11818_v36 }
 0xb2e   : > { %v5630_v8 = vpop.f32.mrb[124].mxu1  ;;  %5710 = vadd.xlane.f32.xlu0 %v5709_v53  ;;  %v5712_v13 = vadd.f32 %v11829_v27, %v11826_v48 }
 0xb2f   : > { %v7164_v1 = vadd.f32 %v5630_v8, %v11690_v46  ;;  %v5632_v37 = vpop.f32.mrb[125].mxu1 }
 0xb30   : > { %v7165_v63 = vadd.f32 %v5632_v37, %v11693_v52  ;;  %v5634_v25 = vpop.f32.mrb[126].mxu1  ;;  %5713 = vadd.xlane.f32.xlu1 %v5712_v13 }
 0xb31   : > { %v11838_v50 = vadd.f32 %v7164_v1, %v12667_v49  ;;  %v7166_v61 = vadd.f32 %v5634_v25, %v11690_v46  ;;  %v5636_v4 = vpop.f32.mrb[127].mxu1 }
 0xb32   : > { %v11842_v54 = vadd.f32 %v7165_v63, %v12668_v57  ;;  %v7167_v19 = vadd.f32 %v5636_v4, %v11693_v52 }
 0xb33   : > { %v11846_v35 = vadd.f32 %v7166_v61, %v12669_v0 }
 0xb34   : > { %v11849_v42 = vadd.f32 %v7167_v19, %v12670_v56  ;;  %v5715_v2 = vadd.f32 %v11842_v54, %v11838_v50 }
 0xb36   : > { %5716 = vadd.xlane.f32.xlu0 %v5715_v2  ;;  %v5718_v47 = vadd.f32 %v11849_v42, %v11846_v35 }
 0xb38   : > { %5719 = vadd.xlane.f32.xlu1 %v5718_v47 }
 0xb8b   : > { %v5675_v46 = vpop.xlane.xlu0 %5674 }
 0xb8c   : > { %v5721_v31 = vmul.f32 0.00390625, %v5675_v46 }
 0xb8d   : > { %v5678_v18 = vpop.xlane.xlu1 %5677 }
 0xb8e   : > { %v11856_v59 = vsub.f32 %v11698_v7, %v5721_v31  ;;  %v11859_v52 = vsub.f32 %v11702_v32, %v5721_v31  ;;  %v5722_v5 = vmul.f32 0.00390625, %v5678_v18 }
 0xb90   : > { %v5769_v28 = vmul.f32 %v11856_v59, %v11856_v59  ;;  %v5770_v43 = vmul.f32 %v11859_v52, %v11859_v52  ;;  %v11866_v29 = vsub.f32 %v11706_v34, %v5722_v5  ;;  %v11869_v58 = vsub.f32 %v11709_v23, %v5722_v5 }
 0xb92   : > { %v5771_v7 = vmul.f32 %v11866_v29, %v11866_v29  ;;  %v5772_v32 = vmul.f32 %v11869_v58, %v11869_v58  ;;  %v5801_v55 = vadd.f32 %v5770_v43, %v5769_v28 }
 0xb93   : > { %v5681_v39 = vpop.xlane.xlu0 %5680 }
 0xb94   : > { %v5723_v62 = vmul.f32 0.00390625, %v5681_v39  ;;  %5802 = vadd.xlane.f32.xlu0 %v5801_v55  ;;  %v5804_v41 = vadd.f32 %v5772_v32, %v5771_v7 }
 0xb95   : > { %v5684_v53 = vpop.xlane.xlu1 %5683 }
 0xb96   : > { %v11876_v8 = vsub.f32 %v11718_v26, %v5723_v62  ;;  %v11879_v34 = vsub.f32 %v11722_v11, %v5723_v62  ;;  %v5724_v23 = vmul.f32 0.00390625, %v5684_v53  ;;  %5805 = vadd.xlane.f32.xlu1 %v5804_v41 }
 0xb98   : > { %v5773_v13 = vmul.f32 %v11876_v8, %v11876_v8  ;;  %v5774_v1 = vmul.f32 %v11879_v34, %v11879_v34  ;;  %v11886_v37 = vsub.f32 %v11726_v44, %v5724_v23  ;;  %v11889_v63 = vsub.f32 %v11729_v3, %v5724_v23 }
 0xb9a   : > { %v5775_v26 = vmul.f32 %v11886_v37, %v11886_v37  ;;  %v5776_v11 = vmul.f32 %v11889_v63, %v11889_v63  ;;  %v5807_v25 = vadd.f32 %v5774_v1, %v5773_v13 }
 0xb9b   : > { %v5687_v49 = vpop.xlane.xlu0 %5686 }
 0xb9c   : > { %v5725_v61 = vmul.f32 0.00390625, %v5687_v49  ;;  %5808 = vadd.xlane.f32.xlu0 %v5807_v25  ;;  %v5810_v4 = vadd.f32 %v5776_v11, %v5775_v26 }
 0xb9d   : > { %v5690_v57 = vpop.xlane.xlu1 %5689 }
 0xb9e   : > { %v11896_v19 = vsub.f32 %v11738_v38, %v5725_v61  ;;  %v11899_v44 = vsub.f32 %v11742_v15, %v5725_v61  ;;  %v5726_v3 = vmul.f32 0.00390625, %v5690_v57  ;;  %5811 = vadd.xlane.f32.xlu1 %v5810_v4 }
 0xba0   : > { %v5777_v0 = vmul.f32 %v11896_v19, %v11896_v19  ;;  %v5778_v56 = vmul.f32 %v11899_v44, %v11899_v44  ;;  %v11906_v2 = vsub.f32 %v11746_v9, %v5726_v3  ;;  %v11909_v47 = vsub.f32 %v11749_v21, %v5726_v3 }
 0xba2   : > { %v5779_v38 = vmul.f32 %v11906_v2, %v11906_v2  ;;  %v5780_v15 = vmul.f32 %v11909_v47, %v11909_v47  ;;  %v5813_v46 = vadd.f32 %v5778_v56, %v5777_v0 }
 0xba3   : > { %v5693_v31 = vpop.xlane.xlu0 %5692 }
 0xba4   : > { %v5727_v18 = vmul.f32 0.00390625, %v5693_v31  ;;  %5814 = vadd.xlane.f32.xlu0 %v5813_v46  ;;  %v5816_v5 = vadd.f32 %v5780_v15, %v5779_v38 }
 0xba5   : > { %v5696_v28 = vpop.xlane.xlu1 %5695 }
 0xba6   : > { %v11916_v43 = vsub.f32 %v11758_v30, %v5727_v18  ;;  %v11919_v9 = vsub.f32 %v11762_v45, %v5727_v18  ;;  %v5728_v21 = vmul.f32 0.00390625, %v5696_v28  ;;  %5817 = vadd.xlane.f32.xlu1 %v5816_v5 }
 0xba8   : > { %v5781_v7 = vmul.f32 %v11916_v43, %v11916_v43  ;;  %v5782_v32 = vmul.f32 %v11919_v9, %v11919_v9  ;;  %v11926_v55 = vsub.f32 %v11766_v6, %v5728_v21  ;;  %v11929_v39 = vsub.f32 %v11769_v24, %v5728_v21 }
 0xbaa   : > { %v5783_v30 = vmul.f32 %v11926_v55, %v11926_v55  ;;  %v5784_v45 = vmul.f32 %v11929_v39, %v11929_v39  ;;  %v5819_v62 = vadd.f32 %v5782_v32, %v5781_v7 }
 0xbab   : > { %v5699_v41 = vpop.xlane.xlu0 %5698 }
 0xbac   : > { %v5729_v53 = vmul.f32 0.00390625, %v5699_v41  ;;  %5820 = vadd.xlane.f32.xlu0 %v5819_v62  ;;  %v5822_v23 = vadd.f32 %v5784_v45, %v5783_v30 }
 0xbad   : > { %v5702_v13 = vpop.xlane.xlu1 %5701 }
 0xbae   : > { %v11936_v1 = vsub.f32 %v11778_v10, %v5729_v53  ;;  %v11939_v6 = vsub.f32 %v11782_v16, %v5729_v53  ;;  %v5730_v24 = vmul.f32 0.00390625, %v5702_v13  ;;  %5823 = vadd.xlane.f32.xlu1 %v5822_v23 }
 0xbb0   : > { %v5785_v26 = vmul.f32 %v11936_v1, %v11936_v1  ;;  %v5786_v11 = vmul.f32 %v11939_v6, %v11939_v6  ;;  %v11946_v25 = vsub.f32 %v11786_v40, %v5730_v24  ;;  %v11949_v49 = vsub.f32 %v11789_v12, %v5730_v24 }
 0xbb2   : > { %v5787_v10 = vmul.f32 %v11946_v25, %v11946_v25  ;;  %v5788_v16 = vmul.f32 %v11949_v49, %v11949_v49  ;;  %v5825_v61 = vadd.f32 %v5786_v11, %v5785_v26 }
 0xbb3   : > { %v5705_v4 = vpop.xlane.xlu0 %5704 }
 0xbb4   : > { %v5731_v57 = vmul.f32 0.00390625, %v5705_v4  ;;  %5826 = vadd.xlane.f32.xlu0 %v5825_v61  ;;  %v5828_v3 = vadd.f32 %v5788_v16, %v5787_v10 }
 0xbb5   : > { %v5708_v0 = vpop.xlane.xlu1 %5707 }
 0xbb6   : > { %v11956_v56 = vsub.f32 %v11798_v22, %v5731_v57  ;;  %v11959_v40 = vsub.f32 %v11802_v51, %v5731_v57  ;;  %v5732_v12 = vmul.f32 0.00390625, %v5708_v0  ;;  %5829 = vadd.xlane.f32.xlu1 %v5828_v3 }
 0xbb8   : > { %v5789_v38 = vmul.f32 %v11956_v56, %v11956_v56  ;;  %v5790_v15 = vmul.f32 %v11959_v40, %v11959_v40  ;;  %v11966_v46 = vsub.f32 %v11806_v14, %v5732_v12  ;;  %v11969_v31 = vsub.f32 %v11809_v60, %v5732_v12 }
 0xbba   : > { %v5791_v22 = vmul.f32 %v11966_v46, %v11966_v46  ;;  %v5792_v51 = vmul.f32 %v11969_v31, %v11969_v31  ;;  %v5831_v18 = vadd.f32 %v5790_v15, %v5789_v38 }
 0xbbb   : > { %v5711_v5 = vpop.xlane.xlu0 %5710 }
 0xbbc   : > { %v5733_v28 = vmul.f32 0.00390625, %v5711_v5  ;;  %5832 = vadd.xlane.f32.xlu0 %v5831_v18  ;;  %v5834_v21 = vadd.f32 %v5792_v51, %v5791_v22  ;;  %v5671_v5 = vld [vmem:[%s1103_s9] sm:$0x3] }
 0xbbd   : > { %v5714_v7 = vpop.xlane.xlu1 %5713 }
 0xbbe   : > { %v11976_v32 = vsub.f32 %v11818_v36, %v5733_v28  ;;  %v11979_v14 = vsub.f32 %v11822_v17, %v5733_v28  ;;  %v5734_v60 = vmul.f32 0.00390625, %v5714_v7  ;;  %5835 = vadd.xlane.f32.xlu1 %v5834_v21  ;;  %v5672_v7 = vld [vmem:[%s1107_s27] sm:$0x3] }
 0xbc0   : > { %v5793_v30 = vmul.f32 %v11976_v32, %v11976_v32  ;;  %v5794_v45 = vmul.f32 %v11979_v14, %v11979_v14  ;;  %v11986_v62 = vsub.f32 %v11826_v48, %v5734_v60  ;;  %v11989_v41 = vsub.f32 %v11829_v27, %v5734_v60 }
 0xbc2   : > { %v5795_v36 = vmul.f32 %v11986_v62, %v11986_v62  ;;  %v5796_v17 = vmul.f32 %v11989_v41, %v11989_v41  ;;  %v5837_v53 = vadd.f32 %v5794_v45, %v5793_v30  ;;  %v12026_v30 = vrot.slane %v5671_v5, %v12637_v33 }
 0xbc3   : > { %v5717_v23 = vpop.xlane.xlu0 %5716  ;;  %v12029_v45 = vrot.slane %v5671_v5, %v12638_v20 }
 0xbc4   : > { %v5735_v13 = vmul.f32 0.00390625, %v5717_v23  ;;  %5838 = vadd.xlane.f32.xlu0 %v5837_v53  ;;  %v5840_v24 = vadd.f32 %v5796_v17, %v5795_v36  ;;  %v12032_v17 = vrot.slane %v5672_v7, %v12637_v33  ;;  %v12035_v53 = vrot.slane %v5672_v7, %v12638_v20 }
 0xbc5   : > { %v5720_v26 = vpop.xlane.xlu1 %5719 }
 0xbc6   : > { %v11996_v11 = vsub.f32 %v11838_v50, %v5735_v13  ;;  %v11999_v48 = vsub.f32 %v11842_v54, %v5735_v13  ;;  %v5736_v27 = vmul.f32 0.00390625, %v5720_v26  ;;  %5841 = vadd.xlane.f32.xlu1 %v5840_v24 }
 0xbc8   : > { %v5797_v10 = vmul.f32 %v11996_v11, %v11996_v11  ;;  %v5798_v16 = vmul.f32 %v11999_v48, %v11999_v48  ;;  %v12006_v61 = vsub.f32 %v11846_v35, %v5736_v27  ;;  %v12009_v4 = vsub.f32 %v11849_v42, %v5736_v27 }
 0xbca   : > { %v5799_v50 = vmul.f32 %v12006_v61, %v12006_v61  ;;  %v5800_v54 = vmul.f32 %v12009_v4, %v12009_v4  ;;  %v5843_v57 = vadd.f32 %v5798_v16, %v5797_v10 }
 0xbcc   : > { %5844 = vadd.xlane.f32.xlu0 %v5843_v57  ;;  %v5846_v3 = vadd.f32 %v5800_v54, %v5799_v50 }
 0xbce   : > { %5847 = vadd.xlane.f32.xlu1 %v5846_v3 }
 0xc21   : > { %v5803_v0 = vpop.xlane.xlu0 %5802 }
 0xc22   : > { %v5849_v12 = vmul.f32 0.00390625, %v5803_v0 }
 0xc23   : > { %v5806_v38 = vpop.xlane.xlu1 %5805 }
 0xc24   : > { %v5865_v35 = vadd.f32 1e-05, %v5849_v12  ;;  %v5850_v15 = vmul.f32 0.00390625, %v5806_v38 }
 0xc26   : > { %8026 = vrsqrt.f32 %v5865_v35  ;;  %v5866_v42 = vadd.f32 1e-05, %v5850_v15 }
 0xc28   : > { %8028 = vrsqrt.f32 %v5866_v42 }
 0xc29   : > { %v5809_v22 = vpop.xlane.xlu0 %5808 }
 0xc2a   : > { %v5851_v51 = vmul.f32 0.00390625, %v5809_v22 }
 0xc2b   : > { %v5812_v18 = vpop.xlane.xlu1 %5811 }
 0xc2c   : > { %v5867_v28 = vadd.f32 1e-05, %v5851_v51  ;;  %v5852_v21 = vmul.f32 0.00390625, %v5812_v18 }
 0xc2e   : > { %8030 = vrsqrt.f32 %v5867_v28  ;;  %v5868_v60 = vadd.f32 1e-05, %v5852_v21 }
 0xc30   : > { %v8027_v36 = vpop.eup %8026  ;;  %8032 = vrsqrt.f32 %v5868_v60 }
 0xc31   : > { %v5897_v23 = vmul.f32 %v8027_v36, %v11856_v59  ;;  %v5898_v13 = vmul.f32 %v8027_v36, %v11859_v52  ;;  %v5815_v24 = vpop.xlane.xlu0 %5814 }
 0xc32   : > { %v8029_v26 = vpop.eup %8028  ;;  %v5853_v27 = vmul.f32 0.00390625, %v5815_v24 }
 0xc33   : > { %v5940_v10 = vmul.f32 %v12026_v30, %v5897_v23  ;;  %v5941_v16 = vmul.f32 %v12029_v45, %v5898_v13  ;;  %v5899_v50 = vmul.f32 %v8029_v26, %v11866_v29  ;;  %v5900_v54 = vmul.f32 %v8029_v26, %v11869_v58  ;;  %v5818_v33 = vpop.xlane.xlu1 %5817 }
 0xc34   : > { %v5869_v57 = vadd.f32 1e-05, %v5853_v27  ;;  %v5854_v3 = vmul.f32 0.00390625, %v5818_v33 }
 0xc35   : > { %v12044_v20 = vadd.f32 %v12032_v17, %v5940_v10  ;;  %v12047_v59 = vadd.f32 %v12035_v53, %v5941_v16  ;;  %v5942_v52 = vmul.f32 %v12026_v30, %v5899_v50  ;;  %v5943_v0 = vmul.f32 %v12029_v45, %v5900_v54 }
 0xc36   : > { %8034 = vrsqrt.f32 %v5869_v57  ;;  %v5870_v12 = vadd.f32 1e-05, %v5854_v3 }
 0xc37   : > { %6015 = vst [vmem:[#allocation2] sm:$0xff] %v12044_v20  ;;  %6016 = vst [vmem:[#allocation2 + $0x8] sm:$0xff] %v12047_v59  ;;  %v5985_v29 = vadd.f32 %v12032_v17, %v5942_v52  ;;  %v5986_v58 = vadd.f32 %v12035_v53, %v5943_v0 }
 0xc38   : > { %v8031_v38 = vpop.eup %8030  ;;  %8036 = vrsqrt.f32 %v5870_v12 }
 0xc39   : > { %6017 = vst [vmem:[#allocation2 + $0x10] sm:$0xff] %v5985_v29  ;;  %6018 = vst [vmem:[#allocation2 + $0x18] sm:$0xff] %v5986_v58  ;;  %v5901_v35 = vmul.f32 %v8031_v38, %v11876_v8  ;;  %v5902_v15 = vmul.f32 %v8031_v38, %v11879_v34  ;;  %v5821_v42 = vpop.xlane.xlu0 %5820 }
 0xc3a   : > { %v8033_v22 = vpop.eup %8032  ;;  %v5855_v51 = vmul.f32 0.00390625, %v5821_v42 }
 0xc3b   : > { %v5944_v18 = vmul.f32 %v12026_v30, %v5901_v35  ;;  %v5945_v5 = vmul.f32 %v12029_v45, %v5902_v15  ;;  %v5903_v28 = vmul.f32 %v8033_v22, %v11886_v37  ;;  %v5904_v21 = vmul.f32 %v8033_v22, %v11889_v63  ;;  %v5824_v7 = vpop.xlane.xlu1 %5823 }
 0xc3c   : > { %v5871_v60 = vadd.f32 1e-05, %v5855_v51  ;;  %v5856_v36 = vmul.f32 0.00390625, %v5824_v7 }
 0xc3d   : > { %v5987_v23 = vadd.f32 %v12032_v17, %v5944_v18  ;;  %v5988_v8 = vadd.f32 %v12035_v53, %v5945_v5  ;;  %v5946_v34 = vmul.f32 %v12026_v30, %v5903_v28  ;;  %v5947_v13 = vmul.f32 %v12029_v45, %v5904_v21 }
 0xc3e   : > { %8038 = vrsqrt.f32 %v5871_v60  ;;  %v5872_v24 = vadd.f32 1e-05, %v5856_v36 }
 0xc3f   : > { %6019 = vst [vmem:[#allocation2 + $0x20] sm:$0xff] %v5987_v23  ;;  %6020 = vst [vmem:[#allocation2 + $0x28] sm:$0xff] %v5988_v8  ;;  %v5989_v26 = vadd.f32 %v12032_v17, %v5946_v34  ;;  %v5990_v37 = vadd.f32 %v12035_v53, %v5947_v13 }
 0xc40   : > { %v8035_v63 = vpop.eup %8034  ;;  %8040 = vrsqrt.f32 %v5872_v24 }
 0xc41   : > { %6021 = vst [vmem:[#allocation2 + $0x30] sm:$0xff] %v5989_v26  ;;  %6022 = vst [vmem:[#allocation2 + $0x38] sm:$0xff] %v5990_v37  ;;  %v5905_v27 = vmul.f32 %v8035_v63, %v11896_v19  ;;  %v5906_v10 = vmul.f32 %v8035_v63, %v11899_v44  ;;  %v5827_v16 = vpop.xlane.xlu0 %5826 }
 0xc42   : > { %v8037_v50 = vpop.eup %8036  ;;  %v5857_v54 = vmul.f32 0.00390625, %v5827_v16 }
 0xc43   : > { %v5948_v33 = vmul.f32 %v12026_v30, %v5905_v27  ;;  %v5949_v57 = vmul.f32 %v12029_v45, %v5906_v10  ;;  %v5907_v3 = vmul.f32 %v8037_v50, %v11906_v2  ;;  %v5908_v52 = vmul.f32 %v8037_v50, %v11909_v47  ;;  %v5830_v0 = vpop.xlane.xlu1 %5829 }
 0xc44   : > { %v5873_v12 = vadd.f32 1e-05, %v5857_v54  ;;  %v5858_v29 = vmul.f32 0.00390625, %v5830_v0 }
 0xc45   : > { %v5991_v58 = vadd.f32 %v12032_v17, %v5948_v33  ;;  %v5992_v19 = vadd.f32 %v12035_v53, %v5949_v57  ;;  %v5950_v44 = vmul.f32 %v12026_v30, %v5907_v3  ;;  %v5951_v38 = vmul.f32 %v12029_v45, %v5908_v52 }
 0xc46   : > { %8042 = vrsqrt.f32 %v5873_v12  ;;  %v5874_v35 = vadd.f32 1e-05, %v5858_v29 }
 0xc47   : > { %6023 = vst [vmem:[#allocation2 + $0x40] sm:$0xff] %v5991_v58  ;;  %6024 = vst [vmem:[#allocation2 + $0x48] sm:$0xff] %v5992_v19  ;;  %v5993_v15 = vadd.f32 %v12032_v17, %v5950_v44  ;;  %v5994_v2 = vadd.f32 %v12035_v53, %v5951_v38 }
 0xc48   : > { %v8039_v47 = vpop.eup %8038  ;;  %8044 = vrsqrt.f32 %v5874_v35 }
 0xc49   : > { %6025 = vst [vmem:[#allocation2 + $0x50] sm:$0xff] %v5993_v15  ;;  %6026 = vst [vmem:[#allocation2 + $0x58] sm:$0xff] %v5994_v2  ;;  %v5909_v42 = vmul.f32 %v8039_v47, %v11916_v43  ;;  %v5910_v22 = vmul.f32 %v8039_v47, %v11919_v9  ;;  %v5833_v51 = vpop.xlane.xlu0 %5832 }
 0xc4a   : > { %v8041_v18 = vpop.eup %8040  ;;  %v5859_v5 = vmul.f32 0.00390625, %v5833_v51 }
 0xc4b   : > { %v5952_v28 = vmul.f32 %v12026_v30, %v5909_v42  ;;  %v5953_v21 = vmul.f32 %v12029_v45, %v5910_v22  ;;  %v5911_v7 = vmul.f32 %v8041_v18, %v11926_v55  ;;  %v5912_v60 = vmul.f32 %v8041_v18, %v11929_v39  ;;  %v5836_v36 = vpop.xlane.xlu1 %5835 }
 0xc4c   : > { %v5875_v23 = vadd.f32 1e-05, %v5859_v5  ;;  %v5860_v8 = vmul.f32 0.00390625, %v5836_v36 }
 0xc4d   : > { %v5995_v34 = vadd.f32 %v12032_v17, %v5952_v28  ;;  %v5996_v43 = vadd.f32 %v12035_v53, %v5953_v21  ;;  %v5954_v9 = vmul.f32 %v12026_v30, %v5911_v7  ;;  %v5955_v13 = vmul.f32 %v12029_v45, %v5912_v60 }
 0xc4e   : > { %8046 = vrsqrt.f32 %v5875_v23  ;;  %v5876_v24 = vadd.f32 1e-05, %v5860_v8 }
 0xc4f   : > { %6027 = vst [vmem:[#allocation2 + $0x60] sm:$0xff] %v5995_v34  ;;  %6028 = vst [vmem:[#allocation2 + $0x68] sm:$0xff] %v5996_v43  ;;  %v5997_v26 = vadd.f32 %v12032_v17, %v5954_v9  ;;  %v5998_v55 = vadd.f32 %v12035_v53, %v5955_v13 }
 0xc50   : > { %v8043_v39 = vpop.eup %8042  ;;  %8048 = vrsqrt.f32 %v5876_v24 }
 0xc51   : > { %6029 = vst [vmem:[#allocation2 + $0x70] sm:$0xff] %v5997_v26  ;;  %6030 = vst [vmem:[#allocation2 + $0x78] sm:$0xff] %v5998_v55  ;;  %v5913_v37 = vmul.f32 %v8043_v39, %v11936_v1  ;;  %v5914_v63 = vmul.f32 %v8043_v39, %v11939_v6  ;;  %v5839_v27 = vpop.xlane.xlu0 %5838 }
 0xc52   : > { %v8045_v10 = vpop.eup %8044  ;;  %v5861_v16 = vmul.f32 0.00390625, %v5839_v27 }
 0xc53   : > { %v5956_v50 = vmul.f32 %v12026_v30, %v5913_v37  ;;  %v5957_v54 = vmul.f32 %v12029_v45, %v5914_v63  ;;  %v5915_v33 = vmul.f32 %v8045_v10, %v11946_v25  ;;  %v5916_v57 = vmul.f32 %v8045_v10, %v11949_v49  ;;  %v5842_v3 = vpop.xlane.xlu1 %5841 }
 0xc54   : > { %v5877_v52 = vadd.f32 1e-05, %v5861_v16  ;;  %v5862_v0 = vmul.f32 0.00390625, %v5842_v3 }
 0xc55   : > { %v5999_v12 = vadd.f32 %v12032_v17, %v5956_v50  ;;  %v6000_v1 = vadd.f32 %v12035_v53, %v5957_v54  ;;  %v5958_v6 = vmul.f32 %v12026_v30, %v5915_v33  ;;  %v5959_v29 = vmul.f32 %v12029_v45, %v5916_v57 }
 0xc56   : > { %8050 = vrsqrt.f32 %v5877_v52  ;;  %v5878_v58 = vadd.f32 1e-05, %v5862_v0  ;;  %v8091_v0 = vld [vmem:[#allocation17] sm:$0xff] (!%p6895_p9)  }
 0xc57   : > { %6031 = vst [vmem:[#allocation2 + $0x80] sm:$0xff] %v5999_v12  ;;  %6032 = vst [vmem:[#allocation2 + $0x88] sm:$0xff] %v6000_v1  ;;  %v6001_v19 = vadd.f32 %v12032_v17, %v5958_v6  ;;  %v6002_v25 = vadd.f32 %v12035_v53, %v5959_v29  ;;  %v8094_v12 = vld [vmem:[#allocation17 + $0x50] sm:$0xff] (!%p6895_p9)   ;;  %v8097_v1 = vld [vmem:[#allocation17 + $0x18] sm:$0xff] (!%p6895_p9)  }
 0xc58   : > { %v8047_v49 = vpop.eup %8046  ;;  %8052 = vrsqrt.f32 %v5878_v58  ;;  %v8098_v6 = vld [vmem:[#allocation17 + $0x60] sm:$0xff] (!%p6895_p9)   ;;  %v8101_v58 = vld [vmem:[#allocation17 + $0x28] sm:$0xff] (!%p6895_p9)  }
 0xc59   : > { %6033 = vst [vmem:[#allocation2 + $0x90] sm:$0xff] %v6001_v19  ;;  %6034 = vst [vmem:[#allocation2 + $0x98] sm:$0xff] %v6002_v25  ;;  %v5917_v44 = vmul.f32 %v8047_v49, %v11956_v56  ;;  %v5918_v38 = vmul.f32 %v8047_v49, %v11959_v40  ;;  %v5845_v35 = vpop.xlane.xlu0 %5844  ;;  %v8099_v29 = vld [vmem:[#allocation17 + $0x20] sm:$0xff] (!%p6895_p9)   ;;  %v8102_v19 = vld [vmem:[#allocation17 + $0x70] sm:$0xff] (!%p6895_p9)  }
 0xc5a   : > { %v8049_v15 = vpop.eup %8048  ;;  %v5863_v2 = vmul.f32 0.00390625, %v5845_v35  ;;  %v8103_v25 = vld [vmem:[#allocation17 + $0x30] sm:$0xff] (!%p6895_p9)   ;;  %v8104_v49 = vld [vmem:[#allocation17 + $0x78] sm:$0xff] (!%p6895_p9)  }
 0xc5b   : > { %v5960_v47 = vmul.f32 %v12026_v30, %v5917_v44  ;;  %v5961_v42 = vmul.f32 %v12029_v45, %v5918_v38  ;;  %v5919_v22 = vmul.f32 %v8049_v15, %v11966_v46  ;;  %v5920_v51 = vmul.f32 %v8049_v15, %v11969_v31  ;;  %v5848_v18 = vpop.xlane.xlu1 %5847  ;;  %v8105_v44 = vld [vmem:[#allocation17 + $0x38] sm:$0xff] (!%p6895_p9)  }
 0xc5c   : > { %v5879_v5 = vadd.f32 1e-05, %v5863_v2  ;;  %v5864_v28 = vmul.f32 0.00390625, %v5848_v18  ;;  %v6051_v38 = vpack.c.bf16 (!%p6895_p9), %v12044_v20, %v12044_v20  ;;  %v6085_v15 = vld [vmem:[%s12674_s3] sm:$0x1] (!%p6895_p9) }
 0xc5d   : > { %v6003_v21 = vadd.f32 %v12032_v17, %v5960_v47  ;;  %v6004_v56 = vadd.f32 %v12035_v53, %v5961_v42  ;;  %v5962_v40 = vmul.f32 %v12026_v30, %v5919_v22  ;;  %v5963_v7 = vmul.f32 %v12029_v45, %v5920_v51 }
 0xc5e   : > { %8054 = vrsqrt.f32 %v5879_v5  ;;  %v5880_v60 = vadd.f32 1e-05, %v5864_v28 }
 0xc5f   : > { %6035 = vst [vmem:[#allocation2 + $0xa0] sm:$0xff] %v6003_v21  ;;  %6036 = vst [vmem:[#allocation2 + $0xa8] sm:$0xff] %v6004_v56  ;;  %v6005_v36 = vadd.f32 %v12032_v17, %v5962_v40  ;;  %v6006_v46 = vadd.f32 %v12035_v53, %v5963_v7 }
 0xc60   : > { %v8051_v31 = vpop.eup %8050  ;;  %8056 = vrsqrt.f32 %v5880_v60 }
 0xc61   : > { %6037 = vst [vmem:[#allocation2 + $0xb0] sm:$0xff] %v6005_v36  ;;  %6038 = vst [vmem:[#allocation2 + $0xb8] sm:$0xff] %v6006_v46  ;;  %v5921_v23 = vmul.f32 %v8051_v31, %v11976_v32  ;;  %v5922_v8 = vmul.f32 %v8051_v31, %v11979_v14 }
 0xc62   : > { %v8053_v34 = vpop.eup %8052 }
 0xc63   : > { %v5964_v43 = vmul.f32 %v12026_v30, %v5921_v23  ;;  %v5965_v9 = vmul.f32 %v12029_v45, %v5922_v8  ;;  %v5923_v13 = vmul.f32 %v8053_v34, %v11986_v62  ;;  %v5924_v24 = vmul.f32 %v8053_v34, %v11989_v41 }
 0xc65   : > { %v6007_v26 = vadd.f32 %v12032_v17, %v5964_v43  ;;  %v6008_v55 = vadd.f32 %v12035_v53, %v5965_v9  ;;  %v5966_v39 = vmul.f32 %v12026_v30, %v5923_v13  ;;  %v5967_v37 = vmul.f32 %v12029_v45, %v5924_v24 }
 0xc67   : > { %6039 = vst [vmem:[#allocation2 + $0xc0] sm:$0xff] %v6007_v26  ;;  %6040 = vst [vmem:[#allocation2 + $0xc8] sm:$0xff] %v6008_v55  ;;  %v6009_v32 = vadd.f32 %v12032_v17, %v5966_v39  ;;  %v6010_v14 = vadd.f32 %v12035_v53, %v5967_v37 }
 0xc68   : > { %v8055_v63 = vpop.eup %8054 }
 0xc69   : > { %6041 = vst [vmem:[#allocation2 + $0xd0] sm:$0xff] %v6009_v32  ;;  %6042 = vst [vmem:[#allocation2 + $0xd8] sm:$0xff] %v6010_v14  ;;  %v5925_v62 = vmul.f32 %v8055_v63, %v11996_v11  ;;  %v5926_v41 = vmul.f32 %v8055_v63, %v11999_v48 }
 0xc6a   : > { %v8057_v27 = vpop.eup %8056 }
 0xc6b   : > { %v5968_v10 = vmul.f32 %v12026_v30, %v5925_v62  ;;  %v5969_v16 = vmul.f32 %v12029_v45, %v5926_v41  ;;  %v5927_v50 = vmul.f32 %v8057_v27, %v12006_v61  ;;  %v5928_v54 = vmul.f32 %v8057_v27, %v12009_v4  ;;  %6050 = sbr.rel (%p6895_p9) target bundleno = 3430 (0xd66), region = 144  ;;  %v8090_v61 = vld [vmem:[#allocation17 + $0x40] sm:$0xff] (!%p6895_p9)  }
 0xc6c   : > { %v6052_v4 = vpack.c.bf16 (!%p6895_p9), %v12047_v59, %v12047_v59  ;;  %6986 = vmatprep.subr.bf16.mxu0 (!%p6895_p9), %v8090_v61  ;;  %v8100_v59 = vld [vmem:[#allocation17 + $0x68] sm:$0xff] (!%p6895_p9)  }
 0xc6d   : > { %v6011_v33 = vadd.f32 %v12032_v17, %v5968_v10  ;;  %v6012_v57 = vadd.f32 %v12035_v53, %v5969_v16  ;;  %v5970_v3 = vmul.f32 %v12026_v30, %v5927_v50  ;;  %v5971_v52 = vmul.f32 %v12029_v45, %v5928_v54  ;;  %v8092_v30 = vld [vmem:[#allocation17 + $0x48] sm:$0xff] (!%p6895_p9)   ;;  %6987 = vmatpush3.bf16.msra.mxu0 (!%p6895_p9), %v8091_v0 }
 0xc6e   : > { %6214 = vmatprep.mubr.bf16.mxu0 (!%p6895_p9), %v6052_v4  ;;  %v8093_v45 = vld [vmem:[#allocation17 + $0x8] sm:$0xff] (!%p6895_p9)   ;;  %6988 = vmatprep.subr.bf16.mxu0 (!%p6895_p9), %v8092_v30 }
 0xc6f   : > { %6043 = vst [vmem:[#allocation2 + $0xe0] sm:$0xff] %v6011_v33  ;;  %6044 = vst [vmem:[#allocation2 + $0xe8] sm:$0xff] %v6012_v57  ;;  %v6013_v11 = vadd.f32 %v12032_v17, %v5970_v3  ;;  %v6014_v48 = vadd.f32 %v12035_v53, %v5971_v52  ;;  %v8095_v17 = vld [vmem:[#allocation17 + $0x10] sm:$0xff] (!%p6895_p9)   ;;  %v8096_v53 = vld [vmem:[#allocation17 + $0x58] sm:$0xff] (!%p6895_p9)  }
 0xc71   : > { %6045 = vst [vmem:[#allocation2 + $0xf0] sm:$0xff] %v6013_v11  ;;  %6046 = vst [vmem:[#allocation2 + $0xf8] sm:$0xff] %v6014_v48  ;;  %6989 = vmatpush3.bf16.msra.mxu0 (!%p6895_p9), %v8093_v45 }
 0xc72   : > { %6990 = vmatprep.subr.bf16.mxu0 %v8094_v12 }
 0xc75   : > { %6991 = vmatpush3.bf16.msra.mxu0 %v8095_v17 }
 0xc76   : > { %6992 = vmatprep.subr.bf16.mxu0 %v8096_v53 }
 0xc79   : > { %6993 = vmatpush3.bf16.msra.mxu0 %v8097_v1 }
 0xc7a   : > { %6994 = vmatprep.subr.bf16.mxu0 %v8098_v6 }
 0xc7d   : > { %6995 = vmatpush3.bf16.msra.mxu0 %v8099_v29 }
 0xc7e   : > { %6996 = vmatprep.subr.bf16.mxu0 %v8100_v59 }
 0xc81   : > { %6997 = vmatpush3.bf16.msra.mxu0 %v8101_v58 }
 0xc82   : > { %6998 = vmatprep.subr.bf16.mxu0 %v8102_v19 }
 0xc85   : > { %6999 = vmatpush3.bf16.msra.mxu0 %v8103_v25 }
 0xc86   : > { %7000 = vmatprep.subr.bf16.mxu0 %v8104_v49 }
 0xc89   : > { %7001 = vmatpush3.bf16.msra.mxu0 %v8105_v44 }
 0xc8c   : > { %6215 = vmatmul.mubr.bf16.vlgmr.msra.gmra.mrb[0].mxu0 %v6051_v38 }
 0xd5f   : > { %v7002_v35 = vpop.f32.mrb[0].mxu0 }
 0xd60   : > { %v7003_v2 = vpop.f32.mrb[1].mxu0 }
 0xd61   : > { %v7004_v47 = vadd.f32 %v7003_v2, %v7002_v35  ;;  %v7005_v42 = vpop.f32.mrb[2].mxu0 }
 0xd62   : > { %v7006_v22 = vpop.f32.mrb[3].mxu0 }
 0xd63   : > { %v6217_v51 = vadd.f32 %v7004_v47, %v6085_v15 }
 0xd65   : > { %6222 = vst [vmem:[%s1067_s22] sm:$0x1] %v6217_v51 }
 0xd66 PF: > { %s12675_s0 = sld [smem:[#allocation33_spill]]  ;;  %s12676_s16 = sld [smem:[#allocation44_spill]] }
 0xd67   : > { %s12677_s10 = sld [smem:[#allocation161_spill]]  ;;  %s6236_s19 = sshll.u32 %s1067_s22, 4  ;;  %s6237_s19 = int_to_ptr.vmem [resolvable:$true] %s6236_s19 }
 0xd68   : > { %s6224_s11 = scalar_lea.sflag [#allocation5], %s9142_s29  ;;  %s8374_s5 = scalar_lea.vmem %s6237_s19, 16 }
 0xd69   : > { %p8375_p1 = scmp.ne.s32.totalorder %s6237_s19, %s8374_s5  ;;  %s8537_s12 = smov [#allocation18]  }
 0xd6a   : > { %s8378_s14 = sshll.u32 %s8537_s12, 4  ;;  %s8379_s14 = int_to_ptr.vmem [resolvable:$false] %s8378_s14 }
 0xd6b   : > { %s8380_s2 = scalar_lea.vmem %s8379_s14, 32  ;;  %p8381_p0 = scmp.lt.s32.totalorder %s6237_s19, %s8379_s14 }
 0xd6c   : > { %s6912_s13 = sshll.u32 %s12675_s0, 4  ;;  %p12678_p4 = scmp.ne.s32.totalorder %s12676_s16, 0 }
 0xd6d   : > { %s12153_s26 = scalar_lea.hbm %s12677_s10, %s6912_s13  ;;  %p8382_p7 = scmp.lt.s32.totalorder %s8380_s2, %s8374_s5 }
 0xd6e   : > { %p8376_p6 = pnand %p8375_p1, %p12678_p4 }
 0xd6f   : > { %p8383_p3 = por %p8382_p7, %p8381_p0 }
 0xd70   : > { %p8377_p5 = pneg %p8376_p6 }
 0xd72   : > { %p8384_p11 = pnand %p8383_p3, %p8377_p5 }
 0xd74   : > { %8387 = shalt.err (!%p8384_p11)
}
 0xd75   : > { %s8388_s29 = scalar_lea.hbm %s12153_s26, 16  ;;  %s8392_s6 = scalar_lea.hbm %s12677_s10, 32 }
 0xd76   : > { %p8389_p10 = scmp.ne.s32.totalorder %s12153_s26, %s8388_s29  ;;  %p8393_p2 = scmp.lt.u32.totalorder %s12153_s26, %s12677_s10 }
 0xd77   : > { %p8394_p13 = scmp.lt.u32.totalorder %s8392_s6, %s8388_s29  ;;  %p8396_p1 = scmp.lt.u32.totalorder %s8388_s29, %s12153_s26 }
 0xd78   : > { %p8390_p8 = pnand %p8389_p10, %p12678_p4 }
 0xd79   : > { %p8395_p9 = por %p8394_p13, %p8393_p2 }
 0xd7a   : > { %p8391_p12 = pneg %p8390_p8 }
 0xd7b   : > { %p8397_p6 = por %p8396_p1, %p8395_p9 }
 0xd7d   : > { %p8398_p5 = pnand %p8397_p6, %p8391_p12 }
 0xd7f   : > { %8401 = shalt.err (!%p8398_p5)
}
 0xd80   : > { %7220 = dma.vmem_to_hbm [thread:$0]  (%p12678_p4), %s6237_s19, 16, %s12153_s26, %s6224_s11  }
 0xd81 PF: > { %s12679_s15 = sld [smem:[#allocation36_spill]]  ;;  %s12680_s20 = sld [smem:[#allocation29_spill]] }
 0xd82   : > { %s12681_s21 = sld [smem:[#allocation45_spill]] }
 0xd87   : > { %p7258_p0 = scmp.ge.s32.totalorder %s12679_s15, 2  ;;  %s6248_s30 = sand.u32 1, %s12680_s20  }
 0xd88   : > { %p12682_p7 = scmp.ne.s32.totalorder %s12681_s21, 0  ;;  %s6249_s24 = scalar_lea.sflag [#allocation5], %s6248_s30 }
 0xd8a   : > { %p7252_p3 = pnand %p7258_p0, %p12682_p7 }
 0xd8c   : > { %8475 = dma.done.wait (!%p7252_p3), %s6249_s24, 16  }
 0xd8d   : > { %8477 = vsyncadd (!%p7252_p3), %s6249_s24, 4294967280  ;;  %s48_s4 = sadd.s32 1, %s12679_s15   ;;  %s12683_s1 = sld [smem:[#allocation27_spill]] }
 0xd8e   : > { %p45_p11 = scmp.ge.s32.totalorder %s48_s4, 6   ;;  %s12684_s22 = sld [smem:[#allocation28_spill]] }
 0xd8f   : > { %s12685_s23 = sld [smem:[#allocation42_spill]]  ;;  %s12686_s24 = sld [smem:[#allocation30_spill]] }
 0xd90   : > { %s12687_s2 = sld [smem:[#allocation31_spill]]  ;;  %s12688_s25 = sld [smem:[#allocation43_spill]] }
 0xd91   : > { %s12689_s3 = sld [smem:[#allocation34_spill]]  ;;  %s12690_s26 = sld [smem:[#allocation35_spill]] }
 0xd92   : > { %s12691_s27 = sld [smem:[#allocation39_spill]]  ;;  %s12692_s28 = sld [smem:[#allocation41_spill]] }
 0xd93   :  { %47 = sbr.rel (!%p45_p11) target bundleno = 39 (0x27), region = 272 }
 0xd9a   :  { %6253 = vsyncpa [#allocation4], 1 }
 0xd9b   :  { %6255 = vsyncpa [#allocation4 + $0x1], 1 }
 0xd9c   :  { %6256 = vsyncpa [#allocation7], 1 }
 0xd9d   :  { %6258 = vsyncpa [#allocation7 + $0x1], 1 }
 0xd9e   :  { %6259 = vsyncpa [#allocation10], 1 }
 0xd9f   :  { %6261 = vsyncpa [#allocation10 + $0x1], 1 }
 0xda0   :  { %6262 = vsyncpa [#allocation13], 1 }
 0xda1   :  { %6264 = vsyncpa [#allocation13 + $0x1], 1 }
 0xda2   :  { %6265 = vsyncpa [#allocation16], 1 }
 0xda3   :  { %6267 = vsyncpa [#allocation16 + $0x1], 1 }
 0xda4   :  { %6268 = vsyncpa [#allocation5], 1 }
 0xda5   :  { %6270 = vsyncpa [#allocation5 + $0x1], 1 }

</bundles_post_ra>
